<compile_context>
chip_gen: v5e
topology: v5e:2x2
jax: 0.10.0
libtpu: 0.0.40
codegen_flags: <defaults>
</compile_context>

<pallas_src>
import jax
import jax.numpy as jnp
from jax.experimental import pallas as pl
from jax.experimental.pallas import tpu as pltpu

INPUT_SIZE = 784
HIDDEN_SIZE = 500
NUM_CLASSES = 10

# Lane-aligned padded dims (multiples of 128) and batch tile.
IN_PAD = 896      # 7 * 128
HID_PAD = 512     # 4 * 128
OUT_PAD = 128     # 1 * 128
TM = 256          # batch tile; fits easily in 32 MiB scoped VMEM on all chips


def ffn_kernel(x_ref, w1_ref, b1_ref, w2_ref, b2_ref, o_ref):
    # fc1: (TM, IN_PAD)bf16 @ (IN_PAD, HID_PAD)bf16 -> f32 accumulation on MXU
    h = jnp.dot(x_ref[...], w1_ref[...], preferred_element_type=jnp.float32)
    # bias + ReLU ride in otherwise-idle VPU slots
    h = jnp.maximum(h + b1_ref[...], 0.0)
    # fc2: (TM, HID_PAD)bf16 @ (HID_PAD, OUT_PAD)bf16 -> f32
    out = jnp.dot(h.astype(jnp.bfloat16), w2_ref[...],
                  preferred_element_type=jnp.float32)
    # lane-dense (TM, 128) unmasked store
    o_ref[...] = (out + b2_ref[...]).astype(o_ref.dtype)


def _pad_to(a, shape):
    pads = [(0, t - s) for s, t in zip(a.shape, shape)]
    return jnp.pad(a, pads)


def ffn_forward(x, w1, b1, w2, b2):
    """x: (B, 784) f32; w1: (784, 500); b1: (1, 500); w2: (500, 10); b2: (1, 10)."""
    B = x.shape[0]
    b_pad = pl.cdiv(B, TM) * TM
    grid = (b_pad // TM,)

    # Zero-pad to lane-aligned shapes; compute-carrying tensors -> bf16.
    x_p = _pad_to(x, (b_pad, IN_PAD)).astype(jnp.bfloat16)
    w1_p = _pad_to(w1, (IN_PAD, HID_PAD)).astype(jnp.bfloat16)
    b1_p = _pad_to(b1, (1, HID_PAD)).astype(jnp.float32)
    w2_p = _pad_to(w2, (HID_PAD, OUT_PAD)).astype(jnp.bfloat16)
    b2_p = _pad_to(b2, (1, OUT_PAD)).astype(jnp.float32)

    cost = pl.CostEstimate(
        flops=2 * b_pad * (IN_PAD * HID_PAD + HID_PAD * OUT_PAD),
        transcendentals=0,
        bytes_accessed=(x_p.size * 2 + w1_p.size * 2 + w2_p.size * 2
                        + b1_p.size * 4 + b2_p.size * 4 + b_pad * OUT_PAD * 4),
    )

    out_padded = pl.pallas_call(
        ffn_kernel,
        out_shape=jax.ShapeDtypeStruct((b_pad, OUT_PAD), jnp.float32),
        grid_spec=pltpu.PrefetchScalarGridSpec(
            num_scalar_prefetch=0,
            grid=grid,
            in_specs=[
                # x: tiled over batch, pipelined
                pl.BlockSpec((TM, IN_PAD), lambda i: (i, 0)),
                # weights/biases: constant index_map -> resident in VMEM
                pl.BlockSpec((IN_PAD, HID_PAD), lambda i: (0, 0)),
                pl.BlockSpec((1, HID_PAD), lambda i: (0, 0)),
                pl.BlockSpec((HID_PAD, OUT_PAD), lambda i: (0, 0)),
                pl.BlockSpec((1, OUT_PAD), lambda i: (0, 0)),
            ],
            out_specs=pl.BlockSpec((TM, OUT_PAD), lambda i: (i, 0)),
        ),
        compiler_params=pltpu.CompilerParams(
            dimension_semantics=("parallel",),   # shards batch across 2 TCs on v7x
            vmem_limit_bytes=32 * 1024 * 1024,
        ),
        cost_estimate=cost,
    )(x_p, w1_p, b1_p, w2_p, b2_p)

    # Strip batch padding and the lane-padding of the logits.
    return out_padded[:B, :NUM_CLASSES]


def init_params(key):
    # Deterministic synthetic init (PyTorch-Linear-style uniform bounds),
    # stored as (in, out) — transpose of PyTorch's (out, in).
    k1, k2, k3, k4 = jax.random.split(key, 4)
    bound1 = 1.0 / (INPUT_SIZE ** 0.5)
    bound2 = 1.0 / (HIDDEN_SIZE ** 0.5)
    w1 = jax.random.uniform(k1, (INPUT_SIZE, HIDDEN_SIZE), jnp.float32, -bound1, bound1)
    b1 = jax.random.uniform(k2, (1, HIDDEN_SIZE), jnp.float32, -bound1, bound1)
    w2 = jax.random.uniform(k3, (HIDDEN_SIZE, NUM_CLASSES), jnp.float32, -bound2, bound2)
    b2 = jax.random.uniform(k4, (1, NUM_CLASSES), jnp.float32, -bound2, bound2)
    return w1, b1, w2, b2


if __name__ == "__main__":
    key = jax.random.PRNGKey(0)
    kx, kp = jax.random.split(key)
    batch = 8
    x = jax.random.normal(kx, (batch, INPUT_SIZE), jnp.float32)
    w1, b1, w2, b2 = init_params(kp)

    out = ffn_forward(x, w1, b1, w2, b2)
    out = jax.block_until_ready(out)
    assert out.shape == (batch, NUM_CLASSES)

    # Reference with the same bf16 quantization of x / weights as the kernel.
    q = lambda a: a.astype(jnp.bfloat16).astype(jnp.float32)
    h_ref = jnp.maximum(q(x) @ q(w1) + b1, 0.0)
    ref_bf16 = q(h_ref) @ q(w2) + b2
    assert jnp.allclose(out, ref_bf16, atol=5e-3, rtol=5e-3)

    # Loose sanity check against the pure-f32 math of the PyTorch module.
    ref_f32 = jnp.maximum(x @ w1 + b1, 0.0) @ w2 + b2
    assert jnp.allclose(out, ref_f32, atol=5e-2, rtol=5e-2)

    print("KERNEL_OK")
</pallas_src>

<mosaic_0001>
module attributes {stable_mosaic.version = 11 : i64} {
  func.func @ffn_kernel(%arg0: i32, %arg1: memref<256x896xbf16, #tpu.memory_space<vmem>>, %arg2: memref<896x512xbf16, #tpu.memory_space<vmem>>, %arg3: memref<1x512xf32, #tpu.memory_space<vmem>>, %arg4: memref<512x128xbf16, #tpu.memory_space<vmem>>, %arg5: memref<1x128xf32, #tpu.memory_space<vmem>>, %arg6: memref<256x128xf32, #tpu.memory_space<vmem>>) attributes {dimension_semantics = [#tpu.dimension_semantics<parallel>], iteration_bounds = array<i64: 1>, scalar_prefetch = 0 : i64, scratch_operands = 0 : i64, tpu.core_type = #tpu.core_type<tc>, window_params = [{transform_indices = @transform_0, window_bounds = array<i64: 256, 896>}, {pipeline_mode = #tpu.pipeline_mode<synchronous>, transform_indices = @transform_1, window_bounds = array<i64: 896, 512>}, {pipeline_mode = #tpu.pipeline_mode<synchronous>, transform_indices = @transform_2, window_bounds = array<i64: 1, 512>}, {pipeline_mode = #tpu.pipeline_mode<synchronous>, transform_indices = @transform_3, window_bounds = array<i64: 512, 128>}, {pipeline_mode = #tpu.pipeline_mode<synchronous>, transform_indices = @transform_4, window_bounds = array<i64: 1, 128>}, {transform_indices = @transform_5, window_bounds = array<i64: 256, 128>}]} {
    %c0 = arith.constant 0 : index
    %c0_0 = arith.constant 0 : index
    %0 = vector.load %arg1[%c0, %c0_0] : memref<256x896xbf16, #tpu.memory_space<vmem>>, vector<256x896xbf16>
    %c0_1 = arith.constant 0 : index
    %c0_2 = arith.constant 0 : index
    %1 = vector.load %arg2[%c0_1, %c0_2] : memref<896x512xbf16, #tpu.memory_space<vmem>>, vector<896x512xbf16>
    %cst = arith.constant dense<0.000000e+00> : vector<256x512xf32>
    %2 = tpu.matmul %0, %1, %cst {dimension_numbers = #tpu.dot_dimension_numbers<[1], [0], [0], [1], [0, 0, 1, 1], [], []>} : vector<256x896xbf16>, vector<896x512xbf16>, vector<256x512xf32> -> vector<256x512xf32>
    %c0_3 = arith.constant 0 : index
    %c0_4 = arith.constant 0 : index
    %3 = vector.load %arg3[%c0_3, %c0_4] : memref<1x512xf32, #tpu.memory_space<vmem>>, vector<1x512xf32>
    %4 = vector.broadcast %3 : vector<1x512xf32> to vector<256x512xf32>
    %5 = arith.addf %2, %4 : vector<256x512xf32>
    %cst_5 = arith.constant 0.000000e+00 : f32
    %6 = vector.broadcast %cst_5 : f32 to vector<256x512xf32>
    %7 = arith.maximumf %5, %6 : vector<256x512xf32>
    %8 = arith.truncf %7 : vector<256x512xf32> to vector<256x512xbf16>
    %c0_6 = arith.constant 0 : index
    %c0_7 = arith.constant 0 : index
    %9 = vector.load %arg4[%c0_6, %c0_7] : memref<512x128xbf16, #tpu.memory_space<vmem>>, vector<512x128xbf16>
    %cst_8 = arith.constant dense<0.000000e+00> : vector<256x128xf32>
    %10 = tpu.matmul %8, %9, %cst_8 {dimension_numbers = #tpu.dot_dimension_numbers<[1], [0], [0], [1], [0, 0, 1, 1], [], []>} : vector<256x512xbf16>, vector<512x128xbf16>, vector<256x128xf32> -> vector<256x128xf32>
    %c0_9 = arith.constant 0 : index
    %c0_10 = arith.constant 0 : index
    %11 = vector.load %arg5[%c0_9, %c0_10] : memref<1x128xf32, #tpu.memory_space<vmem>>, vector<1x128xf32>
    %12 = vector.broadcast %11 : vector<1x128xf32> to vector<256x128xf32>
    %13 = arith.addf %10, %12 : vector<256x128xf32>
    %c0_11 = arith.constant 0 : index
    %c0_12 = arith.constant 0 : index
    %14 = vector.load %arg6[%c0_11, %c0_12] : memref<256x128xf32, #tpu.memory_space<vmem>>, vector<256x128xf32>
    tpu.vector_store %arg6[%c0_11, %c0_12], %13 {strides = array<i32>} : memref<256x128xf32, #tpu.memory_space<vmem>>, vector<256x128xf32>,
    return
  }
  func.func @transform_0(%arg0: i32) -> (i32, i32) {
    %c0_i32 = arith.constant 0 : i32
    %c0_i32_0 = arith.constant 0 : i32
    return %arg0, %c0_i32 : i32, i32
  }
  func.func @transform_1(%arg0: i32) -> (i32, i32) {
    %c0_i32 = arith.constant 0 : i32
    %c0_i32_0 = arith.constant 0 : i32
    %c0_i32_1 = arith.constant 0 : i32
    return %c0_i32, %c0_i32_0 : i32, i32
  }
  func.func @transform_2(%arg0: i32) -> (i32, i32) {
    %c0_i32 = arith.constant 0 : i32
    %c0_i32_0 = arith.constant 0 : i32
    %c0_i32_1 = arith.constant 0 : i32
    return %c0_i32, %c0_i32_0 : i32, i32
  }
  func.func @transform_3(%arg0: i32) -> (i32, i32) {
    %c0_i32 = arith.constant 0 : i32
    %c0_i32_0 = arith.constant 0 : i32
    %c0_i32_1 = arith.constant 0 : i32
    return %c0_i32, %c0_i32_0 : i32, i32
  }
  func.func @transform_4(%arg0: i32) -> (i32, i32) {
    %c0_i32 = arith.constant 0 : i32
    %c0_i32_0 = arith.constant 0 : i32
    %c0_i32_1 = arith.constant 0 : i32
    return %c0_i32, %c0_i32_0 : i32, i32
  }
  func.func @transform_5(%arg0: i32) -> (i32, i32) {
    %c0_i32 = arith.constant 0 : i32
    %c0_i32_0 = arith.constant 0 : i32
    return %arg0, %c0_i32 : i32, i32
  }
}

</mosaic_0001>

<bundles_post_ra>
// kernel: tpu_custom_call.1
= control target key start
LH: loop header
LB: loop body
LE: loop exit
PB: predicated region body
PF: predicated region fallthrough
CT: control target
= control target key end

     0   :  { %10 = vsyncpa [#allocation3], 0  ;;  %s9152_s0 = inlined_call_operand.hbm [shape: bf16[256,896], index: 0, kind: input, shape index: {}]   ;;  %s9153_s1 = inlined_call_operand.hbm [shape: bf16[896,512], index: 1, kind: input, shape index: {}]   ;;  %s9154_s2 = inlined_call_operand.hbm [shape: f32[1,512], index: 2, kind: input, shape index: {}]   ;;  %s9155_s3 = inlined_call_operand.hbm [shape: bf16[512,128], index: 3, kind: input, shape index: {}]   ;;  %s9156_s4 = inlined_call_operand.vmem [shape: f32[1,128], index: 4, kind: input, shape index: {}]   ;;  %s9157_s5 = inlined_call_operand.hbm [shape: f32[256,128], index: 5, kind: output, shape index: {}]  }
   0x1   :  { %11 = vsyncpa [#allocation6], 0 }
   0x2   :  { %12 = vsyncpa [#allocation9], 0  ;;  %s31_s20 = sshll.u32 %s9153_s1, 4  ;;  %s32_s20 = int_to_ptr.hbm [resolvable:$true] %s31_s20 }
   0x3   :  { %13 = vsyncpa [#allocation4], 0  ;;  %s7477_s21 = smov [#allocation5]   ;;  %s18_s25 = sshll.u32 %s9152_s0, 4  ;;  %s19_s25 = int_to_ptr.hbm [resolvable:$true] %s18_s25 }
   0x4   :  { %s33_s22 = sshll.u32 %s7477_s21, 4  ;;  %s7478_s26 = smov 256   ;;  %s34_s22 = int_to_ptr.vmem [resolvable:$true] %s33_s22 }
   0x5   :  { %s7479_s27 = smov 16   ;;  %s7480_s28 = smov [#allocation2]  }
   0x6   :  { %39 = dma.hbm_to_vmem [thread:$0]  %s32_s20, 28672, %s34_s22, [#allocation6], %s7478_s26, %s7478_s26, %s7479_s27  }
   0x7   :  { %s20_s29 = sshll.u32 %s7480_s28, 4  ;;  %s7481_s30 = smov 448   ;;  %s21_s29 = int_to_ptr.vmem [resolvable:$true] %s20_s29 }
   0x8   :  { %s7482_s6 = smov 28   ;;  %s45_s8 = sshll.u32 %s9154_s2, 4  ;;  %s46_s8 = int_to_ptr.hbm [resolvable:$true] %s45_s8 }
   0x9   :  { %26 = dma.hbm_to_vmem [thread:$0]  %s19_s25, 14336, %s21_s29, [#allocation3], %s7481_s30, %s7481_s30, %s7482_s6  }
   0xa   :  { %s7483_s9 = smov [#allocation7]   ;;  %s55_s12 = sshll.u32 %s9155_s3, 4  ;;  %s56_s12 = int_to_ptr.hbm [resolvable:$true] %s55_s12 }
   0xb   :  { %s47_s10 = sshll.u32 %s7483_s9, 4  ;;  %s7484_s13 = smov [#allocation8]   ;;  %s48_s10 = int_to_ptr.vmem [resolvable:$true] %s47_s10 }
   0xc   :  { %50 = dma.hbm_to_vmem [thread:$0]  %s46_s8, 64, %s48_s10, [#allocation6]  }
   0xd   :  { %s57_s14 = sshll.u32 %s7484_s13, 4  ;;  %s7485_s15 = smov 64   ;;  %s58_s14 = int_to_ptr.vmem [resolvable:$true] %s57_s14 }
   0xe   :  { %s7486_s16 = smov 4  }
   0xf   :  { %63 = dma.hbm_to_vmem [thread:$0]  %s56_s12, 4096, %s58_s14, [#allocation9], %s7485_s15, %s7485_s15, %s7486_s16  }
  0x10   :  { %7469 = dma.done.wait [#allocation3], 14336  }
  0x11   :  { %7470 = vsyncadd [#allocation3], 4294952960 }
  0x12   :  { %7471 = dma.done.wait [#allocation6], 28736  }
  0x13   :  { %7472 = vsyncadd [#allocation6], 4294938560 }
  0x14   :  { %7473 = dma.done.wait [#allocation9], 4096  }
  0x15   :  { %7474 = vsyncadd [#allocation9], 4294963200  ;;  %v6055_v0 = vld [vmem:[#allocation5 + $0xe0] sm:$0xf]  ;;  %v7107_v1 = vld [vmem:[#allocation5 + $0xec] sm:$0xf0] }
  0x16   :  { %v6183_v2 = vld [vmem:[#allocation5 + $0x1e0] sm:$0xf]  ;;  %v6056_v3 = vor.u32 %v7107_v1, %v6055_v0  ;;  %v7139_v4 = vld [vmem:[#allocation5 + $0x1ec] sm:$0xf0]  ;;  %s5478_s20 = sshll.u32 %s9157_s5, 4  ;;  %s7488_s21 = smov 128   ;;  %s5479_s20 = int_to_ptr.hbm [resolvable:$true] %s5478_s20 }
  0x17   :  { %v6311_v5 = vld [vmem:[#allocation5 + $0x2e0] sm:$0xf]  ;;  %v7171_v6 = vld [vmem:[#allocation5 + $0x2ec] sm:$0xf0]  ;;  %v6184_v7 = vor.u32 %v7139_v4, %v6183_v2  ;;  %s7489_s22 = smov 8  }
  0x18   :  { %v6312_v8 = vor.u32 %v7171_v6, %v6311_v5  ;;  %v6439_v9 = vld [vmem:[#allocation5 + $0x3e0] sm:$0xf]  ;;  %v7203_v10 = vld [vmem:[#allocation5 + $0x3ec] sm:$0xf0]  ;;  %2140 = vmatpush.bf16.msra.mxu0 %v6056_v3 }
  0x19   :  { %v6039_v11 = vld [vmem:[#allocation5 + $0xc0] sm:$0xf]  ;;  %v6440_v12 = vor.u32 %v7203_v10, %v6439_v9  ;;  %v7103_v13 = vld [vmem:[#allocation5 + $0xcc] sm:$0xf0]  ;;  %2229 = vmatpush.bf16.msra.mxu1 %v6184_v7 }
  0x1a   :  { %v6167_v14 = vld [vmem:[#allocation5 + $0x1c0] sm:$0xf]  ;;  %v7135_v15 = vld [vmem:[#allocation5 + $0x1cc] sm:$0xf0]  ;;  %2318 = vmatpush.bf16.msra.mxu2 %v6312_v8  ;;  %v6040_v16 = vor.u32 %v7103_v13, %v6039_v11 }
  0x1b   :  { %v6168_v17 = vor.u32 %v7135_v15, %v6167_v14  ;;  %v6295_v18 = vld [vmem:[#allocation5 + $0x2c0] sm:$0xf]  ;;  %v7167_v19 = vld [vmem:[#allocation5 + $0x2cc] sm:$0xf0]  ;;  %2407 = vmatpush.bf16.msra.mxu3 %v6440_v12 }
  0x1c   :  { %v6423_v20 = vld [vmem:[#allocation5 + $0x3c0] sm:$0xf]  ;;  %v6296_v21 = vor.u32 %v7167_v19, %v6295_v18  ;;  %v7199_v22 = vld [vmem:[#allocation5 + $0x3cc] sm:$0xf0]  ;;  %2141 = vmatpush.bf16.msra.mxu0 %v6040_v16 }
  0x1d   :  { %v6023_v23 = vld [vmem:[#allocation5 + $0xa0] sm:$0xf]  ;;  %v7099_v24 = vld [vmem:[#allocation5 + $0xac] sm:$0xf0]  ;;  %v6424_v25 = vor.u32 %v7199_v22, %v6423_v20  ;;  %2230 = vmatpush.bf16.msra.mxu1 %v6168_v17 }
  0x1e   :  { %v6151_v26 = vld [vmem:[#allocation5 + $0x1a0] sm:$0xf]  ;;  %v7131_v27 = vld [vmem:[#allocation5 + $0x1ac] sm:$0xf0]  ;;  %v6024_v29 = vor.u32 %v7099_v24, %v6023_v23  ;;  %2319 = vmatpush.bf16.msra.mxu2 %v6296_v21 }
  0x1f   :  { %v6279_v28 = vld [vmem:[#allocation5 + $0x2a0] sm:$0xf]  ;;  %v7163_v30 = vld [vmem:[#allocation5 + $0x2ac] sm:$0xf0]  ;;  %v6152_v33 = vor.u32 %v7131_v27, %v6151_v26  ;;  %2408 = vmatpush.bf16.msra.mxu3 %v6424_v25 }
  0x20   :  { %v6407_v31 = vld [vmem:[#allocation5 + $0x3a0] sm:$0xf]  ;;  %v7195_v32 = vld [vmem:[#allocation5 + $0x3ac] sm:$0xf0]  ;;  %v6280_v34 = vor.u32 %v7163_v30, %v6279_v28  ;;  %2142 = vmatpush.bf16.msra.mxu0 %v6024_v29  ;;  %v6968_v29 = vld [vmem:[#allocation2 + $0x18] sm:$0xf0] }
  0x21   :  { %v6007_v35 = vld [vmem:[#allocation5 + $0x80] sm:$0xf]  ;;  %v7095_v36 = vld [vmem:[#allocation5 + $0x8c] sm:$0xf0]  ;;  %v6408_v38 = vor.u32 %v7195_v32, %v6407_v31  ;;  %2231 = vmatpush.bf16.msra.mxu1 %v6152_v33  ;;  %v6965_v30 = vld [vmem:[#allocation2 + $0x4] sm:$0xf] }
  0x22   :  { %v6135_v37 = vld [vmem:[#allocation5 + $0x180] sm:$0xf]  ;;  %v7127_v39 = vld [vmem:[#allocation5 + $0x18c] sm:$0xf0]  ;;  %v6008_v44 = vor.u32 %v7095_v36, %v6007_v35  ;;  %2320 = vmatpush.bf16.msra.mxu2 %v6280_v34  ;;  %v7105_v35 = vld [vmem:[#allocation5 + $0xe4] sm:$0xf] }
  0x23   :  { %v6263_v40 = vld [vmem:[#allocation5 + $0x280] sm:$0xf]  ;;  %v7159_v41 = vld [vmem:[#allocation5 + $0x28c] sm:$0xf0]  ;;  %v6136_v45 = vor.u32 %v7127_v39, %v6135_v37  ;;  %2409 = vmatpush.bf16.msra.mxu3 %v6408_v38  ;;  %v6057_v36 = vld [vmem:[#allocation5 + $0xf0] sm:$0xf0] }
  0x24   :  { %v6391_v42 = vld [vmem:[#allocation5 + $0x380] sm:$0xf]  ;;  %v7191_v43 = vld [vmem:[#allocation5 + $0x38c] sm:$0xf0]  ;;  %v6264_v46 = vor.u32 %v7159_v41, %v6263_v40  ;;  %2143 = vmatpush.bf16.msra.mxu0 %v6008_v44  ;;  %v5503_v39 = vld [vmem:[#allocation2 + $0x8] sm:$0xf] }
  0x25   :  { %v5991_v47 = vld [vmem:[#allocation5 + $0x60] sm:$0xf]  ;;  %v7091_v48 = vld [vmem:[#allocation5 + $0x6c] sm:$0xf0]  ;;  %v6392_v50 = vor.u32 %v7191_v43, %v6391_v42  ;;  %2232 = vmatpush.bf16.msra.mxu1 %v6136_v45  ;;  %v6969_v40 = vld [vmem:[#allocation2 + $0x20] sm:$0xf0] }
  0x26   :  { %v6119_v49 = vld [vmem:[#allocation5 + $0x160] sm:$0xf]  ;;  %v7123_v51 = vld [vmem:[#allocation5 + $0x16c] sm:$0xf0]  ;;  %v5992_v56 = vor.u32 %v7091_v48, %v5991_v47  ;;  %2321 = vmatpush.bf16.msra.mxu2 %v6264_v46  ;;  %v6966_v41 = vld [vmem:[#allocation2 + $0xc] sm:$0xf]  ;;  %v6060_v48 = vor.u32 %v7105_v35, %v6057_v36 }
  0x27   :  { %v6247_v52 = vld [vmem:[#allocation5 + $0x260] sm:$0xf]  ;;  %v7155_v53 = vld [vmem:[#allocation5 + $0x26c] sm:$0xf0]  ;;  %v6120_v57 = vor.u32 %v7123_v51, %v6119_v49  ;;  %2410 = vmatpush.bf16.msra.mxu3 %v6392_v50  ;;  %v5505_v43 = vld [vmem:[#allocation2 + $0x24] sm:$0xf0] }
  0x28   :  { %v6375_v54 = vld [vmem:[#allocation5 + $0x360] sm:$0xf]  ;;  %v7187_v55 = vld [vmem:[#allocation5 + $0x36c] sm:$0xf0]  ;;  %v6248_v58 = vor.u32 %v7155_v53, %v6247_v52  ;;  %2144 = vmatpush.bf16.msra.mxu0 %v5992_v56  ;;  %v7536_v52 = vor.u32 %v6969_v40, %v5503_v39  ;;  %v7538_v53 = vor.u32 %v6966_v41, %v5505_v43  ;;  %v5579_v40 = vld [vmem:[#allocation2 + $0xa8] sm:$0xf] }
  0x29   :  { %v5975_v59 = vld [vmem:[#allocation5 + $0x40] sm:$0xf]  ;;  %v7087_v60 = vld [vmem:[#allocation5 + $0x4c] sm:$0xf0]  ;;  %v6376_v62 = vor.u32 %v7187_v55, %v6375_v54  ;;  %2233 = vmatpush.bf16.msra.mxu1 %v6120_v57  ;;  %v6989_v41 = vld [vmem:[#allocation2 + $0xc0] sm:$0xf0] }
  0x2a   :  { %v6103_v61 = vld [vmem:[#allocation5 + $0x140] sm:$0xf]  ;;  %v7119_v63 = vld [vmem:[#allocation5 + $0x14c] sm:$0xf0]  ;;  %v5976_v4 = vor.u32 %v7087_v60, %v5975_v59  ;;  %2322 = vmatpush.bf16.msra.mxu2 %v6248_v58  ;;  %9409 = vst [vmem:[#allocation17_spill] sm:$0xff] %v7536_v52 }
  0x2b   :  { %v6231_v0 = vld [vmem:[#allocation5 + $0x240] sm:$0xf]  ;;  %v7151_v1 = vld [vmem:[#allocation5 + $0x24c] sm:$0xf0]  ;;  %v6104_v5 = vor.u32 %v7119_v63, %v6103_v61  ;;  %2411 = vmatpush.bf16.msra.mxu3 %v6376_v62  ;;  %9410 = vst [vmem:[#allocation18_spill] sm:$0xff] %v7538_v53 }
  0x2c   :  { %v6359_v2 = vld [vmem:[#allocation5 + $0x340] sm:$0xf]  ;;  %v7183_v3 = vld [vmem:[#allocation5 + $0x34c] sm:$0xf0]  ;;  %v6232_v6 = vor.u32 %v7151_v1, %v6231_v0  ;;  %2145 = vmatpush.bf16.msra.mxu0 %v5976_v4  ;;  %v7101_v61 = vld [vmem:[#allocation5 + $0xc4] sm:$0xf] }
  0x2d   :  { %v5959_v7 = vld [vmem:[#allocation5 + $0x20] sm:$0xf]  ;;  %v7083_v8 = vld [vmem:[#allocation5 + $0x2c] sm:$0xf0]  ;;  %v6360_v10 = vor.u32 %v7183_v3, %v6359_v2  ;;  %2234 = vmatpush.bf16.msra.mxu1 %v6104_v5  ;;  %v6041_v62 = vld [vmem:[#allocation5 + $0xd0] sm:$0xf0] }
  0x2e   :  { %v6087_v9 = vld [vmem:[#allocation5 + $0x120] sm:$0xf]  ;;  %v7115_v11 = vld [vmem:[#allocation5 + $0x12c] sm:$0xf0]  ;;  %v5960_v17 = vor.u32 %v7083_v8, %v5959_v7  ;;  %2323 = vmatpush.bf16.msra.mxu2 %v6232_v6  ;;  %v6044_v0 = vor.u32 %v7101_v61, %v6041_v62  ;;  %v5523_v4 = vld [vmem:[#allocation2 + $0x38] sm:$0xf] }
  0x2f   :  { %v6215_v12 = vld [vmem:[#allocation5 + $0x220] sm:$0xf]  ;;  %v7147_v13 = vld [vmem:[#allocation5 + $0x22c] sm:$0xf0]  ;;  %v6088_v21 = vor.u32 %v7115_v11, %v6087_v9  ;;  %2412 = vmatpush.bf16.msra.mxu3 %v6360_v10  ;;  %v6975_v5 = vld [vmem:[#allocation2 + $0x50] sm:$0xf0] }
  0x30   :  { %v6343_v14 = vld [vmem:[#allocation5 + $0x320] sm:$0xf]  ;;  %v7179_v15 = vld [vmem:[#allocation5 + $0x32c] sm:$0xf0]  ;;  %v6216_v22 = vor.u32 %v7147_v13, %v6215_v12  ;;  %2146 = vmatpush.bf16.msra.mxu0 %v5960_v17  ;;  %v6972_v6 = vld [vmem:[#allocation2 + $0x3c] sm:$0xf]  ;;  %v7544_v12 = vor.u32 %v6975_v5, %v5523_v4 }
  0x31   :  { %v5943_v16 = vld [vmem:[#allocation5] sm:$0xf]  ;;  %v7079_v18 = vld [vmem:[#allocation5 + $0xc] sm:$0xf0]  ;;  %v6344_v26 = vor.u32 %v7179_v15, %v6343_v14  ;;  %2235 = vmatpush.bf16.msra.mxu1 %v6088_v21  ;;  %v5525_v7 = vld [vmem:[#allocation2 + $0x54] sm:$0xf0] }
  0x32   :  { %v6071_v19 = vld [vmem:[#allocation5 + $0x100] sm:$0xf]  ;;  %v7111_v20 = vld [vmem:[#allocation5 + $0x10c] sm:$0xf0]  ;;  %v5944_v33 = vor.u32 %v7079_v18, %v5943_v16  ;;  %2324 = vmatpush.bf16.msra.mxu2 %v6216_v22  ;;  %v6976_v9 = vld [vmem:[#allocation2 + $0x58] sm:$0xf0]  ;;  %v7546_v13 = vor.u32 %v6972_v6, %v5525_v7 }
  0x33   :  { %v6199_v23 = vld [vmem:[#allocation5 + $0x200] sm:$0xf]  ;;  %v7143_v24 = vld [vmem:[#allocation5 + $0x20c] sm:$0xf0]  ;;  %v6072_v37 = vor.u32 %v7111_v20, %v6071_v19  ;;  %2413 = vmatpush.bf16.msra.mxu3 %v6344_v26  ;;  %v6973_v10 = vld [vmem:[#allocation2 + $0x44] sm:$0xf] }
  0x34   :  { %v6327_v25 = vld [vmem:[#allocation5 + $0x300] sm:$0xf]  ;;  %v7175_v27 = vld [vmem:[#allocation5 + $0x30c] sm:$0xf0]  ;;  %v6200_v38 = vor.u32 %v7143_v24, %v6199_v23  ;;  %2147 = vmatpush.bf16.msra.mxu0 %v5944_v33  ;;  %9411 = vst [vmem:[#allocation19_spill] sm:$0xff] %v7544_v12 }
  0x35   :  { %v5495_v28 = vld [vmem:[#allocation2] sm:$0xf]  ;;  %v7299_v32 = vld [vmem:[#allocation5 + $0x6ec] sm:$0xf0]  ;;  %v6328_v42 = vor.u32 %v7175_v27, %v6327_v25  ;;  %2236 = vmatpush.bf16.msra.mxu1 %v6072_v37  ;;  %9412 = vst [vmem:[#allocation20_spill] sm:$0xff] %v7546_v13 }
  0x36   :  { %v6823_v31 = vld [vmem:[#allocation5 + $0x6e0] sm:$0xf]  ;;  %v7235_v46 = vld [vmem:[#allocation5 + $0x4ec] sm:$0xf0]  ;;  %v7532_v47 = vor.u32 %v6968_v29, %v5495_v28  ;;  %2325 = vmatpush.bf16.msra.mxu2 %v6200_v38  ;;  %v6982_v17 = vld [vmem:[#allocation2 + $0x88] sm:$0xf0] }
  0x37   :  { %v5497_v34 = vld [vmem:[#allocation2 + $0x1c] sm:$0xf0]  ;;  %v6824_v44 = vor.u32 %v7299_v32, %v6823_v31  ;;  %v7267_v50 = vld [vmem:[#allocation5 + $0x5ec] sm:$0xf0]  ;;  %2414 = vmatpush.bf16.msra.mxu3 %v6328_v42  ;;  %v6979_v18 = vld [vmem:[#allocation2 + $0x74] sm:$0xf] }
  0x38   :  { %v6567_v45 = vld [vmem:[#allocation5 + $0x4e0] sm:$0xf]  ;;  %9407 = vst [vmem:[#allocation15_spill] sm:$0xff] %v7532_v47  ;;  %v7534_v51 = vor.u32 %v6965_v30, %v5497_v34  ;;  %2148 = vmatmul.bf16.vlgmr.msra.gmra.mxu0 %v7532_v47  ;;  %v7295_v57 = vld [vmem:[#allocation5 + $0x6cc] sm:$0xf0] }
  0x39   :  { %v6695_v49 = vld [vmem:[#allocation5 + $0x5e0] sm:$0xf]  ;;  %v6568_v54 = vor.u32 %v7235_v46, %v6567_v45  ;;  %2326 = vmatmul.bf16.vlgmr.msra.gmra.mxu2 %v7536_v52  ;;  %v7231_v60 = vld [vmem:[#allocation5 + $0x4cc] sm:$0xf0]  ;;  %v5559_v20 = vld [vmem:[#allocation2 + $0x78] sm:$0xf] }
  0x3a   :  { %9408 = vst [vmem:[#allocation16_spill] sm:$0xff] %v7534_v51  ;;  %2674 = vmatpush.bf16.msrb.mxu2 %v6824_v44  ;;  %v6696_v55 = vor.u32 %v7267_v50, %v6695_v49  ;;  %2237 = vmatmul.bf16.vlgmr.msra.gmra.mxu1 %v7534_v51  ;;  %v6807_v56 = vld [vmem:[#allocation5 + $0x6c0] sm:$0xf]  ;;  %v7263_v2 = vld [vmem:[#allocation5 + $0x5cc] sm:$0xf0]  ;;  %v7568_v49 = vor.u32 %v6989_v41, %v5579_v40 }
  0x3b   :  { %2763 = vmatpush.bf16.msrb.mxu3 %v6060_v48  ;;  %2496 = vmatpush.bf16.msrb.mxu0 %v6568_v54  ;;  %v6551_v58 = vld [vmem:[#allocation5 + $0x4c0] sm:$0xf]  ;;  %v6808_v59 = vor.u32 %v7295_v57, %v6807_v56  ;;  %v5551_v16 = vld [vmem:[#allocation2 + $0x70] sm:$0xf]  ;;  %v6983_v21 = vld [vmem:[#allocation2 + $0x90] sm:$0xf0] }
  0x3c   :  { %2415 = vmatmul.bf16.vlgmr.msra.gmra.mxu3 %v7538_v53  ;;  %2585 = vmatpush.bf16.msrb.mxu1 %v6696_v55  ;;  %v6552_v63 = vor.u32 %v7231_v60, %v6551_v58  ;;  %v6679_v1 = vld [vmem:[#allocation5 + $0x5c0] sm:$0xf]  ;;  %v5553_v19 = vld [vmem:[#allocation2 + $0x8c] sm:$0xf0]  ;;  %v6980_v22 = vld [vmem:[#allocation2 + $0x7c] sm:$0xf]  ;;  %v7556_v24 = vor.u32 %v6982_v17, %v5551_v16  ;;  %v7560_v26 = vor.u32 %v6983_v21, %v5559_v20 }
  0x3d   :  { %v6680_v3 = vor.u32 %v7263_v2, %v6679_v1  ;;  %v5531_v8 = vld [vmem:[#allocation2 + $0x40] sm:$0xf]  ;;  %v5561_v23 = vld [vmem:[#allocation2 + $0x94] sm:$0xf0]  ;;  %v7558_v25 = vor.u32 %v6979_v18, %v5553_v19  ;;  %v7291_v29 = vld [vmem:[#allocation5 + $0x6ac] sm:$0xf0] }
  0x3e   :  { %2675 = vmatpush.bf16.msrb.mxu2 %v6808_v59  ;;  %v5533_v11 = vld [vmem:[#allocation2 + $0x5c] sm:$0xf0]  ;;  %v7548_v14 = vor.u32 %v6976_v9, %v5531_v8  ;;  %9415 = vst [vmem:[#allocation23_spill] sm:$0xff] %v7556_v24  ;;  %v7562_v27 = vor.u32 %v6980_v22, %v5561_v23  ;;  %v7227_v32 = vld [vmem:[#allocation5 + $0x4ac] sm:$0xf0] }
  0x3f   :  { %2497 = vmatpush.bf16.msrb.mxu0 %v6552_v63  ;;  %2764 = vmatpush.bf16.msrb.mxu3 %v6044_v0  ;;  %v7550_v15 = vor.u32 %v6973_v10, %v5533_v11  ;;  %9416 = vst [vmem:[#allocation24_spill] sm:$0xff] %v7558_v25  ;;  %v6791_v28 = vld [vmem:[#allocation5 + $0x6a0] sm:$0xf]  ;;  %v7097_v33 = vld [vmem:[#allocation5 + $0xa4] sm:$0xf] }
  0x40   :  { %2586 = vmatpush.bf16.msrb.mxu1 %v6680_v3  ;;  %9413 = vst [vmem:[#allocation21_spill] sm:$0xff] %v7548_v14  ;;  %v6535_v30 = vld [vmem:[#allocation5 + $0x4a0] sm:$0xf]  ;;  %v6792_v31 = vor.u32 %v7291_v29, %v6791_v28  ;;  %v6025_v34 = vld [vmem:[#allocation5 + $0xb0] sm:$0xf0] }
  0x41   :  { %9414 = vst [vmem:[#allocation22_spill] sm:$0xff] %v7550_v15  ;;  %v6536_v35 = vor.u32 %v7227_v32, %v6535_v30  ;;  %v6028_v36 = vor.u32 %v7097_v33, %v6025_v34  ;;  %v6663_v37 = vld [vmem:[#allocation5 + $0x5a0] sm:$0xf]  ;;  %v7259_v38 = vld [vmem:[#allocation5 + $0x5ac] sm:$0xf0] }
  0x42   :  { %9417 = vst [vmem:[#allocation25_spill] sm:$0xff] %v7560_v26  ;;  %2676 = vmatpush.bf16.msrb.mxu2 %v6792_v31  ;;  %v6664_v39 = vor.u32 %v7259_v38, %v6663_v37  ;;  %v6986_v42 = vld [vmem:[#allocation2 + $0xac] sm:$0xf]  ;;  %v5581_v43 = vld [vmem:[#allocation2 + $0xc4] sm:$0xf0] }
  0x43   :  { %9418 = vst [vmem:[#allocation26_spill] sm:$0xff] %v7562_v27  ;;  %2498 = vmatpush.bf16.msrb.mxu0 %v6536_v35  ;;  %2765 = vmatpush.bf16.msrb.mxu3 %v6028_v36  ;;  %v5587_v44 = vld [vmem:[#allocation2 + $0xb0] sm:$0xf]  ;;  %v6990_v45 = vld [vmem:[#allocation2 + $0xc8] sm:$0xf0]  ;;  %v7570_v50 = vor.u32 %v6986_v42, %v5581_v43 }
  0x44   :  { %2587 = vmatpush.bf16.msrb.mxu1 %v6664_v39  ;;  %v6987_v46 = vld [vmem:[#allocation2 + $0xb4] sm:$0xf]  ;;  %v5589_v48 = vld [vmem:[#allocation2 + $0xcc] sm:$0xf0]  ;;  %9419 = vst [vmem:[#allocation27_spill] sm:$0xff] %v7568_v49  ;;  %v7572_v54 = vor.u32 %v6990_v45, %v5587_v44 }
  0x45   :  { %9420 = vst [vmem:[#allocation28_spill] sm:$0xff] %v7570_v50  ;;  %v7574_v55 = vor.u32 %v6987_v46, %v5589_v48  ;;  %v5607_v56 = vld [vmem:[#allocation2 + $0xe0] sm:$0xf]  ;;  %v6996_v57 = vld [vmem:[#allocation2 + $0xf8] sm:$0xf0] }
  0x46   :  { %9421 = vst [vmem:[#allocation29_spill] sm:$0xff] %v7572_v54  ;;  %v6993_v58 = vld [vmem:[#allocation2 + $0xe4] sm:$0xf]  ;;  %v5609_v59 = vld [vmem:[#allocation2 + $0xfc] sm:$0xf0]  ;;  %v7580_v0 = vor.u32 %v6996_v57, %v5607_v56 }
  0x47   :  { %9422 = vst [vmem:[#allocation30_spill] sm:$0xff] %v7574_v55  ;;  %v5615_v60 = vld [vmem:[#allocation2 + $0xe8] sm:$0xf]  ;;  %v6997_v61 = vld [vmem:[#allocation2 + $0x100] sm:$0xf0]  ;;  %v7582_v1 = vor.u32 %v6993_v58, %v5609_v59 }
  0x48   :  { %2153 = vmatmul.bf16.gmra.mxu0 %v7544_v12  ;;  %v6994_v62 = vld [vmem:[#allocation2 + $0xec] sm:$0xf]  ;;  %v5617_v63 = vld [vmem:[#allocation2 + $0x104] sm:$0xf0]  ;;  %9423 = vst [vmem:[#allocation31_spill] sm:$0xff] %v7580_v0  ;;  %v7584_v2 = vor.u32 %v6997_v61, %v5615_v60 }
  0x49   :  { %2331 = vmatmul.bf16.gmra.mxu2 %v7548_v14  ;;  %9424 = vst [vmem:[#allocation32_spill] sm:$0xff] %v7582_v1  ;;  %v7586_v3 = vor.u32 %v6994_v62, %v5617_v63  ;;  %v6775_v4 = vld [vmem:[#allocation5 + $0x680] sm:$0xf]  ;;  %v7287_v5 = vld [vmem:[#allocation5 + $0x68c] sm:$0xf0] }
  0x4a   :  { %2242 = vmatmul.bf16.gmra.mxu1 %v7546_v13  ;;  %9425 = vst [vmem:[#allocation33_spill] sm:$0xff] %v7584_v2  ;;  %v6519_v6 = vld [vmem:[#allocation5 + $0x480] sm:$0xf]  ;;  %v6776_v7 = vor.u32 %v7287_v5, %v6775_v4  ;;  %v7223_v8 = vld [vmem:[#allocation5 + $0x48c] sm:$0xf0] }
  0x4b   :  { %9426 = vst [vmem:[#allocation34_spill] sm:$0xff] %v7586_v3  ;;  %v7093_v9 = vld [vmem:[#allocation5 + $0x84] sm:$0xf]  ;;  %v6009_v10 = vld [vmem:[#allocation5 + $0x90] sm:$0xf0]  ;;  %v6520_v11 = vor.u32 %v7223_v8, %v6519_v6 }
  0x4c   :  { %2420 = vmatmul.bf16.gmra.mxu3 %v7550_v15  ;;  %v6012_v16 = vor.u32 %v7093_v9, %v6009_v10  ;;  %v6647_v17 = vld [vmem:[#allocation5 + $0x580] sm:$0xf]  ;;  %v7255_v18 = vld [vmem:[#allocation5 + $0x58c] sm:$0xf0]  ;;  %2677 = vmatpush.bf16.msrb.mxu2 %v6776_v7  ;;  %v5635_v20 = vld [vmem:[#allocation2 + $0x118] sm:$0xf] }
  0x4d   :  { %v6648_v19 = vor.u32 %v7255_v18, %v6647_v17  ;;  %2499 = vmatpush.bf16.msrb.mxu0 %v6520_v11  ;;  %v7003_v21 = vld [vmem:[#allocation2 + $0x130] sm:$0xf0]  ;;  %v7000_v22 = vld [vmem:[#allocation2 + $0x11c] sm:$0xf]  ;;  %v5637_v23 = vld [vmem:[#allocation2 + $0x134] sm:$0xf0] }
  0x4e   :  { %2766 = vmatpush.bf16.msrb.mxu3 %v6012_v16  ;;  %v5643_v28 = vld [vmem:[#allocation2 + $0x120] sm:$0xf]  ;;  %v7004_v29 = vld [vmem:[#allocation2 + $0x138] sm:$0xf0]  ;;  %v7001_v30 = vld [vmem:[#allocation2 + $0x124] sm:$0xf]  ;;  %v7592_v32 = vor.u32 %v7003_v21, %v5635_v20  ;;  %v7594_v33 = vor.u32 %v7000_v22, %v5637_v23 }
  0x4f   :  { %2588 = vmatpush.bf16.msrb.mxu1 %v6648_v19  ;;  %v5645_v31 = vld [vmem:[#allocation2 + $0x13c] sm:$0xf0]  ;;  %v7596_v34 = vor.u32 %v7004_v29, %v5643_v28  ;;  %v5663_v36 = vld [vmem:[#allocation2 + $0x150] sm:$0xf]  ;;  %v7010_v37 = vld [vmem:[#allocation2 + $0x168] sm:$0xf0] }
  0x50   :  { %9427 = vst [vmem:[#allocation35_spill] sm:$0xff] %v7592_v32  ;;  %v7598_v35 = vor.u32 %v7001_v30, %v5645_v31  ;;  %v7007_v38 = vld [vmem:[#allocation2 + $0x154] sm:$0xf]  ;;  %v5665_v39 = vld [vmem:[#allocation2 + $0x16c] sm:$0xf0]  ;;  %v7604_v44 = vor.u32 %v7010_v37, %v5663_v36 }
  0x51   :  { %9428 = vst [vmem:[#allocation36_spill] sm:$0xff] %v7594_v33  ;;  %v5671_v40 = vld [vmem:[#allocation2 + $0x158] sm:$0xf]  ;;  %v7011_v41 = vld [vmem:[#allocation2 + $0x170] sm:$0xf0]  ;;  %v7606_v45 = vor.u32 %v7007_v38, %v5665_v39 }
  0x52   :  { %9429 = vst [vmem:[#allocation37_spill] sm:$0xff] %v7596_v34  ;;  %v7008_v42 = vld [vmem:[#allocation2 + $0x15c] sm:$0xf]  ;;  %v5673_v43 = vld [vmem:[#allocation2 + $0x174] sm:$0xf0]  ;;  %v7608_v46 = vor.u32 %v7011_v41, %v5671_v40 }
  0x53   :  { %9430 = vst [vmem:[#allocation38_spill] sm:$0xff] %v7598_v35  ;;  %v7610_v48 = vor.u32 %v7008_v42, %v5673_v43  ;;  %v6759_v56 = vld [vmem:[#allocation5 + $0x660] sm:$0xf]  ;;  %v7283_v57 = vld [vmem:[#allocation5 + $0x66c] sm:$0xf0] }
  0x54   :  { %9431 = vst [vmem:[#allocation39_spill] sm:$0xff] %v7604_v44  ;;  %v6503_v58 = vld [vmem:[#allocation5 + $0x460] sm:$0xf]  ;;  %v6760_v59 = vor.u32 %v7283_v57, %v6759_v56  ;;  %v7219_v60 = vld [vmem:[#allocation5 + $0x46c] sm:$0xf0] }
  0x55   :  { %9432 = vst [vmem:[#allocation40_spill] sm:$0xff] %v7606_v45  ;;  %v7089_v61 = vld [vmem:[#allocation5 + $0x64] sm:$0xf]  ;;  %v5993_v62 = vld [vmem:[#allocation5 + $0x70] sm:$0xf0]  ;;  %v6504_v63 = vor.u32 %v7219_v60, %v6503_v58 }
  0x56   :  { %9433 = vst [vmem:[#allocation41_spill] sm:$0xff] %v7608_v46  ;;  %v5996_v4 = vor.u32 %v7089_v61, %v5993_v62  ;;  %2678 = vmatpush.bf16.msrb.mxu2 %v6760_v59  ;;  %v6631_v5 = vld [vmem:[#allocation5 + $0x560] sm:$0xf]  ;;  %v7251_v6 = vld [vmem:[#allocation5 + $0x56c] sm:$0xf0] }
  0x57   :  { %9434 = vst [vmem:[#allocation42_spill] sm:$0xff] %v7610_v48  ;;  %2500 = vmatpush.bf16.msrb.mxu0 %v6504_v63  ;;  %v6632_v7 = vor.u32 %v7251_v6, %v6631_v5  ;;  %v5691_v8 = vld [vmem:[#allocation2 + $0x188] sm:$0xf]  ;;  %v7017_v9 = vld [vmem:[#allocation2 + $0x1a0] sm:$0xf0] }
  0x58   :  { %2158 = vmatmul.bf16.gmra.mxu0 %v7556_v24  ;;  %2767 = vmatpush.bf16.msrb.mxu3 %v5996_v4  ;;  %v7014_v10 = vld [vmem:[#allocation2 + $0x18c] sm:$0xf]  ;;  %v5693_v11 = vld [vmem:[#allocation2 + $0x1a4] sm:$0xf0]  ;;  %v5699_v16 = vld [vmem:[#allocation2 + $0x190] sm:$0xf]  ;;  %v7616_v20 = vor.u32 %v7017_v9, %v5691_v8 }
  0x59   :  { %2336 = vmatmul.bf16.gmra.mxu2 %v7560_v26  ;;  %v7018_v17 = vld [vmem:[#allocation2 + $0x1a8] sm:$0xf0]  ;;  %2589 = vmatpush.bf16.msrb.mxu1 %v6632_v7  ;;  %v7015_v18 = vld [vmem:[#allocation2 + $0x194] sm:$0xf]  ;;  %v5701_v19 = vld [vmem:[#allocation2 + $0x1ac] sm:$0xf0]  ;;  %v7618_v21 = vor.u32 %v7014_v10, %v5693_v11 }
  0x5a   :  { %2247 = vmatmul.bf16.gmra.mxu1 %v7558_v25  ;;  %9435 = vst [vmem:[#allocation43_spill] sm:$0xff] %v7616_v20  ;;  %v7620_v22 = vor.u32 %v7018_v17, %v5699_v16  ;;  %v7622_v23 = vor.u32 %v7015_v18, %v5701_v19  ;;  %v434_v28 = vld [vmem:[#allocation7] sm:$0xf]  ;;  %v7024_v31 = vld [vmem:[#allocation2 + $0x1d8] sm:$0xf0] }
  0x5b   :  { %9436 = vst [vmem:[#allocation44_spill] sm:$0xff] %v7618_v21  ;;  %v7628_v29 = vperm.slane %v434_v28, 0  ;;  %v5719_v30 = vld [vmem:[#allocation2 + $0x1c0] sm:$0xf]  ;;  %v7021_v36 = vld [vmem:[#allocation2 + $0x1c4] sm:$0xf] }
  0x5c   :  { %2425 = vmatmul.bf16.gmra.mxu3 %v7562_v27  ;;  %9437 = vst [vmem:[#allocation45_spill] sm:$0xff] %v7620_v22  ;;  %v5721_v37 = vld [vmem:[#allocation2 + $0x1dc] sm:$0xf0]  ;;  %v5727_v38 = vld [vmem:[#allocation2 + $0x1c8] sm:$0xf]  ;;  %v7630_v42 = vor.u32 %v7024_v31, %v5719_v30 }
  0x5d   :  { %9438 = vst [vmem:[#allocation46_spill] sm:$0xff] %v7622_v23  ;;  %v7025_v39 = vld [vmem:[#allocation2 + $0x1e0] sm:$0xf0]  ;;  %v7022_v40 = vld [vmem:[#allocation2 + $0x1cc] sm:$0xf]  ;;  %v7632_v56 = vor.u32 %v7021_v36, %v5721_v37 }
  0x5e   :  { %v5729_v41 = vld [vmem:[#allocation2 + $0x1e4] sm:$0xf0]  ;;  %9439 = vst [vmem:[#allocation47_spill] sm:$0xff] %v7630_v42  ;;  %v7634_v57 = vor.u32 %v7025_v39, %v5727_v38  ;;  %v6743_v62 = vld [vmem:[#allocation5 + $0x640] sm:$0xf] }
  0x5f   :  { %9440 = vst [vmem:[#allocation48_spill] sm:$0xff] %v7632_v56  ;;  %v7637_v60 = vor.u32 %v7022_v40, %v5729_v41  ;;  %v7279_v63 = vld [vmem:[#allocation5 + $0x64c] sm:$0xf0]  ;;  %v6487_v4 = vld [vmem:[#allocation5 + $0x440] sm:$0xf] }
  0x60   :  { %9441 = vst [vmem:[#allocation49_spill] sm:$0xff] %v7634_v57  ;;  %v6744_v5 = vor.u32 %v7279_v63, %v6743_v62  ;;  %v7215_v6 = vld [vmem:[#allocation5 + $0x44c] sm:$0xf0]  ;;  %v7085_v7 = vld [vmem:[#allocation5 + $0x44] sm:$0xf] }
  0x61   :  { %9442 = vst [vmem:[#allocation50_spill] sm:$0xff] %v7637_v60  ;;  %v5977_v8 = vld [vmem:[#allocation5 + $0x50] sm:$0xf0]  ;;  %v6488_v10 = vor.u32 %v7215_v6, %v6487_v4  ;;  %v6615_v31 = vld [vmem:[#allocation5 + $0x540] sm:$0xf] }
  0x62   :  { %v5980_v11 = vor.u32 %v7085_v7, %v5977_v8  ;;  %2679 = vmatpush.bf16.msrb.mxu2 %v6744_v5  ;;  %v7247_v36 = vld [vmem:[#allocation5 + $0x54c] sm:$0xf0]  ;;  %v5747_v39 = vld [vmem:[#allocation2 + $0x1f8] sm:$0xf]  ;;  %v7031_v40 = vld [vmem:[#allocation2 + $0x210] sm:$0xf0] }
  0x63   :  { %2501 = vmatpush.bf16.msrb.mxu0 %v6488_v10  ;;  %v6616_v38 = vor.u32 %v7247_v36, %v6615_v31  ;;  %v7028_v41 = vld [vmem:[#allocation2 + $0x1fc] sm:$0xf]  ;;  %v5757_v62 = vld [vmem:[#allocation2 + $0x21c] sm:$0xf0]  ;;  %v7646_v4 = vor.u32 %v7031_v40, %v5747_v39  ;;  %v5595_v27 = vld [vmem:[#allocation2 + $0xb8] sm:$0xf] }
  0x64   :  { %2768 = vmatpush.bf16.msrb.mxu3 %v5980_v11  ;;  %v6991_v26 = vld [vmem:[#allocation2 + $0xd0] sm:$0xf0]  ;;  %v6988_v25 = vld [vmem:[#allocation2 + $0xbc] sm:$0xf] }
  0x65   :  { %2590 = vmatpush.bf16.msrb.mxu1 %v6616_v38  ;;  %9443 = vst [vmem:[#allocation51_spill] sm:$0xff] %v7646_v4 }
  0x68   :  { %2163 = vmatmul.bf16.gmra.mxu0 %v7568_v49 }
  0x69   :  { %2341 = vmatmul.bf16.gmra.mxu2 %v7572_v54  ;;  %v6977_v54 = vld [vmem:[#allocation2 + $0x60] sm:$0xf0] }
  0x6a   :  { %2252 = vmatmul.bf16.gmra.mxu1 %v7570_v50  ;;  %v6974_v50 = vld [vmem:[#allocation2 + $0x4c] sm:$0xf] }
  0x6c   :  { %2430 = vmatmul.bf16.gmra.mxu3 %v7574_v55  ;;  %v5539_v55 = vld [vmem:[#allocation2 + $0x48] sm:$0xf] }
  0x78   :  { %2168 = vmatmul.bf16.gmra.mxu0 %v7580_v0 }
  0x79   :  { %2346 = vmatmul.bf16.gmra.mxu2 %v7584_v2 }
  0x7a   :  { %2257 = vmatmul.bf16.gmra.mxu1 %v7582_v1  ;;  %v6297_v1 = vld [vmem:[#allocation5 + $0x2d0] sm:$0xf0] }
  0x7c   :  { %2435 = vmatmul.bf16.gmra.mxu3 %v7586_v3  ;;  %v7070_v3 = vld [vmem:[#allocation2 + $0x34c] sm:$0xf] }
  0x88   :  { %2173 = vmatmul.bf16.gmra.mxu0 %v7592_v32 }
  0x89   :  { %2351 = vmatmul.bf16.gmra.mxu2 %v7596_v34  ;;  %v5915_v34 = vld [vmem:[#allocation2 + $0x348] sm:$0xf] }
  0x8a   :  { %2262 = vmatmul.bf16.gmra.mxu1 %v7594_v33  ;;  %v7073_v33 = vld [vmem:[#allocation2 + $0x360] sm:$0xf0] }
  0x8c   :  { %2440 = vmatmul.bf16.gmra.mxu3 %v7598_v35 }
  0x98   :  { %2178 = vmatmul.bf16.gmra.mxu0 %v7604_v44 }
  0x99   :  { %2356 = vmatmul.bf16.gmra.mxu2 %v7608_v46 }
  0x9a   :  { %2267 = vmatmul.bf16.gmra.mxu1 %v7606_v45 }
  0x9c   :  { %2445 = vmatmul.bf16.gmra.mxu3 %v7610_v48  ;;  %v7056_v48 = vld [vmem:[#allocation2 + $0x2dc] sm:$0xf] }
  0xa8   :  { %2183 = vmatmul.bf16.gmra.mxu0 %v7616_v20 }
  0xa9   :  { %2361 = vmatmul.bf16.gmra.mxu2 %v7620_v22  ;;  %v5859_v22 = vld [vmem:[#allocation2 + $0x2d8] sm:$0xf] }
  0xaa   :  { %2272 = vmatmul.bf16.gmra.mxu1 %v7618_v21  ;;  %v7059_v21 = vld [vmem:[#allocation2 + $0x2f0] sm:$0xf0] }
  0xac   :  { %2450 = vmatmul.bf16.gmra.mxu3 %v7622_v23 }
  0xb5   :  { %v2149_v43 = vpop.f32.mrf.mxu0 }
  0xb6   :  { %v2150_v58 = vadd.f32 %v2149_v43, %v7628_v29  ;;  %v5749_v43 = vld [vmem:[#allocation2 + $0x214] sm:$0xf0] }
  0xb7   :  { %v2238_v59 = vpop.f32.mrf.mxu1  ;;  %v7648_v8 = vor.u32 %v7028_v41, %v5749_v43  ;;  %v5775_v41 = vld [vmem:[#allocation2 + $0x230] sm:$0xf]  ;;  %v7038_v43 = vld [vmem:[#allocation2 + $0x248] sm:$0xf0] }
  0xb8   :  { %v2239_v61 = vadd.f32 %v2238_v59, %v2150_v58  ;;  %2188 = vmatmul.bf16.gmra.mxu0 %v7630_v42  ;;  %v5755_v58 = vld [vmem:[#allocation2 + $0x200] sm:$0xf]  ;;  %v7032_v59 = vld [vmem:[#allocation2 + $0x218] sm:$0xf0] }
  0xb9   :  { %2366 = vmatmul.bf16.gmra.mxu2 %v7634_v57  ;;  %9444 = vst [vmem:[#allocation52_spill] sm:$0xff] %v7648_v8 }
  0xba   :  { %2277 = vmatmul.bf16.gmra.mxu1 %v7632_v56 }
  0xbc   :  { %2455 = vmatmul.bf16.gmra.mxu3 %v7637_v60  ;;  %v2327_v9 = vpop.f32.mrf.mxu2  ;;  %v7042_v60 = vld [vmem:[#allocation2 + $0x26c] sm:$0xf] }
  0xbd   :  { %v2328_v16 = vadd.f32 %v2327_v9, %v2239_v61  ;;  %v2151_v18 = vpop.f32.mrf.mxu0  ;;  %v7029_v61 = vld [vmem:[#allocation2 + $0x204] sm:$0xf]  ;;  %v7650_v9 = vor.u32 %v7032_v59, %v5755_v58  ;;  %v7035_v58 = vld [vmem:[#allocation2 + $0x234] sm:$0xf]  ;;  %v5777_v59 = vld [vmem:[#allocation2 + $0x24c] sm:$0xf0] }
  0xbe   :  { %v2152_v19 = vadd.f32 %v2151_v18, %v7628_v29 }
  0xbf   :  { %v2416_v17 = vpop.f32.mrf.mxu3  ;;  %v2240_v28 = vpop.f32.mrf.mxu1  ;;  %9445 = vst [vmem:[#allocation53_spill] sm:$0xff] %v7650_v9 }
  0xc0   :  { %v7644_v30 = vadd.f32 %v2416_v17, %v2328_v16  ;;  %v2241_v37 = vadd.f32 %v2240_v28, %v2152_v19  ;;  %v7653_v16 = vor.u32 %v7029_v61, %v5757_v62  ;;  %v5783_v61 = vld [vmem:[#allocation2 + $0x238] sm:$0xf]  ;;  %v7039_v62 = vld [vmem:[#allocation2 + $0x250] sm:$0xf0] }
  0xc2   :  { %9446 = vst [vmem:[#allocation54_spill] sm:$0xff] %v7653_v16 }
  0xc4   :  { %v2329_v63 = vpop.f32.mrf.mxu2 }
  0xc5   :  { %v2330_v5 = vadd.f32 %v2329_v63, %v2241_v37  ;;  %v2154_v7 = vpop.f32.mrf.mxu0  ;;  %v7036_v63 = vld [vmem:[#allocation2 + $0x23c] sm:$0xf] }
  0xc6   :  { %v2155_v10 = vadd.f32 %v2154_v7, %v7628_v29  ;;  %v7664_v7 = vor.u32 %v7038_v43, %v5775_v41  ;;  %v7275_v41 = vld [vmem:[#allocation5 + $0x62c] sm:$0xf0]  ;;  %v6471_v43 = vld [vmem:[#allocation5 + $0x420] sm:$0xf] }
  0xc7   :  { %v2418_v6 = vpop.f32.mrf.mxu3  ;;  %v2243_v11 = vpop.f32.mrf.mxu1 }
  0xc8   :  { %v7655_v17 = vadd.f32 %v2418_v6, %v2330_v5  ;;  %v2244_v18 = vadd.f32 %v2243_v11, %v2155_v10  ;;  %2193 = vmatmul.bf16.gmra.mxu0 %v7646_v4  ;;  %v5785_v5 = vld [vmem:[#allocation2 + $0x254] sm:$0xf0]  ;;  %9447 = vst [vmem:[#allocation55_spill] sm:$0xff] %v7664_v7 }
  0xc9   :  { %2371 = vmatmul.bf16.gmra.mxu2 %v7650_v9  ;;  %v5803_v9 = vld [vmem:[#allocation2 + $0x268] sm:$0xf] }
  0xca   :  { %2282 = vmatmul.bf16.gmra.mxu1 %v7648_v8  ;;  %v7045_v8 = vld [vmem:[#allocation2 + $0x280] sm:$0xf0] }
  0xcc   :  { %2460 = vmatmul.bf16.gmra.mxu3 %v7653_v16  ;;  %v2332_v19 = vpop.f32.mrf.mxu2 }
  0xcd   :  { %v2333_v28 = vadd.f32 %v2332_v19, %v2244_v18  ;;  %v2156_v36 = vpop.f32.mrf.mxu0  ;;  %v7666_v19 = vor.u32 %v7035_v58, %v5777_v59  ;;  %v7211_v59 = vld [vmem:[#allocation5 + $0x42c] sm:$0xf0] }
  0xce   :  { %v2157_v37 = vadd.f32 %v2156_v36, %v7628_v29  ;;  %v7668_v36 = vor.u32 %v7039_v62, %v5783_v61  ;;  %v7081_v61 = vld [vmem:[#allocation5 + $0x24] sm:$0xf]  ;;  %v5961_v62 = vld [vmem:[#allocation5 + $0x30] sm:$0xf0] }
  0xcf   :  { %v2421_v31 = vpop.f32.mrf.mxu3  ;;  %v2245_v38 = vpop.f32.mrf.mxu1  ;;  %9448 = vst [vmem:[#allocation56_spill] sm:$0xff] %v7666_v19 }
  0xd0   :  { %v7662_v39 = vadd.f32 %v2421_v31, %v2333_v28  ;;  %v2246_v40 = vadd.f32 %v2245_v38, %v2157_v37  ;;  %9449 = vst [vmem:[#allocation57_spill] sm:$0xff] %v7668_v36  ;;  %v7671_v37 = vor.u32 %v7036_v63, %v5785_v5  ;;  %v6472_v5 = vor.u32 %v7211_v59, %v6471_v43  ;;  %v5805_v43 = vld [vmem:[#allocation2 + $0x284] sm:$0xf0]  ;;  %v5811_v59 = vld [vmem:[#allocation2 + $0x270] sm:$0xf] }
  0xd2   :  { %9450 = vst [vmem:[#allocation58_spill] sm:$0xff] %v7671_v37  ;;  %2502 = vmatpush.bf16.msrb.mxu0 %v6472_v5 }
  0xd4   :  { %v2334_v6 = vpop.f32.mrf.mxu2 }
  0xd5   :  { %v2335_v10 = vadd.f32 %v2334_v6, %v2246_v40  ;;  %v2159_v18 = vpop.f32.mrf.mxu0  ;;  %v6727_v40 = vld [vmem:[#allocation5 + $0x620] sm:$0xf]  ;;  %v5964_v6 = vor.u32 %v7081_v61, %v5961_v62  ;;  %v7043_v61 = vld [vmem:[#allocation2 + $0x274] sm:$0xf] }
  0xd6   :  { %v2160_v28 = vadd.f32 %v2159_v18, %v7628_v29  ;;  %v6728_v58 = vor.u32 %v7275_v41, %v6727_v40 }
  0xd7   :  { %v2423_v11 = vpop.f32.mrf.mxu3  ;;  %v2248_v31 = vpop.f32.mrf.mxu1  ;;  %2769 = vmatpush.bf16.msrb.mxu3 %v5964_v6 }
  0xd8   :  { %v7673_v38 = vadd.f32 %v2423_v11, %v2335_v10  ;;  %v2249_v16 = vadd.f32 %v2248_v31, %v2160_v28  ;;  %2198 = vmatmul.bf16.gmra.mxu0 %v7664_v7  ;;  %2680 = vmatpush.bf16.msrb.mxu2 %v6728_v58  ;;  %v5813_v58 = vld [vmem:[#allocation2 + $0x28c] sm:$0xf0] }
  0xd9   :  { %2376 = vmatmul.bf16.gmra.mxu2 %v7668_v36  ;;  %v6599_v36 = vld [vmem:[#allocation5 + $0x520] sm:$0xf] }
  0xda   :  { %2287 = vmatmul.bf16.gmra.mxu1 %v7666_v19  ;;  %v7243_v19 = vld [vmem:[#allocation5 + $0x52c] sm:$0xf0] }
  0xdb   :  { %v6600_v41 = vor.u32 %v7243_v19, %v6599_v36 }
  0xdc   :  { %2465 = vmatmul.bf16.gmra.mxu3 %v7671_v37  ;;  %v2337_v63 = vpop.f32.mrf.mxu2 }
  0xdd   :  { %v2338_v10 = vadd.f32 %v2337_v63, %v2249_v16  ;;  %v2161_v18 = vpop.f32.mrf.mxu0  ;;  %v7046_v16 = vld [vmem:[#allocation2 + $0x288] sm:$0xf0]  ;;  %2591 = vmatpush.bf16.msrb.mxu1 %v6600_v41  ;;  %v7682_v63 = vor.u32 %v7045_v8, %v5803_v9 }
  0xde   :  { %v2162_v28 = vadd.f32 %v2161_v18, %v7628_v29  ;;  %v7686_v18 = vor.u32 %v7046_v16, %v5811_v59 }
  0xdf   :  { %v2426_v11 = vpop.f32.mrf.mxu3  ;;  %v2250_v31 = vpop.f32.mrf.mxu1  ;;  %9451 = vst [vmem:[#allocation59_spill] sm:$0xff] %v7682_v63 }
  0xe0   :  { %v7680_v37 = vadd.f32 %v2426_v11, %v2338_v10  ;;  %v2251_v40 = vadd.f32 %v2250_v31, %v2162_v28  ;;  %v7684_v11 = vor.u32 %v7042_v60, %v5805_v43  ;;  %9453 = vst [vmem:[#allocation61_spill] sm:$0xff] %v7686_v18  ;;  %v7689_v28 = vor.u32 %v7043_v61, %v5813_v58  ;;  %v5831_v58 = vld [vmem:[#allocation2 + $0x2a0] sm:$0xf] }
  0xe2   :  { %9452 = vst [vmem:[#allocation60_spill] sm:$0xff] %v7684_v11 }
  0xe3   :  { %9454 = vst [vmem:[#allocation62_spill] sm:$0xff] %v7689_v28 }
  0xe4   :  { %v2339_v62 = vpop.f32.mrf.mxu2 }
  0xe5   :  { %v2340_v5 = vadd.f32 %v2339_v62, %v2251_v40  ;;  %v2164_v10 = vpop.f32.mrf.mxu0  ;;  %v7052_v62 = vld [vmem:[#allocation2 + $0x2b8] sm:$0xf0] }
  0xe6   :  { %v2165_v19 = vadd.f32 %v2164_v10, %v7628_v29  ;;  %v5839_v10 = vld [vmem:[#allocation2 + $0x2a8] sm:$0xf] }
  0xe7   :  { %v2428_v6 = vpop.f32.mrf.mxu3  ;;  %v2253_v36 = vpop.f32.mrf.mxu1 }
  0xe8   :  { %v7691_v31 = vadd.f32 %v2428_v6, %v2340_v5  ;;  %v2254_v41 = vadd.f32 %v2253_v36, %v2165_v19  ;;  %2203 = vmatmul.bf16.gmra.mxu0 %v7682_v63  ;;  %v7049_v5 = vld [vmem:[#allocation2 + $0x2a4] sm:$0xf]  ;;  %v5833_v6 = vld [vmem:[#allocation2 + $0x2bc] sm:$0xf0]  ;;  %v7050_v36 = vld [vmem:[#allocation2 + $0x2ac] sm:$0xf] }
  0xe9   :  { %2381 = vmatmul.bf16.gmra.mxu2 %v7686_v18  ;;  %v7053_v19 = vld [vmem:[#allocation2 + $0x2c0] sm:$0xf0]  ;;  %v5841_v18 = vld [vmem:[#allocation2 + $0x2c4] sm:$0xf0]  ;;  %v7702_v56 = vor.u32 %v7049_v5, %v5833_v6  ;;  %v7207_v5 = vld [vmem:[#allocation5 + $0x40c] sm:$0xf0] }
  0xea   :  { %2292 = vmatmul.bf16.gmra.mxu1 %v7684_v11  ;;  %v5945_v6 = vld [vmem:[#allocation5 + $0x10] sm:$0xf0] }
  0xeb   :  { %9456 = vst [vmem:[#allocation64_spill] sm:$0xff] %v7702_v56 }
  0xec   :  { %2470 = vmatmul.bf16.gmra.mxu3 %v7689_v28  ;;  %v2342_v60 = vpop.f32.mrf.mxu2  ;;  %v7700_v28 = vor.u32 %v7052_v62, %v5831_v58  ;;  %v6455_v58 = vld [vmem:[#allocation5 + $0x400] sm:$0xf] }
  0xed   :  { %v2343_v8 = vadd.f32 %v2342_v60, %v2254_v41  ;;  %v2166_v40 = vpop.f32.mrf.mxu0 }
  0xee   :  { %v2167_v43 = vadd.f32 %v2166_v40, %v7628_v29  ;;  %9455 = vst [vmem:[#allocation63_spill] sm:$0xff] %v7700_v28  ;;  %v7704_v40 = vor.u32 %v7053_v19, %v5839_v10  ;;  %v6456_v10 = vor.u32 %v7207_v5, %v6455_v58  ;;  %v5861_v58 = vld [vmem:[#allocation2 + $0x2f4] sm:$0xf0]  ;;  %v5867_v5 = vld [vmem:[#allocation2 + $0x2e0] sm:$0xf] }
  0xef   :  { %v2431_v9 = vpop.f32.mrf.mxu3  ;;  %v2255_v59 = vpop.f32.mrf.mxu1 }
  0xf0   :  { %v7698_v16 = vadd.f32 %v2431_v9, %v2343_v8  ;;  %v2256_v61 = vadd.f32 %v2255_v59, %v2167_v43  ;;  %9457 = vst [vmem:[#allocation65_spill] sm:$0xff] %v7704_v40  ;;  %v7707_v43 = vor.u32 %v7050_v36, %v5841_v18  ;;  %2503 = vmatpush.bf16.msrb.mxu0 %v6456_v10 }
  0xf2   :  { %9458 = vst [vmem:[#allocation66_spill] sm:$0xff] %v7707_v43 }
  0xf4   :  { %v2344_v11 = vpop.f32.mrf.mxu2 }
  0xf5   :  { %v2345_v41 = vadd.f32 %v2344_v11, %v2256_v61  ;;  %v2169_v57 = vpop.f32.mrf.mxu0  ;;  %v6711_v11 = vld [vmem:[#allocation5 + $0x600] sm:$0xf]  ;;  %v7271_v61 = vld [vmem:[#allocation5 + $0x60c] sm:$0xf0] }
  0xf6   :  { %v2170_v8 = vadd.f32 %v2169_v57, %v7628_v29  ;;  %v6712_v62 = vor.u32 %v7271_v61, %v6711_v11  ;;  %v7077_v57 = vld [vmem:[#allocation5 + $0x4] sm:$0xf] }
  0xf7   :  { %v2433_v60 = vpop.f32.mrf.mxu3  ;;  %v2258_v9 = vpop.f32.mrf.mxu1  ;;  %v5948_v19 = vor.u32 %v7077_v57, %v5945_v6  ;;  %v7057_v57 = vld [vmem:[#allocation2 + $0x2e4] sm:$0xf] }
  0xf8   :  { %v7709_v59 = vadd.f32 %v2433_v60, %v2345_v41  ;;  %v2259_v23 = vadd.f32 %v2258_v9, %v2170_v8  ;;  %2208 = vmatmul.bf16.gmra.mxu0 %v7700_v28  ;;  %2681 = vmatpush.bf16.msrb.mxu2 %v6712_v62  ;;  %v5869_v62 = vld [vmem:[#allocation2 + $0x2fc] sm:$0xf0] }
  0xf9   :  { %2386 = vmatmul.bf16.gmra.mxu2 %v7704_v40  ;;  %2770 = vmatpush.bf16.msrb.mxu3 %v5948_v19  ;;  %v6583_v40 = vld [vmem:[#allocation5 + $0x500] sm:$0xf] }
  0xfa   :  { %2297 = vmatmul.bf16.gmra.mxu1 %v7702_v56  ;;  %v7239_v56 = vld [vmem:[#allocation5 + $0x50c] sm:$0xf0] }
  0xfb   :  { %v6584_v61 = vor.u32 %v7239_v56, %v6583_v40 }
  0xfc   :  { %2475 = vmatmul.bf16.gmra.mxu3 %v7707_v43  ;;  %v2347_v18 = vpop.f32.mrf.mxu2 }
  0xfd   :  { %v2348_v36 = vadd.f32 %v2347_v18, %v2259_v23  ;;  %v2171_v60 = vpop.f32.mrf.mxu0  ;;  %v7060_v23 = vld [vmem:[#allocation2 + $0x2f8] sm:$0xf0]  ;;  %2592 = vmatpush.bf16.msrb.mxu1 %v6584_v61  ;;  %v7718_v18 = vor.u32 %v7059_v21, %v5859_v22 }
  0xfe   :  { %v2172_v8 = vadd.f32 %v2171_v60, %v7628_v29  ;;  %v7722_v60 = vor.u32 %v7060_v23, %v5867_v5 }
  0xff   :  { %v2436_v41 = vpop.f32.mrf.mxu3  ;;  %v2260_v9 = vpop.f32.mrf.mxu1  ;;  %9459 = vst [vmem:[#allocation67_spill] sm:$0xff] %v7718_v18 }
 0x100   :  { %v7716_v43 = vadd.f32 %v2436_v41, %v2348_v36  ;;  %v2261_v11 = vadd.f32 %v2260_v9, %v2172_v8  ;;  %v7720_v41 = vor.u32 %v7056_v48, %v5861_v58  ;;  %9461 = vst [vmem:[#allocation69_spill] sm:$0xff] %v7722_v60  ;;  %v7725_v8 = vor.u32 %v7057_v57, %v5869_v62  ;;  %v5887_v62 = vld [vmem:[#allocation2 + $0x310] sm:$0xf] }
 0x102   :  { %9460 = vst [vmem:[#allocation68_spill] sm:$0xff] %v7720_v41 }
 0x103   :  { %9462 = vst [vmem:[#allocation70_spill] sm:$0xff] %v7725_v8 }
 0x104   :  { %v2349_v6 = vpop.f32.mrf.mxu2 }
 0x105   :  { %v2350_v10 = vadd.f32 %v2349_v6, %v2261_v11  ;;  %v2174_v36 = vpop.f32.mrf.mxu0  ;;  %v7066_v6 = vld [vmem:[#allocation2 + $0x328] sm:$0xf0] }
 0x106   :  { %v2175_v56 = vadd.f32 %v2174_v36, %v7628_v29  ;;  %v5895_v36 = vld [vmem:[#allocation2 + $0x318] sm:$0xf] }
 0x107   :  { %v2438_v19 = vpop.f32.mrf.mxu3  ;;  %v2263_v40 = vpop.f32.mrf.mxu1 }
 0x108   :  { %v7727_v9 = vadd.f32 %v2438_v19, %v2350_v10  ;;  %v2264_v61 = vadd.f32 %v2263_v40, %v2175_v56  ;;  %2213 = vmatmul.bf16.gmra.mxu0 %v7718_v18  ;;  %v7063_v10 = vld [vmem:[#allocation2 + $0x314] sm:$0xf]  ;;  %v5889_v19 = vld [vmem:[#allocation2 + $0x32c] sm:$0xf0]  ;;  %v7064_v40 = vld [vmem:[#allocation2 + $0x31c] sm:$0xf] }
 0x109   :  { %2391 = vmatmul.bf16.gmra.mxu2 %v7722_v60  ;;  %v7067_v56 = vld [vmem:[#allocation2 + $0x330] sm:$0xf0]  ;;  %v5897_v60 = vld [vmem:[#allocation2 + $0x334] sm:$0xf0]  ;;  %v7738_v45 = vor.u32 %v7063_v10, %v5889_v19 }
 0x10a   :  { %2302 = vmatmul.bf16.gmra.mxu1 %v7720_v41  ;;  %v6185_v10 = vld [vmem:[#allocation5 + $0x1f0] sm:$0xf0] }
 0x10b   :  { %9464 = vst [vmem:[#allocation72_spill] sm:$0xff] %v7738_v45  ;;  %v6569_v19 = vld [vmem:[#allocation5 + $0x4f0] sm:$0xf0] }
 0x10c   :  { %2480 = vmatmul.bf16.gmra.mxu3 %v7725_v8  ;;  %v2352_v48 = vpop.f32.mrf.mxu2  ;;  %v7736_v8 = vor.u32 %v7066_v6, %v5887_v62  ;;  %v7137_v62 = vld [vmem:[#allocation5 + $0x1e4] sm:$0xf] }
 0x10d   :  { %v2353_v21 = vadd.f32 %v2352_v48, %v2264_v61  ;;  %v2176_v11 = vpop.f32.mrf.mxu0 }
 0x10e   :  { %v2177_v58 = vadd.f32 %v2176_v11, %v7628_v29  ;;  %9463 = vst [vmem:[#allocation71_spill] sm:$0xff] %v7736_v8  ;;  %v7740_v11 = vor.u32 %v7067_v56, %v5895_v36  ;;  %v6188_v36 = vor.u32 %v7137_v62, %v6185_v10  ;;  %v5917_v62 = vld [vmem:[#allocation2 + $0x364] sm:$0xf0]  ;;  %v5923_v10 = vld [vmem:[#allocation2 + $0x350] sm:$0xf] }
 0x10f   :  { %v2441_v22 = vpop.f32.mrf.mxu3  ;;  %v2265_v5 = vpop.f32.mrf.mxu1 }
 0x110   :  { %v7734_v23 = vadd.f32 %v2441_v22, %v2353_v21  ;;  %v2266_v57 = vadd.f32 %v2265_v5, %v2177_v58  ;;  %9465 = vst [vmem:[#allocation73_spill] sm:$0xff] %v7740_v11  ;;  %v7743_v58 = vor.u32 %v7064_v40, %v5897_v60  ;;  %2852 = vmatpush.bf16.msra.mxu0 %v6188_v36 }
 0x112   :  { %9466 = vst [vmem:[#allocation74_spill] sm:$0xff] %v7743_v58 }
 0x114   :  { %v2354_v41 = vpop.f32.mrf.mxu2 }
 0x115   :  { %v2355_v61 = vadd.f32 %v2354_v41, %v2266_v57  ;;  %v2179_v46 = vpop.f32.mrf.mxu0  ;;  %v7201_v41 = vld [vmem:[#allocation5 + $0x3e4] sm:$0xf]  ;;  %v6441_v57 = vld [vmem:[#allocation5 + $0x3f0] sm:$0xf0] }
 0x116   :  { %v2180_v21 = vadd.f32 %v2179_v46, %v7628_v29  ;;  %v6444_v6 = vor.u32 %v7201_v41, %v6441_v57  ;;  %v7233_v46 = vld [vmem:[#allocation5 + $0x4e4] sm:$0xf] }
 0x117   :  { %v2443_v48 = vpop.f32.mrf.mxu3  ;;  %v2268_v22 = vpop.f32.mrf.mxu1  ;;  %v6572_v56 = vor.u32 %v7233_v46, %v6569_v19  ;;  %v7071_v46 = vld [vmem:[#allocation2 + $0x354] sm:$0xf] }
 0x118   :  { %v7745_v5 = vadd.f32 %v2443_v48, %v2355_v61  ;;  %v2269_v35 = vadd.f32 %v2268_v22, %v2180_v21  ;;  %2218 = vmatmul.bf16.gmra.mxu0 %v7736_v8  ;;  %3030 = vmatpush.bf16.msra.mxu2 %v6444_v6  ;;  %v5925_v6 = vld [vmem:[#allocation2 + $0x36c] sm:$0xf0] }
 0x119   :  { %2396 = vmatmul.bf16.gmra.mxu2 %v7740_v11  ;;  %3119 = vmatpush.bf16.msra.mxu3 %v6572_v56  ;;  %v7169_v11 = vld [vmem:[#allocation5 + $0x2e4] sm:$0xf] }
 0x11a   :  { %2307 = vmatmul.bf16.gmra.mxu1 %v7738_v45  ;;  %v6313_v45 = vld [vmem:[#allocation5 + $0x2f0] sm:$0xf0] }
 0x11b   :  { %v6316_v57 = vor.u32 %v7169_v11, %v6313_v45 }
 0x11c   :  { %2485 = vmatmul.bf16.gmra.mxu3 %v7743_v58  ;;  %v2357_v60 = vpop.f32.mrf.mxu2 }
 0x11d   :  { %v2358_v40 = vadd.f32 %v2357_v60, %v2269_v35  ;;  %v2181_v48 = vpop.f32.mrf.mxu0  ;;  %v7074_v35 = vld [vmem:[#allocation2 + $0x368] sm:$0xf0]  ;;  %2941 = vmatpush.bf16.msra.mxu1 %v6316_v57  ;;  %v7754_v60 = vor.u32 %v7073_v33, %v5915_v34 }
 0x11e   :  { %v2182_v21 = vadd.f32 %v2181_v48, %v7628_v29  ;;  %v7758_v48 = vor.u32 %v7074_v35, %v5923_v10 }
 0x11f   :  { %v2446_v61 = vpop.f32.mrf.mxu3  ;;  %v2270_v22 = vpop.f32.mrf.mxu1  ;;  %9467 = vst [vmem:[#allocation75_spill] sm:$0xff] %v7754_v60 }
 0x120   :  { %v7752_v58 = vadd.f32 %v2446_v61, %v2358_v40  ;;  %v2271_v41 = vadd.f32 %v2270_v22, %v2182_v21  ;;  %v7756_v61 = vor.u32 %v7070_v3, %v5917_v62  ;;  %9469 = vst [vmem:[#allocation77_spill] sm:$0xff] %v7758_v48  ;;  %v7761_v21 = vor.u32 %v7071_v46, %v5925_v6  ;;  %v5511_v6 = vld [vmem:[#allocation2 + $0x10] sm:$0xf] }
 0x122   :  { %9468 = vst [vmem:[#allocation76_spill] sm:$0xff] %v7756_v61 }
 0x123   :  { %9470 = vst [vmem:[#allocation78_spill] sm:$0xff] %v7761_v21 }
 0x124   :  { %v2359_v19 = vpop.f32.mrf.mxu2 }
 0x125   :  { %v2360_v36 = vadd.f32 %v2359_v19, %v2271_v41  ;;  %v2184_v40 = vpop.f32.mrf.mxu0  ;;  %v6970_v19 = vld [vmem:[#allocation2 + $0x28] sm:$0xf0] }
 0x126   :  { %v2185_v45 = vadd.f32 %v2184_v40, %v7628_v29  ;;  %v5519_v40 = vld [vmem:[#allocation2 + $0x18] sm:$0xf] }
 0x127   :  { %v2448_v56 = vpop.f32.mrf.mxu3  ;;  %v2273_v11 = vpop.f32.mrf.mxu1 }
 0x128   :  { %v7763_v22 = vadd.f32 %v2448_v56, %v2360_v36  ;;  %v2274_v57 = vadd.f32 %v2273_v11, %v2185_v45  ;;  %2223 = vmatmul.bf16.gmra.mxu0 %v7754_v60  ;;  %v6967_v36 = vld [vmem:[#allocation2 + $0x14] sm:$0xf]  ;;  %v5513_v56 = vld [vmem:[#allocation2 + $0x2c] sm:$0xf0] }
 0x129   :  { %2401 = vmatmul.bf16.gmra.mxu2 %v7758_v48  ;;  %v6971_v45 = vld [vmem:[#allocation2 + $0x30] sm:$0xf0]  ;;  %v7772_v48 = vor.u32 %v6970_v19, %v5511_v6  ;;  %v7133_v6 = vld [vmem:[#allocation5 + $0x1c4] sm:$0xf] }
 0x12a   :  { %2312 = vmatmul.bf16.gmra.mxu1 %v7756_v61  ;;  %v7776_v2 = vor.u32 %v6971_v45, %v5519_v40  ;;  %v6553_v40 = vld [vmem:[#allocation5 + $0x4d0] sm:$0xf0] }
 0x12b   :  { %9471 = vst [vmem:[#allocation79_spill] sm:$0xff] %v7772_v48 }
 0x12c   :  { %2490 = vmatmul.bf16.gmra.mxu3 %v7761_v21  ;;  %v2362_v3 = vpop.f32.mrf.mxu2  ;;  %9473 = vst [vmem:[#allocation81_spill] sm:$0xff] %v7776_v2 }
 0x12d   :  { %v2363_v33 = vadd.f32 %v2362_v3, %v2274_v57  ;;  %v2186_v41 = vpop.f32.mrf.mxu0  ;;  %v7774_v3 = vor.u32 %v6967_v36, %v5513_v56  ;;  %v6169_v36 = vld [vmem:[#allocation5 + $0x1d0] sm:$0xf0]  ;;  %v7229_v56 = vld [vmem:[#allocation5 + $0x4c4] sm:$0xf] }
 0x12e   :  { %v2187_v62 = vadd.f32 %v2186_v41, %v7628_v29 }
 0x12f   :  { %v2451_v34 = vpop.f32.mrf.mxu3  ;;  %v2275_v10 = vpop.f32.mrf.mxu1  ;;  %9472 = vst [vmem:[#allocation80_spill] sm:$0xff] %v7774_v3 }
 0x130   :  { %v7770_v35 = vadd.f32 %v2451_v34, %v2363_v33  ;;  %v2276_v46 = vadd.f32 %v2275_v10, %v2187_v62  ;;  %v7197_v10 = vld [vmem:[#allocation5 + $0x3c4] sm:$0xf] }
 0x134   :  { %v2364_v11 = vpop.f32.mrf.mxu2 }
 0x135   :  { %v2365_v21 = vadd.f32 %v2364_v11, %v2276_v46  ;;  %v2189_v57 = vpop.f32.mrf.mxu0  ;;  %v6425_v46 = vld [vmem:[#allocation5 + $0x3d0] sm:$0xf0]  ;;  %v6172_v11 = vor.u32 %v7133_v6, %v6169_v36  ;;  %v5541_v6 = vld [vmem:[#allocation2 + $0x64] sm:$0xf0]  ;;  %v5547_v36 = vld [vmem:[#allocation2 + $0x50] sm:$0xf] }
 0x136   :  { %v2190_v33 = vadd.f32 %v2189_v57, %v7628_v29  ;;  %v6428_v19 = vor.u32 %v7197_v10, %v6425_v46 }
 0x137   :  { %v2453_v61 = vpop.f32.mrf.mxu3  ;;  %v2278_v34 = vpop.f32.mrf.mxu1  ;;  %2853 = vmatpush.bf16.msra.mxu0 %v6172_v11 }
 0x138   :  { %v7779_v41 = vadd.f32 %v2453_v61, %v2365_v21  ;;  %v2279_v62 = vadd.f32 %v2278_v34, %v2190_v33  ;;  %2504 = vmatmul.bf16.vlgmr.msrb.gmra.mxu0 %v7772_v48  ;;  %v6556_v61 = vor.u32 %v7229_v56, %v6553_v40  ;;  %3031 = vmatpush.bf16.msra.mxu2 %v6428_v19 }
 0x139   :  { %2682 = vmatmul.bf16.vlgmr.msrb.gmra.mxu2 %v7776_v2  ;;  %v7165_v2 = vld [vmem:[#allocation5 + $0x2c4] sm:$0xf]  ;;  %v7788_v19 = vor.u32 %v6977_v54, %v5539_v55 }
 0x13a   :  { %2593 = vmatmul.bf16.vlgmr.msrb.gmra.mxu1 %v7774_v3  ;;  %3120 = vmatpush.bf16.msra.mxu3 %v6556_v61  ;;  %v6300_v46 = vor.u32 %v7165_v2, %v6297_v1  ;;  %v7790_v61 = vor.u32 %v6974_v50, %v5541_v6 }
 0x13b   :  { %9474 = vst [vmem:[#allocation82_spill] sm:$0xff] %v7788_v19 }
 0x13c   :  { %2771 = vmatmul.bf16.vlgmr.msrb.gmra.mxu3 %v7532_v47  ;;  %v2367_v45 = vpop.f32.mrf.mxu2  ;;  %2942 = vmatpush.bf16.msra.mxu1 %v6300_v46  ;;  %9475 = vst [vmem:[#allocation83_spill] sm:$0xff] %v7790_v61 }
 0x13d   :  { %v2368_v21 = vadd.f32 %v2367_v45, %v2279_v62  ;;  %v2191_v33 = vpop.f32.mrf.mxu0  ;;  %v6978_v62 = vld [vmem:[#allocation2 + $0x68] sm:$0xf0] }
 0x13e   :  { %v2192_v34 = vadd.f32 %v2191_v33, %v7628_v29 }
 0x13f   :  { %v2456_v57 = vpop.f32.mrf.mxu3  ;;  %v2280_v3 = vpop.f32.mrf.mxu1 }
 0x140   :  { %v7786_v47 = vadd.f32 %v2456_v57, %v2368_v21  ;;  %v2281_v10 = vadd.f32 %v2280_v3, %v2192_v34  ;;  %v7792_v21 = vor.u32 %v6978_v62, %v5547_v36  ;;  %v5567_v36 = vld [vmem:[#allocation2 + $0x80] sm:$0xf]  ;;  %v6984_v62 = vld [vmem:[#allocation2 + $0x98] sm:$0xf0] }
 0x142   :  { %9476 = vst [vmem:[#allocation84_spill] sm:$0xff] %v7792_v21 }
 0x144   :  { %v2369_v56 = vpop.f32.mrf.mxu2 }
 0x145   :  { %v2370_v40 = vadd.f32 %v2369_v56, %v2281_v10  ;;  %v2194_v11 = vpop.f32.mrf.mxu0  ;;  %v6981_v56 = vld [vmem:[#allocation2 + $0x84] sm:$0xf] }
 0x146   :  { %v2195_v3 = vadd.f32 %v2194_v11, %v7628_v29  ;;  %v6985_v11 = vld [vmem:[#allocation2 + $0xa0] sm:$0xf0] }
 0x147   :  { %v2458_v45 = vpop.f32.mrf.mxu3  ;;  %v2283_v1 = vpop.f32.mrf.mxu1 }
 0x148   :  { %v7795_v2 = vadd.f32 %v2458_v45, %v2370_v40  ;;  %v2284_v57 = vadd.f32 %v2283_v1, %v2195_v3  ;;  %2509 = vmatmul.bf16.gmra.mxu0 %v7788_v19  ;;  %v5569_v40 = vld [vmem:[#allocation2 + $0x9c] sm:$0xf0]  ;;  %v5575_v45 = vld [vmem:[#allocation2 + $0x88] sm:$0xf]  ;;  %v7804_v1 = vor.u32 %v6984_v62, %v5567_v36  ;;  %v7129_v36 = vld [vmem:[#allocation5 + $0x1a4] sm:$0xf] }
 0x149   :  { %2687 = vmatmul.bf16.gmra.mxu2 %v7792_v21 }
 0x14a   :  { %2598 = vmatmul.bf16.gmra.mxu1 %v7790_v61  ;;  %9477 = vst [vmem:[#allocation85_spill] sm:$0xff] %v7804_v1  ;;  %v7808_v61 = vor.u32 %v6985_v11, %v5575_v45  ;;  %v6537_v45 = vld [vmem:[#allocation5 + $0x4b0] sm:$0xf0] }
 0x14c   :  { %2776 = vmatmul.bf16.gmra.mxu3 %v7544_v12  ;;  %v2372_v54 = vpop.f32.mrf.mxu2  ;;  %9479 = vst [vmem:[#allocation87_spill] sm:$0xff] %v7808_v61 }
 0x14d   :  { %v2373_v55 = vadd.f32 %v2372_v54, %v2284_v57  ;;  %v2196_v33 = vpop.f32.mrf.mxu0  ;;  %v7806_v54 = vor.u32 %v6981_v56, %v5569_v40  ;;  %v6153_v56 = vld [vmem:[#allocation5 + $0x1b0] sm:$0xf0]  ;;  %v7225_v40 = vld [vmem:[#allocation5 + $0x4a4] sm:$0xf] }
 0x14e   :  { %v2197_v34 = vadd.f32 %v2196_v33, %v7628_v29 }
 0x14f   :  { %v2461_v50 = vpop.f32.mrf.mxu3  ;;  %v2285_v10 = vpop.f32.mrf.mxu1  ;;  %9478 = vst [vmem:[#allocation86_spill] sm:$0xff] %v7806_v54 }
 0x150   :  { %v7802_v46 = vadd.f32 %v2461_v50, %v2373_v55  ;;  %v2286_v6 = vadd.f32 %v2285_v10, %v2197_v34  ;;  %v7193_v10 = vld [vmem:[#allocation5 + $0x3a4] sm:$0xf] }
 0x154   :  { %v2374_v3 = vpop.f32.mrf.mxu2 }
 0x155   :  { %v2375_v12 = vadd.f32 %v2374_v3, %v2286_v6  ;;  %v2199_v57 = vpop.f32.mrf.mxu0  ;;  %v6409_v6 = vld [vmem:[#allocation5 + $0x3b0] sm:$0xf0]  ;;  %v6156_v3 = vor.u32 %v7129_v36, %v6153_v56  ;;  %v5597_v36 = vld [vmem:[#allocation2 + $0xd4] sm:$0xf0]  ;;  %v5603_v56 = vld [vmem:[#allocation2 + $0xc0] sm:$0xf] }
 0x156   :  { %v2200_v55 = vadd.f32 %v2199_v57, %v7628_v29  ;;  %v6412_v62 = vor.u32 %v7193_v10, %v6409_v6 }
 0x157   :  { %v2463_v21 = vpop.f32.mrf.mxu3  ;;  %v2288_v50 = vpop.f32.mrf.mxu1  ;;  %2854 = vmatpush.bf16.msra.mxu0 %v6156_v3 }
 0x158   :  { %v7811_v33 = vadd.f32 %v2463_v21, %v2375_v12  ;;  %v2289_v34 = vadd.f32 %v2288_v50, %v2200_v55  ;;  %2514 = vmatmul.bf16.gmra.mxu0 %v7804_v1  ;;  %v6540_v12 = vor.u32 %v7225_v40, %v6537_v45  ;;  %3032 = vmatpush.bf16.msra.mxu2 %v6412_v62  ;;  %v6281_v1 = vld [vmem:[#allocation5 + $0x2b0] sm:$0xf0] }
 0x159   :  { %2692 = vmatmul.bf16.gmra.mxu2 %v7808_v61  ;;  %v7161_v61 = vld [vmem:[#allocation5 + $0x2a4] sm:$0xf]  ;;  %v7820_v62 = vor.u32 %v6991_v26, %v5595_v27 }
 0x15a   :  { %2603 = vmatmul.bf16.gmra.mxu1 %v7806_v54  ;;  %3121 = vmatpush.bf16.msra.mxu3 %v6540_v12  ;;  %v6284_v6 = vor.u32 %v7161_v61, %v6281_v1  ;;  %v7822_v12 = vor.u32 %v6988_v25, %v5597_v36 }
 0x15b   :  { %9480 = vst [vmem:[#allocation88_spill] sm:$0xff] %v7820_v62 }
 0x15c   :  { %2781 = vmatmul.bf16.gmra.mxu3 %v7556_v24  ;;  %v2377_v11 = vpop.f32.mrf.mxu2  ;;  %2943 = vmatpush.bf16.msra.mxu1 %v6284_v6  ;;  %9481 = vst [vmem:[#allocation89_spill] sm:$0xff] %v7822_v12 }
 0x15d   :  { %v2378_v21 = vadd.f32 %v2377_v11, %v2289_v34  ;;  %v2201_v55 = vpop.f32.mrf.mxu0  ;;  %v6992_v34 = vld [vmem:[#allocation2 + $0xd8] sm:$0xf0] }
 0x15e   :  { %v2202_v50 = vadd.f32 %v2201_v55, %v7628_v29 }
 0x15f   :  { %v2466_v57 = vpop.f32.mrf.mxu3  ;;  %v2290_v54 = vpop.f32.mrf.mxu1 }
 0x160   :  { %v7818_v24 = vadd.f32 %v2466_v57, %v2378_v21  ;;  %v2291_v10 = vadd.f32 %v2290_v54, %v2202_v50  ;;  %v7824_v21 = vor.u32 %v6992_v34, %v5603_v56  ;;  %v5623_v56 = vld [vmem:[#allocation2 + $0xf0] sm:$0xf]  ;;  %v6998_v34 = vld [vmem:[#allocation2 + $0x108] sm:$0xf0] }
 0x162   :  { %9482 = vst [vmem:[#allocation90_spill] sm:$0xff] %v7824_v21 }
 0x164   :  { %v2379_v40 = vpop.f32.mrf.mxu2 }
 0x165   :  { %v2380_v45 = vadd.f32 %v2379_v40, %v2291_v10  ;;  %v2204_v3 = vpop.f32.mrf.mxu0  ;;  %v6995_v40 = vld [vmem:[#allocation2 + $0xf4] sm:$0xf] }
 0x166   :  { %v2205_v54 = vadd.f32 %v2204_v3, %v7628_v29  ;;  %v6999_v3 = vld [vmem:[#allocation2 + $0x110] sm:$0xf0] }
 0x167   :  { %v2468_v11 = vpop.f32.mrf.mxu3  ;;  %v2293_v61 = vpop.f32.mrf.mxu1 }
 0x168   :  { %v7827_v1 = vadd.f32 %v2468_v11, %v2380_v45  ;;  %v2294_v57 = vadd.f32 %v2293_v61, %v2205_v54  ;;  %2519 = vmatmul.bf16.gmra.mxu0 %v7820_v62  ;;  %v5625_v45 = vld [vmem:[#allocation2 + $0x10c] sm:$0xf0]  ;;  %v5631_v11 = vld [vmem:[#allocation2 + $0xf8] sm:$0xf]  ;;  %v7836_v61 = vor.u32 %v6998_v34, %v5623_v56  ;;  %v7125_v56 = vld [vmem:[#allocation5 + $0x184] sm:$0xf] }
 0x169   :  { %2697 = vmatmul.bf16.gmra.mxu2 %v7824_v21  ;;  %v7005_v62 = vld [vmem:[#allocation2 + $0x140] sm:$0xf0] }
 0x16a   :  { %2608 = vmatmul.bf16.gmra.mxu1 %v7822_v12  ;;  %9484 = vst [vmem:[#allocation92_spill] sm:$0xff] %v7836_v61  ;;  %v7840_v12 = vor.u32 %v6999_v3, %v5631_v11  ;;  %v6521_v11 = vld [vmem:[#allocation5 + $0x490] sm:$0xf0] }
 0x16c   :  { %2786 = vmatmul.bf16.gmra.mxu3 %v7568_v49  ;;  %v2382_v26 = vpop.f32.mrf.mxu2  ;;  %9486 = vst [vmem:[#allocation94_spill] sm:$0xff] %v7840_v12 }
 0x16d   :  { %v2383_v27 = vadd.f32 %v2382_v26, %v2294_v57  ;;  %v2206_v55 = vpop.f32.mrf.mxu0  ;;  %v7838_v26 = vor.u32 %v6995_v40, %v5625_v45  ;;  %v6137_v40 = vld [vmem:[#allocation5 + $0x190] sm:$0xf0]  ;;  %v7221_v45 = vld [vmem:[#allocation5 + $0x484] sm:$0xf] }
 0x16e   :  { %v2207_v50 = vadd.f32 %v2206_v55, %v7628_v29 }
 0x16f   :  { %v2471_v25 = vpop.f32.mrf.mxu3  ;;  %v2295_v10 = vpop.f32.mrf.mxu1  ;;  %9485 = vst [vmem:[#allocation93_spill] sm:$0xff] %v7838_v26 }
 0x170   :  { %v7834_v6 = vadd.f32 %v2471_v25, %v2383_v27  ;;  %v2296_v36 = vadd.f32 %v2295_v10, %v2207_v50  ;;  %v7189_v10 = vld [vmem:[#allocation5 + $0x384] sm:$0xf] }
 0x172   :  { %9483 = vst [vmem:[#allocation91_spill] sm:$0xff] %v7834_v6  ;;  %v7002_v6 = vld [vmem:[#allocation2 + $0x12c] sm:$0xf] }
 0x174   :  { %v2384_v54 = vpop.f32.mrf.mxu2 }
 0x175   :  { %v2385_v49 = vadd.f32 %v2384_v54, %v2296_v36  ;;  %v2209_v57 = vpop.f32.mrf.mxu0  ;;  %v6393_v36 = vld [vmem:[#allocation5 + $0x390] sm:$0xf0]  ;;  %v6140_v54 = vor.u32 %v7125_v56, %v6137_v40  ;;  %v5653_v56 = vld [vmem:[#allocation2 + $0x144] sm:$0xf0]  ;;  %v5659_v40 = vld [vmem:[#allocation2 + $0x130] sm:$0xf] }
 0x176   :  { %v2210_v27 = vadd.f32 %v2209_v57, %v7628_v29  ;;  %v6396_v34 = vor.u32 %v7189_v10, %v6393_v36 }
 0x177   :  { %v2473_v21 = vpop.f32.mrf.mxu3  ;;  %v2298_v25 = vpop.f32.mrf.mxu1  ;;  %2855 = vmatpush.bf16.msra.mxu0 %v6140_v54 }
 0x178   :  { %v7843_v55 = vadd.f32 %v2473_v21, %v2385_v49  ;;  %v2299_v50 = vadd.f32 %v2298_v25, %v2210_v27  ;;  %2524 = vmatmul.bf16.gmra.mxu0 %v7836_v61  ;;  %v6524_v49 = vor.u32 %v7221_v45, %v6521_v11  ;;  %3033 = vmatpush.bf16.msra.mxu2 %v6396_v34  ;;  %v6265_v61 = vld [vmem:[#allocation5 + $0x290] sm:$0xf0] }
 0x179   :  { %2702 = vmatmul.bf16.gmra.mxu2 %v7840_v12  ;;  %v7157_v12 = vld [vmem:[#allocation5 + $0x284] sm:$0xf] }
 0x17a   :  { %9487 = vst [vmem:[#allocation95_spill] sm:$0xff] %v7843_v55  ;;  %2613 = vmatmul.bf16.gmra.mxu1 %v7838_v26  ;;  %3122 = vmatpush.bf16.msra.mxu3 %v6524_v49  ;;  %v6268_v36 = vor.u32 %v7157_v12, %v6265_v61  ;;  %v5651_v55 = vld [vmem:[#allocation2 + $0x128] sm:$0xf]  ;;  %v7854_v49 = vor.u32 %v7002_v6, %v5653_v56 }
 0x17b   :  { %v7852_v34 = vor.u32 %v7005_v62, %v5651_v55 }
 0x17c   :  { %2791 = vmatmul.bf16.gmra.mxu3 %v7580_v0  ;;  %v2387_v3 = vpop.f32.mrf.mxu2  ;;  %2944 = vmatpush.bf16.msra.mxu1 %v6268_v36  ;;  %9489 = vst [vmem:[#allocation97_spill] sm:$0xff] %v7854_v49 }
 0x17d   :  { %v2388_v21 = vadd.f32 %v2387_v3, %v2299_v50  ;;  %v2211_v27 = vpop.f32.mrf.mxu0  ;;  %v7006_v50 = vld [vmem:[#allocation2 + $0x148] sm:$0xf0]  ;;  %9488 = vst [vmem:[#allocation96_spill] sm:$0xff] %v7852_v34 }
 0x17e   :  { %v2212_v25 = vadd.f32 %v2211_v27, %v7628_v29 }
 0x17f   :  { %v2476_v57 = vpop.f32.mrf.mxu3  ;;  %v2300_v26 = vpop.f32.mrf.mxu1 }
 0x180   :  { %v7850_v0 = vadd.f32 %v2476_v57, %v2388_v21  ;;  %v2301_v10 = vadd.f32 %v2300_v26, %v2212_v25  ;;  %v7856_v21 = vor.u32 %v7006_v50, %v5659_v40  ;;  %v5679_v40 = vld [vmem:[#allocation2 + $0x160] sm:$0xf]  ;;  %v7012_v50 = vld [vmem:[#allocation2 + $0x178] sm:$0xf0] }
 0x182   :  { %9490 = vst [vmem:[#allocation98_spill] sm:$0xff] %v7856_v21 }
 0x184   :  { %v2389_v45 = vpop.f32.mrf.mxu2 }
 0x185   :  { %v2390_v11 = vadd.f32 %v2389_v45, %v2301_v10  ;;  %v2214_v54 = vpop.f32.mrf.mxu0  ;;  %v7009_v45 = vld [vmem:[#allocation2 + $0x164] sm:$0xf] }
 0x186   :  { %v2215_v26 = vadd.f32 %v2214_v54, %v7628_v29  ;;  %v7013_v54 = vld [vmem:[#allocation2 + $0x180] sm:$0xf0] }
 0x187   :  { %v2478_v3 = vpop.f32.mrf.mxu3  ;;  %v2303_v12 = vpop.f32.mrf.mxu1 }
 0x188   :  { %v7859_v61 = vadd.f32 %v2478_v3, %v2390_v11  ;;  %v2304_v57 = vadd.f32 %v2303_v12, %v2215_v26  ;;  %2529 = vmatmul.bf16.gmra.mxu0 %v7852_v34  ;;  %v5681_v11 = vld [vmem:[#allocation2 + $0x17c] sm:$0xf0]  ;;  %v5687_v3 = vld [vmem:[#allocation2 + $0x168] sm:$0xf]  ;;  %v7868_v12 = vor.u32 %v7012_v50, %v5679_v40  ;;  %v7121_v40 = vld [vmem:[#allocation5 + $0x164] sm:$0xf] }
 0x189   :  { %2707 = vmatmul.bf16.gmra.mxu2 %v7856_v21  ;;  %v7019_v34 = vld [vmem:[#allocation2 + $0x1b0] sm:$0xf0] }
 0x18a   :  { %2618 = vmatmul.bf16.gmra.mxu1 %v7854_v49  ;;  %9492 = vst [vmem:[#allocation100_spill] sm:$0xff] %v7868_v12  ;;  %v7872_v49 = vor.u32 %v7013_v54, %v5687_v3  ;;  %v6505_v3 = vld [vmem:[#allocation5 + $0x470] sm:$0xf0] }
 0x18c   :  { %2796 = vmatmul.bf16.gmra.mxu3 %v7592_v32  ;;  %v2392_v62 = vpop.f32.mrf.mxu2  ;;  %9494 = vst [vmem:[#allocation102_spill] sm:$0xff] %v7872_v49 }
 0x18d   :  { %v2393_v55 = vadd.f32 %v2392_v62, %v2304_v57  ;;  %v2216_v27 = vpop.f32.mrf.mxu0  ;;  %v7870_v62 = vor.u32 %v7009_v45, %v5681_v11  ;;  %v6121_v45 = vld [vmem:[#allocation5 + $0x170] sm:$0xf0]  ;;  %v7217_v11 = vld [vmem:[#allocation5 + $0x464] sm:$0xf] }
 0x18e   :  { %v2217_v25 = vadd.f32 %v2216_v27, %v7628_v29 }
 0x18f   :  { %v2481_v6 = vpop.f32.mrf.mxu3  ;;  %v2305_v10 = vpop.f32.mrf.mxu1  ;;  %9493 = vst [vmem:[#allocation101_spill] sm:$0xff] %v7870_v62 }
 0x190   :  { %v7866_v36 = vadd.f32 %v2481_v6, %v2393_v55  ;;  %v2306_v56 = vadd.f32 %v2305_v10, %v2217_v25  ;;  %v7185_v10 = vld [vmem:[#allocation5 + $0x364] sm:$0xf] }
 0x192   :  { %9491 = vst [vmem:[#allocation99_spill] sm:$0xff] %v7866_v36  ;;  %v7016_v36 = vld [vmem:[#allocation2 + $0x19c] sm:$0xf] }
 0x194   :  { %v2394_v26 = vpop.f32.mrf.mxu2 }
 0x195   :  { %v2395_v32 = vadd.f32 %v2394_v26, %v2306_v56  ;;  %v2219_v57 = vpop.f32.mrf.mxu0  ;;  %v6377_v56 = vld [vmem:[#allocation5 + $0x370] sm:$0xf0]  ;;  %v6124_v26 = vor.u32 %v7121_v40, %v6121_v45  ;;  %v5709_v40 = vld [vmem:[#allocation2 + $0x1b4] sm:$0xf0]  ;;  %v5715_v45 = vld [vmem:[#allocation2 + $0x1a0] sm:$0xf] }
 0x196   :  { %v2220_v55 = vadd.f32 %v2219_v57, %v7628_v29  ;;  %v6380_v50 = vor.u32 %v7185_v10, %v6377_v56 }
 0x197   :  { %v2483_v21 = vpop.f32.mrf.mxu3  ;;  %v2308_v6 = vpop.f32.mrf.mxu1  ;;  %2856 = vmatpush.bf16.msra.mxu0 %v6124_v26 }
 0x198   :  { %v7875_v27 = vadd.f32 %v2483_v21, %v2395_v32  ;;  %v2309_v25 = vadd.f32 %v2308_v6, %v2220_v55  ;;  %2534 = vmatmul.bf16.gmra.mxu0 %v7868_v12  ;;  %v6508_v32 = vor.u32 %v7217_v11, %v6505_v3  ;;  %3034 = vmatpush.bf16.msra.mxu2 %v6380_v50  ;;  %v6249_v12 = vld [vmem:[#allocation5 + $0x270] sm:$0xf0] }
 0x199   :  { %2712 = vmatmul.bf16.gmra.mxu2 %v7872_v49  ;;  %v7153_v49 = vld [vmem:[#allocation5 + $0x264] sm:$0xf] }
 0x19a   :  { %9495 = vst [vmem:[#allocation103_spill] sm:$0xff] %v7875_v27  ;;  %2623 = vmatmul.bf16.gmra.mxu1 %v7870_v62  ;;  %3123 = vmatpush.bf16.msra.mxu3 %v6508_v32  ;;  %v6252_v56 = vor.u32 %v7153_v49, %v6249_v12  ;;  %v5707_v27 = vld [vmem:[#allocation2 + $0x198] sm:$0xf]  ;;  %v7886_v32 = vor.u32 %v7016_v36, %v5709_v40 }
 0x19b   :  { %v7884_v50 = vor.u32 %v7019_v34, %v5707_v27 }
 0x19c   :  { %2801 = vmatmul.bf16.gmra.mxu3 %v7604_v44  ;;  %v2397_v54 = vpop.f32.mrf.mxu2  ;;  %2945 = vmatpush.bf16.msra.mxu1 %v6252_v56  ;;  %9497 = vst [vmem:[#allocation105_spill] sm:$0xff] %v7886_v32 }
 0x19d   :  { %v2398_v21 = vadd.f32 %v2397_v54, %v2309_v25  ;;  %v2221_v55 = vpop.f32.mrf.mxu0  ;;  %v7020_v25 = vld [vmem:[#allocation2 + $0x1b8] sm:$0xf0]  ;;  %9496 = vst [vmem:[#allocation104_spill] sm:$0xff] %v7884_v50 }
 0x19e   :  { %v2222_v6 = vadd.f32 %v2221_v55, %v7628_v29 }
 0x19f   :  { %v2486_v57 = vpop.f32.mrf.mxu3  ;;  %v2310_v62 = vpop.f32.mrf.mxu1 }
 0x1a0   :  { %v7882_v44 = vadd.f32 %v2486_v57, %v2398_v21  ;;  %v2311_v10 = vadd.f32 %v2310_v62, %v2222_v6  ;;  %v7888_v21 = vor.u32 %v7020_v25, %v5715_v45  ;;  %v5735_v45 = vld [vmem:[#allocation2 + $0x1d0] sm:$0xf]  ;;  %v7026_v25 = vld [vmem:[#allocation2 + $0x1e8] sm:$0xf0] }
 0x1a2   :  { %9498 = vst [vmem:[#allocation106_spill] sm:$0xff] %v7888_v21 }
 0x1a4   :  { %v2399_v11 = vpop.f32.mrf.mxu2 }
 0x1a5   :  { %v2400_v3 = vadd.f32 %v2399_v11, %v2311_v10  ;;  %v2224_v26 = vpop.f32.mrf.mxu0  ;;  %v7023_v11 = vld [vmem:[#allocation2 + $0x1d4] sm:$0xf] }
 0x1a6   :  { %v2225_v62 = vadd.f32 %v2224_v26, %v7628_v29  ;;  %v7027_v26 = vld [vmem:[#allocation2 + $0x1f0] sm:$0xf0] }
 0x1a7   :  { %v2488_v54 = vpop.f32.mrf.mxu3  ;;  %v2313_v49 = vpop.f32.mrf.mxu1 }
 0x1a8   :  { %v7891_v12 = vadd.f32 %v2488_v54, %v2400_v3  ;;  %v2314_v57 = vadd.f32 %v2313_v49, %v2225_v62  ;;  %2539 = vmatmul.bf16.gmra.mxu0 %v7884_v50  ;;  %v5737_v3 = vld [vmem:[#allocation2 + $0x1ec] sm:$0xf0]  ;;  %v5743_v54 = vld [vmem:[#allocation2 + $0x1d8] sm:$0xf]  ;;  %v7900_v49 = vor.u32 %v7026_v25, %v5735_v45  ;;  %v6105_v25 = vld [vmem:[#allocation5 + $0x150] sm:$0xf0] }
 0x1a9   :  { %2717 = vmatmul.bf16.gmra.mxu2 %v7888_v21 }
 0x1aa   :  { %2628 = vmatmul.bf16.gmra.mxu1 %v7886_v32  ;;  %9499 = vst [vmem:[#allocation107_spill] sm:$0xff] %v7900_v49  ;;  %v7904_v32 = vor.u32 %v7027_v26, %v5743_v54 }
 0x1ac   :  { %2806 = vmatmul.bf16.gmra.mxu3 %v7616_v20  ;;  %v2402_v34 = vpop.f32.mrf.mxu2  ;;  %9501 = vst [vmem:[#allocation109_spill] sm:$0xff] %v7904_v32 }
 0x1ad   :  { %v2403_v27 = vadd.f32 %v2402_v34, %v2314_v57  ;;  %v2226_v55 = vpop.f32.mrf.mxu0  ;;  %v7902_v34 = vor.u32 %v7023_v11, %v5737_v3  ;;  %v7213_v11 = vld [vmem:[#allocation5 + $0x444] sm:$0xf]  ;;  %v6489_v3 = vld [vmem:[#allocation5 + $0x450] sm:$0xf0] }
 0x1ae   :  { %v2227_v6 = vadd.f32 %v2226_v55, %v7628_v29 }
 0x1af   :  { %v2491_v36 = vpop.f32.mrf.mxu3  ;;  %v2315_v10 = vpop.f32.mrf.mxu1  ;;  %9500 = vst [vmem:[#allocation108_spill] sm:$0xff] %v7902_v34 }
 0x1b0   :  { %v7898_v56 = vadd.f32 %v2491_v36, %v2403_v27  ;;  %v2316_v40 = vadd.f32 %v2315_v10, %v2227_v6  ;;  %v7181_v6 = vld [vmem:[#allocation5 + $0x344] sm:$0xf]  ;;  %v6361_v10 = vld [vmem:[#allocation5 + $0x350] sm:$0xf0] }
 0x1b1   :  { %v6364_v45 = vor.u32 %v7181_v6, %v6361_v10  ;;  %v5763_v10 = vld [vmem:[#allocation2 + $0x208] sm:$0xf] }
 0x1b3   :  { %3035 = vmatpush.bf16.msra.mxu2 %v6364_v45 }
 0x1b4   :  { %v2404_v62 = vpop.f32.mrf.mxu2 }
 0x1b5   :  { %v2405_v20 = vadd.f32 %v2404_v62, %v2316_v40  ;;  %v2505_v57 = vpop.f32.mrf.mxu0  ;;  %v7117_v40 = vld [vmem:[#allocation5 + $0x144] sm:$0xf] }
 0x1b6   :  { %v2506_v29 = vadd.f32 %v2505_v57, %v7644_v30  ;;  %v6108_v54 = vor.u32 %v7117_v40, %v6105_v25  ;;  %v5771_v40 = vld [vmem:[#allocation2 + $0x210] sm:$0xf]  ;;  %v7034_v25 = vld [vmem:[#allocation2 + $0x228] sm:$0xf0] }
 0x1b7   :  { %v2493_v21 = vpop.f32.mrf.mxu3  ;;  %v2594_v27 = vpop.f32.mrf.mxu1 }
 0x1b8   :  { %v7907_v36 = vadd.f32 %v2493_v21, %v2405_v20  ;;  %v2595_v55 = vadd.f32 %v2594_v27, %v2506_v29  ;;  %2544 = vmatmul.bf16.gmra.mxu0 %v7900_v49  ;;  %v6492_v20 = vor.u32 %v7213_v11, %v6489_v3  ;;  %v7149_v27 = vld [vmem:[#allocation5 + $0x244] sm:$0xf]  ;;  %v7030_v49 = vld [vmem:[#allocation2 + $0x20c] sm:$0xf] }
 0x1b9   :  { %2722 = vmatmul.bf16.gmra.mxu2 %v7904_v32  ;;  %2857 = vmatpush.bf16.msra.mxu0 %v6108_v54  ;;  %v7922_v54 = vor.u32 %v7034_v25, %v5771_v40  ;;  %v7040_v40 = vld [vmem:[#allocation2 + $0x258] sm:$0xf0]  ;;  %v7037_v25 = vld [vmem:[#allocation2 + $0x244] sm:$0xf] }
 0x1ba   :  { %9502 = vst [vmem:[#allocation110_spill] sm:$0xff] %v7907_v36  ;;  %2633 = vmatmul.bf16.gmra.mxu1 %v7902_v34  ;;  %3124 = vmatpush.bf16.msra.mxu3 %v6492_v20  ;;  %v7033_v34 = vld [vmem:[#allocation2 + $0x220] sm:$0xf0]  ;;  %v5765_v36 = vld [vmem:[#allocation2 + $0x224] sm:$0xf0] }
 0x1bb   :  { %v7916_v11 = vor.u32 %v7033_v34, %v5763_v10  ;;  %9505 = vst [vmem:[#allocation113_spill] sm:$0xff] %v7922_v54  ;;  %v5791_v10 = vld [vmem:[#allocation2 + $0x240] sm:$0xf] }
 0x1bc   :  { %2811 = vmatmul.bf16.gmra.mxu3 %v7630_v42  ;;  %v2683_v30 = vpop.f32.mrf.mxu2  ;;  %v6233_v42 = vld [vmem:[#allocation5 + $0x250] sm:$0xf0] }
 0x1bd   :  { %v2684_v21 = vadd.f32 %v2683_v30, %v2595_v55  ;;  %v2507_v62 = vpop.f32.mrf.mxu0  ;;  %v6236_v6 = vor.u32 %v7149_v27, %v6233_v42  ;;  %9503 = vst [vmem:[#allocation111_spill] sm:$0xff] %v7916_v11  ;;  %v7920_v30 = vor.u32 %v7030_v49, %v5765_v36 }
 0x1be   :  { %v2508_v57 = vadd.f32 %v2507_v62, %v7655_v17 }
 0x1bf   :  { %v7913_v26 = vpop.f32.mrf.mxu3  ;;  %v2596_v29 = vpop.f32.mrf.mxu1  ;;  %2946 = vmatpush.bf16.msra.mxu1 %v6236_v6  ;;  %9504 = vst [vmem:[#allocation112_spill] sm:$0xff] %v7920_v30  ;;  %v4632_v62 = vmax.f32 %v2684_v21, 0.0 }
 0x1c0   :  { %v2597_v32 = vadd.f32 %v2596_v29, %v2508_v57 }
 0x1c4   :  { %v2685_v55 = vpop.f32.mrf.mxu2 }
 0x1c5   :  { %v2686_v45 = vadd.f32 %v2685_v55, %v2597_v32  ;;  %v2510_v17 = vpop.f32.mrf.mxu0  ;;  %v5793_v55 = vld [vmem:[#allocation2 + $0x25c] sm:$0xf0] }
 0x1c6   :  { %v2511_v42 = vadd.f32 %v2510_v17, %v7662_v39  ;;  %v7041_v17 = vld [vmem:[#allocation2 + $0x260] sm:$0xf0] }
 0x1c7   :  { %v7918_v3 = vpop.f32.mrf.mxu3  ;;  %v2599_v20 = vpop.f32.mrf.mxu1  ;;  %v4636_v57 = vmax.f32 %v2686_v45, 0.0  ;;  %v5799_v45 = vld [vmem:[#allocation2 + $0x248] sm:$0xf] }
 0x1c8   :  { %v2600_v29 = vadd.f32 %v2599_v20, %v2511_v42  ;;  %2549 = vmatmul.bf16.gmra.mxu0 %v7916_v11  ;;  %v7934_v20 = vor.u32 %v7040_v40, %v5791_v10  ;;  %v7177_v10 = vld [vmem:[#allocation5 + $0x324] sm:$0xf]  ;;  %v6345_v40 = vld [vmem:[#allocation5 + $0x330] sm:$0xf0] }
 0x1c9   :  { %v7926_v27 = vpack.c.bf16 %v4636_v57, %v4632_v62  ;;  %2727 = vmatmul.bf16.gmra.mxu2 %v7922_v54  ;;  %v7044_v54 = vld [vmem:[#allocation2 + $0x27c] sm:$0xf] }
 0x1ca   :  { %2638 = vmatmul.bf16.gmra.mxu1 %v7920_v30  ;;  %9507 = vst [vmem:[#allocation115_spill] sm:$0xff] %v7934_v20  ;;  %v5821_v30 = vld [vmem:[#allocation2 + $0x294] sm:$0xf0] }
 0x1cb   :  { %9506 = vst [vmem:[#allocation114_spill] sm:$0xff] %v7926_v27  ;;  %v7940_v27 = vor.u32 %v7041_v17, %v5799_v45  ;;  %v6089_v45 = vld [vmem:[#allocation5 + $0x130] sm:$0xf0] }
 0x1cc   :  { %2816 = vmatmul.bf16.gmra.mxu3 %v7646_v4  ;;  %v2688_v32 = vpop.f32.mrf.mxu2  ;;  %v6473_v17 = vld [vmem:[#allocation5 + $0x430] sm:$0xf0] }
 0x1cd   :  { %v2689_v49 = vadd.f32 %v2688_v32, %v2600_v29  ;;  %v2512_v36 = vpop.f32.mrf.mxu0  ;;  %v7938_v32 = vor.u32 %v7037_v25, %v5793_v55  ;;  %9509 = vst [vmem:[#allocation117_spill] sm:$0xff] %v7940_v27  ;;  %v7113_v25 = vld [vmem:[#allocation5 + $0x124] sm:$0xf]  ;;  %v6348_v55 = vor.u32 %v7177_v10, %v6345_v40  ;;  %v5819_v40 = vld [vmem:[#allocation2 + $0x278] sm:$0xf] }
 0x1ce   :  { %v2513_v39 = vadd.f32 %v2512_v36, %v7673_v38 }
 0x1cf   :  { %v7931_v34 = vpop.f32.mrf.mxu3  ;;  %v2601_v21 = vpop.f32.mrf.mxu1  ;;  %9508 = vst [vmem:[#allocation116_spill] sm:$0xff] %v7938_v32  ;;  %3036 = vmatpush.bf16.msra.mxu2 %v6348_v55 }
 0x1d0   :  { %v2602_v6 = vadd.f32 %v2601_v21, %v2513_v39  ;;  %v4640_v39 = vmax.f32 %v2689_v49, 0.0 }
 0x1d4   :  { %v2690_v42 = vpop.f32.mrf.mxu2 }
 0x1d5   :  { %v2691_v62 = vadd.f32 %v2690_v42, %v2602_v6  ;;  %v2515_v29 = vpop.f32.mrf.mxu0  ;;  %v6092_v42 = vor.u32 %v7113_v25, %v6089_v45  ;;  %v5827_v25 = vld [vmem:[#allocation2 + $0x280] sm:$0xf]  ;;  %v7048_v45 = vld [vmem:[#allocation2 + $0x298] sm:$0xf0] }
 0x1d6   :  { %v2516_v38 = vadd.f32 %v2515_v29, %v7680_v37  ;;  %v7209_v37 = vld [vmem:[#allocation5 + $0x424] sm:$0xf] }
 0x1d7   :  { %v7936_v57 = vpop.f32.mrf.mxu3  ;;  %v2604_v36 = vpop.f32.mrf.mxu1  ;;  %v4644_v21 = vmax.f32 %v2691_v62, 0.0  ;;  %v6476_v62 = vor.u32 %v7209_v37, %v6473_v17  ;;  %2858 = vmatpush.bf16.msra.mxu0 %v6092_v42  ;;  %v7958_v42 = vor.u32 %v7048_v45, %v5827_v25  ;;  %v7054_v25 = vld [vmem:[#allocation2 + $0x2c8] sm:$0xf0]  ;;  %v7051_v45 = vld [vmem:[#allocation2 + $0x2b4] sm:$0xf] }
 0x1d8   :  { %v2605_v4 = vadd.f32 %v2604_v36, %v2516_v38  ;;  %2554 = vmatmul.bf16.gmra.mxu0 %v7934_v20 }
 0x1d9   :  { %2732 = vmatmul.bf16.gmra.mxu2 %v7940_v27  ;;  %v7946_v6 = vpack.c.bf16 %v4644_v21, %v4640_v39  ;;  %3125 = vmatpush.bf16.msra.mxu3 %v6476_v62  ;;  %9513 = vst [vmem:[#allocation121_spill] sm:$0xff] %v7958_v42 }
 0x1da   :  { %2643 = vmatmul.bf16.gmra.mxu1 %v7938_v32  ;;  %v7047_v32 = vld [vmem:[#allocation2 + $0x290] sm:$0xf0] }
 0x1db   :  { %9510 = vst [vmem:[#allocation118_spill] sm:$0xff] %v7946_v6  ;;  %v7145_v6 = vld [vmem:[#allocation5 + $0x224] sm:$0xf]  ;;  %v7952_v37 = vor.u32 %v7047_v32, %v5819_v40  ;;  %v5847_v40 = vld [vmem:[#allocation2 + $0x2b0] sm:$0xf] }
 0x1dc   :  { %2821 = vmatmul.bf16.gmra.mxu3 %v7664_v7  ;;  %v2693_v49 = vpop.f32.mrf.mxu2  ;;  %v6217_v7 = vld [vmem:[#allocation5 + $0x230] sm:$0xf0] }
 0x1dd   :  { %v2694_v29 = vadd.f32 %v2693_v49, %v2605_v4  ;;  %v2517_v36 = vpop.f32.mrf.mxu0  ;;  %v6220_v10 = vor.u32 %v7145_v6, %v6217_v7  ;;  %9511 = vst [vmem:[#allocation119_spill] sm:$0xff] %v7952_v37  ;;  %v7956_v49 = vor.u32 %v7044_v54, %v5821_v30 }
 0x1de   :  { %v2518_v39 = vadd.f32 %v2517_v36, %v7691_v31 }
 0x1df   :  { %v7949_v38 = vpop.f32.mrf.mxu3  ;;  %v2606_v21 = vpop.f32.mrf.mxu1  ;;  %2947 = vmatpush.bf16.msra.mxu1 %v6220_v10  ;;  %9512 = vst [vmem:[#allocation120_spill] sm:$0xff] %v7956_v49  ;;  %v4648_v62 = vmax.f32 %v2694_v29, 0.0 }
 0x1e0   :  { %v2607_v27 = vadd.f32 %v2606_v21, %v2518_v39 }
 0x1e4   :  { %v2695_v4 = vpop.f32.mrf.mxu2 }
 0x1e5   :  { %v2696_v55 = vadd.f32 %v2695_v4, %v2607_v27  ;;  %v2520_v31 = vpop.f32.mrf.mxu0  ;;  %v5849_v4 = vld [vmem:[#allocation2 + $0x2cc] sm:$0xf0] }
 0x1e6   :  { %v2521_v7 = vadd.f32 %v2520_v31, %v7698_v16  ;;  %v7055_v31 = vld [vmem:[#allocation2 + $0x2d0] sm:$0xf0] }
 0x1e7   :  { %v7954_v17 = vpop.f32.mrf.mxu3  ;;  %v2609_v6 = vpop.f32.mrf.mxu1  ;;  %v4652_v36 = vmax.f32 %v2696_v55, 0.0  ;;  %v5855_v55 = vld [vmem:[#allocation2 + $0x2b8] sm:$0xf] }
 0x1e8   :  { %v2610_v39 = vadd.f32 %v2609_v6, %v2521_v7  ;;  %2559 = vmatmul.bf16.gmra.mxu0 %v7952_v37  ;;  %v7970_v6 = vor.u32 %v7054_v25, %v5847_v40  ;;  %v7173_v40 = vld [vmem:[#allocation5 + $0x304] sm:$0xf]  ;;  %v6329_v25 = vld [vmem:[#allocation5 + $0x310] sm:$0xf0] }
 0x1e9   :  { %2737 = vmatmul.bf16.gmra.mxu2 %v7958_v42  ;;  %v7964_v27 = vpack.c.bf16 %v4652_v36, %v4648_v62  ;;  %v7058_v42 = vld [vmem:[#allocation2 + $0x2ec] sm:$0xf] }
 0x1ea   :  { %2648 = vmatmul.bf16.gmra.mxu1 %v7956_v49  ;;  %9515 = vst [vmem:[#allocation123_spill] sm:$0xff] %v7970_v6  ;;  %v5877_v49 = vld [vmem:[#allocation2 + $0x304] sm:$0xf0] }
 0x1eb   :  { %9514 = vst [vmem:[#allocation122_spill] sm:$0xff] %v7964_v27  ;;  %v7976_v27 = vor.u32 %v7055_v31, %v5855_v55  ;;  %v6073_v55 = vld [vmem:[#allocation5 + $0x110] sm:$0xf0] }
 0x1ec   :  { %2826 = vmatmul.bf16.gmra.mxu3 %v7682_v63  ;;  %v2698_v30 = vpop.f32.mrf.mxu2  ;;  %v6457_v31 = vld [vmem:[#allocation5 + $0x410] sm:$0xf0] }
 0x1ed   :  { %v2699_v54 = vadd.f32 %v2698_v30, %v2610_v39  ;;  %v2522_v21 = vpop.f32.mrf.mxu0  ;;  %v7974_v30 = vor.u32 %v7051_v45, %v5849_v4  ;;  %9517 = vst [vmem:[#allocation125_spill] sm:$0xff] %v7976_v27  ;;  %v7109_v45 = vld [vmem:[#allocation5 + $0x104] sm:$0xf]  ;;  %v6332_v4 = vor.u32 %v7173_v40, %v6329_v25  ;;  %v5875_v25 = vld [vmem:[#allocation2 + $0x2e8] sm:$0xf] }
 0x1ee   :  { %v2523_v16 = vadd.f32 %v2522_v21, %v7709_v59 }
 0x1ef   :  { %v7967_v32 = vpop.f32.mrf.mxu3  ;;  %v2611_v29 = vpop.f32.mrf.mxu1  ;;  %9516 = vst [vmem:[#allocation124_spill] sm:$0xff] %v7974_v30  ;;  %3037 = vmatpush.bf16.msra.mxu2 %v6332_v4 }
 0x1f0   :  { %v2612_v10 = vadd.f32 %v2611_v29, %v2523_v16  ;;  %v4656_v16 = vmax.f32 %v2699_v54, 0.0 }
 0x1f4   :  { %v2700_v7 = vpop.f32.mrf.mxu2 }
 0x1f5   :  { %v2701_v62 = vadd.f32 %v2700_v7, %v2612_v10  ;;  %v2525_v39 = vpop.f32.mrf.mxu0  ;;  %v6076_v7 = vor.u32 %v7109_v45, %v6073_v55  ;;  %v5883_v45 = vld [vmem:[#allocation2 + $0x2f0] sm:$0xf]  ;;  %v7062_v55 = vld [vmem:[#allocation2 + $0x308] sm:$0xf0] }
 0x1f6   :  { %v2526_v59 = vadd.f32 %v2525_v39, %v7716_v43  ;;  %v7205_v43 = vld [vmem:[#allocation5 + $0x404] sm:$0xf] }
 0x1f7   :  { %v7972_v36 = vpop.f32.mrf.mxu3  ;;  %v2614_v21 = vpop.f32.mrf.mxu1  ;;  %v4660_v29 = vmax.f32 %v2701_v62, 0.0  ;;  %v6460_v62 = vor.u32 %v7205_v43, %v6457_v31  ;;  %2859 = vmatpush.bf16.msra.mxu0 %v6076_v7  ;;  %v7994_v7 = vor.u32 %v7062_v55, %v5883_v45  ;;  %v7068_v45 = vld [vmem:[#allocation2 + $0x338] sm:$0xf0]  ;;  %v7065_v55 = vld [vmem:[#allocation2 + $0x324] sm:$0xf] }
 0x1f8   :  { %v2615_v63 = vadd.f32 %v2614_v21, %v2526_v59  ;;  %2564 = vmatmul.bf16.gmra.mxu0 %v7970_v6 }
 0x1f9   :  { %2742 = vmatmul.bf16.gmra.mxu2 %v7976_v27  ;;  %v7982_v10 = vpack.c.bf16 %v4660_v29, %v4656_v16  ;;  %3126 = vmatpush.bf16.msra.mxu3 %v6460_v62  ;;  %9521 = vst [vmem:[#allocation129_spill] sm:$0xff] %v7994_v7 }
 0x1fa   :  { %2653 = vmatmul.bf16.gmra.mxu1 %v7974_v30  ;;  %v7061_v30 = vld [vmem:[#allocation2 + $0x300] sm:$0xf0] }
 0x1fb   :  { %9518 = vst [vmem:[#allocation126_spill] sm:$0xff] %v7982_v10  ;;  %v7141_v10 = vld [vmem:[#allocation5 + $0x204] sm:$0xf]  ;;  %v7988_v43 = vor.u32 %v7061_v30, %v5875_v25  ;;  %v5903_v25 = vld [vmem:[#allocation2 + $0x320] sm:$0xf] }
 0x1fc   :  { %2831 = vmatmul.bf16.gmra.mxu3 %v7700_v28  ;;  %v2703_v54 = vpop.f32.mrf.mxu2  ;;  %v6201_v28 = vld [vmem:[#allocation5 + $0x210] sm:$0xf0] }
 0x1fd   :  { %v2704_v39 = vadd.f32 %v2703_v54, %v2615_v63  ;;  %v2527_v21 = vpop.f32.mrf.mxu0  ;;  %v6204_v40 = vor.u32 %v7141_v10, %v6201_v28  ;;  %9519 = vst [vmem:[#allocation127_spill] sm:$0xff] %v7988_v43  ;;  %v7992_v54 = vor.u32 %v7058_v42, %v5877_v49 }
 0x1fe   :  { %v2528_v16 = vadd.f32 %v2527_v21, %v7727_v9 }
 0x1ff   :  { %v7985_v59 = vpop.f32.mrf.mxu3  ;;  %v2616_v29 = vpop.f32.mrf.mxu1  ;;  %2948 = vmatpush.bf16.msra.mxu1 %v6204_v40  ;;  %9520 = vst [vmem:[#allocation128_spill] sm:$0xff] %v7992_v54  ;;  %v4664_v62 = vmax.f32 %v2704_v39, 0.0 }
 0x200   :  { %v2617_v27 = vadd.f32 %v2616_v29, %v2528_v16 }
 0x204   :  { %v2705_v63 = vpop.f32.mrf.mxu2 }
 0x205   :  { %v2706_v4 = vadd.f32 %v2705_v63, %v2617_v27  ;;  %v2530_v9 = vpop.f32.mrf.mxu0  ;;  %v5905_v63 = vld [vmem:[#allocation2 + $0x33c] sm:$0xf0] }
 0x206   :  { %v2531_v28 = vadd.f32 %v2530_v9, %v7734_v23  ;;  %v7069_v9 = vld [vmem:[#allocation2 + $0x340] sm:$0xf0] }
 0x207   :  { %v7990_v31 = vpop.f32.mrf.mxu3  ;;  %v2619_v10 = vpop.f32.mrf.mxu1  ;;  %v4668_v21 = vmax.f32 %v2706_v4, 0.0  ;;  %v5911_v4 = vld [vmem:[#allocation2 + $0x328] sm:$0xf] }
 0x208   :  { %v2620_v16 = vadd.f32 %v2619_v10, %v2531_v28  ;;  %2569 = vmatmul.bf16.gmra.mxu0 %v7988_v43  ;;  %v8006_v10 = vor.u32 %v7068_v45, %v5903_v25  ;;  %v6063_v25 = vld [vmem:[#allocation5 + $0xe8] sm:$0xf]  ;;  %v7108_v45 = vld [vmem:[#allocation5 + $0xf4] sm:$0xf0] }
 0x209   :  { %2747 = vmatmul.bf16.gmra.mxu2 %v7994_v7  ;;  %v8000_v27 = vpack.c.bf16 %v4668_v21, %v4664_v62  ;;  %v7072_v7 = vld [vmem:[#allocation2 + $0x35c] sm:$0xf] }
 0x20a   :  { %2658 = vmatmul.bf16.gmra.mxu1 %v7992_v54  ;;  %9523 = vst [vmem:[#allocation131_spill] sm:$0xff] %v8006_v10  ;;  %v5933_v54 = vld [vmem:[#allocation2 + $0x374] sm:$0xf0] }
 0x20b   :  { %9522 = vst [vmem:[#allocation130_spill] sm:$0xff] %v8000_v27  ;;  %v8012_v27 = vor.u32 %v7069_v9, %v5911_v4  ;;  %v6697_v4 = vld [vmem:[#allocation5 + $0x5f0] sm:$0xf0]  ;;  %v7140_v9 = vld [vmem:[#allocation5 + $0x1f4] sm:$0xf0] }
 0x20c   :  { %2836 = vmatmul.bf16.gmra.mxu3 %v7718_v18  ;;  %v2708_v49 = vpop.f32.mrf.mxu2 }
 0x20d   :  { %v2709_v42 = vadd.f32 %v2708_v49, %v2620_v16  ;;  %v2532_v29 = vpop.f32.mrf.mxu0  ;;  %v8010_v49 = vor.u32 %v7065_v55, %v5905_v63  ;;  %9525 = vst [vmem:[#allocation133_spill] sm:$0xff] %v8012_v27  ;;  %v7265_v55 = vld [vmem:[#allocation5 + $0x5e4] sm:$0xf]  ;;  %v6064_v63 = vor.u32 %v7108_v45, %v6063_v25  ;;  %v5931_v45 = vld [vmem:[#allocation2 + $0x358] sm:$0xf] }
 0x20e   :  { %v2533_v23 = vadd.f32 %v2532_v29, %v7745_v5 }
 0x20f   :  { %v8003_v30 = vpop.f32.mrf.mxu3  ;;  %v2621_v39 = vpop.f32.mrf.mxu1  ;;  %9524 = vst [vmem:[#allocation132_spill] sm:$0xff] %v8010_v49  ;;  %3386 = vmatpush.bf16.msrb.mxu2 %v6064_v63 }
 0x210   :  { %v2622_v40 = vadd.f32 %v2621_v39, %v2533_v23  ;;  %v4672_v23 = vmax.f32 %v2709_v42, 0.0 }
 0x214   :  { %v2710_v28 = vpop.f32.mrf.mxu2 }
 0x215   :  { %v2711_v62 = vadd.f32 %v2710_v28, %v2622_v40  ;;  %v2535_v16 = vpop.f32.mrf.mxu0  ;;  %v6700_v28 = vor.u32 %v7265_v55, %v6697_v4  ;;  %v5939_v55 = vld [vmem:[#allocation2 + $0x360] sm:$0xf]  ;;  %v7076_v4 = vld [vmem:[#allocation2 + $0x378] sm:$0xf0] }
 0x216   :  { %v2536_v5 = vadd.f32 %v2535_v16, %v7752_v58  ;;  %v6191_v58 = vld [vmem:[#allocation5 + $0x1e8] sm:$0xf] }
 0x217   :  { %v8008_v21 = vpop.f32.mrf.mxu3  ;;  %v2624_v29 = vpop.f32.mrf.mxu1  ;;  %v4676_v39 = vmax.f32 %v2711_v62, 0.0  ;;  %v6192_v62 = vor.u32 %v7140_v9, %v6191_v58  ;;  %3208 = vmatpush.bf16.msrb.mxu0 %v6700_v28  ;;  %v8030_v28 = vor.u32 %v7076_v4, %v5939_v55 }
 0x218   :  { %v2625_v18 = vadd.f32 %v2624_v29, %v2536_v5  ;;  %2574 = vmatmul.bf16.gmra.mxu0 %v8006_v10 }
 0x219   :  { %2752 = vmatmul.bf16.gmra.mxu2 %v8012_v27  ;;  %v8018_v40 = vpack.c.bf16 %v4676_v39, %v4672_v23  ;;  %3475 = vmatpush.bf16.msrb.mxu3 %v6192_v62  ;;  %9529 = vst [vmem:[#allocation137_spill] sm:$0xff] %v8030_v28 }
 0x21a   :  { %2663 = vmatmul.bf16.gmra.mxu1 %v8010_v49  ;;  %v7075_v49 = vld [vmem:[#allocation2 + $0x370] sm:$0xf0] }
 0x21b   :  { %9526 = vst [vmem:[#allocation134_spill] sm:$0xff] %v8018_v40  ;;  %v7297_v40 = vld [vmem:[#allocation5 + $0x6e4] sm:$0xf]  ;;  %v8024_v58 = vor.u32 %v7075_v49, %v5931_v45 }
 0x21c   :  { %2841 = vmatmul.bf16.gmra.mxu3 %v7736_v8  ;;  %v2713_v42 = vpop.f32.mrf.mxu2  ;;  %v6825_v8 = vld [vmem:[#allocation5 + $0x6f0] sm:$0xf0] }
 0x21d   :  { %v2714_v16 = vadd.f32 %v2713_v42, %v2625_v18  ;;  %v2537_v29 = vpop.f32.mrf.mxu0  ;;  %v6828_v25 = vor.u32 %v7297_v40, %v6825_v8  ;;  %9527 = vst [vmem:[#allocation135_spill] sm:$0xff] %v8024_v58  ;;  %v8028_v42 = vor.u32 %v7072_v7, %v5933_v54 }
 0x21e   :  { %v2538_v23 = vadd.f32 %v2537_v29, %v7763_v22 }
 0x21f   :  { %v8021_v5 = vpop.f32.mrf.mxu3  ;;  %v2626_v39 = vpop.f32.mrf.mxu1  ;;  %3297 = vmatpush.bf16.msrb.mxu1 %v6828_v25  ;;  %9528 = vst [vmem:[#allocation136_spill] sm:$0xff] %v8028_v42  ;;  %v4680_v62 = vmax.f32 %v2714_v16, 0.0 }
 0x220   :  { %v2627_v27 = vadd.f32 %v2626_v39, %v2538_v23 }
 0x224   :  { %v2715_v18 = vpop.f32.mrf.mxu2 }
 0x225   :  { %v2716_v63 = vadd.f32 %v2715_v18, %v2627_v27  ;;  %v2540_v22 = vpop.f32.mrf.mxu0 }
 0x226   :  { %v2541_v8 = vadd.f32 %v2540_v22, %v7770_v35 }
 0x227   :  { %v8026_v9 = vpop.f32.mrf.mxu3  ;;  %v2629_v40 = vpop.f32.mrf.mxu1  ;;  %v4684_v29 = vmax.f32 %v2716_v63, 0.0 }
 0x228   :  { %v2630_v23 = vadd.f32 %v2629_v40, %v2541_v8  ;;  %2579 = vmatmul.bf16.gmra.mxu0 %v8024_v58 }
 0x229   :  { %2757 = vmatmul.bf16.gmra.mxu2 %v8030_v28  ;;  %v8036_v27 = vpack.c.bf16 %v4684_v29, %v4680_v62  ;;  %v6047_v29 = vld [vmem:[#allocation5 + $0xc8] sm:$0xf]  ;;  %v6633_v28 = vld [vmem:[#allocation5 + $0x570] sm:$0xf0] }
 0x22a   :  { %2668 = vmatmul.bf16.gmra.mxu1 %v8028_v42 }
 0x22b   :  { %9530 = vst [vmem:[#allocation138_spill] sm:$0xff] %v8036_v27 }
 0x22c   :  { %2846 = vmatmul.bf16.gmra.mxu3 %v7754_v60  ;;  %v2718_v54 = vpop.f32.mrf.mxu2 }
 0x22d   :  { %v2719_v7 = vadd.f32 %v2718_v54, %v2630_v23  ;;  %v2542_v39 = vpop.f32.mrf.mxu0  ;;  %v7104_v23 = vld [vmem:[#allocation5 + $0xd4] sm:$0xf0]  ;;  %v7261_v54 = vld [vmem:[#allocation5 + $0x5c4] sm:$0xf] }
 0x22e   :  { %v2543_v35 = vadd.f32 %v2542_v39, %v7779_v41  ;;  %v6048_v39 = vor.u32 %v7104_v23, %v6047_v29 }
 0x22f   :  { %v8039_v49 = vpop.f32.mrf.mxu3  ;;  %v2631_v16 = vpop.f32.mrf.mxu1  ;;  %v4688_v8 = vmax.f32 %v2719_v7, 0.0 }
 0x230   :  { %v2632_v25 = vadd.f32 %v2631_v16, %v2543_v35  ;;  %v6681_v35 = vld [vmem:[#allocation5 + $0x5d0] sm:$0xf0]  ;;  %v7136_v16 = vld [vmem:[#allocation5 + $0x1d4] sm:$0xf0]  ;;  %3387 = vmatpush.bf16.msrb.mxu2 %v6048_v39 }
 0x234   :  { %v2720_v45 = vpop.f32.mrf.mxu2 }
 0x235   :  { %v2721_v55 = vadd.f32 %v2720_v45, %v2632_v25  ;;  %v2545_v18 = vpop.f32.mrf.mxu0  ;;  %v6684_v25 = vor.u32 %v7261_v54, %v6681_v35 }
 0x236   :  { %v2546_v63 = vadd.f32 %v2545_v18, %v7786_v47  ;;  %v6175_v47 = vld [vmem:[#allocation5 + $0x1c8] sm:$0xf] }
 0x237   :  { %v8042_v4 = vpop.f32.mrf.mxu3  ;;  %v2634_v22 = vpop.f32.mrf.mxu1  ;;  %v4692_v40 = vmax.f32 %v2721_v55, 0.0  ;;  %v6176_v45 = vor.u32 %v7136_v16, %v6175_v47  ;;  %3209 = vmatpush.bf16.msrb.mxu0 %v6684_v25 }
 0x238   :  { %v2635_v62 = vadd.f32 %v2634_v22, %v2546_v63  ;;  %2860 = vmatmul.bf16.vlgmr.msra.gmra.mxu0 %v7534_v51 }
 0x239   :  { %3038 = vmatmul.bf16.vlgmr.msra.gmra.mxu2 %v7538_v53  ;;  %v8048_v41 = vpack.c.bf16 %v4692_v40, %v4688_v8  ;;  %3476 = vmatpush.bf16.msrb.mxu3 %v6176_v45  ;;  %v7293_v40 = vld [vmem:[#allocation5 + $0x6c4] sm:$0xf] }
 0x23a   :  { %2949 = vmatmul.bf16.vlgmr.msra.gmra.mxu1 %v7536_v52 }
 0x23b   :  { %9531 = vst [vmem:[#allocation139_spill] sm:$0xff] %v8048_v41  ;;  %v6809_v41 = vld [vmem:[#allocation5 + $0x6d0] sm:$0xf0] }
 0x23c   :  { %3127 = vmatmul.bf16.vlgmr.msra.gmra.mxu3 %v7772_v48  ;;  %v2723_v7 = vpop.f32.mrf.mxu2  ;;  %v6812_v29 = vor.u32 %v7293_v40, %v6809_v41 }
 0x23d   :  { %v2724_v55 = vadd.f32 %v2723_v7, %v2635_v62  ;;  %v2547_v63 = vpop.f32.mrf.mxu0 }
 0x23e   :  { %v2548_v22 = vadd.f32 %v2547_v63, %v7795_v2  ;;  %3298 = vmatpush.bf16.msrb.mxu1 %v6812_v29 }
 0x23f   :  { %v8051_v18 = vpop.f32.mrf.mxu3  ;;  %v2636_v8 = vpop.f32.mrf.mxu1  ;;  %v4696_v47 = vmax.f32 %v2724_v55, 0.0 }
 0x240   :  { %v2637_v27 = vadd.f32 %v2636_v8, %v2548_v22 }
 0x244   :  { %v2725_v23 = vpop.f32.mrf.mxu2 }
 0x245   :  { %v2726_v48 = vadd.f32 %v2725_v23, %v2637_v27  ;;  %v2550_v54 = vpop.f32.mrf.mxu0 }
 0x246   :  { %v2551_v62 = vadd.f32 %v2550_v54, %v7802_v46 }
 0x247   :  { %v8054_v53 = vpop.f32.mrf.mxu3  ;;  %v2639_v35 = vpop.f32.mrf.mxu1  ;;  %v4700_v39 = vmax.f32 %v2726_v48, 0.0 }
 0x248   :  { %v2640_v16 = vadd.f32 %v2639_v35, %v2551_v62  ;;  %2865 = vmatmul.bf16.gmra.mxu0 %v7546_v13  ;;  %v9533_v35 = vld [vmem:[#allocation24_spill] sm:$0xff] }
 0x249   :  { %3043 = vmatmul.bf16.gmra.mxu2 %v7550_v15  ;;  %v8060_v2 = vpack.c.bf16 %v4700_v39, %v4696_v47  ;;  %v9534_v47 = vld [vmem:[#allocation25_spill] sm:$0xff]  ;;  %v9535_v39 = vld [vmem:[#allocation26_spill] sm:$0xff] }
 0x24a   :  { %2954 = vmatmul.bf16.gmra.mxu1 %v7548_v14  ;;  %v6649_v15 = vld [vmem:[#allocation5 + $0x590] sm:$0xf0] }
 0x24b   :  { %9532 = vst [vmem:[#allocation140_spill] sm:$0xff] %v8060_v2 }
 0x24c   :  { %3132 = vmatmul.bf16.gmra.mxu3 %v7788_v19  ;;  %v2728_v27 = vpop.f32.mrf.mxu2 }
 0x24d   :  { %v2729_v41 = vadd.f32 %v2728_v27, %v2640_v16  ;;  %v2552_v25 = vpop.f32.mrf.mxu0  ;;  %v9537_v16 = vld [vmem:[#allocation85_spill] sm:$0xff]  ;;  %v6031_v27 = vld [vmem:[#allocation5 + $0xa8] sm:$0xf] }
 0x24e   :  { %v2553_v46 = vadd.f32 %v2552_v25, %v7811_v33  ;;  %v7100_v25 = vld [vmem:[#allocation5 + $0xb4] sm:$0xf0] }
 0x24f   :  { %v8063_v7 = vpop.f32.mrf.mxu3  ;;  %v2641_v45 = vpop.f32.mrf.mxu1  ;;  %v4704_v23 = vmax.f32 %v2729_v41, 0.0 }
 0x250   :  { %v2642_v48 = vadd.f32 %v2641_v45, %v2553_v46  ;;  %v7257_v46 = vld [vmem:[#allocation5 + $0x5a4] sm:$0xf]  ;;  %v6032_v45 = vor.u32 %v7100_v25, %v6031_v27 }
 0x252   :  { %3388 = vmatpush.bf16.msrb.mxu2 %v6032_v45 }
 0x254   :  { %v2730_v55 = vpop.f32.mrf.mxu2 }
 0x255   :  { %v2731_v63 = vadd.f32 %v2730_v55, %v2642_v48  ;;  %v2555_v8 = vpop.f32.mrf.mxu0  ;;  %v6665_v48 = vld [vmem:[#allocation5 + $0x5b0] sm:$0xf0]  ;;  %v7132_v55 = vld [vmem:[#allocation5 + $0x1b4] sm:$0xf0] }
 0x256   :  { %v2556_v40 = vadd.f32 %v2555_v8, %v7818_v24  ;;  %v6159_v24 = vld [vmem:[#allocation5 + $0x1a8] sm:$0xf] }
 0x257   :  { %v8066_v22 = vpop.f32.mrf.mxu3  ;;  %v2644_v29 = vpop.f32.mrf.mxu1  ;;  %v4708_v54 = vmax.f32 %v2731_v63, 0.0  ;;  %v6668_v63 = vor.u32 %v7257_v46, %v6665_v48  ;;  %v6160_v8 = vor.u32 %v7132_v55, %v6159_v24 }
 0x258   :  { %v2645_v62 = vadd.f32 %v2644_v29, %v2556_v40  ;;  %2870 = vmatmul.bf16.gmra.mxu0 %v9533_v35 }
 0x259   :  { %3048 = vmatmul.bf16.gmra.mxu2 %v9535_v39  ;;  %v8072_v33 = vpack.c.bf16 %v4708_v54, %v4704_v23  ;;  %3210 = vmatpush.bf16.msrb.mxu0 %v6668_v63  ;;  %v9541_v63 = vld [vmem:[#allocation30_spill] sm:$0xff] }
 0x25a   :  { %2959 = vmatmul.bf16.gmra.mxu1 %v9534_v47  ;;  %3477 = vmatpush.bf16.msrb.mxu3 %v6160_v8 }
 0x25b   :  { %9536 = vst [vmem:[#allocation141_spill] sm:$0xff] %v8072_v33  ;;  %v7289_v33 = vld [vmem:[#allocation5 + $0x6a4] sm:$0xf] }
 0x25c   :  { %3137 = vmatmul.bf16.gmra.mxu3 %v9537_v16  ;;  %v2733_v41 = vpop.f32.mrf.mxu2  ;;  %v6793_v16 = vld [vmem:[#allocation5 + $0x6b0] sm:$0xf0] }
 0x25d   :  { %v2734_v40 = vadd.f32 %v2733_v41, %v2645_v62  ;;  %v2557_v2 = vpop.f32.mrf.mxu0  ;;  %v6796_v27 = vor.u32 %v7289_v33, %v6793_v16  ;;  %v9538_v62 = vld [vmem:[#allocation91_spill] sm:$0xff]  ;;  %v9543_v33 = vld [vmem:[#allocation88_spill] sm:$0xff] }
 0x25e   :  { %v2558_v23 = vadd.f32 %v2557_v2, %v7827_v1  ;;  %v9539_v1 = vld [vmem:[#allocation28_spill] sm:$0xff]  ;;  %v9540_v2 = vld [vmem:[#allocation29_spill] sm:$0xff] }
 0x25f   :  { %v8075_v29 = vpop.f32.mrf.mxu3  ;;  %v2646_v54 = vpop.f32.mrf.mxu1  ;;  %3299 = vmatpush.bf16.msrb.mxu1 %v6796_v27  ;;  %v4712_v55 = vmax.f32 %v2734_v40, 0.0  ;;  %v9544_v27 = vld [vmem:[#allocation95_spill] sm:$0xff] }
 0x260   :  { %v2647_v39 = vadd.f32 %v2646_v54, %v2558_v23 }
 0x264   :  { %v2735_v25 = vpop.f32.mrf.mxu2 }
 0x265   :  { %v2736_v47 = vadd.f32 %v2735_v25, %v2647_v39  ;;  %v2560_v46 = vpop.f32.mrf.mxu0 }
 0x266   :  { %v2561_v48 = vadd.f32 %v2560_v46, %v9538_v62 }
 0x267   :  { %v8078_v19 = vpop.f32.mrf.mxu3  ;;  %v2649_v24 = vpop.f32.mrf.mxu1  ;;  %v4716_v45 = vmax.f32 %v2736_v47, 0.0 }
 0x268   :  { %v2650_v41 = vadd.f32 %v2649_v24, %v2561_v48  ;;  %2875 = vmatmul.bf16.gmra.mxu0 %v9539_v1 }
 0x269   :  { %3053 = vmatmul.bf16.gmra.mxu2 %v9541_v63  ;;  %v8084_v8 = vpack.c.bf16 %v4716_v45, %v4712_v55 }
 0x26a   :  { %2964 = vmatmul.bf16.gmra.mxu1 %v9540_v2  ;;  %v9545_v2 = vld [vmem:[#allocation32_spill] sm:$0xff] }
 0x26b   :  { %9542 = vst [vmem:[#allocation91_spill] sm:$0xff] %v8084_v8 }
 0x26c   :  { %3142 = vmatmul.bf16.gmra.mxu3 %v9543_v33  ;;  %v2738_v39 = vpop.f32.mrf.mxu2 }
 0x26d   :  { %v2739_v16 = vadd.f32 %v2738_v39, %v2650_v41  ;;  %v2562_v54 = vpop.f32.mrf.mxu0  ;;  %v9546_v41 = vld [vmem:[#allocation33_spill] sm:$0xff]  ;;  %v9547_v39 = vld [vmem:[#allocation34_spill] sm:$0xff] }
 0x26e   :  { %v2563_v25 = vadd.f32 %v2562_v54, %v9544_v27  ;;  %v9549_v27 = vld [vmem:[#allocation92_spill] sm:$0xff] }
 0x26f   :  { %v8087_v23 = vpop.f32.mrf.mxu3  ;;  %v2651_v40 = vpop.f32.mrf.mxu1  ;;  %v4720_v45 = vmax.f32 %v2739_v16, 0.0 }
 0x270   :  { %v2652_v47 = vadd.f32 %v2651_v40, %v2563_v25  ;;  %v6015_v25 = vld [vmem:[#allocation5 + $0x88] sm:$0xf]  ;;  %v7096_v40 = vld [vmem:[#allocation5 + $0x94] sm:$0xf0] }
 0x274   :  { %v2740_v46 = vpop.f32.mrf.mxu2 }
 0x275   :  { %v2741_v62 = vadd.f32 %v2740_v46, %v2652_v47  ;;  %v2565_v24 = vpop.f32.mrf.mxu0  ;;  %v7253_v47 = vld [vmem:[#allocation5 + $0x584] sm:$0xf]  ;;  %v6016_v46 = vor.u32 %v7096_v40, %v6015_v25 }
 0x276   :  { %v2566_v63 = vadd.f32 %v2565_v24, %v7850_v0  ;;  %v6143_v0 = vld [vmem:[#allocation5 + $0x188] sm:$0xf]  ;;  %v7128_v24 = vld [vmem:[#allocation5 + $0x194] sm:$0xf0] }
 0x277   :  { %v8090_v48 = vpop.f32.mrf.mxu3  ;;  %v2654_v55 = vpop.f32.mrf.mxu1  ;;  %v4724_v8 = vmax.f32 %v2741_v62, 0.0  ;;  %v6652_v62 = vor.u32 %v7253_v47, %v6649_v15  ;;  %3389 = vmatpush.bf16.msrb.mxu2 %v6016_v46 }
 0x278   :  { %v2655_v33 = vadd.f32 %v2654_v55, %v2566_v63  ;;  %2880 = vmatmul.bf16.gmra.mxu0 %v9545_v2  ;;  %v6144_v63 = vor.u32 %v7128_v24, %v6143_v0 }
 0x279   :  { %3058 = vmatmul.bf16.gmra.mxu2 %v9547_v39  ;;  %v8096_v54 = vpack.c.bf16 %v4724_v8, %v4720_v45  ;;  %3211 = vmatpush.bf16.msrb.mxu0 %v6652_v62  ;;  %v9553_v62 = vld [vmem:[#allocation38_spill] sm:$0xff] }
 0x27a   :  { %2969 = vmatmul.bf16.gmra.mxu1 %v9546_v41  ;;  %3478 = vmatpush.bf16.msrb.mxu3 %v6144_v63 }
 0x27b   :  { %9548 = vst [vmem:[#allocation95_spill] sm:$0xff] %v8096_v54  ;;  %v7285_v54 = vld [vmem:[#allocation5 + $0x684] sm:$0xf] }
 0x27c   :  { %3147 = vmatmul.bf16.gmra.mxu3 %v9549_v27  ;;  %v2743_v16 = vpop.f32.mrf.mxu2  ;;  %v6777_v27 = vld [vmem:[#allocation5 + $0x690] sm:$0xf0] }
 0x27d   :  { %v2744_v55 = vadd.f32 %v2743_v16, %v2655_v33  ;;  %v2567_v41 = vpop.f32.mrf.mxu0  ;;  %v6780_v25 = vor.u32 %v7285_v54, %v6777_v27  ;;  %v9550_v33 = vld [vmem:[#allocation99_spill] sm:$0xff]  ;;  %v9555_v54 = vld [vmem:[#allocation96_spill] sm:$0xff] }
 0x27e   :  { %v2568_v8 = vadd.f32 %v2567_v41, %v7859_v61  ;;  %v9551_v61 = vld [vmem:[#allocation36_spill] sm:$0xff]  ;;  %v9552_v41 = vld [vmem:[#allocation37_spill] sm:$0xff] }
 0x27f   :  { %v8099_v14 = vpop.f32.mrf.mxu3  ;;  %v2656_v45 = vpop.f32.mrf.mxu1  ;;  %3300 = vmatpush.bf16.msrb.mxu1 %v6780_v25  ;;  %v4728_v24 = vmax.f32 %v2744_v55, 0.0  ;;  %v9556_v25 = vld [vmem:[#allocation103_spill] sm:$0xff] }
 0x280   :  { %v2657_v39 = vadd.f32 %v2656_v45, %v2568_v8 }
 0x284   :  { %v2745_v40 = vpop.f32.mrf.mxu2 }
 0x285   :  { %v2746_v52 = vadd.f32 %v2745_v40, %v2657_v39  ;;  %v2570_v15 = vpop.f32.mrf.mxu0 }
 0x286   :  { %v2571_v47 = vadd.f32 %v2570_v15, %v9550_v33 }
 0x287   :  { %v8102_v60 = vpop.f32.mrf.mxu3  ;;  %v2659_v0 = vpop.f32.mrf.mxu1  ;;  %v4732_v46 = vmax.f32 %v2746_v52, 0.0 }
 0x288   :  { %v2660_v16 = vadd.f32 %v2659_v0, %v2571_v47  ;;  %2885 = vmatmul.bf16.gmra.mxu0 %v9551_v61 }
 0x289   :  { %3063 = vmatmul.bf16.gmra.mxu2 %v9553_v62  ;;  %v8108_v63 = vpack.c.bf16 %v4732_v46, %v4728_v24 }
 0x28a   :  { %2974 = vmatmul.bf16.gmra.mxu1 %v9552_v41  ;;  %v9558_v41 = vld [vmem:[#allocation40_spill] sm:$0xff] }
 0x28b   :  { %9554 = vst [vmem:[#allocation99_spill] sm:$0xff] %v8108_v63 }
 0x28c   :  { %3152 = vmatmul.bf16.gmra.mxu3 %v9555_v54  ;;  %v2748_v39 = vpop.f32.mrf.mxu2 }
 0x28d   :  { %v2749_v27 = vadd.f32 %v2748_v39, %v2660_v16  ;;  %v2572_v45 = vpop.f32.mrf.mxu0  ;;  %v9559_v16 = vld [vmem:[#allocation41_spill] sm:$0xff]  ;;  %v9560_v39 = vld [vmem:[#allocation42_spill] sm:$0xff] }
 0x28e   :  { %v2573_v40 = vadd.f32 %v2572_v45, %v9556_v25  ;;  %v9562_v25 = vld [vmem:[#allocation100_spill] sm:$0xff] }
 0x28f   :  { %v8111_v8 = vpop.f32.mrf.mxu3  ;;  %v2661_v55 = vpop.f32.mrf.mxu1  ;;  %v4736_v46 = vmax.f32 %v2749_v27, 0.0 }
 0x290   :  { %v2662_v52 = vadd.f32 %v2661_v55, %v2573_v40  ;;  %v5999_v40 = vld [vmem:[#allocation5 + $0x68] sm:$0xf]  ;;  %v7092_v55 = vld [vmem:[#allocation5 + $0x74] sm:$0xf0] }
 0x294   :  { %v2750_v15 = vpop.f32.mrf.mxu2 }
 0x295   :  { %v2751_v33 = vadd.f32 %v2750_v15, %v2662_v52  ;;  %v2575_v0 = vpop.f32.mrf.mxu0  ;;  %v7249_v52 = vld [vmem:[#allocation5 + $0x564] sm:$0xf]  ;;  %v6000_v15 = vor.u32 %v7092_v55, %v5999_v40 }
 0x296   :  { %v2576_v62 = vadd.f32 %v2575_v0, %v7882_v44  ;;  %v6127_v44 = vld [vmem:[#allocation5 + $0x168] sm:$0xf]  ;;  %v7124_v0 = vld [vmem:[#allocation5 + $0x174] sm:$0xf0] }
 0x297   :  { %v8114_v47 = vpop.f32.mrf.mxu3  ;;  %v2664_v24 = vpop.f32.mrf.mxu1  ;;  %v4740_v63 = vmax.f32 %v2751_v33, 0.0  ;;  %v6636_v33 = vor.u32 %v7249_v52, %v6633_v28  ;;  %3390 = vmatpush.bf16.msrb.mxu2 %v6000_v15 }
 0x298   :  { %9557 = vst [vmem:[#allocation103_spill] sm:$0xff] %v8114_v47  ;;  %v2665_v54 = vadd.f32 %v2664_v24, %v2576_v62  ;;  %2890 = vmatmul.bf16.gmra.mxu0 %v9558_v41  ;;  %v6128_v62 = vor.u32 %v7124_v0, %v6127_v44 }
 0x299   :  { %3068 = vmatmul.bf16.gmra.mxu2 %v9560_v39  ;;  %v8120_v45 = vpack.c.bf16 %v4740_v63, %v4736_v46  ;;  %3212 = vmatpush.bf16.msrb.mxu0 %v6636_v33 }
 0x29a   :  { %2979 = vmatmul.bf16.gmra.mxu1 %v9559_v16  ;;  %3479 = vmatpush.bf16.msrb.mxu3 %v6128_v62 }
 0x29b   :  { %9561 = vst [vmem:[#allocation142_spill] sm:$0xff] %v8120_v45  ;;  %v7281_v45 = vld [vmem:[#allocation5 + $0x664] sm:$0xf] }
 0x29c   :  { %3157 = vmatmul.bf16.gmra.mxu3 %v9562_v25  ;;  %v2753_v27 = vpop.f32.mrf.mxu2  ;;  %v6761_v25 = vld [vmem:[#allocation5 + $0x670] sm:$0xf0] }
 0x29d   :  { %v2754_v24 = vadd.f32 %v2753_v27, %v2665_v54  ;;  %v2577_v16 = vpop.f32.mrf.mxu0  ;;  %v6764_v40 = vor.u32 %v7281_v45, %v6761_v25  ;;  %v9565_v27 = vld [vmem:[#allocation46_spill] sm:$0xff] }
 0x29e   :  { %v2578_v63 = vadd.f32 %v2577_v16, %v7891_v12  ;;  %v9563_v12 = vld [vmem:[#allocation44_spill] sm:$0xff]  ;;  %v9564_v16 = vld [vmem:[#allocation45_spill] sm:$0xff] }
 0x29f   :  { %v8123_v42 = vpop.f32.mrf.mxu3  ;;  %v2666_v46 = vpop.f32.mrf.mxu1  ;;  %3301 = vmatpush.bf16.msrb.mxu1 %v6764_v40  ;;  %v4744_v44 = vmax.f32 %v2754_v24, 0.0 }
 0x2a0   :  { %v2667_v39 = vadd.f32 %v2666_v46, %v2578_v63 }
 0x2a4   :  { %v2755_v55 = vpop.f32.mrf.mxu2 }
 0x2a5   :  { %v2756_v41 = vadd.f32 %v2755_v55, %v2667_v39  ;;  %v2580_v28 = vpop.f32.mrf.mxu0 }
 0x2a6   :  { %v2581_v54 = vadd.f32 %v2580_v28, %v7898_v56  ;;  %v9567_v56 = vld [vmem:[#allocation110_spill] sm:$0xff] }
 0x2a7   :  { %v8126_v47 = vpop.f32.mrf.mxu3  ;;  %v2669_v52 = vpop.f32.mrf.mxu1  ;;  %v4748_v15 = vmax.f32 %v2756_v41, 0.0  ;;  %v8138_v41 = vld [vmem:[#allocation7] sm:$0xf] }
 0x2a8   :  { %v2670_v0 = vadd.f32 %v2669_v52, %v2581_v54  ;;  %2895 = vmatmul.bf16.gmra.mxu0 %v9563_v12  ;;  %9568 = vst [vmem:[#allocation110_spill] sm:$0xff] %v8138_v41  ;;  %v8141_v46 = vperm.slane %v8138_v41, 1  ;;  %v6617_v41 = vld [vmem:[#allocation5 + $0x550] sm:$0xf0] }
 0x2a9   :  { %3073 = vmatmul.bf16.gmra.mxu2 %v9565_v27  ;;  %v8132_v33 = vpack.c.bf16 %v4748_v15, %v4744_v44  ;;  %v9572_v27 = vld [vmem:[#allocation50_spill] sm:$0xff] }
 0x2aa   :  { %2984 = vmatmul.bf16.gmra.mxu1 %v9564_v16  ;;  %v2773_v55 = vadd.f32 %v7913_v26, %v8141_v46  ;;  %v5983_v26 = vld [vmem:[#allocation5 + $0x48] sm:$0xf] }
 0x2ab   :  { %9566 = vst [vmem:[#allocation143_spill] sm:$0xff] %v8132_v33 }
 0x2ac   :  { %3162 = vmatmul.bf16.gmra.mxu3 %v7884_v50  ;;  %v2758_v39 = vpop.f32.mrf.mxu2  ;;  %v9571_v50 = vld [vmem:[#allocation49_spill] sm:$0xff] }
 0x2ad   :  { %v2759_v45 = vadd.f32 %v2758_v39, %v2670_v0  ;;  %v2582_v62 = vpop.f32.mrf.mxu0 }
 0x2ae   :  { %v2583_v63 = vadd.f32 %v2582_v62, %v9567_v56  ;;  %v9570_v56 = vld [vmem:[#allocation48_spill] sm:$0xff] }
 0x2af   :  { %v8135_v25 = vpop.f32.mrf.mxu3  ;;  %v2671_v24 = vpop.f32.mrf.mxu1  ;;  %v4752_v39 = vmax.f32 %v2759_v45, 0.0  ;;  %v2775_v45 = vadd.f32 %v7918_v3, %v8141_v46  ;;  %v2778_v3 = vadd.f32 %v7931_v34, %v8141_v46  ;;  %v2780_v34 = vadd.f32 %v7936_v57, %v8141_v46 }
 0x2b0   :  { %v2672_v40 = vadd.f32 %v2671_v24, %v2583_v63  ;;  %v9574_v24 = vld [vmem:[#allocation107_spill] sm:$0xff] }
 0x2b4   :  { %v2760_v28 = vpop.f32.mrf.mxu2 }
 0x2b5   :  { %v2761_v54 = vadd.f32 %v2760_v28, %v2672_v40  ;;  %v2861_v44 = vpop.f32.mrf.mxu0  ;;  %v7088_v40 = vld [vmem:[#allocation5 + $0x54] sm:$0xf0]  ;;  %v7245_v28 = vld [vmem:[#allocation5 + $0x544] sm:$0xf] }
 0x2b6   :  { %v2862_v15 = vadd.f32 %v2861_v44, %v2773_v55  ;;  %v5984_v16 = vor.u32 %v7088_v40, %v5983_v26  ;;  %v6111_v55 = vld [vmem:[#allocation5 + $0x148] sm:$0xf]  ;;  %v7120_v44 = vld [vmem:[#allocation5 + $0x154] sm:$0xf0]  ;;  %v7277_v26 = vld [vmem:[#allocation5 + $0x644] sm:$0xf] }
 0x2b7   :  { %v8145_v52 = vpop.f32.mrf.mxu3  ;;  %v2950_v0 = vpop.f32.mrf.mxu1  ;;  %v4756_v33 = vmax.f32 %v2761_v54, 0.0  ;;  %v6745_v40 = vld [vmem:[#allocation5 + $0x650] sm:$0xf0] }
 0x2b8   :  { %9569 = vst [vmem:[#allocation144_spill] sm:$0xff] %v8145_v52  ;;  %v2951_v62 = vadd.f32 %v2950_v0, %v2862_v15  ;;  %2900 = vmatmul.bf16.gmra.mxu0 %v9570_v56  ;;  %v6620_v15 = vor.u32 %v7245_v28, %v6617_v41  ;;  %v6112_v0 = vor.u32 %v7120_v44, %v6111_v55 }
 0x2b9   :  { %3078 = vmatmul.bf16.gmra.mxu2 %v9572_v27  ;;  %v8150_v63 = vpack.c.bf16 %v4756_v33, %v4752_v39  ;;  %v6748_v52 = vor.u32 %v7277_v26, %v6745_v40 }
 0x2ba   :  { %2989 = vmatmul.bf16.gmra.mxu1 %v9571_v50  ;;  %3391 = vmatpush.bf16.msrb.mxu2 %v5984_v16 }
 0x2bb   :  { %9573 = vst [vmem:[#allocation145_spill] sm:$0xff] %v8150_v63  ;;  %3213 = vmatpush.bf16.msrb.mxu0 %v6620_v15  ;;  %3480 = vmatpush.bf16.msrb.mxu3 %v6112_v0 }
 0x2bc   :  { %3167 = vmatmul.bf16.gmra.mxu3 %v9574_v24  ;;  %v3039_v54 = vpop.f32.mrf.mxu2  ;;  %3302 = vmatpush.bf16.msrb.mxu1 %v6748_v52 }
 0x2bd   :  { %v3040_v50 = vadd.f32 %v3039_v54, %v2951_v62  ;;  %v2863_v27 = vpop.f32.mrf.mxu0  ;;  %v9575_v54 = vld [vmem:[#allocation52_spill] sm:$0xff] }
 0x2be   :  { %v2864_v33 = vadd.f32 %v2863_v27, %v2775_v45 }
 0x2bf   :  { %v3128_v56 = vpop.f32.mrf.mxu3  ;;  %v2952_v39 = vpop.f32.mrf.mxu1 }
 0x2c0   :  { %v8155_v63 = vadd.f32 %v3128_v56, %v3040_v50  ;;  %v2953_v24 = vadd.f32 %v2952_v39, %v2864_v33  ;;  %v9576_v50 = vld [vmem:[#allocation53_spill] sm:$0xff]  ;;  %v9577_v56 = vld [vmem:[#allocation54_spill] sm:$0xff] }
 0x2c4   :  { %v3041_v41 = vpop.f32.mrf.mxu2 }
 0x2c5   :  { %v3042_v28 = vadd.f32 %v3041_v41, %v2953_v24  ;;  %v2866_v55 = vpop.f32.mrf.mxu0 }
 0x2c6   :  { %v2867_v44 = vadd.f32 %v2866_v55, %v2778_v3  ;;  %v2783_v3 = vadd.f32 %v7949_v38, %v8141_v46  ;;  %v7241_v38 = vld [vmem:[#allocation5 + $0x524] sm:$0xf] }
 0x2c7   :  { %v3130_v62 = vpop.f32.mrf.mxu3  ;;  %v2955_v16 = vpop.f32.mrf.mxu1 }
 0x2c8   :  { %v8159_v27 = vadd.f32 %v3130_v62, %v3042_v28  ;;  %v2956_v45 = vadd.f32 %v2955_v16, %v2867_v44  ;;  %2905 = vmatmul.bf16.gmra.mxu0 %v9575_v54 }
 0x2c9   :  { %3083 = vmatmul.bf16.gmra.mxu2 %v9577_v56 }
 0x2ca   :  { %2994 = vmatmul.bf16.gmra.mxu1 %v9576_v50 }
 0x2cc   :  { %3172 = vmatmul.bf16.gmra.mxu3 %v7916_v11  ;;  %v3044_v52 = vpop.f32.mrf.mxu2 }
 0x2cd   :  { %v3045_v24 = vadd.f32 %v3044_v52, %v2956_v45  ;;  %v2868_v0 = vpop.f32.mrf.mxu0  ;;  %v9578_v45 = vld [vmem:[#allocation56_spill] sm:$0xff]  ;;  %v9579_v52 = vld [vmem:[#allocation57_spill] sm:$0xff] }
 0x2ce   :  { %v2869_v33 = vadd.f32 %v2868_v0, %v2780_v34  ;;  %v9580_v34 = vld [vmem:[#allocation58_spill] sm:$0xff] }
 0x2cf   :  { %v3133_v15 = vpop.f32.mrf.mxu3  ;;  %v2957_v39 = vpop.f32.mrf.mxu1 }
 0x2d0   :  { %v8167_v26 = vadd.f32 %v3133_v15, %v3045_v24  ;;  %v2958_v40 = vadd.f32 %v2957_v39, %v2869_v33  ;;  %v5967_v24 = vld [vmem:[#allocation5 + $0x28] sm:$0xf]  ;;  %v7084_v15 = vld [vmem:[#allocation5 + $0x34] sm:$0xf0]  ;;  %v6601_v33 = vld [vmem:[#allocation5 + $0x530] sm:$0xf0] }
 0x2d1   :  { %v5968_v0 = vor.u32 %v7084_v15, %v5967_v24  ;;  %v6095_v39 = vld [vmem:[#allocation5 + $0x128] sm:$0xf]  ;;  %v7273_v24 = vld [vmem:[#allocation5 + $0x624] sm:$0xf]  ;;  %v6729_v15 = vld [vmem:[#allocation5 + $0x630] sm:$0xf0] }
 0x2d2   :  { %v6732_v50 = vor.u32 %v7273_v24, %v6729_v15 }
 0x2d3   :  { %3392 = vmatpush.bf16.msrb.mxu2 %v5968_v0 }
 0x2d4   :  { %v3046_v41 = vpop.f32.mrf.mxu2  ;;  %3303 = vmatpush.bf16.msrb.mxu1 %v6732_v50 }
 0x2d5   :  { %v3047_v28 = vadd.f32 %v3046_v41, %v2958_v40  ;;  %v2871_v55 = vpop.f32.mrf.mxu0  ;;  %v7116_v40 = vld [vmem:[#allocation5 + $0x134] sm:$0xf0] }
 0x2d6   :  { %v2872_v44 = vadd.f32 %v2871_v55, %v2783_v3  ;;  %v2785_v3 = vadd.f32 %v7954_v17, %v8141_v46  ;;  %v2788_v17 = vadd.f32 %v7967_v32, %v8141_v46  ;;  %v2790_v32 = vadd.f32 %v7972_v36, %v8141_v46 }
 0x2d7   :  { %v3135_v62 = vpop.f32.mrf.mxu3  ;;  %v2960_v16 = vpop.f32.mrf.mxu1 }
 0x2d8   :  { %v8171_v11 = vadd.f32 %v3135_v62, %v3047_v28  ;;  %v2961_v57 = vadd.f32 %v2960_v16, %v2872_v44  ;;  %2910 = vmatmul.bf16.gmra.mxu0 %v9578_v45  ;;  %v6604_v28 = vor.u32 %v7241_v38, %v6601_v33  ;;  %v6096_v62 = vor.u32 %v7116_v40, %v6095_v39 }
 0x2d9   :  { %3088 = vmatmul.bf16.gmra.mxu2 %v9580_v34 }
 0x2da   :  { %2999 = vmatmul.bf16.gmra.mxu1 %v9579_v52  ;;  %3214 = vmatpush.bf16.msrb.mxu0 %v6604_v28  ;;  %v9581_v28 = vld [vmem:[#allocation60_spill] sm:$0xff] }
 0x2db   :  { %3481 = vmatpush.bf16.msrb.mxu3 %v6096_v62  ;;  %v9582_v62 = vld [vmem:[#allocation61_spill] sm:$0xff] }
 0x2dc   :  { %3177 = vmatmul.bf16.gmra.mxu3 %v7934_v20  ;;  %v3049_v41 = vpop.f32.mrf.mxu2 }
 0x2dd   :  { %v3050_v55 = vadd.f32 %v3049_v41, %v2961_v57  ;;  %v2873_v16 = vpop.f32.mrf.mxu0 }
 0x2de   :  { %v2874_v34 = vadd.f32 %v2873_v16, %v2785_v3 }
 0x2df   :  { %v3138_v44 = vpop.f32.mrf.mxu3  ;;  %v2962_v52 = vpop.f32.mrf.mxu1 }
 0x2e0   :  { %v8179_v20 = vadd.f32 %v3138_v44, %v3050_v55  ;;  %v2963_v56 = vadd.f32 %v2962_v52, %v2874_v34  ;;  %v9583_v55 = vld [vmem:[#allocation62_spill] sm:$0xff] }
 0x2e4   :  { %v3051_v38 = vpop.f32.mrf.mxu2 }
 0x2e5   :  { %v3052_v33 = vadd.f32 %v3051_v38, %v2963_v56  ;;  %v2876_v39 = vpop.f32.mrf.mxu0 }
 0x2e6   :  { %v2877_v40 = vadd.f32 %v2876_v39, %v2788_v17  ;;  %v2793_v17 = vadd.f32 %v7985_v59, %v8141_v46  ;;  %v7237_v59 = vld [vmem:[#allocation5 + $0x504] sm:$0xf] }
 0x2e7   :  { %v3140_v57 = vpop.f32.mrf.mxu3  ;;  %v2965_v0 = vpop.f32.mrf.mxu1 }
 0x2e8   :  { %v8183_v3 = vadd.f32 %v3140_v57, %v3052_v33  ;;  %v2966_v41 = vadd.f32 %v2965_v0, %v2877_v40  ;;  %2915 = vmatmul.bf16.gmra.mxu0 %v9581_v28 }
 0x2e9   :  { %3093 = vmatmul.bf16.gmra.mxu2 %v9583_v55 }
 0x2ea   :  { %3004 = vmatmul.bf16.gmra.mxu1 %v9582_v62 }
 0x2ec   :  { %3182 = vmatmul.bf16.gmra.mxu3 %v7952_v37  ;;  %v3054_v50 = vpop.f32.mrf.mxu2 }
 0x2ed   :  { %v3055_v56 = vadd.f32 %v3054_v50, %v2966_v41  ;;  %v2878_v34 = vpop.f32.mrf.mxu0  ;;  %v9584_v41 = vld [vmem:[#allocation64_spill] sm:$0xff]  ;;  %v9585_v50 = vld [vmem:[#allocation65_spill] sm:$0xff] }
 0x2ee   :  { %v2879_v44 = vadd.f32 %v2878_v34, %v2790_v32  ;;  %v9586_v32 = vld [vmem:[#allocation66_spill] sm:$0xff] }
 0x2ef   :  { %v3143_v52 = vpop.f32.mrf.mxu3  ;;  %v2967_v16 = vpop.f32.mrf.mxu1 }
 0x2f0   :  { %v8191_v24 = vadd.f32 %v3143_v52, %v3055_v56  ;;  %v2968_v15 = vadd.f32 %v2967_v16, %v2879_v44  ;;  %v5951_v56 = vld [vmem:[#allocation5 + $0x8] sm:$0xf]  ;;  %v7080_v52 = vld [vmem:[#allocation5 + $0x14] sm:$0xf0]  ;;  %v6585_v44 = vld [vmem:[#allocation5 + $0x510] sm:$0xf0] }
 0x2f1   :  { %v5952_v34 = vor.u32 %v7080_v52, %v5951_v56  ;;  %v6079_v16 = vld [vmem:[#allocation5 + $0x108] sm:$0xf]  ;;  %v7269_v56 = vld [vmem:[#allocation5 + $0x604] sm:$0xf]  ;;  %v6713_v52 = vld [vmem:[#allocation5 + $0x610] sm:$0xf0] }
 0x2f2   :  { %v6716_v62 = vor.u32 %v7269_v56, %v6713_v52 }
 0x2f3   :  { %3393 = vmatpush.bf16.msrb.mxu2 %v5952_v34 }
 0x2f4   :  { %v3056_v38 = vpop.f32.mrf.mxu2  ;;  %3304 = vmatpush.bf16.msrb.mxu1 %v6716_v62 }
 0x2f5   :  { %v3057_v33 = vadd.f32 %v3056_v38, %v2968_v15  ;;  %v2881_v39 = vpop.f32.mrf.mxu0  ;;  %v7112_v15 = vld [vmem:[#allocation5 + $0x114] sm:$0xf0] }
 0x2f6   :  { %v2882_v40 = vadd.f32 %v2881_v39, %v2793_v17  ;;  %v2795_v17 = vadd.f32 %v7990_v31, %v8141_v46  ;;  %v2798_v31 = vadd.f32 %v8003_v30, %v8141_v46  ;;  %v2800_v30 = vadd.f32 %v8008_v21, %v8141_v46 }
 0x2f7   :  { %v3145_v57 = vpop.f32.mrf.mxu3  ;;  %v2970_v0 = vpop.f32.mrf.mxu1 }
 0x2f8   :  { %v8195_v37 = vadd.f32 %v3145_v57, %v3057_v33  ;;  %v2971_v36 = vadd.f32 %v2970_v0, %v2882_v40  ;;  %2920 = vmatmul.bf16.gmra.mxu0 %v9584_v41  ;;  %v6588_v33 = vor.u32 %v7237_v59, %v6585_v44  ;;  %v6080_v57 = vor.u32 %v7112_v15, %v6079_v16 }
 0x2f9   :  { %3098 = vmatmul.bf16.gmra.mxu2 %v9586_v32 }
 0x2fa   :  { %3009 = vmatmul.bf16.gmra.mxu1 %v9585_v50  ;;  %3215 = vmatpush.bf16.msrb.mxu0 %v6588_v33  ;;  %v9587_v33 = vld [vmem:[#allocation68_spill] sm:$0xff] }
 0x2fb   :  { %3482 = vmatpush.bf16.msrb.mxu3 %v6080_v57  ;;  %v9588_v57 = vld [vmem:[#allocation69_spill] sm:$0xff] }
 0x2fc   :  { %3187 = vmatmul.bf16.gmra.mxu3 %v7970_v6  ;;  %v3059_v38 = vpop.f32.mrf.mxu2 }
 0x2fd   :  { %v3060_v39 = vadd.f32 %v3059_v38, %v2971_v36  ;;  %v2883_v0 = vpop.f32.mrf.mxu0 }
 0x2fe   :  { %v2884_v32 = vadd.f32 %v2883_v0, %v2795_v17 }
 0x2ff   :  { %v3148_v40 = vpop.f32.mrf.mxu3  ;;  %v2972_v50 = vpop.f32.mrf.mxu1 }
 0x300   :  { %v8203_v6 = vadd.f32 %v3148_v40, %v3060_v39  ;;  %v2973_v55 = vadd.f32 %v2972_v50, %v2884_v32  ;;  %v9589_v39 = vld [vmem:[#allocation70_spill] sm:$0xff] }
 0x304   :  { %v3061_v59 = vpop.f32.mrf.mxu2 }
 0x305   :  { %v3062_v44 = vadd.f32 %v3061_v59, %v2973_v55  ;;  %v2886_v16 = vpop.f32.mrf.mxu0 }
 0x306   :  { %v2887_v15 = vadd.f32 %v2886_v16, %v2798_v31  ;;  %v2803_v31 = vadd.f32 %v8021_v5, %v8141_v46  ;;  %v6319_v5 = vld [vmem:[#allocation5 + $0x2e8] sm:$0xf] }
 0x307   :  { %v3150_v36 = vpop.f32.mrf.mxu3  ;;  %v2975_v34 = vpop.f32.mrf.mxu1 }
 0x308   :  { %v8207_v17 = vadd.f32 %v3150_v36, %v3062_v44  ;;  %v2976_v38 = vadd.f32 %v2975_v34, %v2887_v15  ;;  %2925 = vmatmul.bf16.gmra.mxu0 %v9587_v33 }
 0x309   :  { %3103 = vmatmul.bf16.gmra.mxu2 %v9589_v39 }
 0x30a   :  { %3014 = vmatmul.bf16.gmra.mxu1 %v9588_v57 }
 0x30c   :  { %3192 = vmatmul.bf16.gmra.mxu3 %v7988_v43  ;;  %v3064_v62 = vpop.f32.mrf.mxu2 }
 0x30d   :  { %v3065_v55 = vadd.f32 %v3064_v62, %v2976_v38  ;;  %v2888_v32 = vpop.f32.mrf.mxu0  ;;  %v9590_v38 = vld [vmem:[#allocation72_spill] sm:$0xff]  ;;  %v9591_v62 = vld [vmem:[#allocation73_spill] sm:$0xff] }
 0x30e   :  { %v2889_v40 = vadd.f32 %v2888_v32, %v2800_v30  ;;  %v9592_v30 = vld [vmem:[#allocation74_spill] sm:$0xff] }
 0x30f   :  { %v3153_v50 = vpop.f32.mrf.mxu3  ;;  %v2977_v0 = vpop.f32.mrf.mxu1 }
 0x310   :  { %v8215_v56 = vadd.f32 %v3153_v50, %v3065_v55  ;;  %v2978_v52 = vadd.f32 %v2977_v0, %v2889_v40  ;;  %v6575_v55 = vld [vmem:[#allocation5 + $0x4e8] sm:$0xf]  ;;  %v7236_v50 = vld [vmem:[#allocation5 + $0x4f4] sm:$0xf0] }
 0x311   :  { %v6576_v32 = vor.u32 %v7236_v50, %v6575_v55  ;;  %v7172_v40 = vld [vmem:[#allocation5 + $0x2f4] sm:$0xf0]  ;;  %v6703_v0 = vld [vmem:[#allocation5 + $0x5e8] sm:$0xf] }
 0x312   :  { %v6447_v55 = vld [vmem:[#allocation5 + $0x3e8] sm:$0xf]  ;;  %v7204_v50 = vld [vmem:[#allocation5 + $0x3f4] sm:$0xf0] }
 0x313   :  { %3742 = vmatpush.bf16.msra.mxu2 %v6576_v32  ;;  %v6448_v57 = vor.u32 %v7204_v50, %v6447_v55 }
 0x314   :  { %v3066_v59 = vpop.f32.mrf.mxu2 }
 0x315   :  { %v3067_v44 = vadd.f32 %v3066_v59, %v2978_v52  ;;  %v2891_v16 = vpop.f32.mrf.mxu0  ;;  %v7268_v52 = vld [vmem:[#allocation5 + $0x5f4] sm:$0xf0]  ;;  %3653 = vmatpush.bf16.msra.mxu1 %v6448_v57 }
 0x316   :  { %v2892_v15 = vadd.f32 %v2891_v16, %v2803_v31  ;;  %v2805_v31 = vadd.f32 %v8026_v9, %v8141_v46  ;;  %v2808_v9 = vadd.f32 %v8039_v49, %v8141_v46  ;;  %v2810_v49 = vadd.f32 %v8042_v4, %v8141_v46 }
 0x317   :  { %v3155_v36 = vpop.f32.mrf.mxu3  ;;  %v2980_v34 = vpop.f32.mrf.mxu1 }
 0x318   :  { %v8219_v43 = vadd.f32 %v3155_v36, %v3067_v44  ;;  %v2981_v21 = vadd.f32 %v2980_v34, %v2892_v15  ;;  %2930 = vmatmul.bf16.gmra.mxu0 %v9590_v38  ;;  %v6320_v44 = vor.u32 %v7172_v40, %v6319_v5  ;;  %v6704_v36 = vor.u32 %v7268_v52, %v6703_v0 }
 0x319   :  { %3108 = vmatmul.bf16.gmra.mxu2 %v9592_v30 }
 0x31a   :  { %3019 = vmatmul.bf16.gmra.mxu1 %v9591_v62  ;;  %3564 = vmatpush.bf16.msra.mxu0 %v6320_v44  ;;  %v9593_v44 = vld [vmem:[#allocation76_spill] sm:$0xff] }
 0x31b   :  { %3831 = vmatpush.bf16.msra.mxu3 %v6704_v36  ;;  %v9594_v36 = vld [vmem:[#allocation77_spill] sm:$0xff] }
 0x31c   :  { %3197 = vmatmul.bf16.gmra.mxu3 %v8006_v10  ;;  %v3069_v59 = vpop.f32.mrf.mxu2 }
 0x31d   :  { %v3070_v16 = vadd.f32 %v3069_v59, %v2981_v21  ;;  %v2893_v34 = vpop.f32.mrf.mxu0 }
 0x31e   :  { %v2894_v30 = vadd.f32 %v2893_v34, %v2805_v31 }
 0x31f   :  { %v3158_v15 = vpop.f32.mrf.mxu3  ;;  %v2982_v62 = vpop.f32.mrf.mxu1 }
 0x320   :  { %v8227_v10 = vadd.f32 %v3158_v15, %v3070_v16  ;;  %v2983_v39 = vadd.f32 %v2982_v62, %v2894_v30  ;;  %v9595_v16 = vld [vmem:[#allocation78_spill] sm:$0xff] }
 0x324   :  { %v3071_v5 = vpop.f32.mrf.mxu2 }
 0x325   :  { %v3072_v40 = vadd.f32 %v3071_v5, %v2983_v39  ;;  %v2896_v0 = vpop.f32.mrf.mxu0 }
 0x326   :  { %v2897_v52 = vadd.f32 %v2896_v0, %v2808_v9  ;;  %v2813_v9 = vadd.f32 %v8051_v18, %v8141_v46  ;;  %v6303_v18 = vld [vmem:[#allocation5 + $0x2c8] sm:$0xf] }
 0x327   :  { %v3160_v21 = vpop.f32.mrf.mxu3  ;;  %v2985_v32 = vpop.f32.mrf.mxu1 }
 0x328   :  { %v8231_v31 = vadd.f32 %v3160_v21, %v3072_v40  ;;  %v2986_v59 = vadd.f32 %v2985_v32, %v2897_v52  ;;  %2935 = vmatmul.bf16.gmra.mxu0 %v9593_v44 }
 0x329   :  { %3113 = vmatmul.bf16.gmra.mxu2 %v9595_v16 }
 0x32a   :  { %3024 = vmatmul.bf16.gmra.mxu1 %v9594_v36 }
 0x32c   :  { %3202 = vmatmul.bf16.gmra.mxu3 %v8024_v58  ;;  %v3074_v57 = vpop.f32.mrf.mxu2 }
 0x32d   :  { %v3075_v39 = vadd.f32 %v3074_v57, %v2986_v59  ;;  %v2898_v30 = vpop.f32.mrf.mxu0  ;;  %v9596_v59 = vld [vmem:[#allocation80_spill] sm:$0xff]  ;;  %v9597_v57 = vld [vmem:[#allocation81_spill] sm:$0xff] }
 0x32e   :  { %v2899_v15 = vadd.f32 %v2898_v30, %v2810_v49  ;;  %v9598_v49 = vld [vmem:[#allocation15_spill] sm:$0xff] }
 0x32f   :  { %v3163_v62 = vpop.f32.mrf.mxu3  ;;  %v2987_v34 = vpop.f32.mrf.mxu1 }
 0x330   :  { %v8239_v55 = vadd.f32 %v3163_v62, %v3075_v39  ;;  %v2988_v50 = vadd.f32 %v2987_v34, %v2899_v15  ;;  %v6559_v39 = vld [vmem:[#allocation5 + $0x4c8] sm:$0xf]  ;;  %v7232_v62 = vld [vmem:[#allocation5 + $0x4d4] sm:$0xf0] }
 0x331   :  { %v6560_v30 = vor.u32 %v7232_v62, %v6559_v39  ;;  %v7168_v15 = vld [vmem:[#allocation5 + $0x2d4] sm:$0xf0]  ;;  %v6687_v34 = vld [vmem:[#allocation5 + $0x5c8] sm:$0xf] }
 0x332   :  { %v6431_v39 = vld [vmem:[#allocation5 + $0x3c8] sm:$0xf]  ;;  %v7200_v62 = vld [vmem:[#allocation5 + $0x3d4] sm:$0xf0] }
 0x333   :  { %3743 = vmatpush.bf16.msra.mxu2 %v6560_v30  ;;  %v6432_v36 = vor.u32 %v7200_v62, %v6431_v39 }
 0x334   :  { %v3076_v5 = vpop.f32.mrf.mxu2 }
 0x335   :  { %v3077_v40 = vadd.f32 %v3076_v5, %v2988_v50  ;;  %v2901_v0 = vpop.f32.mrf.mxu0  ;;  %v7264_v50 = vld [vmem:[#allocation5 + $0x5d4] sm:$0xf0]  ;;  %3654 = vmatpush.bf16.msra.mxu1 %v6432_v36 }
 0x336   :  { %v2902_v52 = vadd.f32 %v2901_v0, %v2813_v9  ;;  %v2815_v9 = vadd.f32 %v8054_v53, %v8141_v46  ;;  %v2818_v53 = vadd.f32 %v8063_v7, %v8141_v46  ;;  %v2820_v7 = vadd.f32 %v8066_v22, %v8141_v46 }
 0x337   :  { %v3165_v21 = vpop.f32.mrf.mxu3  ;;  %v2990_v32 = vpop.f32.mrf.mxu1 }
 0x338   :  { %v8243_v58 = vadd.f32 %v3165_v21, %v3077_v40  ;;  %v2991_v4 = vadd.f32 %v2990_v32, %v2902_v52  ;;  %3216 = vmatmul.bf16.vlgmr.msrb.gmra.mxu0 %v9596_v59  ;;  %v6304_v40 = vor.u32 %v7168_v15, %v6303_v18  ;;  %v6688_v21 = vor.u32 %v7264_v50, %v6687_v34 }
 0x339   :  { %3394 = vmatmul.bf16.vlgmr.msrb.gmra.mxu2 %v9598_v49 }
 0x33a   :  { %3305 = vmatmul.bf16.vlgmr.msrb.gmra.mxu1 %v9597_v57  ;;  %3565 = vmatpush.bf16.msra.mxu0 %v6304_v40  ;;  %v9599_v40 = vld [vmem:[#allocation83_spill] sm:$0xff] }
 0x33b   :  { %3832 = vmatpush.bf16.msra.mxu3 %v6688_v21  ;;  %v9600_v21 = vld [vmem:[#allocation84_spill] sm:$0xff] }
 0x33c   :  { %3483 = vmatmul.bf16.vlgmr.msrb.gmra.mxu3 %v7534_v51  ;;  %v3079_v5 = vpop.f32.mrf.mxu2 }
 0x33d   :  { %v3080_v0 = vadd.f32 %v3079_v5, %v2991_v4  ;;  %v2903_v32 = vpop.f32.mrf.mxu0 }
 0x33e   :  { %v2904_v49 = vadd.f32 %v2903_v32, %v2815_v9 }
 0x33f   :  { %v3168_v52 = vpop.f32.mrf.mxu3  ;;  %v2992_v57 = vpop.f32.mrf.mxu1 }
 0x340   :  { %v8251_v51 = vadd.f32 %v3168_v52, %v3080_v0  ;;  %v2993_v16 = vadd.f32 %v2992_v57, %v2904_v49  ;;  %v9601_v0 = vld [vmem:[#allocation19_spill] sm:$0xff] }
 0x344   :  { %v3081_v18 = vpop.f32.mrf.mxu2 }
 0x345   :  { %v3082_v15 = vadd.f32 %v3081_v18, %v2993_v16  ;;  %v2906_v34 = vpop.f32.mrf.mxu0 }
 0x346   :  { %v2907_v50 = vadd.f32 %v2906_v34, %v2818_v53  ;;  %v2823_v53 = vadd.f32 %v8075_v29, %v8141_v46  ;;  %v6287_v29 = vld [vmem:[#allocation5 + $0x2a8] sm:$0xf] }
 0x347   :  { %v3170_v4 = vpop.f32.mrf.mxu3  ;;  %v2995_v30 = vpop.f32.mrf.mxu1 }
 0x348   :  { %v8255_v9 = vadd.f32 %v3170_v4, %v3082_v15  ;;  %v2996_v5 = vadd.f32 %v2995_v30, %v2907_v50  ;;  %3221 = vmatmul.bf16.gmra.mxu0 %v9599_v40 }
 0x349   :  { %3399 = vmatmul.bf16.gmra.mxu2 %v9601_v0 }
 0x34a   :  { %3310 = vmatmul.bf16.gmra.mxu1 %v9600_v21 }
 0x34c   :  { %3488 = vmatmul.bf16.gmra.mxu3 %v7546_v13  ;;  %v3084_v36 = vpop.f32.mrf.mxu2 }
 0x34d   :  { %v3085_v16 = vadd.f32 %v3084_v36, %v2996_v5  ;;  %v2908_v49 = vpop.f32.mrf.mxu0  ;;  %v9602_v5 = vld [vmem:[#allocation86_spill] sm:$0xff]  ;;  %v9603_v36 = vld [vmem:[#allocation87_spill] sm:$0xff] }
 0x34e   :  { %v2909_v52 = vadd.f32 %v2908_v49, %v2820_v7  ;;  %v9604_v7 = vld [vmem:[#allocation23_spill] sm:$0xff] }
 0x34f   :  { %v3173_v57 = vpop.f32.mrf.mxu3  ;;  %v2997_v32 = vpop.f32.mrf.mxu1 }
 0x350   :  { %v8263_v39 = vadd.f32 %v3173_v57, %v3085_v16  ;;  %v2998_v62 = vadd.f32 %v2997_v32, %v2909_v52  ;;  %v6543_v16 = vld [vmem:[#allocation5 + $0x4a8] sm:$0xf]  ;;  %v7228_v57 = vld [vmem:[#allocation5 + $0x4b4] sm:$0xf0] }
 0x351   :  { %v6544_v49 = vor.u32 %v7228_v57, %v6543_v16  ;;  %v7164_v52 = vld [vmem:[#allocation5 + $0x2b4] sm:$0xf0]  ;;  %v6671_v32 = vld [vmem:[#allocation5 + $0x5a8] sm:$0xf] }
 0x352   :  { %v6415_v16 = vld [vmem:[#allocation5 + $0x3a8] sm:$0xf]  ;;  %v7196_v57 = vld [vmem:[#allocation5 + $0x3b4] sm:$0xf0] }
 0x353   :  { %3744 = vmatpush.bf16.msra.mxu2 %v6544_v49  ;;  %v6416_v21 = vor.u32 %v7196_v57, %v6415_v16 }
 0x354   :  { %v3086_v18 = vpop.f32.mrf.mxu2 }
 0x355   :  { %v3087_v15 = vadd.f32 %v3086_v18, %v2998_v62  ;;  %v2911_v34 = vpop.f32.mrf.mxu0  ;;  %v7260_v62 = vld [vmem:[#allocation5 + $0x5b4] sm:$0xf0]  ;;  %3655 = vmatpush.bf16.msra.mxu1 %v6416_v21 }
 0x356   :  { %v2912_v50 = vadd.f32 %v2911_v34, %v2823_v53  ;;  %v2825_v53 = vadd.f32 %v8078_v19, %v8141_v46  ;;  %v2828_v19 = vadd.f32 %v8087_v23, %v8141_v46  ;;  %v2830_v23 = vadd.f32 %v8090_v48, %v8141_v46 }
 0x357   :  { %v3175_v4 = vpop.f32.mrf.mxu3  ;;  %v3000_v30 = vpop.f32.mrf.mxu1 }
 0x358   :  { %v8267_v13 = vadd.f32 %v3175_v4, %v3087_v15  ;;  %v3001_v22 = vadd.f32 %v3000_v30, %v2912_v50  ;;  %3226 = vmatmul.bf16.gmra.mxu0 %v9602_v5  ;;  %v6288_v15 = vor.u32 %v7164_v52, %v6287_v29  ;;  %v6672_v4 = vor.u32 %v7260_v62, %v6671_v32 }
 0x359   :  { %3404 = vmatmul.bf16.gmra.mxu2 %v9604_v7 }
 0x35a   :  { %3315 = vmatmul.bf16.gmra.mxu1 %v9603_v36  ;;  %3566 = vmatpush.bf16.msra.mxu0 %v6288_v15  ;;  %v9605_v15 = vld [vmem:[#allocation89_spill] sm:$0xff] }
 0x35b   :  { %3833 = vmatpush.bf16.msra.mxu3 %v6672_v4  ;;  %v9606_v4 = vld [vmem:[#allocation90_spill] sm:$0xff] }
 0x35c   :  { %3493 = vmatmul.bf16.gmra.mxu3 %v9533_v35  ;;  %v3089_v18 = vpop.f32.mrf.mxu2 }
 0x35d   :  { %v3090_v34 = vadd.f32 %v3089_v18, %v3001_v22  ;;  %v2913_v30 = vpop.f32.mrf.mxu0 }
 0x35e   :  { %v2914_v7 = vadd.f32 %v2913_v30, %v2825_v53 }
 0x35f   :  { %v3178_v50 = vpop.f32.mrf.mxu3  ;;  %v3002_v36 = vpop.f32.mrf.mxu1 }
 0x360   :  { %v8275_v35 = vadd.f32 %v3178_v50, %v3090_v34  ;;  %v3003_v0 = vadd.f32 %v3002_v36, %v2914_v7  ;;  %v9607_v34 = vld [vmem:[#allocation27_spill] sm:$0xff] }
 0x364   :  { %v3091_v29 = vpop.f32.mrf.mxu2 }
 0x365   :  { %v3092_v52 = vadd.f32 %v3091_v29, %v3003_v0  ;;  %v2916_v32 = vpop.f32.mrf.mxu0 }
 0x366   :  { %v2917_v62 = vadd.f32 %v2916_v32, %v2828_v19  ;;  %v2833_v19 = vadd.f32 %v8099_v14, %v8141_v46  ;;  %v6271_v14 = vld [vmem:[#allocation5 + $0x288] sm:$0xf] }
 0x367   :  { %v3180_v22 = vpop.f32.mrf.mxu3  ;;  %v3005_v49 = vpop.f32.mrf.mxu1 }
 0x368   :  { %v8279_v53 = vadd.f32 %v3180_v22, %v3092_v52  ;;  %v3006_v18 = vadd.f32 %v3005_v49, %v2917_v62  ;;  %3231 = vmatmul.bf16.gmra.mxu0 %v9605_v15 }
 0x369   :  { %3409 = vmatmul.bf16.gmra.mxu2 %v9607_v34 }
 0x36a   :  { %3320 = vmatmul.bf16.gmra.mxu1 %v9606_v4 }
 0x36c   :  { %3498 = vmatmul.bf16.gmra.mxu3 %v9539_v1  ;;  %v3094_v21 = vpop.f32.mrf.mxu2 }
 0x36d   :  { %v3095_v0 = vadd.f32 %v3094_v21, %v3006_v18  ;;  %v2918_v7 = vpop.f32.mrf.mxu0  ;;  %v9608_v18 = vld [vmem:[#allocation93_spill] sm:$0xff]  ;;  %v9609_v21 = vld [vmem:[#allocation94_spill] sm:$0xff] }
 0x36e   :  { %v2919_v50 = vadd.f32 %v2918_v7, %v2830_v23  ;;  %v9610_v23 = vld [vmem:[#allocation31_spill] sm:$0xff] }
 0x36f   :  { %v3183_v36 = vpop.f32.mrf.mxu3  ;;  %v3007_v30 = vpop.f32.mrf.mxu1 }
 0x370   :  { %v8287_v16 = vadd.f32 %v3183_v36, %v3095_v0  ;;  %v3008_v57 = vadd.f32 %v3007_v30, %v2919_v50  ;;  %v6527_v0 = vld [vmem:[#allocation5 + $0x488] sm:$0xf]  ;;  %v7224_v36 = vld [vmem:[#allocation5 + $0x494] sm:$0xf0] }
 0x371   :  { %v6528_v7 = vor.u32 %v7224_v36, %v6527_v0  ;;  %v7160_v50 = vld [vmem:[#allocation5 + $0x294] sm:$0xf0]  ;;  %v6655_v30 = vld [vmem:[#allocation5 + $0x588] sm:$0xf] }
 0x372   :  { %v6399_v0 = vld [vmem:[#allocation5 + $0x388] sm:$0xf]  ;;  %v7192_v36 = vld [vmem:[#allocation5 + $0x394] sm:$0xf0] }
 0x373   :  { %3745 = vmatpush.bf16.msra.mxu2 %v6528_v7  ;;  %v6400_v4 = vor.u32 %v7192_v36, %v6399_v0 }
 0x374   :  { %v3096_v29 = vpop.f32.mrf.mxu2 }
 0x375   :  { %v3097_v52 = vadd.f32 %v3096_v29, %v3008_v57  ;;  %v2921_v32 = vpop.f32.mrf.mxu0  ;;  %v7256_v57 = vld [vmem:[#allocation5 + $0x594] sm:$0xf0]  ;;  %3656 = vmatpush.bf16.msra.mxu1 %v6400_v4  ;;  %v9614_v4 = vld [vmem:[#allocation103_spill] sm:$0xff] }
 0x376   :  { %v2922_v62 = vadd.f32 %v2921_v32, %v2833_v19  ;;  %v2835_v19 = vadd.f32 %v8102_v60, %v8141_v46  ;;  %v2838_v60 = vadd.f32 %v8111_v8, %v8141_v46  ;;  %v2840_v8 = vadd.f32 %v9614_v4, %v8141_v46 }
 0x377   :  { %v3185_v22 = vpop.f32.mrf.mxu3  ;;  %v3010_v49 = vpop.f32.mrf.mxu1 }
 0x378   :  { %v8291_v1 = vadd.f32 %v3185_v22, %v3097_v52  ;;  %v3011_v48 = vadd.f32 %v3010_v49, %v2922_v62  ;;  %3236 = vmatmul.bf16.gmra.mxu0 %v9608_v18  ;;  %v6272_v52 = vor.u32 %v7160_v50, %v6271_v14  ;;  %v6656_v22 = vor.u32 %v7256_v57, %v6655_v30 }
 0x379   :  { %3414 = vmatmul.bf16.gmra.mxu2 %v9610_v23 }
 0x37a   :  { %3325 = vmatmul.bf16.gmra.mxu1 %v9609_v21  ;;  %3567 = vmatpush.bf16.msra.mxu0 %v6272_v52  ;;  %v9611_v52 = vld [vmem:[#allocation97_spill] sm:$0xff] }
 0x37b   :  { %3834 = vmatpush.bf16.msra.mxu3 %v6656_v22  ;;  %v9612_v22 = vld [vmem:[#allocation98_spill] sm:$0xff] }
 0x37c   :  { %3503 = vmatmul.bf16.gmra.mxu3 %v9545_v2  ;;  %v3099_v29 = vpop.f32.mrf.mxu2 }
 0x37d   :  { %v3100_v32 = vadd.f32 %v3099_v29, %v3011_v48  ;;  %v2923_v49 = vpop.f32.mrf.mxu0 }
 0x37e   :  { %v2924_v23 = vadd.f32 %v2923_v49, %v2835_v19 }
 0x37f   :  { %v3188_v62 = vpop.f32.mrf.mxu3  ;;  %v3012_v21 = vpop.f32.mrf.mxu1 }
 0x380   :  { %v8299_v2 = vadd.f32 %v3188_v62, %v3100_v32  ;;  %v3013_v34 = vadd.f32 %v3012_v21, %v2924_v23  ;;  %v9613_v32 = vld [vmem:[#allocation35_spill] sm:$0xff] }
 0x384   :  { %v3101_v14 = vpop.f32.mrf.mxu2 }
 0x385   :  { %v3102_v50 = vadd.f32 %v3101_v14, %v3013_v34  ;;  %v2926_v30 = vpop.f32.mrf.mxu0  ;;  %v2843_v14 = vadd.f32 %v8123_v42, %v8141_v46  ;;  %v6255_v42 = vld [vmem:[#allocation5 + $0x268] sm:$0xf] }
 0x386   :  { %v2927_v57 = vadd.f32 %v2926_v30, %v2838_v60 }
 0x387   :  { %v3190_v48 = vpop.f32.mrf.mxu3  ;;  %v3015_v7 = vpop.f32.mrf.mxu1 }
 0x388   :  { %v8303_v19 = vadd.f32 %v3190_v48, %v3102_v50  ;;  %v3016_v29 = vadd.f32 %v3015_v7, %v2927_v57  ;;  %3241 = vmatmul.bf16.gmra.mxu0 %v9611_v52 }
 0x389   :  { %3419 = vmatmul.bf16.gmra.mxu2 %v9613_v32 }
 0x38a   :  { %3330 = vmatmul.bf16.gmra.mxu1 %v9612_v22 }
 0x38c   :  { %3508 = vmatmul.bf16.gmra.mxu3 %v9551_v61  ;;  %v3104_v21 = vpop.f32.mrf.mxu2 }
 0x38d   :  { %v3105_v34 = vadd.f32 %v3104_v21, %v3016_v29  ;;  %v2928_v62 = vpop.f32.mrf.mxu0  ;;  %v9616_v29 = vld [vmem:[#allocation101_spill] sm:$0xff]  ;;  %v9617_v21 = vld [vmem:[#allocation102_spill] sm:$0xff] }
 0x38e   :  { %v2929_v49 = vadd.f32 %v2928_v62, %v2840_v8  ;;  %v9618_v8 = vld [vmem:[#allocation39_spill] sm:$0xff]  ;;  %v7220_v62 = vld [vmem:[#allocation5 + $0x474] sm:$0xf0] }
 0x38f   :  { %v3193_v23 = vpop.f32.mrf.mxu3  ;;  %v3017_v0 = vpop.f32.mrf.mxu1 }
 0x390   :  { %v8311_v36 = vadd.f32 %v3193_v23, %v3105_v34  ;;  %v3018_v60 = vadd.f32 %v3017_v0, %v2929_v49  ;;  %v9619_v34 = vld [vmem:[#allocation40_spill] sm:$0xff]  ;;  %v6511_v23 = vld [vmem:[#allocation5 + $0x468] sm:$0xf]  ;;  %v7156_v0 = vld [vmem:[#allocation5 + $0x274] sm:$0xf0] }
 0x391   :  { %v6512_v49 = vor.u32 %v7220_v62, %v6511_v23  ;;  %v6383_v23 = vld [vmem:[#allocation5 + $0x368] sm:$0xf]  ;;  %v7188_v62 = vld [vmem:[#allocation5 + $0x374] sm:$0xf0] }
 0x393   :  { %3746 = vmatpush.bf16.msra.mxu2 %v6512_v49 }
 0x394   :  { %v3106_v50 = vpop.f32.mrf.mxu2 }
 0x395   :  { %v3107_v48 = vadd.f32 %v3106_v50, %v3018_v60  ;;  %v2931_v57 = vpop.f32.mrf.mxu0  ;;  %v6639_v60 = vld [vmem:[#allocation5 + $0x568] sm:$0xf]  ;;  %v7252_v50 = vld [vmem:[#allocation5 + $0x574] sm:$0xf0] }
 0x396   :  { %v2932_v7 = vadd.f32 %v2931_v57, %v2843_v14  ;;  %v2845_v14 = vadd.f32 %v8126_v47, %v8141_v46  ;;  %v2848_v47 = vadd.f32 %v8135_v25, %v8141_v46 }
 0x397   :  { %v3195_v30 = vpop.f32.mrf.mxu3  ;;  %v3020_v61 = vpop.f32.mrf.mxu1 }
 0x398   :  { %v8315_v32 = vadd.f32 %v3195_v30, %v3107_v48  ;;  %v3021_v4 = vadd.f32 %v3020_v61, %v2932_v7  ;;  %3246 = vmatmul.bf16.gmra.mxu0 %v9616_v29  ;;  %v6256_v61 = vor.u32 %v7156_v0, %v6255_v42  ;;  %v6640_v30 = vor.u32 %v7252_v50, %v6639_v60 }
 0x399   :  { %3424 = vmatmul.bf16.gmra.mxu2 %v9618_v8 }
 0x39a   :  { %9615 = vst [vmem:[#allocation103_spill] sm:$0xff] %v8315_v32  ;;  %3335 = vmatmul.bf16.gmra.mxu1 %v9617_v21  ;;  %3568 = vmatpush.bf16.msra.mxu0 %v6256_v61  ;;  %v6384_v32 = vor.u32 %v7188_v62, %v6383_v23  ;;  %v9621_v61 = vld [vmem:[#allocation106_spill] sm:$0xff] }
 0x39b   :  { %3835 = vmatpush.bf16.msra.mxu3 %v6640_v30  ;;  %v9622_v30 = vld [vmem:[#allocation43_spill] sm:$0xff] }
 0x39c   :  { %3513 = vmatmul.bf16.gmra.mxu3 %v9619_v34  ;;  %v3109_v48 = vpop.f32.mrf.mxu2  ;;  %3657 = vmatpush.bf16.msra.mxu1 %v6384_v32 }
 0x39d   :  { %v3110_v57 = vadd.f32 %v3109_v48, %v3021_v4  ;;  %v2933_v21 = vpop.f32.mrf.mxu0  ;;  %v9620_v48 = vld [vmem:[#allocation105_spill] sm:$0xff] }
 0x39e   :  { %v2934_v8 = vadd.f32 %v2933_v21, %v2845_v14 }
 0x39f   :  { %v3198_v7 = vpop.f32.mrf.mxu3  ;;  %v3022_v22 = vpop.f32.mrf.mxu1 }
 0x3a0   :  { %v8323_v34 = vadd.f32 %v3198_v7, %v3110_v57  ;;  %v3023_v29 = vadd.f32 %v3022_v22, %v2934_v8  ;;  %v9623_v22 = vld [vmem:[#allocation144_spill] sm:$0xff] }
 0x3a1   :  { %v2850_v25 = vadd.f32 %v9623_v22, %v8141_v46  ;;  %v9625_v46 = vld [vmem:[#allocation108_spill] sm:$0xff]  ;;  %v9627_v22 = vld [vmem:[#allocation47_spill] sm:$0xff] }
 0x3a4   :  { %v3111_v42 = vpop.f32.mrf.mxu2 }
 0x3a5   :  { %v3112_v0 = vadd.f32 %v3111_v42, %v3023_v29  ;;  %v2936_v60 = vpop.f32.mrf.mxu0 }
 0x3a6   :  { %v2937_v50 = vadd.f32 %v2936_v60, %v2848_v47 }
 0x3a7   :  { %v3200_v4 = vpop.f32.mrf.mxu3  ;;  %v3025_v49 = vpop.f32.mrf.mxu1 }
 0x3a8   :  { %v8327_v21 = vadd.f32 %v3200_v4, %v3112_v0  ;;  %v3026_v14 = vadd.f32 %v3025_v49, %v2937_v50  ;;  %3251 = vmatmul.bf16.gmra.mxu0 %v9620_v48 }
 0x3a9   :  { %3429 = vmatmul.bf16.gmra.mxu2 %v9622_v30 }
 0x3aa   :  { %3340 = vmatmul.bf16.gmra.mxu1 %v9621_v61 }
 0x3ac   :  { %3518 = vmatmul.bf16.gmra.mxu3 %v9563_v12  ;;  %v3114_v32 = vpop.f32.mrf.mxu2 }
 0x3ad   :  { %v3115_v29 = vadd.f32 %v3114_v32, %v3026_v14  ;;  %v2938_v57 = vpop.f32.mrf.mxu0  ;;  %v9626_v14 = vld [vmem:[#allocation109_spill] sm:$0xff] }
 0x3ae   :  { %v2939_v7 = vadd.f32 %v2938_v57, %v2850_v25  ;;  %v9628_v25 = vld [vmem:[#allocation110_spill] sm:$0xff]  ;;  %v7216_v57 = vld [vmem:[#allocation5 + $0x454] sm:$0xf0] }
 0x3af   :  { %v3203_v8 = vpop.f32.mrf.mxu3  ;;  %v3027_v23 = vpop.f32.mrf.mxu1  ;;  %v8344_v32 = vperm.slane %v9628_v25, 2 }
 0x3b0   :  { %v8335_v62 = vadd.f32 %v3203_v8, %v3115_v29  ;;  %v3028_v47 = vadd.f32 %v3027_v23, %v2939_v7  ;;  %v9629_v29 = vld [vmem:[#allocation48_spill] sm:$0xff]  ;;  %v6495_v8 = vld [vmem:[#allocation5 + $0x448] sm:$0xf] }
 0x3b1   :  { %v6496_v7 = vor.u32 %v7216_v57, %v6495_v8  ;;  %v6239_v23 = vld [vmem:[#allocation5 + $0x248] sm:$0xf]  ;;  %v7184_v57 = vld [vmem:[#allocation5 + $0x354] sm:$0xf0] }
 0x3b2   :  { %v6367_v8 = vld [vmem:[#allocation5 + $0x348] sm:$0xf] }
 0x3b3   :  { %3747 = vmatpush.bf16.msra.mxu2 %v6496_v7 }
 0x3b4   :  { %v3116_v42 = vpop.f32.mrf.mxu2 }
 0x3b5   :  { %v3117_v0 = vadd.f32 %v3116_v42, %v3028_v47  ;;  %v3217_v60 = vpop.f32.mrf.mxu0  ;;  %v6623_v47 = vld [vmem:[#allocation5 + $0x548] sm:$0xf] }
 0x3b6   :  { %v3218_v50 = vadd.f32 %v3217_v60, %v8155_v63  ;;  %v7152_v63 = vld [vmem:[#allocation5 + $0x254] sm:$0xf0] }
 0x3b7   :  { %v3205_v4 = vpop.f32.mrf.mxu3  ;;  %v3306_v49 = vpop.f32.mrf.mxu1 }
 0x3b8   :  { %v8338_v12 = vadd.f32 %v3205_v4, %v3117_v0  ;;  %v3307_v30 = vadd.f32 %v3306_v49, %v3218_v50  ;;  %3256 = vmatmul.bf16.gmra.mxu0 %v9625_v46  ;;  %v6240_v0 = vor.u32 %v7152_v63, %v6239_v23  ;;  %v7248_v4 = vld [vmem:[#allocation5 + $0x554] sm:$0xf0]  ;;  %v6368_v46 = vor.u32 %v7184_v57, %v6367_v8 }
 0x3b9   :  { %3434 = vmatmul.bf16.gmra.mxu2 %v9627_v22  ;;  %v6624_v22 = vor.u32 %v7248_v4, %v6623_v47 }
 0x3ba   :  { %9624 = vst [vmem:[#allocation144_spill] sm:$0xff] %v8338_v12  ;;  %3345 = vmatmul.bf16.gmra.mxu1 %v9626_v14  ;;  %3569 = vmatpush.bf16.msra.mxu0 %v6240_v0  ;;  %v4633_v12 = vmax.f32 %v3307_v30, 0.0  ;;  %v9633_v30 = vld [vmem:[#allocation51_spill] sm:$0xff] }
 0x3bb   :  { %3836 = vmatpush.bf16.msra.mxu3 %v6624_v22  ;;  %3658 = vmatpush.bf16.msra.mxu1 %v6368_v46 }
 0x3bc   :  { %3523 = vmatmul.bf16.gmra.mxu3 %v9629_v29  ;;  %v3395_v42 = vpop.f32.mrf.mxu2 }
 0x3bd   :  { %v3396_v60 = vadd.f32 %v3395_v42, %v8344_v32  ;;  %v3219_v49 = vpop.f32.mrf.mxu0 }
 0x3be   :  { %v3220_v25 = vadd.f32 %v3219_v49, %v8159_v27 }
 0x3bf   :  { %v3484_v50 = vpop.f32.mrf.mxu3  ;;  %v3308_v14 = vpop.f32.mrf.mxu1 }
 0x3c0   :  { %v8349_v29 = vadd.f32 %v3484_v50, %v3396_v60  ;;  %v3309_v61 = vadd.f32 %v3308_v14, %v3220_v25  ;;  %v9631_v50 = vld [vmem:[#allocation112_spill] sm:$0xff]  ;;  %v9632_v14 = vld [vmem:[#allocation113_spill] sm:$0xff] }
 0x3c2   :  { %v4637_v23 = vmax.f32 %v3309_v61, 0.0 }
 0x3c4   :  { %v8351_v63 = vpack.c.bf16 %v4637_v23, %v4633_v12  ;;  %v3397_v42 = vpop.f32.mrf.mxu2 }
 0x3c5   :  { %v3398_v7 = vadd.f32 %v3397_v42, %v8344_v32  ;;  %v3222_v4 = vpop.f32.mrf.mxu0 }
 0x3c6   :  { %9630 = vst [vmem:[#allocation110_spill] sm:$0xff] %v8351_v63  ;;  %v3223_v27 = vadd.f32 %v3222_v4, %v8167_v26 }
 0x3c7   :  { %v3486_v47 = vpop.f32.mrf.mxu3  ;;  %v3311_v0 = vpop.f32.mrf.mxu1 }
 0x3c8   :  { %v8355_v60 = vadd.f32 %v3486_v47, %v3398_v7  ;;  %v3312_v22 = vadd.f32 %v3311_v0, %v3223_v27  ;;  %3261 = vmatmul.bf16.gmra.mxu0 %v9631_v50 }
 0x3c9   :  { %3439 = vmatmul.bf16.gmra.mxu2 %v9633_v30 }
 0x3ca   :  { %3350 = vmatmul.bf16.gmra.mxu1 %v9632_v14  ;;  %v4641_v23 = vmax.f32 %v3312_v22, 0.0  ;;  %v6479_v22 = vld [vmem:[#allocation5 + $0x428] sm:$0xf] }
 0x3cc   :  { %3528 = vmatmul.bf16.gmra.mxu3 %v9575_v54  ;;  %v3400_v12 = vpop.f32.mrf.mxu2 }
 0x3cd   :  { %v3401_v61 = vadd.f32 %v3400_v12, %v8344_v32  ;;  %v3224_v49 = vpop.f32.mrf.mxu0 }
 0x3ce   :  { %v3225_v25 = vadd.f32 %v3224_v49, %v8171_v11  ;;  %v9635_v11 = vld [vmem:[#allocation116_spill] sm:$0xff]  ;;  %v7212_v49 = vld [vmem:[#allocation5 + $0x434] sm:$0xf0] }
 0x3cf   :  { %v3489_v46 = vpop.f32.mrf.mxu3  ;;  %v3313_v26 = vpop.f32.mrf.mxu1 }
 0x3d0   :  { %v8363_v8 = vadd.f32 %v3489_v46, %v3401_v61  ;;  %v3314_v57 = vadd.f32 %v3313_v26, %v3225_v25  ;;  %v9636_v61 = vld [vmem:[#allocation117_spill] sm:$0xff]  ;;  %v9637_v46 = vld [vmem:[#allocation55_spill] sm:$0xff]  ;;  %v6480_v25 = vor.u32 %v7212_v49, %v6479_v22 }
 0x3d1   :  { %v6223_v26 = vld [vmem:[#allocation5 + $0x228] sm:$0xf]  ;;  %v7180_v49 = vld [vmem:[#allocation5 + $0x334] sm:$0xf0] }
 0x3d2   :  { %v4645_v42 = vmax.f32 %v3314_v57, 0.0  ;;  %v7148_v57 = vld [vmem:[#allocation5 + $0x234] sm:$0xf0]  ;;  %3748 = vmatpush.bf16.msra.mxu2 %v6480_v25  ;;  %v6351_v22 = vld [vmem:[#allocation5 + $0x328] sm:$0xf] }
 0x3d4   :  { %v3402_v7 = vpop.f32.mrf.mxu2  ;;  %v8365_v47 = vpack.c.bf16 %v4645_v42, %v4641_v23  ;;  %v6607_v23 = vld [vmem:[#allocation5 + $0x528] sm:$0xf] }
 0x3d5   :  { %v3403_v4 = vadd.f32 %v3402_v7, %v8344_v32  ;;  %v3227_v0 = vpop.f32.mrf.mxu0  ;;  %v7244_v7 = vld [vmem:[#allocation5 + $0x534] sm:$0xf0] }
 0x3d6   :  { %9634 = vst [vmem:[#allocation146_spill] sm:$0xff] %v8365_v47  ;;  %v3228_v63 = vadd.f32 %v3227_v0, %v8179_v20  ;;  %v6224_v20 = vor.u32 %v7148_v57, %v6223_v26  ;;  %v6608_v0 = vor.u32 %v7244_v7, %v6607_v23 }
 0x3d7   :  { %v3491_v27 = vpop.f32.mrf.mxu3  ;;  %v3316_v12 = vpop.f32.mrf.mxu1 }
 0x3d8   :  { %v8369_v54 = vadd.f32 %v3491_v27, %v3403_v4  ;;  %v3317_v30 = vadd.f32 %v3316_v12, %v3228_v63  ;;  %3266 = vmatmul.bf16.gmra.mxu0 %v9635_v11  ;;  %3837 = vmatpush.bf16.msra.mxu3 %v6608_v0 }
 0x3d9   :  { %3444 = vmatmul.bf16.gmra.mxu2 %v9637_v46  ;;  %3570 = vmatpush.bf16.msra.mxu0 %v6224_v20 }
 0x3da   :  { %3355 = vmatmul.bf16.gmra.mxu1 %v9636_v61  ;;  %v6352_v61 = vor.u32 %v7180_v49, %v6351_v22  ;;  %v4649_v14 = vmax.f32 %v3317_v30, 0.0  ;;  %v9641_v30 = vld [vmem:[#allocation59_spill] sm:$0xff] }
 0x3dc   :  { %3533 = vmatmul.bf16.gmra.mxu3 %v9578_v45  ;;  %v3405_v42 = vpop.f32.mrf.mxu2  ;;  %3659 = vmatpush.bf16.msra.mxu1 %v6352_v61 }
 0x3dd   :  { %v3406_v4 = vadd.f32 %v3405_v42, %v8344_v32  ;;  %v3229_v27 = vpop.f32.mrf.mxu0 }
 0x3de   :  { %v3230_v12 = vadd.f32 %v3229_v27, %v8183_v3  ;;  %v9639_v27 = vld [vmem:[#allocation120_spill] sm:$0xff] }
 0x3df   :  { %v3494_v63 = vpop.f32.mrf.mxu3  ;;  %v3318_v47 = vpop.f32.mrf.mxu1 }
 0x3e0   :  { %v8377_v45 = vadd.f32 %v3494_v63, %v3406_v4  ;;  %v3319_v46 = vadd.f32 %v3318_v47, %v3230_v12  ;;  %v9640_v47 = vld [vmem:[#allocation121_spill] sm:$0xff] }
 0x3e2   :  { %v4653_v26 = vmax.f32 %v3319_v46, 0.0 }
 0x3e4   :  { %v3407_v57 = vpop.f32.mrf.mxu2  ;;  %v8379_v42 = vpack.c.bf16 %v4653_v26, %v4649_v14 }
 0x3e5   :  { %v3408_v25 = vadd.f32 %v3407_v57, %v8344_v32  ;;  %v3232_v7 = vpop.f32.mrf.mxu0 }
 0x3e6   :  { %9638 = vst [vmem:[#allocation147_spill] sm:$0xff] %v8379_v42  ;;  %v3233_v3 = vadd.f32 %v3232_v7, %v8191_v24 }
 0x3e7   :  { %v3496_v23 = vpop.f32.mrf.mxu3  ;;  %v3321_v20 = vpop.f32.mrf.mxu1 }
 0x3e8   :  { %v8383_v4 = vadd.f32 %v3496_v23, %v3408_v25  ;;  %v3322_v63 = vadd.f32 %v3321_v20, %v3233_v3  ;;  %3271 = vmatmul.bf16.gmra.mxu0 %v9639_v27 }
 0x3e9   :  { %3449 = vmatmul.bf16.gmra.mxu2 %v9641_v30 }
 0x3ea   :  { %3360 = vmatmul.bf16.gmra.mxu1 %v9640_v47  ;;  %v4657_v26 = vmax.f32 %v3322_v63, 0.0  ;;  %v6463_v63 = vld [vmem:[#allocation5 + $0x408] sm:$0xf] }
 0x3ec   :  { %3538 = vmatmul.bf16.gmra.mxu3 %v9581_v28  ;;  %v3410_v14 = vpop.f32.mrf.mxu2 }
 0x3ed   :  { %v3411_v61 = vadd.f32 %v3410_v14, %v8344_v32  ;;  %v3234_v0 = vpop.f32.mrf.mxu0 }
 0x3ee   :  { %v3235_v12 = vadd.f32 %v3234_v0, %v8195_v37  ;;  %v9643_v37 = vld [vmem:[#allocation124_spill] sm:$0xff]  ;;  %v7208_v0 = vld [vmem:[#allocation5 + $0x414] sm:$0xf0] }
 0x3ef   :  { %v3499_v46 = vpop.f32.mrf.mxu3  ;;  %v3323_v24 = vpop.f32.mrf.mxu1 }
 0x3f0   :  { %v8391_v22 = vadd.f32 %v3499_v46, %v3411_v61  ;;  %v3324_v49 = vadd.f32 %v3323_v24, %v3235_v12  ;;  %v9644_v61 = vld [vmem:[#allocation125_spill] sm:$0xff]  ;;  %v9645_v46 = vld [vmem:[#allocation63_spill] sm:$0xff]  ;;  %v6464_v12 = vor.u32 %v7208_v0, %v6463_v63 }
 0x3f1   :  { %v6207_v24 = vld [vmem:[#allocation5 + $0x208] sm:$0xf]  ;;  %v7176_v0 = vld [vmem:[#allocation5 + $0x314] sm:$0xf0] }
 0x3f2   :  { %v4661_v57 = vmax.f32 %v3324_v49, 0.0  ;;  %v7144_v49 = vld [vmem:[#allocation5 + $0x214] sm:$0xf0]  ;;  %3749 = vmatpush.bf16.msra.mxu2 %v6464_v12  ;;  %v6335_v63 = vld [vmem:[#allocation5 + $0x308] sm:$0xf] }
 0x3f4   :  { %v3412_v25 = vpop.f32.mrf.mxu2  ;;  %v8393_v23 = vpack.c.bf16 %v4661_v57, %v4657_v26  ;;  %v6591_v26 = vld [vmem:[#allocation5 + $0x508] sm:$0xf] }
 0x3f5   :  { %v3413_v7 = vadd.f32 %v3412_v25, %v8344_v32  ;;  %v3237_v20 = vpop.f32.mrf.mxu0  ;;  %v7240_v25 = vld [vmem:[#allocation5 + $0x514] sm:$0xf0] }
 0x3f6   :  { %9642 = vst [vmem:[#allocation148_spill] sm:$0xff] %v8393_v23  ;;  %v3238_v42 = vadd.f32 %v3237_v20, %v8203_v6  ;;  %v6208_v6 = vor.u32 %v7144_v49, %v6207_v24  ;;  %v6592_v20 = vor.u32 %v7240_v25, %v6591_v26 }
 0x3f7   :  { %v3501_v3 = vpop.f32.mrf.mxu3  ;;  %v3326_v14 = vpop.f32.mrf.mxu1 }
 0x3f8   :  { %v8397_v28 = vadd.f32 %v3501_v3, %v3413_v7  ;;  %v3327_v30 = vadd.f32 %v3326_v14, %v3238_v42  ;;  %3276 = vmatmul.bf16.gmra.mxu0 %v9643_v37  ;;  %3838 = vmatpush.bf16.msra.mxu3 %v6592_v20 }
 0x3f9   :  { %3454 = vmatmul.bf16.gmra.mxu2 %v9645_v46  ;;  %3571 = vmatpush.bf16.msra.mxu0 %v6208_v6 }
 0x3fa   :  { %3365 = vmatmul.bf16.gmra.mxu1 %v9644_v61  ;;  %v6336_v61 = vor.u32 %v7176_v0, %v6335_v63  ;;  %v4665_v47 = vmax.f32 %v3327_v30, 0.0  ;;  %v9649_v30 = vld [vmem:[#allocation67_spill] sm:$0xff] }
 0x3fc   :  { %3543 = vmatmul.bf16.gmra.mxu3 %v9584_v41  ;;  %v3415_v57 = vpop.f32.mrf.mxu2  ;;  %3660 = vmatpush.bf16.msra.mxu1 %v6336_v61 }
 0x3fd   :  { %v3416_v7 = vadd.f32 %v3415_v57, %v8344_v32  ;;  %v3239_v3 = vpop.f32.mrf.mxu0 }
 0x3fe   :  { %v3240_v14 = vadd.f32 %v3239_v3, %v8207_v17  ;;  %v9647_v3 = vld [vmem:[#allocation128_spill] sm:$0xff] }
 0x3ff   :  { %v3504_v42 = vpop.f32.mrf.mxu3  ;;  %v3328_v23 = vpop.f32.mrf.mxu1 }
 0x400   :  { %v8405_v41 = vadd.f32 %v3504_v42, %v3416_v7  ;;  %v3329_v46 = vadd.f32 %v3328_v23, %v3240_v14  ;;  %v9648_v23 = vld [vmem:[#allocation129_spill] sm:$0xff] }
 0x402   :  { %v4669_v24 = vmax.f32 %v3329_v46, 0.0 }
 0x404   :  { %v3417_v49 = vpop.f32.mrf.mxu2  ;;  %v8407_v57 = vpack.c.bf16 %v4669_v24, %v4665_v47 }
 0x405   :  { %v3418_v12 = vadd.f32 %v3417_v49, %v8344_v32  ;;  %v3242_v25 = vpop.f32.mrf.mxu0 }
 0x406   :  { %9646 = vst [vmem:[#allocation149_spill] sm:$0xff] %v8407_v57  ;;  %v3243_v17 = vadd.f32 %v3242_v25, %v8215_v56 }
 0x407   :  { %v3506_v26 = vpop.f32.mrf.mxu3  ;;  %v3331_v6 = vpop.f32.mrf.mxu1 }
 0x408   :  { %v8411_v7 = vadd.f32 %v3506_v26, %v3418_v12  ;;  %v3332_v42 = vadd.f32 %v3331_v6, %v3243_v17  ;;  %3281 = vmatmul.bf16.gmra.mxu0 %v9647_v3 }
 0x409   :  { %3459 = vmatmul.bf16.gmra.mxu2 %v9649_v30 }
 0x40a   :  { %3370 = vmatmul.bf16.gmra.mxu1 %v9648_v23  ;;  %v4673_v24 = vmax.f32 %v3332_v42, 0.0  ;;  %v7138_v42 = vld [vmem:[#allocation5 + $0x1ec] sm:$0xf] }
 0x40c   :  { %3548 = vmatmul.bf16.gmra.mxu3 %v9587_v33  ;;  %v3420_v47 = vpop.f32.mrf.mxu2 }
 0x40d   :  { %v3421_v61 = vadd.f32 %v3420_v47, %v8344_v32  ;;  %v3244_v20 = vpop.f32.mrf.mxu0 }
 0x40e   :  { %v3245_v14 = vadd.f32 %v3244_v20, %v8219_v43  ;;  %v9651_v43 = vld [vmem:[#allocation132_spill] sm:$0xff]  ;;  %v6193_v20 = vld [vmem:[#allocation5 + $0x1f8] sm:$0xf0] }
 0x40f   :  { %v3509_v46 = vpop.f32.mrf.mxu3  ;;  %v3333_v56 = vpop.f32.mrf.mxu1 }
 0x410   :  { %v8419_v63 = vadd.f32 %v3509_v46, %v3421_v61  ;;  %v3334_v0 = vadd.f32 %v3333_v56, %v3245_v14  ;;  %v9652_v61 = vld [vmem:[#allocation133_spill] sm:$0xff]  ;;  %v9653_v46 = vld [vmem:[#allocation71_spill] sm:$0xff]  ;;  %v6196_v14 = vor.u32 %v7138_v42, %v6193_v20  ;;  %v7106_v42 = vld [vmem:[#allocation5 + $0xec] sm:$0xf] }
 0x411   :  { %v6831_v56 = vld [vmem:[#allocation5 + $0x6e8] sm:$0xf]  ;;  %v6065_v20 = vld [vmem:[#allocation5 + $0xf8] sm:$0xf0] }
 0x412   :  { %v4677_v49 = vmax.f32 %v3334_v0, 0.0  ;;  %v7300_v0 = vld [vmem:[#allocation5 + $0x6f4] sm:$0xf0]  ;;  %4098 = vmatpush.bf16.msrb.mxu2 %v6196_v14 }
 0x414   :  { %v3422_v12 = vpop.f32.mrf.mxu2  ;;  %v8421_v26 = vpack.c.bf16 %v4677_v49, %v4673_v24  ;;  %v7170_v24 = vld [vmem:[#allocation5 + $0x2ec] sm:$0xf] }
 0x415   :  { %v3423_v25 = vadd.f32 %v3422_v12, %v8344_v32  ;;  %v3247_v6 = vpop.f32.mrf.mxu0  ;;  %v6321_v12 = vld [vmem:[#allocation5 + $0x2f8] sm:$0xf0] }
 0x416   :  { %9650 = vst [vmem:[#allocation150_spill] sm:$0xff] %v8421_v26  ;;  %v3248_v57 = vadd.f32 %v3247_v6, %v8227_v10  ;;  %v6832_v10 = vor.u32 %v7300_v0, %v6831_v56  ;;  %v6324_v6 = vor.u32 %v7170_v24, %v6321_v12 }
 0x417   :  { %v3511_v17 = vpop.f32.mrf.mxu3  ;;  %v3336_v47 = vpop.f32.mrf.mxu1 }
 0x418   :  { %v8425_v33 = vadd.f32 %v3511_v17, %v3423_v25  ;;  %v3337_v30 = vadd.f32 %v3336_v47, %v3248_v57  ;;  %3286 = vmatmul.bf16.gmra.mxu0 %v9651_v43  ;;  %4187 = vmatpush.bf16.msrb.mxu3 %v6324_v6 }
 0x419   :  { %3464 = vmatmul.bf16.gmra.mxu2 %v9653_v46  ;;  %3920 = vmatpush.bf16.msrb.mxu0 %v6832_v10 }
 0x41a   :  { %3375 = vmatmul.bf16.gmra.mxu1 %v9652_v61  ;;  %v6068_v61 = vor.u32 %v7106_v42, %v6065_v20  ;;  %v4681_v23 = vmax.f32 %v3337_v30, 0.0  ;;  %v9657_v30 = vld [vmem:[#allocation75_spill] sm:$0xff] }
 0x41c   :  { %3553 = vmatmul.bf16.gmra.mxu3 %v9590_v38  ;;  %v3425_v49 = vpop.f32.mrf.mxu2  ;;  %4009 = vmatpush.bf16.msrb.mxu1 %v6068_v61 }
 0x41d   :  { %v3426_v25 = vadd.f32 %v3425_v49, %v8344_v32  ;;  %v3249_v17 = vpop.f32.mrf.mxu0 }
 0x41e   :  { %v3250_v47 = vadd.f32 %v3249_v17, %v8231_v31  ;;  %v9655_v17 = vld [vmem:[#allocation136_spill] sm:$0xff] }
 0x41f   :  { %v3514_v57 = vpop.f32.mrf.mxu3  ;;  %v3338_v26 = vpop.f32.mrf.mxu1 }
 0x420   :  { %v8433_v38 = vadd.f32 %v3514_v57, %v3426_v25  ;;  %v3339_v46 = vadd.f32 %v3338_v26, %v3250_v47  ;;  %v9656_v26 = vld [vmem:[#allocation137_spill] sm:$0xff] }
 0x422   :  { %v4685_v56 = vmax.f32 %v3339_v46, 0.0 }
 0x424   :  { %v3427_v0 = vpop.f32.mrf.mxu2  ;;  %v8435_v49 = vpack.c.bf16 %v4685_v56, %v4681_v23 }
 0x425   :  { %v3428_v14 = vadd.f32 %v3427_v0, %v8344_v32  ;;  %v3252_v12 = vpop.f32.mrf.mxu0 }
 0x426   :  { %9654 = vst [vmem:[#allocation151_spill] sm:$0xff] %v8435_v49  ;;  %v3253_v31 = vadd.f32 %v3252_v12, %v8239_v55 }
 0x427   :  { %v3516_v24 = vpop.f32.mrf.mxu3  ;;  %v3341_v10 = vpop.f32.mrf.mxu1 }
 0x428   :  { %v8439_v25 = vadd.f32 %v3516_v24, %v3428_v14  ;;  %v3342_v57 = vadd.f32 %v3341_v10, %v3253_v31  ;;  %3291 = vmatmul.bf16.gmra.mxu0 %v9655_v17 }
 0x429   :  { %3469 = vmatmul.bf16.gmra.mxu2 %v9657_v30 }
 0x42a   :  { %3380 = vmatmul.bf16.gmra.mxu1 %v9656_v26  ;;  %v4689_v56 = vmax.f32 %v3342_v57, 0.0  ;;  %v7134_v57 = vld [vmem:[#allocation5 + $0x1cc] sm:$0xf] }
 0x42c   :  { %3558 = vmatmul.bf16.gmra.mxu3 %v9593_v44  ;;  %v3430_v23 = vpop.f32.mrf.mxu2 }
 0x42d   :  { %v3431_v61 = vadd.f32 %v3430_v23, %v8344_v32  ;;  %v3254_v6 = vpop.f32.mrf.mxu0 }
 0x42e   :  { %v3255_v47 = vadd.f32 %v3254_v6, %v8243_v58  ;;  %v9659_v58 = vld [vmem:[#allocation17_spill] sm:$0xff]  ;;  %v6177_v6 = vld [vmem:[#allocation5 + $0x1d8] sm:$0xf0] }
 0x42f   :  { %v3519_v46 = vpop.f32.mrf.mxu3  ;;  %v3343_v55 = vpop.f32.mrf.mxu1 }
 0x430   :  { %v8447_v42 = vadd.f32 %v3519_v46, %v3431_v61  ;;  %v3344_v20 = vadd.f32 %v3343_v55, %v3255_v47  ;;  %v9660_v61 = vld [vmem:[#allocation18_spill] sm:$0xff]  ;;  %v9661_v46 = vld [vmem:[#allocation79_spill] sm:$0xff]  ;;  %v6180_v47 = vor.u32 %v7134_v57, %v6177_v6  ;;  %v7102_v57 = vld [vmem:[#allocation5 + $0xcc] sm:$0xf] }
 0x431   :  { %v6815_v55 = vld [vmem:[#allocation5 + $0x6c8] sm:$0xf]  ;;  %v6049_v6 = vld [vmem:[#allocation5 + $0xd8] sm:$0xf0] }
 0x432   :  { %v4693_v0 = vmax.f32 %v3344_v20, 0.0  ;;  %v7296_v20 = vld [vmem:[#allocation5 + $0x6d4] sm:$0xf0]  ;;  %4099 = vmatpush.bf16.msrb.mxu2 %v6180_v47 }
 0x434   :  { %v3432_v14 = vpop.f32.mrf.mxu2  ;;  %v8449_v24 = vpack.c.bf16 %v4693_v0, %v4689_v56  ;;  %v7166_v56 = vld [vmem:[#allocation5 + $0x2cc] sm:$0xf] }
 0x435   :  { %v3433_v12 = vadd.f32 %v3432_v14, %v8344_v32  ;;  %v3257_v10 = vpop.f32.mrf.mxu0  ;;  %v6305_v14 = vld [vmem:[#allocation5 + $0x2d8] sm:$0xf0] }
 0x436   :  { %9658 = vst [vmem:[#allocation152_spill] sm:$0xff] %v8449_v24  ;;  %v3258_v49 = vadd.f32 %v3257_v10, %v8251_v51  ;;  %v6816_v51 = vor.u32 %v7296_v20, %v6815_v55  ;;  %v6308_v10 = vor.u32 %v7166_v56, %v6305_v14 }
 0x437   :  { %v3521_v31 = vpop.f32.mrf.mxu3  ;;  %v3346_v23 = vpop.f32.mrf.mxu1 }
 0x438   :  { %v8453_v44 = vadd.f32 %v3521_v31, %v3433_v12  ;;  %v3347_v30 = vadd.f32 %v3346_v23, %v3258_v49  ;;  %3572 = vmatmul.bf16.vlgmr.msra.gmra.mxu0 %v9659_v58  ;;  %4188 = vmatpush.bf16.msrb.mxu3 %v6308_v10 }
 0x439   :  { %3750 = vmatmul.bf16.vlgmr.msra.gmra.mxu2 %v9661_v46  ;;  %3921 = vmatpush.bf16.msrb.mxu0 %v6816_v51 }
 0x43a   :  { %3661 = vmatmul.bf16.vlgmr.msra.gmra.mxu1 %v9660_v61  ;;  %v6052_v61 = vor.u32 %v7102_v57, %v6049_v6  ;;  %v4697_v26 = vmax.f32 %v3347_v30, 0.0  ;;  %v9665_v30 = vld [vmem:[#allocation82_spill] sm:$0xff] }
 0x43c   :  { %3839 = vmatmul.bf16.vlgmr.msra.gmra.mxu3 %v9596_v59  ;;  %v3435_v0 = vpop.f32.mrf.mxu2  ;;  %4010 = vmatpush.bf16.msrb.mxu1 %v6052_v61 }
 0x43d   :  { %v3436_v12 = vadd.f32 %v3435_v0, %v8344_v32  ;;  %v3259_v31 = vpop.f32.mrf.mxu0 }
 0x43e   :  { %v3260_v23 = vadd.f32 %v3259_v31, %v8255_v9  ;;  %v9663_v31 = vld [vmem:[#allocation21_spill] sm:$0xff] }
 0x43f   :  { %v3524_v49 = vpop.f32.mrf.mxu3  ;;  %v3348_v24 = vpop.f32.mrf.mxu1 }
 0x440   :  { %v8461_v59 = vadd.f32 %v3524_v49, %v3436_v12  ;;  %v3349_v46 = vadd.f32 %v3348_v24, %v3260_v23  ;;  %v9664_v24 = vld [vmem:[#allocation22_spill] sm:$0xff] }
 0x442   :  { %v4701_v55 = vmax.f32 %v3349_v46, 0.0 }
 0x444   :  { %v3437_v20 = vpop.f32.mrf.mxu2  ;;  %v8463_v0 = vpack.c.bf16 %v4701_v55, %v4697_v26 }
 0x445   :  { %v3438_v47 = vadd.f32 %v3437_v20, %v8344_v32  ;;  %v3262_v14 = vpop.f32.mrf.mxu0 }
 0x446   :  { %9662 = vst [vmem:[#allocation17_spill] sm:$0xff] %v8463_v0  ;;  %v3263_v9 = vadd.f32 %v3262_v14, %v8263_v39 }
 0x447   :  { %v3526_v56 = vpop.f32.mrf.mxu3  ;;  %v3351_v51 = vpop.f32.mrf.mxu1 }
 0x448   :  { %v8467_v12 = vadd.f32 %v3526_v56, %v3438_v47  ;;  %v3352_v49 = vadd.f32 %v3351_v51, %v3263_v9  ;;  %3577 = vmatmul.bf16.gmra.mxu0 %v9663_v31 }
 0x449   :  { %3755 = vmatmul.bf16.gmra.mxu2 %v9665_v30 }
 0x44a   :  { %3666 = vmatmul.bf16.gmra.mxu1 %v9664_v24  ;;  %v4705_v55 = vmax.f32 %v3352_v49, 0.0  ;;  %v7130_v49 = vld [vmem:[#allocation5 + $0x1ac] sm:$0xf] }
 0x44c   :  { %3844 = vmatmul.bf16.gmra.mxu3 %v9599_v40  ;;  %v3440_v26 = vpop.f32.mrf.mxu2 }
 0x44d   :  { %v3441_v61 = vadd.f32 %v3440_v26, %v8344_v32  ;;  %v3264_v10 = vpop.f32.mrf.mxu0 }
 0x44e   :  { %v3265_v23 = vadd.f32 %v3264_v10, %v8267_v13  ;;  %v9667_v13 = vld [vmem:[#allocation25_spill] sm:$0xff]  ;;  %v6161_v10 = vld [vmem:[#allocation5 + $0x1b8] sm:$0xf0] }
 0x44f   :  { %v3529_v46 = vpop.f32.mrf.mxu3  ;;  %v3353_v39 = vpop.f32.mrf.mxu1 }
 0x450   :  { %v8475_v57 = vadd.f32 %v3529_v46, %v3441_v61  ;;  %v3354_v6 = vadd.f32 %v3353_v39, %v3265_v23  ;;  %v9668_v61 = vld [vmem:[#allocation26_spill] sm:$0xff]  ;;  %v9669_v46 = vld [vmem:[#allocation85_spill] sm:$0xff]  ;;  %v6164_v23 = vor.u32 %v7130_v49, %v6161_v10  ;;  %v6799_v39 = vld [vmem:[#allocation5 + $0x6a8] sm:$0xf] }
 0x451   :  { %v7098_v49 = vld [vmem:[#allocation5 + $0xac] sm:$0xf]  ;;  %v6033_v10 = vld [vmem:[#allocation5 + $0xb8] sm:$0xf0] }
 0x452   :  { %v4709_v20 = vmax.f32 %v3354_v6, 0.0  ;;  %v7292_v6 = vld [vmem:[#allocation5 + $0x6b4] sm:$0xf0]  ;;  %4100 = vmatpush.bf16.msrb.mxu2 %v6164_v23 }
 0x454   :  { %v3442_v47 = vpop.f32.mrf.mxu2  ;;  %v8477_v56 = vpack.c.bf16 %v4709_v20, %v4705_v55  ;;  %v7162_v55 = vld [vmem:[#allocation5 + $0x2ac] sm:$0xf] }
 0x455   :  { %v3443_v14 = vadd.f32 %v3442_v47, %v8344_v32  ;;  %v3267_v51 = vpop.f32.mrf.mxu0  ;;  %v6289_v47 = vld [vmem:[#allocation5 + $0x2b8] sm:$0xf0] }
 0x456   :  { %9666 = vst [vmem:[#allocation21_spill] sm:$0xff] %v8477_v56  ;;  %v3268_v0 = vadd.f32 %v3267_v51, %v8275_v35  ;;  %v6800_v35 = vor.u32 %v7292_v6, %v6799_v39  ;;  %v6292_v51 = vor.u32 %v7162_v55, %v6289_v47 }
 0x457   :  { %v3531_v9 = vpop.f32.mrf.mxu3  ;;  %v3356_v26 = vpop.f32.mrf.mxu1 }
 0x458   :  { %v8481_v40 = vadd.f32 %v3531_v9, %v3443_v14  ;;  %v3357_v30 = vadd.f32 %v3356_v26, %v3268_v0  ;;  %3582 = vmatmul.bf16.gmra.mxu0 %v9667_v13  ;;  %4189 = vmatpush.bf16.msrb.mxu3 %v6292_v51 }
 0x459   :  { %3760 = vmatmul.bf16.gmra.mxu2 %v9669_v46  ;;  %3922 = vmatpush.bf16.msrb.mxu0 %v6800_v35 }
 0x45a   :  { %3671 = vmatmul.bf16.gmra.mxu1 %v9668_v61  ;;  %v6036_v61 = vor.u32 %v7098_v49, %v6033_v10  ;;  %v4713_v24 = vmax.f32 %v3357_v30, 0.0  ;;  %v9673_v30 = vld [vmem:[#allocation88_spill] sm:$0xff] }
 0x45c   :  { %3849 = vmatmul.bf16.gmra.mxu3 %v9602_v5  ;;  %v3445_v20 = vpop.f32.mrf.mxu2  ;;  %4011 = vmatpush.bf16.msrb.mxu1 %v6036_v61 }
 0x45d   :  { %v3446_v14 = vadd.f32 %v3445_v20, %v8344_v32  ;;  %v3269_v9 = vpop.f32.mrf.mxu0 }
 0x45e   :  { %v3270_v26 = vadd.f32 %v3269_v9, %v8279_v53  ;;  %v9671_v9 = vld [vmem:[#allocation29_spill] sm:$0xff] }
 0x45f   :  { %v3534_v0 = vpop.f32.mrf.mxu3  ;;  %v3358_v56 = vpop.f32.mrf.mxu1 }
 0x460   :  { %v8489_v5 = vadd.f32 %v3534_v0, %v3446_v14  ;;  %v3359_v46 = vadd.f32 %v3358_v56, %v3270_v26  ;;  %v9672_v56 = vld [vmem:[#allocation30_spill] sm:$0xff] }
 0x462   :  { %v4717_v39 = vmax.f32 %v3359_v46, 0.0 }
 0x464   :  { %v3447_v6 = vpop.f32.mrf.mxu2  ;;  %v8491_v20 = vpack.c.bf16 %v4717_v39, %v4713_v24 }
 0x465   :  { %v3448_v23 = vadd.f32 %v3447_v6, %v8344_v32  ;;  %v3272_v47 = vpop.f32.mrf.mxu0 }
 0x466   :  { %9670 = vst [vmem:[#allocation25_spill] sm:$0xff] %v8491_v20  ;;  %v3273_v53 = vadd.f32 %v3272_v47, %v8287_v16 }
 0x467   :  { %v3536_v55 = vpop.f32.mrf.mxu3  ;;  %v3361_v35 = vpop.f32.mrf.mxu1 }
 0x468   :  { %v8495_v14 = vadd.f32 %v3536_v55, %v3448_v23  ;;  %v3362_v0 = vadd.f32 %v3361_v35, %v3273_v53  ;;  %3587 = vmatmul.bf16.gmra.mxu0 %v9671_v9 }
 0x469   :  { %3765 = vmatmul.bf16.gmra.mxu2 %v9673_v30 }
 0x46a   :  { %3676 = vmatmul.bf16.gmra.mxu1 %v9672_v56  ;;  %v4721_v39 = vmax.f32 %v3362_v0, 0.0  ;;  %v7126_v0 = vld [vmem:[#allocation5 + $0x18c] sm:$0xf] }
 0x46c   :  { %3854 = vmatmul.bf16.gmra.mxu3 %v9605_v15  ;;  %v3450_v24 = vpop.f32.mrf.mxu2 }
 0x46d   :  { %v3451_v61 = vadd.f32 %v3450_v24, %v8344_v32  ;;  %v3274_v51 = vpop.f32.mrf.mxu0 }
 0x46e   :  { %v3275_v26 = vadd.f32 %v3274_v51, %v8291_v1  ;;  %v9675_v1 = vld [vmem:[#allocation33_spill] sm:$0xff]  ;;  %v6145_v51 = vld [vmem:[#allocation5 + $0x198] sm:$0xf0] }
 0x46f   :  { %v3539_v46 = vpop.f32.mrf.mxu3  ;;  %v3363_v16 = vpop.f32.mrf.mxu1 }
 0x470   :  { %v8503_v49 = vadd.f32 %v3539_v46, %v3451_v61  ;;  %v3364_v10 = vadd.f32 %v3363_v16, %v3275_v26  ;;  %v9676_v61 = vld [vmem:[#allocation34_spill] sm:$0xff]  ;;  %v9677_v46 = vld [vmem:[#allocation92_spill] sm:$0xff]  ;;  %v6148_v26 = vor.u32 %v7126_v0, %v6145_v51  ;;  %v6783_v16 = vld [vmem:[#allocation5 + $0x688] sm:$0xf] }
 0x471   :  { %v7094_v0 = vld [vmem:[#allocation5 + $0x8c] sm:$0xf]  ;;  %v6017_v51 = vld [vmem:[#allocation5 + $0x98] sm:$0xf0] }
 0x472   :  { %v4725_v6 = vmax.f32 %v3364_v10, 0.0  ;;  %v7288_v10 = vld [vmem:[#allocation5 + $0x694] sm:$0xf0]  ;;  %4101 = vmatpush.bf16.msrb.mxu2 %v6148_v26 }
 0x474   :  { %v3452_v23 = vpop.f32.mrf.mxu2  ;;  %v8505_v55 = vpack.c.bf16 %v4725_v6, %v4721_v39  ;;  %v7158_v39 = vld [vmem:[#allocation5 + $0x28c] sm:$0xf] }
 0x475   :  { %v3453_v47 = vadd.f32 %v3452_v23, %v8344_v32  ;;  %v3277_v35 = vpop.f32.mrf.mxu0  ;;  %v6273_v23 = vld [vmem:[#allocation5 + $0x298] sm:$0xf0] }
 0x476   :  { %9674 = vst [vmem:[#allocation29_spill] sm:$0xff] %v8505_v55  ;;  %v3278_v20 = vadd.f32 %v3277_v35, %v8299_v2  ;;  %v6784_v2 = vor.u32 %v7288_v10, %v6783_v16  ;;  %v6276_v35 = vor.u32 %v7158_v39, %v6273_v23 }
 0x477   :  { %v3541_v53 = vpop.f32.mrf.mxu3  ;;  %v3366_v24 = vpop.f32.mrf.mxu1 }
 0x478   :  { %v8509_v15 = vadd.f32 %v3541_v53, %v3453_v47  ;;  %v3367_v30 = vadd.f32 %v3366_v24, %v3278_v20  ;;  %3592 = vmatmul.bf16.gmra.mxu0 %v9675_v1  ;;  %4190 = vmatpush.bf16.msrb.mxu3 %v6276_v35 }
 0x479   :  { %3770 = vmatmul.bf16.gmra.mxu2 %v9677_v46  ;;  %3923 = vmatpush.bf16.msrb.mxu0 %v6784_v2 }
 0x47a   :  { %3681 = vmatmul.bf16.gmra.mxu1 %v9676_v61  ;;  %v6020_v61 = vor.u32 %v7094_v0, %v6017_v51  ;;  %v4729_v56 = vmax.f32 %v3367_v30, 0.0  ;;  %v9681_v30 = vld [vmem:[#allocation96_spill] sm:$0xff] }
 0x47c   :  { %3859 = vmatmul.bf16.gmra.mxu3 %v9608_v18  ;;  %v3455_v6 = vpop.f32.mrf.mxu2  ;;  %4012 = vmatpush.bf16.msrb.mxu1 %v6020_v61 }
 0x47d   :  { %v3456_v47 = vadd.f32 %v3455_v6, %v8344_v32  ;;  %v3279_v53 = vpop.f32.mrf.mxu0 }
 0x47e   :  { %v3280_v24 = vadd.f32 %v3279_v53, %v8303_v19  ;;  %v9679_v53 = vld [vmem:[#allocation37_spill] sm:$0xff] }
 0x47f   :  { %v3544_v20 = vpop.f32.mrf.mxu3  ;;  %v3368_v55 = vpop.f32.mrf.mxu1 }
 0x480   :  { %v8517_v18 = vadd.f32 %v3544_v20, %v3456_v47  ;;  %v3369_v46 = vadd.f32 %v3368_v55, %v3280_v24  ;;  %v9680_v55 = vld [vmem:[#allocation38_spill] sm:$0xff]  ;;  %v9682_v24 = vld [vmem:[#allocation103_spill] sm:$0xff] }
 0x482   :  { %v4733_v16 = vmax.f32 %v3369_v46, 0.0 }
 0x484   :  { %v3457_v10 = vpop.f32.mrf.mxu2  ;;  %v8519_v6 = vpack.c.bf16 %v4733_v16, %v4729_v56 }
 0x485   :  { %v3458_v26 = vadd.f32 %v3457_v10, %v8344_v32  ;;  %v3282_v23 = vpop.f32.mrf.mxu0 }
 0x486   :  { %9678 = vst [vmem:[#allocation33_spill] sm:$0xff] %v8519_v6  ;;  %v3283_v19 = vadd.f32 %v3282_v23, %v8311_v36 }
 0x487   :  { %v3546_v39 = vpop.f32.mrf.mxu3  ;;  %v3371_v2 = vpop.f32.mrf.mxu1 }
 0x488   :  { %v8523_v47 = vadd.f32 %v3546_v39, %v3458_v26  ;;  %v3372_v20 = vadd.f32 %v3371_v2, %v3283_v19  ;;  %3597 = vmatmul.bf16.gmra.mxu0 %v9679_v53 }
 0x489   :  { %3775 = vmatmul.bf16.gmra.mxu2 %v9681_v30 }
 0x48a   :  { %3686 = vmatmul.bf16.gmra.mxu1 %v9680_v55  ;;  %v4737_v10 = vmax.f32 %v3372_v20, 0.0  ;;  %v9688_v20 = vld [vmem:[#allocation101_spill] sm:$0xff] }
 0x48c   :  { %3864 = vmatmul.bf16.gmra.mxu3 %v9611_v52  ;;  %v3460_v56 = vpop.f32.mrf.mxu2 }
 0x48d   :  { %v3461_v61 = vadd.f32 %v3460_v56, %v8344_v32  ;;  %v3284_v35 = vpop.f32.mrf.mxu0 }
 0x48e   :  { %v3285_v0 = vadd.f32 %v3284_v35, %v9682_v24  ;;  %v9685_v35 = vld [vmem:[#allocation41_spill] sm:$0xff]  ;;  %v7122_v24 = vld [vmem:[#allocation5 + $0x16c] sm:$0xf] }
 0x48f   :  { %v3549_v46 = vpop.f32.mrf.mxu3  ;;  %v3373_v36 = vpop.f32.mrf.mxu1 }
 0x490   :  { %v8531_v51 = vadd.f32 %v3549_v46, %v3461_v61  ;;  %v3374_v16 = vadd.f32 %v3373_v36, %v3285_v0  ;;  %v9686_v61 = vld [vmem:[#allocation42_spill] sm:$0xff]  ;;  %v9687_v46 = vld [vmem:[#allocation100_spill] sm:$0xff] }
 0x491   :  { %v6129_v0 = vld [vmem:[#allocation5 + $0x178] sm:$0xf0] }
 0x492   :  { %v4741_v26 = vmax.f32 %v3374_v16, 0.0  ;;  %v6132_v36 = vor.u32 %v7122_v24, %v6129_v0  ;;  %v6767_v16 = vld [vmem:[#allocation5 + $0x668] sm:$0xf]  ;;  %v7090_v24 = vld [vmem:[#allocation5 + $0x6c] sm:$0xf] }
 0x493   :  { %v6001_v0 = vld [vmem:[#allocation5 + $0x78] sm:$0xf0] }
 0x494   :  { %v3462_v39 = vpop.f32.mrf.mxu2  ;;  %v8533_v23 = vpack.c.bf16 %v4741_v26, %v4737_v10  ;;  %v7284_v10 = vld [vmem:[#allocation5 + $0x674] sm:$0xf0]  ;;  %v7154_v26 = vld [vmem:[#allocation5 + $0x26c] sm:$0xf]  ;;  %4102 = vmatpush.bf16.msrb.mxu2 %v6132_v36 }
 0x495   :  { %v3463_v19 = vadd.f32 %v3462_v39, %v8344_v32  ;;  %v3287_v6 = vpop.f32.mrf.mxu0 }
 0x496   :  { %9683 = vst [vmem:[#allocation37_spill] sm:$0xff] %v8533_v23  ;;  %v3288_v52 = vadd.f32 %v3287_v6, %v8323_v34  ;;  %v6768_v34 = vor.u32 %v7284_v10, %v6767_v16  ;;  %v6257_v6 = vld [vmem:[#allocation5 + $0x278] sm:$0xf0] }
 0x497   :  { %v3551_v2 = vpop.f32.mrf.mxu3  ;;  %v3376_v56 = vpop.f32.mrf.mxu1 }
 0x498   :  { %v8537_v30 = vadd.f32 %v3551_v2, %v3463_v19  ;;  %v3377_v55 = vadd.f32 %v3376_v56, %v3288_v52  ;;  %3602 = vmatmul.bf16.gmra.mxu0 %v9685_v35  ;;  %v6260_v56 = vor.u32 %v7154_v26, %v6257_v6  ;;  %v6004_v35 = vor.u32 %v7090_v24, %v6001_v0 }
 0x499   :  { %3780 = vmatmul.bf16.gmra.mxu2 %v9687_v46  ;;  %3924 = vmatpush.bf16.msrb.mxu0 %v6768_v34 }
 0x49a   :  { %9684 = vst [vmem:[#allocation103_spill] sm:$0xff] %v8537_v30  ;;  %3691 = vmatmul.bf16.gmra.mxu1 %v9686_v61  ;;  %4191 = vmatpush.bf16.msrb.mxu3 %v6260_v56  ;;  %v4745_v30 = vmax.f32 %v3377_v55, 0.0  ;;  %v9692_v55 = vld [vmem:[#allocation104_spill] sm:$0xff] }
 0x49b   :  { %4013 = vmatpush.bf16.msrb.mxu1 %v6004_v35  ;;  %v9693_v56 = vld [vmem:[#allocation144_spill] sm:$0xff] }
 0x49c   :  { %3869 = vmatmul.bf16.gmra.mxu3 %v9688_v20  ;;  %v3465_v39 = vpop.f32.mrf.mxu2 }
 0x49d   :  { %v3466_v19 = vadd.f32 %v3465_v39, %v8344_v32  ;;  %v3289_v2 = vpop.f32.mrf.mxu0 }
 0x49e   :  { %v3290_v23 = vadd.f32 %v3289_v2, %v8327_v21  ;;  %v9690_v2 = vld [vmem:[#allocation45_spill] sm:$0xff] }
 0x49f   :  { %v3554_v52 = vpop.f32.mrf.mxu3  ;;  %v3378_v46 = vpop.f32.mrf.mxu1 }
 0x4a0   :  { %v8545_v20 = vadd.f32 %v3554_v52, %v3466_v19  ;;  %v3379_v61 = vadd.f32 %v3378_v46, %v3290_v23  ;;  %v9691_v23 = vld [vmem:[#allocation46_spill] sm:$0xff] }
 0x4a2   :  { %v4749_v16 = vmax.f32 %v3379_v61, 0.0 }
 0x4a4   :  { %v3467_v10 = vpop.f32.mrf.mxu2  ;;  %v8547_v39 = vpack.c.bf16 %v4749_v16, %v4745_v30 }
 0x4a5   :  { %v3468_v36 = vadd.f32 %v3467_v10, %v8344_v32  ;;  %v3292_v6 = vpop.f32.mrf.mxu0 }
 0x4a6   :  { %9689 = vst [vmem:[#allocation153_spill] sm:$0xff] %v8547_v39  ;;  %v3293_v21 = vadd.f32 %v3292_v6, %v8335_v62 }
 0x4a7   :  { %v3556_v26 = vpop.f32.mrf.mxu3  ;;  %v3381_v34 = vpop.f32.mrf.mxu1 }
 0x4a8   :  { %v8551_v19 = vadd.f32 %v3556_v26, %v3468_v36  ;;  %v3382_v52 = vadd.f32 %v3381_v34, %v3293_v21  ;;  %3607 = vmatmul.bf16.gmra.mxu0 %v9690_v2 }
 0x4a9   :  { %3785 = vmatmul.bf16.gmra.mxu2 %v9692_v55 }
 0x4aa   :  { %3696 = vmatmul.bf16.gmra.mxu1 %v9691_v23  ;;  %v4753_v10 = vmax.f32 %v3382_v52, 0.0  ;;  %v9699_v52 = vld [vmem:[#allocation108_spill] sm:$0xff] }
 0x4ac   :  { %3874 = vmatmul.bf16.gmra.mxu3 %v9620_v48  ;;  %v3470_v30 = vpop.f32.mrf.mxu2 }
 0x4ad   :  { %v3471_v35 = vadd.f32 %v3470_v30, %v8344_v32  ;;  %v3294_v46 = vpop.f32.mrf.mxu0 }
 0x4ae   :  { %v3295_v24 = vadd.f32 %v3294_v46, %v9693_v56  ;;  %v9696_v46 = vld [vmem:[#allocation49_spill] sm:$0xff]  ;;  %v7118_v56 = vld [vmem:[#allocation5 + $0x14c] sm:$0xf] }
 0x4af   :  { %v3559_v61 = vpop.f32.mrf.mxu3  ;;  %v3383_v62 = vpop.f32.mrf.mxu1 }
 0x4b0   :  { %v8559_v0 = vadd.f32 %v3559_v61, %v3471_v35  ;;  %v3384_v16 = vadd.f32 %v3383_v62, %v3295_v24  ;;  %v9697_v35 = vld [vmem:[#allocation50_spill] sm:$0xff]  ;;  %v9698_v61 = vld [vmem:[#allocation107_spill] sm:$0xff] }
 0x4b1   :  { %v6113_v24 = vld [vmem:[#allocation5 + $0x158] sm:$0xf0]  ;;  %v6751_v62 = vld [vmem:[#allocation5 + $0x648] sm:$0xf] }
 0x4b2   :  { %v4757_v36 = vmax.f32 %v3384_v16, 0.0  ;;  %v7280_v16 = vld [vmem:[#allocation5 + $0x654] sm:$0xf0] }
 0x4b4   :  { %v3472_v26 = vpop.f32.mrf.mxu2  ;;  %v8561_v6 = vpack.c.bf16 %v4757_v36, %v4753_v10  ;;  %v7150_v10 = vld [vmem:[#allocation5 + $0x24c] sm:$0xf]  ;;  %v6241_v36 = vld [vmem:[#allocation5 + $0x258] sm:$0xf0] }
 0x4b5   :  { %v3473_v21 = vadd.f32 %v3472_v26, %v8344_v32  ;;  %v3573_v39 = vpop.f32.mrf.mxu0  ;;  %v6116_v32 = vor.u32 %v7118_v56, %v6113_v24  ;;  %v6244_v26 = vor.u32 %v7150_v10, %v6241_v36  ;;  %v9700_v36 = vld [vmem:[#allocation53_spill] sm:$0xff] }
 0x4b6   :  { %9694 = vst [vmem:[#allocation45_spill] sm:$0xff] %v8561_v6  ;;  %v3574_v48 = vadd.f32 %v3573_v39, %v8349_v29  ;;  %v6752_v39 = vor.u32 %v7280_v16, %v6751_v62 }
 0x4b7   :  { %v3561_v34 = vpop.f32.mrf.mxu3  ;;  %v3662_v30 = vpop.f32.mrf.mxu1  ;;  %4103 = vmatpush.bf16.msrb.mxu2 %v6116_v32  ;;  %4192 = vmatpush.bf16.msrb.mxu3 %v6244_v26 }
 0x4b8   :  { %v8565_v55 = vadd.f32 %v3561_v34, %v3473_v21  ;;  %v3663_v23 = vadd.f32 %v3662_v30, %v3574_v48  ;;  %3612 = vmatmul.bf16.gmra.mxu0 %v9696_v46 }
 0x4b9   :  { %3790 = vmatmul.bf16.gmra.mxu2 %v9698_v61  ;;  %3925 = vmatpush.bf16.msrb.mxu0 %v6752_v39  ;;  %v7086_v61 = vld [vmem:[#allocation5 + $0x4c] sm:$0xf]  ;;  %v9702_v39 = vld [vmem:[#allocation111_spill] sm:$0xff] }
 0x4ba   :  { %9695 = vst [vmem:[#allocation144_spill] sm:$0xff] %v8565_v55  ;;  %3701 = vmatmul.bf16.gmra.mxu1 %v9697_v35  ;;  %v5985_v35 = vld [vmem:[#allocation5 + $0x58] sm:$0xf0] }
 0x4bb   :  { %v5988_v24 = vor.u32 %v7086_v61, %v5985_v35 }
 0x4bc   :  { %3879 = vmatmul.bf16.gmra.mxu3 %v9699_v52  ;;  %v3751_v29 = vpop.f32.mrf.mxu2 }
 0x4bd   :  { %v3752_v21 = vadd.f32 %v3751_v29, %v3663_v23  ;;  %v3575_v34 = vpop.f32.mrf.mxu0  ;;  %4014 = vmatpush.bf16.msrb.mxu1 %v5988_v24  ;;  %v9701_v29 = vld [vmem:[#allocation54_spill] sm:$0xff] }
 0x4be   :  { %v3576_v30 = vadd.f32 %v3575_v34, %v8355_v60 }
 0x4bf   :  { %v3840_v48 = vpop.f32.mrf.mxu3  ;;  %v3664_v6 = vpop.f32.mrf.mxu1 }
 0x4c0   :  { %v8572_v52 = vadd.f32 %v3840_v48, %v3752_v21  ;;  %v3665_v56 = vadd.f32 %v3664_v6, %v3576_v30 }
 0x4c4   :  { %v3753_v46 = vpop.f32.mrf.mxu2 }
 0x4c5   :  { %v3754_v55 = vadd.f32 %v3753_v46, %v3665_v56  ;;  %v3578_v16 = vpop.f32.mrf.mxu0 }
 0x4c6   :  { %v3579_v23 = vadd.f32 %v3578_v16, %v8363_v8 }
 0x4c7   :  { %v3842_v62 = vpop.f32.mrf.mxu3  ;;  %v3667_v10 = vpop.f32.mrf.mxu1 }
 0x4c8   :  { %v8575_v32 = vadd.f32 %v3842_v62, %v3754_v55  ;;  %v3668_v60 = vadd.f32 %v3667_v10, %v3579_v23  ;;  %3617 = vmatmul.bf16.gmra.mxu0 %v9700_v36  ;;  %v9703_v10 = vld [vmem:[#allocation57_spill] sm:$0xff] }
 0x4c9   :  { %3795 = vmatmul.bf16.gmra.mxu2 %v9702_v39 }
 0x4ca   :  { %3706 = vmatmul.bf16.gmra.mxu1 %v9701_v29 }
 0x4cc   :  { %3884 = vmatmul.bf16.gmra.mxu3 %v9631_v50  ;;  %v3756_v6 = vpop.f32.mrf.mxu2  ;;  %v5969_v50 = vld [vmem:[#allocation5 + $0x38] sm:$0xf0] }
 0x4cd   :  { %v3757_v35 = vadd.f32 %v3756_v6, %v3668_v60  ;;  %v3580_v46 = vpop.f32.mrf.mxu0  ;;  %v9704_v60 = vld [vmem:[#allocation58_spill] sm:$0xff]  ;;  %v9705_v6 = vld [vmem:[#allocation115_spill] sm:$0xff] }
 0x4ce   :  { %v3581_v26 = vadd.f32 %v3580_v46, %v8369_v54  ;;  %v7114_v54 = vld [vmem:[#allocation5 + $0x12c] sm:$0xf] }
 0x4cf   :  { %v3845_v61 = vpop.f32.mrf.mxu3  ;;  %v3669_v21 = vpop.f32.mrf.mxu1 }
 0x4d0   :  { %v8582_v8 = vadd.f32 %v3845_v61, %v3757_v35  ;;  %v3670_v55 = vadd.f32 %v3669_v21, %v3581_v26  ;;  %v6097_v35 = vld [vmem:[#allocation5 + $0x138] sm:$0xf0]  ;;  %v6735_v61 = vld [vmem:[#allocation5 + $0x628] sm:$0xf]  ;;  %v7276_v26 = vld [vmem:[#allocation5 + $0x634] sm:$0xf0] }
 0x4d1   :  { %v6100_v46 = vor.u32 %v7114_v54, %v6097_v35  ;;  %v7146_v21 = vld [vmem:[#allocation5 + $0x22c] sm:$0xf] }
 0x4d3   :  { %4104 = vmatpush.bf16.msrb.mxu2 %v6100_v46 }
 0x4d4   :  { %v3758_v48 = vpop.f32.mrf.mxu2 }
 0x4d5   :  { %v3759_v34 = vadd.f32 %v3758_v48, %v3670_v55  ;;  %v3583_v56 = vpop.f32.mrf.mxu0  ;;  %v6225_v55 = vld [vmem:[#allocation5 + $0x238] sm:$0xf0]  ;;  %v6736_v48 = vor.u32 %v7276_v26, %v6735_v61 }
 0x4d6   :  { %v3584_v24 = vadd.f32 %v3583_v56, %v8377_v45 }
 0x4d7   :  { %v3847_v30 = vpop.f32.mrf.mxu3  ;;  %v3672_v62 = vpop.f32.mrf.mxu1  ;;  %3926 = vmatpush.bf16.msrb.mxu0 %v6736_v48  ;;  %v9708_v48 = vld [vmem:[#allocation119_spill] sm:$0xff] }
 0x4d8   :  { %v8585_v16 = vadd.f32 %v3847_v30, %v3759_v34  ;;  %v3673_v23 = vadd.f32 %v3672_v62, %v3584_v24  ;;  %3622 = vmatmul.bf16.gmra.mxu0 %v9703_v10  ;;  %v6228_v34 = vor.u32 %v7146_v21, %v6225_v55  ;;  %v9706_v55 = vld [vmem:[#allocation61_spill] sm:$0xff] }
 0x4d9   :  { %3800 = vmatmul.bf16.gmra.mxu2 %v9705_v6  ;;  %v7082_v6 = vld [vmem:[#allocation5 + $0x2c] sm:$0xf] }
 0x4da   :  { %3711 = vmatmul.bf16.gmra.mxu1 %v9704_v60  ;;  %4193 = vmatpush.bf16.msrb.mxu3 %v6228_v34  ;;  %v5972_v35 = vor.u32 %v7082_v6, %v5969_v50 }
 0x4dc   :  { %3889 = vmatmul.bf16.gmra.mxu3 %v9635_v11  ;;  %v3761_v45 = vpop.f32.mrf.mxu2  ;;  %4015 = vmatpush.bf16.msrb.mxu1 %v5972_v35 }
 0x4dd   :  { %v3762_v30 = vadd.f32 %v3761_v45, %v3673_v23  ;;  %v3585_v24 = vpop.f32.mrf.mxu0  ;;  %v9707_v45 = vld [vmem:[#allocation62_spill] sm:$0xff] }
 0x4de   :  { %v3586_v62 = vadd.f32 %v3585_v24, %v8383_v4 }
 0x4df   :  { %v3850_v56 = vpop.f32.mrf.mxu3  ;;  %v3674_v60 = vpop.f32.mrf.mxu1 }
 0x4e0   :  { %v8592_v11 = vadd.f32 %v3850_v56, %v3762_v30  ;;  %v3675_v54 = vadd.f32 %v3674_v60, %v3586_v62 }
 0x4e4   :  { %v3763_v39 = vpop.f32.mrf.mxu2 }
 0x4e5   :  { %v3764_v29 = vadd.f32 %v3763_v39, %v3675_v54  ;;  %v3588_v26 = vpop.f32.mrf.mxu0 }
 0x4e6   :  { %v3589_v23 = vadd.f32 %v3588_v26, %v8391_v22 }
 0x4e7   :  { %v3852_v61 = vpop.f32.mrf.mxu3  ;;  %v3677_v21 = vpop.f32.mrf.mxu1 }
 0x4e8   :  { %v8595_v46 = vadd.f32 %v3852_v61, %v3764_v29  ;;  %v3678_v4 = vadd.f32 %v3677_v21, %v3589_v23  ;;  %3627 = vmatmul.bf16.gmra.mxu0 %v9706_v55  ;;  %v9709_v21 = vld [vmem:[#allocation65_spill] sm:$0xff] }
 0x4e9   :  { %3805 = vmatmul.bf16.gmra.mxu2 %v9708_v48 }
 0x4ea   :  { %3716 = vmatmul.bf16.gmra.mxu1 %v9707_v45 }
 0x4ec   :  { %3894 = vmatmul.bf16.gmra.mxu3 %v9639_v27  ;;  %v3766_v50 = vpop.f32.mrf.mxu2  ;;  %v5953_v27 = vld [vmem:[#allocation5 + $0x18] sm:$0xf0] }
 0x4ed   :  { %v3767_v60 = vadd.f32 %v3766_v50, %v3678_v4  ;;  %v3590_v39 = vpop.f32.mrf.mxu0  ;;  %v9710_v4 = vld [vmem:[#allocation66_spill] sm:$0xff]  ;;  %v9711_v50 = vld [vmem:[#allocation123_spill] sm:$0xff] }
 0x4ee   :  { %v3591_v34 = vadd.f32 %v3590_v39, %v8397_v28  ;;  %v7110_v28 = vld [vmem:[#allocation5 + $0x10c] sm:$0xf] }
 0x4ef   :  { %v3855_v6 = vpop.f32.mrf.mxu3  ;;  %v3679_v30 = vpop.f32.mrf.mxu1 }
 0x4f0   :  { %v8602_v22 = vadd.f32 %v3855_v6, %v3767_v60  ;;  %v3680_v29 = vadd.f32 %v3679_v30, %v3591_v34  ;;  %v6081_v60 = vld [vmem:[#allocation5 + $0x118] sm:$0xf0]  ;;  %v6719_v6 = vld [vmem:[#allocation5 + $0x608] sm:$0xf]  ;;  %v7272_v34 = vld [vmem:[#allocation5 + $0x614] sm:$0xf0] }
 0x4f1   :  { %v6084_v39 = vor.u32 %v7110_v28, %v6081_v60  ;;  %v7142_v30 = vld [vmem:[#allocation5 + $0x20c] sm:$0xf] }
 0x4f3   :  { %4105 = vmatpush.bf16.msrb.mxu2 %v6084_v39 }
 0x4f4   :  { %v3768_v56 = vpop.f32.mrf.mxu2 }
 0x4f5   :  { %v3769_v24 = vadd.f32 %v3768_v56, %v3680_v29  ;;  %v3593_v54 = vpop.f32.mrf.mxu0  ;;  %v6209_v29 = vld [vmem:[#allocation5 + $0x218] sm:$0xf0]  ;;  %v6720_v56 = vor.u32 %v7272_v34, %v6719_v6 }
 0x4f6   :  { %v3594_v35 = vadd.f32 %v3593_v54, %v8405_v41 }
 0x4f7   :  { %v3857_v62 = vpop.f32.mrf.mxu3  ;;  %v3682_v61 = vpop.f32.mrf.mxu1  ;;  %3927 = vmatpush.bf16.msrb.mxu0 %v6720_v56  ;;  %v9714_v56 = vld [vmem:[#allocation127_spill] sm:$0xff] }
 0x4f8   :  { %v8605_v26 = vadd.f32 %v3857_v62, %v3769_v24  ;;  %v3683_v23 = vadd.f32 %v3682_v61, %v3594_v35  ;;  %3632 = vmatmul.bf16.gmra.mxu0 %v9709_v21  ;;  %v6212_v24 = vor.u32 %v7142_v30, %v6209_v29  ;;  %v9712_v29 = vld [vmem:[#allocation69_spill] sm:$0xff] }
 0x4f9   :  { %3810 = vmatmul.bf16.gmra.mxu2 %v9711_v50  ;;  %v7078_v50 = vld [vmem:[#allocation5 + $0xc] sm:$0xf] }
 0x4fa   :  { %3721 = vmatmul.bf16.gmra.mxu1 %v9710_v4  ;;  %4194 = vmatpush.bf16.msrb.mxu3 %v6212_v24  ;;  %v5956_v60 = vor.u32 %v7078_v50, %v5953_v27 }
 0x4fc   :  { %3899 = vmatmul.bf16.gmra.mxu3 %v9643_v37  ;;  %v3771_v41 = vpop.f32.mrf.mxu2  ;;  %4016 = vmatpush.bf16.msrb.mxu1 %v5956_v60 }
 0x4fd   :  { %v3772_v62 = vadd.f32 %v3771_v41, %v3683_v23  ;;  %v3595_v35 = vpop.f32.mrf.mxu0  ;;  %v9713_v41 = vld [vmem:[#allocation70_spill] sm:$0xff] }
 0x4fe   :  { %v3596_v61 = vadd.f32 %v3595_v35, %v8411_v7 }
 0x4ff   :  { %v3860_v54 = vpop.f32.mrf.mxu3  ;;  %v3684_v4 = vpop.f32.mrf.mxu1 }
 0x500   :  { %v8612_v37 = vadd.f32 %v3860_v54, %v3772_v62  ;;  %v3685_v28 = vadd.f32 %v3684_v4, %v3596_v61 }
 0x504   :  { %v3773_v48 = vpop.f32.mrf.mxu2 }
 0x505   :  { %v3774_v45 = vadd.f32 %v3773_v48, %v3685_v28  ;;  %v3598_v34 = vpop.f32.mrf.mxu0 }
 0x506   :  { %v3599_v23 = vadd.f32 %v3598_v34, %v8419_v63 }
 0x507   :  { %v3862_v6 = vpop.f32.mrf.mxu3  ;;  %v3687_v30 = vpop.f32.mrf.mxu1 }
 0x508   :  { %v8615_v39 = vadd.f32 %v3862_v6, %v3774_v45  ;;  %v3688_v7 = vadd.f32 %v3687_v30, %v3599_v23  ;;  %3637 = vmatmul.bf16.gmra.mxu0 %v9712_v29  ;;  %v9715_v30 = vld [vmem:[#allocation73_spill] sm:$0xff] }
 0x509   :  { %3815 = vmatmul.bf16.gmra.mxu2 %v9714_v56 }
 0x50a   :  { %3726 = vmatmul.bf16.gmra.mxu1 %v9713_v41 }
 0x50c   :  { %3904 = vmatmul.bf16.gmra.mxu3 %v9647_v3  ;;  %v3776_v27 = vpop.f32.mrf.mxu2  ;;  %v6577_v3 = vld [vmem:[#allocation5 + $0x4f8] sm:$0xf0] }
 0x50d   :  { %v3777_v4 = vadd.f32 %v3776_v27, %v3688_v7  ;;  %v3600_v48 = vpop.f32.mrf.mxu0  ;;  %v9716_v7 = vld [vmem:[#allocation74_spill] sm:$0xff]  ;;  %v9717_v27 = vld [vmem:[#allocation131_spill] sm:$0xff] }
 0x50e   :  { %v3601_v24 = vadd.f32 %v3600_v48, %v8425_v33  ;;  %v7266_v33 = vld [vmem:[#allocation5 + $0x5ec] sm:$0xf] }
 0x50f   :  { %v3865_v50 = vpop.f32.mrf.mxu3  ;;  %v3689_v62 = vpop.f32.mrf.mxu1 }
 0x510   :  { %v8622_v63 = vadd.f32 %v3865_v50, %v3777_v4  ;;  %v3690_v45 = vadd.f32 %v3689_v62, %v3601_v24  ;;  %v6705_v4 = vld [vmem:[#allocation5 + $0x5f8] sm:$0xf0]  ;;  %v7202_v50 = vld [vmem:[#allocation5 + $0x3ec] sm:$0xf] }
 0x511   :  { %v6708_v48 = vor.u32 %v7266_v33, %v6705_v4  ;;  %v6449_v24 = vld [vmem:[#allocation5 + $0x3f8] sm:$0xf0]  ;;  %v7298_v62 = vld [vmem:[#allocation5 + $0x6ec] sm:$0xf] }
 0x513   :  { %4454 = vmatpush.bf16.msra.mxu2 %v6708_v48 }
 0x514   :  { %v3778_v54 = vpop.f32.mrf.mxu2 }
 0x515   :  { %v3779_v35 = vadd.f32 %v3778_v54, %v3690_v45  ;;  %v3603_v28 = vpop.f32.mrf.mxu0  ;;  %v6833_v45 = vld [vmem:[#allocation5 + $0x6f8] sm:$0xf0]  ;;  %v6452_v54 = vor.u32 %v7202_v50, %v6449_v24 }
 0x516   :  { %v3604_v60 = vadd.f32 %v3603_v28, %v8433_v38 }
 0x517   :  { %v3867_v61 = vpop.f32.mrf.mxu3  ;;  %v3692_v6 = vpop.f32.mrf.mxu1  ;;  %4276 = vmatpush.bf16.msra.mxu0 %v6452_v54  ;;  %v9720_v54 = vld [vmem:[#allocation135_spill] sm:$0xff] }
 0x518   :  { %v8625_v34 = vadd.f32 %v3867_v61, %v3779_v35  ;;  %v3693_v23 = vadd.f32 %v3692_v6, %v3604_v60  ;;  %3642 = vmatmul.bf16.gmra.mxu0 %v9715_v30  ;;  %v6836_v35 = vor.u32 %v7298_v62, %v6833_v45  ;;  %v9718_v45 = vld [vmem:[#allocation77_spill] sm:$0xff] }
 0x519   :  { %3820 = vmatmul.bf16.gmra.mxu2 %v9717_v27  ;;  %v7234_v27 = vld [vmem:[#allocation5 + $0x4ec] sm:$0xf] }
 0x51a   :  { %3731 = vmatmul.bf16.gmra.mxu1 %v9716_v7  ;;  %4543 = vmatpush.bf16.msra.mxu3 %v6836_v35  ;;  %v6580_v4 = vor.u32 %v7234_v27, %v6577_v3 }
 0x51c   :  { %3909 = vmatmul.bf16.gmra.mxu3 %v9651_v43  ;;  %v3781_v38 = vpop.f32.mrf.mxu2  ;;  %4365 = vmatpush.bf16.msra.mxu1 %v6580_v4 }
 0x51d   :  { %v3782_v61 = vadd.f32 %v3781_v38, %v3693_v23  ;;  %v3605_v60 = vpop.f32.mrf.mxu0  ;;  %v9719_v38 = vld [vmem:[#allocation78_spill] sm:$0xff] }
 0x51e   :  { %v3606_v6 = vadd.f32 %v3605_v60, %v8439_v25 }
 0x51f   :  { %v3870_v28 = vpop.f32.mrf.mxu3  ;;  %v3694_v7 = vpop.f32.mrf.mxu1 }
 0x520   :  { %v8632_v43 = vadd.f32 %v3870_v28, %v3782_v61  ;;  %v3695_v33 = vadd.f32 %v3694_v7, %v3606_v6 }
 0x524   :  { %v3783_v56 = vpop.f32.mrf.mxu2 }
 0x525   :  { %v3784_v41 = vadd.f32 %v3783_v56, %v3695_v33  ;;  %v3608_v24 = vpop.f32.mrf.mxu0 }
 0x526   :  { %v3609_v23 = vadd.f32 %v3608_v24, %v8447_v42 }
 0x527   :  { %v3872_v50 = vpop.f32.mrf.mxu3  ;;  %v3697_v62 = vpop.f32.mrf.mxu1 }
 0x528   :  { %v8635_v48 = vadd.f32 %v3872_v50, %v3784_v41  ;;  %v3698_v25 = vadd.f32 %v3697_v62, %v3609_v23  ;;  %3647 = vmatmul.bf16.gmra.mxu0 %v9718_v45  ;;  %v9721_v62 = vld [vmem:[#allocation81_spill] sm:$0xff] }
 0x529   :  { %3825 = vmatmul.bf16.gmra.mxu2 %v9720_v54 }
 0x52a   :  { %3736 = vmatmul.bf16.gmra.mxu1 %v9719_v38 }
 0x52c   :  { %3914 = vmatmul.bf16.gmra.mxu3 %v9655_v17  ;;  %v3786_v3 = vpop.f32.mrf.mxu2  ;;  %v6561_v17 = vld [vmem:[#allocation5 + $0x4d8] sm:$0xf0] }
 0x52d   :  { %v3787_v7 = vadd.f32 %v3786_v3, %v3698_v25  ;;  %v3610_v56 = vpop.f32.mrf.mxu0  ;;  %v9722_v25 = vld [vmem:[#allocation15_spill] sm:$0xff]  ;;  %v9723_v3 = vld [vmem:[#allocation16_spill] sm:$0xff] }
 0x52e   :  { %v3611_v35 = vadd.f32 %v3610_v56, %v8453_v44  ;;  %v7262_v44 = vld [vmem:[#allocation5 + $0x5cc] sm:$0xf] }
 0x52f   :  { %v3875_v27 = vpop.f32.mrf.mxu3  ;;  %v3699_v61 = vpop.f32.mrf.mxu1 }
 0x530   :  { %v8642_v42 = vadd.f32 %v3875_v27, %v3787_v7  ;;  %v3700_v41 = vadd.f32 %v3699_v61, %v3611_v35  ;;  %v6689_v7 = vld [vmem:[#allocation5 + $0x5d8] sm:$0xf0]  ;;  %v7198_v27 = vld [vmem:[#allocation5 + $0x3cc] sm:$0xf] }
 0x531   :  { %v6692_v56 = vor.u32 %v7262_v44, %v6689_v7  ;;  %v6433_v35 = vld [vmem:[#allocation5 + $0x3d8] sm:$0xf0]  ;;  %v7294_v61 = vld [vmem:[#allocation5 + $0x6cc] sm:$0xf] }
 0x533   :  { %4455 = vmatpush.bf16.msra.mxu2 %v6692_v56 }
 0x534   :  { %v3788_v28 = vpop.f32.mrf.mxu2 }
 0x535   :  { %v3789_v60 = vadd.f32 %v3788_v28, %v3700_v41  ;;  %v3613_v33 = vpop.f32.mrf.mxu0  ;;  %v6817_v41 = vld [vmem:[#allocation5 + $0x6d8] sm:$0xf0]  ;;  %v6436_v28 = vor.u32 %v7198_v27, %v6433_v35 }
 0x536   :  { %v3614_v4 = vadd.f32 %v3613_v33, %v8461_v59 }
 0x537   :  { %v3877_v6 = vpop.f32.mrf.mxu3  ;;  %v3702_v50 = vpop.f32.mrf.mxu1  ;;  %4277 = vmatpush.bf16.msra.mxu0 %v6436_v28  ;;  %v9726_v28 = vld [vmem:[#allocation20_spill] sm:$0xff] }
 0x538   :  { %v8645_v24 = vadd.f32 %v3877_v6, %v3789_v60  ;;  %v3703_v23 = vadd.f32 %v3702_v50, %v3614_v4  ;;  %3928 = vmatmul.bf16.vlgmr.msrb.gmra.mxu0 %v9721_v62  ;;  %v6820_v60 = vor.u32 %v7294_v61, %v6817_v41  ;;  %v9724_v41 = vld [vmem:[#allocation84_spill] sm:$0xff] }
 0x539   :  { %4106 = vmatmul.bf16.vlgmr.msrb.gmra.mxu2 %v9723_v3  ;;  %v7230_v3 = vld [vmem:[#allocation5 + $0x4cc] sm:$0xf] }
 0x53a   :  { %4017 = vmatmul.bf16.vlgmr.msrb.gmra.mxu1 %v9722_v25  ;;  %4544 = vmatpush.bf16.msra.mxu3 %v6820_v60  ;;  %v6564_v7 = vor.u32 %v7230_v3, %v6561_v17 }
 0x53c   :  { %4195 = vmatmul.bf16.vlgmr.msrb.gmra.mxu3 %v9659_v58  ;;  %v3791_v59 = vpop.f32.mrf.mxu2  ;;  %4366 = vmatpush.bf16.msra.mxu1 %v6564_v7 }
 0x53d   :  { %v3792_v6 = vadd.f32 %v3791_v59, %v3703_v23  ;;  %v3615_v4 = vpop.f32.mrf.mxu0  ;;  %v9725_v59 = vld [vmem:[#allocation19_spill] sm:$0xff] }
 0x53e   :  { %v3616_v50 = vadd.f32 %v3615_v4, %v8467_v12 }
 0x53f   :  { %v3880_v33 = vpop.f32.mrf.mxu3  ;;  %v3704_v25 = vpop.f32.mrf.mxu1 }
 0x540   :  { %v8652_v58 = vadd.f32 %v3880_v33, %v3792_v6  ;;  %v3705_v44 = vadd.f32 %v3704_v25, %v3616_v50 }
 0x544   :  { %v3793_v54 = vpop.f32.mrf.mxu2 }
 0x545   :  { %v3794_v38 = vadd.f32 %v3793_v54, %v3705_v44  ;;  %v3618_v35 = vpop.f32.mrf.mxu0 }
 0x546   :  { %v3619_v23 = vadd.f32 %v3618_v35, %v8475_v57 }
 0x547   :  { %v3882_v27 = vpop.f32.mrf.mxu3  ;;  %v3707_v61 = vpop.f32.mrf.mxu1 }
 0x548   :  { %v8655_v56 = vadd.f32 %v3882_v27, %v3794_v38  ;;  %v3708_v12 = vadd.f32 %v3707_v61, %v3619_v23  ;;  %3933 = vmatmul.bf16.gmra.mxu0 %v9724_v41  ;;  %v9727_v23 = vld [vmem:[#allocation87_spill] sm:$0xff] }
 0x549   :  { %4111 = vmatmul.bf16.gmra.mxu2 %v9726_v28  ;;  %v9728_v61 = vld [vmem:[#allocation23_spill] sm:$0xff]  ;;  %v7194_v28 = vld [vmem:[#allocation5 + $0x3ac] sm:$0xf] }
 0x54a   :  { %4022 = vmatmul.bf16.gmra.mxu1 %v9725_v59  ;;  %v6673_v59 = vld [vmem:[#allocation5 + $0x5b8] sm:$0xf0] }
 0x54c   :  { %4200 = vmatmul.bf16.gmra.mxu3 %v9663_v31  ;;  %v3796_v17 = vpop.f32.mrf.mxu2 }
 0x54d   :  { %v3797_v60 = vadd.f32 %v3796_v17, %v3708_v12  ;;  %v3620_v54 = vpop.f32.mrf.mxu0  ;;  %v9729_v12 = vld [vmem:[#allocation24_spill] sm:$0xff] }
 0x54e   :  { %v3621_v33 = vadd.f32 %v3620_v54, %v8481_v40  ;;  %v7258_v40 = vld [vmem:[#allocation5 + $0x5ac] sm:$0xf]  ;;  %v6801_v54 = vld [vmem:[#allocation5 + $0x6b8] sm:$0xf0] }
 0x54f   :  { %v3885_v6 = vpop.f32.mrf.mxu3  ;;  %v3709_v4 = vpop.f32.mrf.mxu1  ;;  %v6676_v17 = vor.u32 %v7258_v40, %v6673_v59 }
 0x550   :  { %v8662_v57 = vadd.f32 %v3885_v6, %v3797_v60  ;;  %v3710_v38 = vadd.f32 %v3709_v4, %v3621_v33  ;;  %v6417_v60 = vld [vmem:[#allocation5 + $0x3b8] sm:$0xf0]  ;;  %v7290_v6 = vld [vmem:[#allocation5 + $0x6ac] sm:$0xf] }
 0x551   :  { %v6420_v33 = vor.u32 %v7194_v28, %v6417_v60  ;;  %v6804_v4 = vor.u32 %v7290_v6, %v6801_v54  ;;  %4456 = vmatpush.bf16.msra.mxu2 %v6676_v17  ;;  %v9730_v54 = vld [vmem:[#allocation90_spill] sm:$0xff] }
 0x553   :  { %4278 = vmatpush.bf16.msra.mxu0 %v6420_v33  ;;  %4545 = vmatpush.bf16.msra.mxu3 %v6804_v4  ;;  %v9732_v33 = vld [vmem:[#allocation28_spill] sm:$0xff] }
 0x554   :  { %v3798_v50 = vpop.f32.mrf.mxu2 }
 0x555   :  { %v3799_v25 = vadd.f32 %v3798_v50, %v3710_v38  ;;  %v3623_v44 = vpop.f32.mrf.mxu0 }
 0x556   :  { %v3624_v7 = vadd.f32 %v3623_v44, %v8489_v5 }
 0x557   :  { %v3887_v3 = vpop.f32.mrf.mxu3  ;;  %v3712_v27 = vpop.f32.mrf.mxu1 }
 0x558   :  { %v8665_v35 = vadd.f32 %v3887_v3, %v3799_v25  ;;  %v3713_v31 = vadd.f32 %v3712_v27, %v3624_v7  ;;  %3938 = vmatmul.bf16.gmra.mxu0 %v9727_v23  ;;  %v7226_v7 = vld [vmem:[#allocation5 + $0x4ac] sm:$0xf]  ;;  %v6545_v27 = vld [vmem:[#allocation5 + $0x4b8] sm:$0xf0] }
 0x559   :  { %4116 = vmatmul.bf16.gmra.mxu2 %v9729_v12  ;;  %v6548_v12 = vor.u32 %v7226_v7, %v6545_v27 }
 0x55a   :  { %4027 = vmatmul.bf16.gmra.mxu1 %v9728_v61 }
 0x55b   :  { %4367 = vmatpush.bf16.msra.mxu1 %v6548_v12 }
 0x55c   :  { %4205 = vmatmul.bf16.gmra.mxu3 %v9667_v13  ;;  %v3801_v5 = vpop.f32.mrf.mxu2 }
 0x55d   :  { %v3802_v38 = vadd.f32 %v3801_v5, %v3713_v31  ;;  %v3625_v25 = vpop.f32.mrf.mxu0  ;;  %v9731_v5 = vld [vmem:[#allocation27_spill] sm:$0xff] }
 0x55e   :  { %v3626_v3 = vadd.f32 %v3625_v25, %v8495_v14 }
 0x55f   :  { %v3890_v50 = vpop.f32.mrf.mxu3  ;;  %v3714_v44 = vpop.f32.mrf.mxu1 }
 0x560   :  { %v8672_v13 = vadd.f32 %v3890_v50, %v3802_v38  ;;  %v3715_v61 = vadd.f32 %v3714_v44, %v3626_v3 }
 0x564   :  { %v3803_v40 = vpop.f32.mrf.mxu2 }
 0x565   :  { %v3804_v59 = vadd.f32 %v3803_v40, %v3715_v61  ;;  %v3628_v60 = vpop.f32.mrf.mxu0 }
 0x566   :  { %v3629_v31 = vadd.f32 %v3628_v60, %v8503_v49 }
 0x567   :  { %v3892_v28 = vpop.f32.mrf.mxu3  ;;  %v3717_v6 = vpop.f32.mrf.mxu1 }
 0x568   :  { %v8675_v17 = vadd.f32 %v3892_v28, %v3804_v59  ;;  %v3718_v14 = vadd.f32 %v3717_v6, %v3629_v31  ;;  %3943 = vmatmul.bf16.gmra.mxu0 %v9730_v54  ;;  %v9733_v31 = vld [vmem:[#allocation94_spill] sm:$0xff]  ;;  %v9734_v6 = vld [vmem:[#allocation31_spill] sm:$0xff] }
 0x569   :  { %4121 = vmatmul.bf16.gmra.mxu2 %v9732_v33  ;;  %v7190_v33 = vld [vmem:[#allocation5 + $0x38c] sm:$0xf] }
 0x56a   :  { %4032 = vmatmul.bf16.gmra.mxu1 %v9731_v5  ;;  %v6657_v5 = vld [vmem:[#allocation5 + $0x598] sm:$0xf0] }
 0x56c   :  { %4210 = vmatmul.bf16.gmra.mxu3 %v9671_v9  ;;  %v3806_v4 = vpop.f32.mrf.mxu2 }
 0x56d   :  { %v3807_v38 = vadd.f32 %v3806_v4, %v3718_v14  ;;  %v3630_v25 = vpop.f32.mrf.mxu0  ;;  %v9735_v14 = vld [vmem:[#allocation32_spill] sm:$0xff] }
 0x56e   :  { %v3631_v3 = vadd.f32 %v3630_v25, %v8509_v15  ;;  %v7254_v15 = vld [vmem:[#allocation5 + $0x58c] sm:$0xf]  ;;  %v6785_v25 = vld [vmem:[#allocation5 + $0x698] sm:$0xf0] }
 0x56f   :  { %v3895_v50 = vpop.f32.mrf.mxu3  ;;  %v3719_v44 = vpop.f32.mrf.mxu1  ;;  %v6660_v4 = vor.u32 %v7254_v15, %v6657_v5 }
 0x570   :  { %v8682_v49 = vadd.f32 %v3895_v50, %v3807_v38  ;;  %v3720_v7 = vadd.f32 %v3719_v44, %v3631_v3  ;;  %v6401_v38 = vld [vmem:[#allocation5 + $0x398] sm:$0xf0]  ;;  %v7286_v50 = vld [vmem:[#allocation5 + $0x68c] sm:$0xf] }
 0x571   :  { %v6404_v3 = vor.u32 %v7190_v33, %v6401_v38  ;;  %v6788_v44 = vor.u32 %v7286_v50, %v6785_v25  ;;  %4457 = vmatpush.bf16.msra.mxu2 %v6660_v4  ;;  %v9736_v25 = vld [vmem:[#allocation98_spill] sm:$0xff] }
 0x573   :  { %4279 = vmatpush.bf16.msra.mxu0 %v6404_v3  ;;  %4546 = vmatpush.bf16.msra.mxu3 %v6788_v44  ;;  %v9738_v3 = vld [vmem:[#allocation36_spill] sm:$0xff] }
 0x574   :  { %v3808_v27 = vpop.f32.mrf.mxu2 }
 0x575   :  { %v3809_v61 = vadd.f32 %v3808_v27, %v3720_v7  ;;  %v3633_v40 = vpop.f32.mrf.mxu0 }
 0x576   :  { %v3634_v59 = vadd.f32 %v3633_v40, %v8517_v18 }
 0x577   :  { %v3897_v12 = vpop.f32.mrf.mxu3  ;;  %v3722_v28 = vpop.f32.mrf.mxu1 }
 0x578   :  { %v8685_v60 = vadd.f32 %v3897_v12, %v3809_v61  ;;  %v3723_v9 = vadd.f32 %v3722_v28, %v3634_v59  ;;  %3948 = vmatmul.bf16.gmra.mxu0 %v9733_v31  ;;  %v7222_v59 = vld [vmem:[#allocation5 + $0x48c] sm:$0xf]  ;;  %v6529_v28 = vld [vmem:[#allocation5 + $0x498] sm:$0xf0] }
 0x579   :  { %4126 = vmatmul.bf16.gmra.mxu2 %v9735_v14  ;;  %v6532_v14 = vor.u32 %v7222_v59, %v6529_v28 }
 0x57a   :  { %4037 = vmatmul.bf16.gmra.mxu1 %v9734_v6 }
 0x57b   :  { %4368 = vmatpush.bf16.msra.mxu1 %v6532_v14 }
 0x57c   :  { %4215 = vmatmul.bf16.gmra.mxu3 %v9675_v1  ;;  %v3811_v18 = vpop.f32.mrf.mxu2 }
 0x57d   :  { %v3812_v7 = vadd.f32 %v3811_v18, %v3723_v9  ;;  %v3635_v61 = vpop.f32.mrf.mxu0  ;;  %v9737_v18 = vld [vmem:[#allocation35_spill] sm:$0xff] }
 0x57e   :  { %v3636_v12 = vadd.f32 %v3635_v61, %v8523_v47 }
 0x57f   :  { %v3900_v27 = vpop.f32.mrf.mxu3  ;;  %v3724_v40 = vpop.f32.mrf.mxu1 }
 0x580   :  { %v8692_v1 = vadd.f32 %v3900_v27, %v3812_v7  ;;  %v3725_v6 = vadd.f32 %v3724_v40, %v3636_v12  ;;  %v9739_v12 = vld [vmem:[#allocation103_spill] sm:$0xff] }
 0x584   :  { %v3813_v15 = vpop.f32.mrf.mxu2 }
 0x585   :  { %v3814_v5 = vadd.f32 %v3813_v15, %v3725_v6  ;;  %v3638_v38 = vpop.f32.mrf.mxu0 }
 0x586   :  { %v3639_v9 = vadd.f32 %v3638_v38, %v8531_v51 }
 0x587   :  { %v3902_v33 = vpop.f32.mrf.mxu3  ;;  %v3727_v50 = vpop.f32.mrf.mxu1 }
 0x588   :  { %v8695_v4 = vadd.f32 %v3902_v33, %v3814_v5  ;;  %v3728_v47 = vadd.f32 %v3727_v50, %v3639_v9  ;;  %3953 = vmatmul.bf16.gmra.mxu0 %v9736_v25  ;;  %v9741_v50 = vld [vmem:[#allocation102_spill] sm:$0xff] }
 0x589   :  { %4131 = vmatmul.bf16.gmra.mxu2 %v9738_v3  ;;  %v9744_v3 = vld [vmem:[#allocation41_spill] sm:$0xff] }
 0x58a   :  { %4042 = vmatmul.bf16.gmra.mxu1 %v9737_v18  ;;  %v9743_v18 = vld [vmem:[#allocation40_spill] sm:$0xff] }
 0x58c   :  { %4220 = vmatmul.bf16.gmra.mxu3 %v9679_v53  ;;  %v3816_v44 = vpop.f32.mrf.mxu2 }
 0x58d   :  { %v3817_v7 = vadd.f32 %v3816_v44, %v3728_v47  ;;  %v3640_v61 = vpop.f32.mrf.mxu0  ;;  %v9742_v47 = vld [vmem:[#allocation39_spill] sm:$0xff]  ;;  %v7250_v44 = vld [vmem:[#allocation5 + $0x56c] sm:$0xf] }
 0x58e   :  { %v3641_v40 = vadd.f32 %v3640_v61, %v9739_v12  ;;  %v6385_v12 = vld [vmem:[#allocation5 + $0x378] sm:$0xf0] }
 0x58f   :  { %v3905_v27 = vpop.f32.mrf.mxu3  ;;  %v3729_v59 = vpop.f32.mrf.mxu1 }
 0x590   :  { %v8702_v51 = vadd.f32 %v3905_v27, %v3817_v7  ;;  %v3730_v28 = vadd.f32 %v3729_v59, %v3641_v40  ;;  %v6641_v7 = vld [vmem:[#allocation5 + $0x578] sm:$0xf0]  ;;  %v7186_v27 = vld [vmem:[#allocation5 + $0x36c] sm:$0xf] }
 0x591   :  { %v6644_v61 = vor.u32 %v7250_v44, %v6641_v7  ;;  %v7282_v40 = vld [vmem:[#allocation5 + $0x66c] sm:$0xf]  ;;  %v6769_v59 = vld [vmem:[#allocation5 + $0x678] sm:$0xf0] }
 0x593   :  { %4458 = vmatpush.bf16.msra.mxu2 %v6644_v61 }
 0x594   :  { %v3818_v6 = vpop.f32.mrf.mxu2 }
 0x595   :  { %v3819_v14 = vadd.f32 %v3818_v6, %v3730_v28  ;;  %v3643_v5 = vpop.f32.mrf.mxu0  ;;  %v6388_v28 = vor.u32 %v7186_v27, %v6385_v12  ;;  %v6772_v6 = vor.u32 %v7282_v40, %v6769_v59  ;;  %v9745_v59 = vld [vmem:[#allocation106_spill] sm:$0xff] }
 0x596   :  { %v3644_v33 = vadd.f32 %v3643_v5, %v8545_v20 }
 0x597   :  { %v3907_v15 = vpop.f32.mrf.mxu3  ;;  %v3732_v38 = vpop.f32.mrf.mxu1  ;;  %4280 = vmatpush.bf16.msra.mxu0 %v6388_v28  ;;  %4547 = vmatpush.bf16.msra.mxu3 %v6772_v6  ;;  %v9747_v28 = vld [vmem:[#allocation44_spill] sm:$0xff] }
 0x598   :  { %v8705_v9 = vadd.f32 %v3907_v15, %v3819_v14  ;;  %v3733_v53 = vadd.f32 %v3732_v38, %v3644_v33  ;;  %3958 = vmatmul.bf16.gmra.mxu0 %v9741_v50 }
 0x599   :  { %4136 = vmatmul.bf16.gmra.mxu2 %v9743_v18  ;;  %v7218_v18 = vld [vmem:[#allocation5 + $0x46c] sm:$0xf] }
 0x59a   :  { %9740 = vst [vmem:[#allocation53_spill] sm:$0xff] %v8705_v9  ;;  %4047 = vmatmul.bf16.gmra.mxu1 %v9742_v47 }
 0x59c   :  { %4225 = vmatmul.bf16.gmra.mxu3 %v9744_v3  ;;  %v3821_v20 = vpop.f32.mrf.mxu2  ;;  %v6513_v3 = vld [vmem:[#allocation5 + $0x478] sm:$0xf0] }
 0x59d   :  { %v3822_v14 = vadd.f32 %v3821_v20, %v3733_v53  ;;  %v3645_v5 = vpop.f32.mrf.mxu0  ;;  %v6516_v7 = vor.u32 %v7218_v18, %v6513_v3  ;;  %v9746_v20 = vld [vmem:[#allocation43_spill] sm:$0xff] }
 0x59e   :  { %v3646_v33 = vadd.f32 %v3645_v5, %v8551_v19  ;;  %v9748_v5 = vld [vmem:[#allocation144_spill] sm:$0xff] }
 0x59f   :  { %v3910_v15 = vpop.f32.mrf.mxu3  ;;  %v3734_v38 = vpop.f32.mrf.mxu1  ;;  %4369 = vmatpush.bf16.msra.mxu1 %v6516_v7 }
 0x5a0   :  { %v8712_v47 = vadd.f32 %v3910_v15, %v3822_v14  ;;  %v3735_v44 = vadd.f32 %v3734_v38, %v3646_v33 }
 0x5a4   :  { %v3823_v50 = vpop.f32.mrf.mxu2 }
 0x5a5   :  { %v3824_v9 = vadd.f32 %v3823_v50, %v3735_v44  ;;  %v3648_v12 = vpop.f32.mrf.mxu0 }
 0x5a6   :  { %v3649_v53 = vadd.f32 %v3648_v12, %v8559_v0 }
 0x5a7   :  { %v3912_v27 = vpop.f32.mrf.mxu3  ;;  %v3737_v40 = vpop.f32.mrf.mxu1 }
 0x5a8   :  { %v8715_v61 = vadd.f32 %v3912_v27, %v3824_v9  ;;  %v3738_v19 = vadd.f32 %v3737_v40, %v3649_v53  ;;  %3963 = vmatmul.bf16.gmra.mxu0 %v9745_v59  ;;  %v7348_v27 = vld [vmem:[#allocation7] sm:$0xf] }
 0x5a9   :  { %4141 = vmatmul.bf16.gmra.mxu2 %v9747_v28  ;;  %v8724_v12 = vperm.slane %v7348_v27, 3  ;;  %v9752_v28 = vld [vmem:[#allocation47_spill] sm:$0xff] }
 0x5aa   :  { %4052 = vmatmul.bf16.gmra.mxu1 %v9746_v20 }
 0x5ac   :  { %4230 = vmatmul.bf16.gmra.mxu3 %v9690_v2  ;;  %v3826_v6 = vpop.f32.mrf.mxu2 }
 0x5ad   :  { %v3827_v14 = vadd.f32 %v3826_v6, %v3738_v19  ;;  %v3650_v50 = vpop.f32.mrf.mxu0  ;;  %v9751_v19 = vld [vmem:[#allocation109_spill] sm:$0xff]  ;;  %v9753_v6 = vld [vmem:[#allocation48_spill] sm:$0xff] }
 0x5ae   :  { %v3651_v33 = vadd.f32 %v3650_v50, %v9748_v5  ;;  %v6625_v50 = vld [vmem:[#allocation5 + $0x558] sm:$0xf0]  ;;  %v7182_v5 = vld [vmem:[#allocation5 + $0x34c] sm:$0xf] }
 0x5af   :  { %v3915_v15 = vpop.f32.mrf.mxu3  ;;  %v3739_v38 = vpop.f32.mrf.mxu1 }
 0x5b0   :  { %v8722_v0 = vadd.f32 %v3915_v15, %v3827_v14  ;;  %v3740_v9 = vadd.f32 %v3739_v38, %v3651_v33  ;;  %v9754_v14 = vld [vmem:[#allocation49_spill] sm:$0xff]  ;;  %v7246_v15 = vld [vmem:[#allocation5 + $0x54c] sm:$0xf]  ;;  %v6369_v38 = vld [vmem:[#allocation5 + $0x358] sm:$0xf0] }
 0x5b1   :  { %v6628_v33 = vor.u32 %v7246_v15, %v6625_v50 }
 0x5b2   :  { %9749 = vst [vmem:[#allocation57_spill] sm:$0xff] %v8722_v0 }
 0x5b3   :  { %4459 = vmatpush.bf16.msra.mxu2 %v6628_v33 }
 0x5b4   :  { %v3828_v18 = vpop.f32.mrf.mxu2 }
 0x5b5   :  { %v3829_v3 = vadd.f32 %v3828_v18, %v3740_v9  ;;  %v3929_v7 = vpop.f32.mrf.mxu0  ;;  %v7278_v9 = vld [vmem:[#allocation5 + $0x64c] sm:$0xf] }
 0x5b6   :  { %v3930_v53 = vadd.f32 %v3929_v7, %v8572_v52  ;;  %v6753_v52 = vld [vmem:[#allocation5 + $0x658] sm:$0xf0] }
 0x5b7   :  { %v3917_v44 = vpop.f32.mrf.mxu3  ;;  %v4018_v2 = vpop.f32.mrf.mxu1 }
 0x5b8   :  { %v8727_v40 = vadd.f32 %v3917_v44, %v3829_v3  ;;  %3968 = vmatmul.bf16.gmra.mxu0 %v9751_v19  ;;  %v4019_v20 = vadd.f32 %v4018_v2, %v8724_v12  ;;  %v6372_v3 = vor.u32 %v7182_v5, %v6369_v38  ;;  %v6756_v44 = vor.u32 %v7278_v9, %v6753_v52 }
 0x5b9   :  { %4146 = vmatmul.bf16.gmra.mxu2 %v9753_v6  ;;  %v4634_v15 = vmax.f32 %v3930_v53, 0.0 }
 0x5ba   :  { %9750 = vst [vmem:[#allocation61_spill] sm:$0xff] %v8727_v40  ;;  %4057 = vmatmul.bf16.gmra.mxu1 %v9752_v28  ;;  %4281 = vmatpush.bf16.msra.mxu0 %v6372_v3  ;;  %v6497_v40 = vld [vmem:[#allocation5 + $0x458] sm:$0xf0]  ;;  %v9757_v3 = vld [vmem:[#allocation51_spill] sm:$0xff] }
 0x5bb   :  { %4548 = vmatpush.bf16.msra.mxu3 %v6756_v44 }
 0x5bc   :  { %4235 = vmatmul.bf16.gmra.mxu3 %v9754_v14  ;;  %v4107_v18 = vpop.f32.mrf.mxu2  ;;  %v7214_v14 = vld [vmem:[#allocation5 + $0x44c] sm:$0xf] }
 0x5bd   :  { %v4108_v7 = vadd.f32 %v4107_v18, %v4019_v20  ;;  %v3931_v19 = vpop.f32.mrf.mxu0  ;;  %v6500_v59 = vor.u32 %v7214_v14, %v6497_v40  ;;  %v9756_v18 = vld [vmem:[#allocation113_spill] sm:$0xff]  ;;  %v9758_v40 = vld [vmem:[#allocation52_spill] sm:$0xff] }
 0x5be   :  { %v3932_v2 = vadd.f32 %v3931_v19, %v8575_v32 }
 0x5bf   :  { %v4196_v27 = vpop.f32.mrf.mxu3  ;;  %v4020_v28 = vpop.f32.mrf.mxu1  ;;  %4370 = vmatpush.bf16.msra.mxu1 %v6500_v59 }
 0x5c0   :  { %v8735_v6 = vadd.f32 %v4196_v27, %v4108_v7  ;;  %v4638_v50 = vmax.f32 %v3932_v2, 0.0  ;;  %v4021_v20 = vadd.f32 %v4020_v28, %v8724_v12 }
 0x5c2   :  { %v8737_v0 = vpack.c.bf16 %v4638_v50, %v4634_v15 }
 0x5c4   :  { %9755 = vst [vmem:[#allocation65_spill] sm:$0xff] %v8737_v0  ;;  %v4109_v5 = vpop.f32.mrf.mxu2 }
 0x5c5   :  { %v4110_v38 = vadd.f32 %v4109_v5, %v4021_v20  ;;  %v3934_v9 = vpop.f32.mrf.mxu0 }
 0x5c6   :  { %v3935_v32 = vadd.f32 %v3934_v9, %v8582_v8 }
 0x5c7   :  { %v4198_v33 = vpop.f32.mrf.mxu3  ;;  %v4023_v19 = vpop.f32.mrf.mxu1 }
 0x5c8   :  { %v8741_v52 = vadd.f32 %v4198_v33, %v4110_v38  ;;  %3973 = vmatmul.bf16.gmra.mxu0 %v9756_v18  ;;  %v4024_v53 = vadd.f32 %v4023_v19, %v8724_v12  ;;  %v4642_v14 = vmax.f32 %v3935_v32, 0.0  ;;  %v9762_v32 = vld [vmem:[#allocation56_spill] sm:$0xff] }
 0x5c9   :  { %4151 = vmatmul.bf16.gmra.mxu2 %v9758_v40  ;;  %v9761_v40 = vld [vmem:[#allocation55_spill] sm:$0xff] }
 0x5ca   :  { %4062 = vmatmul.bf16.gmra.mxu1 %v9757_v3  ;;  %v9760_v3 = vld [vmem:[#allocation117_spill] sm:$0xff] }
 0x5cc   :  { %4240 = vmatmul.bf16.gmra.mxu3 %v9700_v36  ;;  %v4112_v59 = vpop.f32.mrf.mxu2 }
 0x5cd   :  { %v4113_v44 = vadd.f32 %v4112_v59, %v4024_v53  ;;  %v3936_v27 = vpop.f32.mrf.mxu0  ;;  %v7242_v59 = vld [vmem:[#allocation5 + $0x52c] sm:$0xf] }
 0x5ce   :  { %v3937_v2 = vadd.f32 %v3936_v27, %v8585_v16 }
 0x5cf   :  { %v4201_v7 = vpop.f32.mrf.mxu3  ;;  %v4025_v8 = vpop.f32.mrf.mxu1 }
 0x5d0   :  { %v8749_v28 = vadd.f32 %v4201_v7, %v4113_v44  ;;  %v4646_v15 = vmax.f32 %v3937_v2, 0.0  ;;  %v4026_v20 = vadd.f32 %v4025_v8, %v8724_v12  ;;  %v6609_v44 = vld [vmem:[#allocation5 + $0x538] sm:$0xf0]  ;;  %v7178_v7 = vld [vmem:[#allocation5 + $0x32c] sm:$0xf] }
 0x5d1   :  { %v6612_v27 = vor.u32 %v7242_v59, %v6609_v44  ;;  %v6353_v2 = vld [vmem:[#allocation5 + $0x338] sm:$0xf0]  ;;  %v7274_v8 = vld [vmem:[#allocation5 + $0x62c] sm:$0xf] }
 0x5d2   :  { %v8751_v50 = vpack.c.bf16 %v4646_v15, %v4642_v14  ;;  %v6356_v15 = vor.u32 %v7178_v7, %v6353_v2 }
 0x5d3   :  { %4460 = vmatpush.bf16.msra.mxu2 %v6612_v27 }
 0x5d4   :  { %9759 = vst [vmem:[#allocation69_spill] sm:$0xff] %v8751_v50  ;;  %v4114_v5 = vpop.f32.mrf.mxu2  ;;  %4282 = vmatpush.bf16.msra.mxu0 %v6356_v15  ;;  %v9764_v15 = vld [vmem:[#allocation121_spill] sm:$0xff] }
 0x5d5   :  { %v4115_v38 = vadd.f32 %v4114_v5, %v4026_v20  ;;  %v3939_v9 = vpop.f32.mrf.mxu0 }
 0x5d6   :  { %v3940_v36 = vadd.f32 %v3939_v9, %v8592_v11  ;;  %v6737_v11 = vld [vmem:[#allocation5 + $0x638] sm:$0xf0] }
 0x5d7   :  { %v4203_v33 = vpop.f32.mrf.mxu3  ;;  %v4028_v19 = vpop.f32.mrf.mxu1  ;;  %v6740_v20 = vor.u32 %v7274_v8, %v6737_v11 }
 0x5d8   :  { %v8755_v53 = vadd.f32 %v4203_v33, %v4115_v38  ;;  %3978 = vmatmul.bf16.gmra.mxu0 %v9760_v3  ;;  %v4029_v16 = vadd.f32 %v4028_v19, %v8724_v12  ;;  %v4650_v59 = vmax.f32 %v3940_v36, 0.0 }
 0x5d9   :  { %4156 = vmatmul.bf16.gmra.mxu2 %v9762_v32  ;;  %4549 = vmatpush.bf16.msra.mxu3 %v6740_v20  ;;  %v6481_v32 = vld [vmem:[#allocation5 + $0x438] sm:$0xf0]  ;;  %v9765_v20 = vld [vmem:[#allocation59_spill] sm:$0xff] }
 0x5da   :  { %4067 = vmatmul.bf16.gmra.mxu1 %v9761_v40  ;;  %v7210_v40 = vld [vmem:[#allocation5 + $0x42c] sm:$0xf] }
 0x5db   :  { %v6484_v50 = vor.u32 %v7210_v40, %v6481_v32 }
 0x5dc   :  { %4245 = vmatmul.bf16.gmra.mxu3 %v9703_v10  ;;  %v4117_v14 = vpop.f32.mrf.mxu2 }
 0x5dd   :  { %v4118_v5 = vadd.f32 %v4117_v14, %v4029_v16  ;;  %v3941_v33 = vpop.f32.mrf.mxu0  ;;  %4371 = vmatpush.bf16.msra.mxu1 %v6484_v50  ;;  %v9766_v50 = vld [vmem:[#allocation60_spill] sm:$0xff] }
 0x5de   :  { %v3942_v9 = vadd.f32 %v3941_v33, %v8595_v46 }
 0x5df   :  { %v4206_v38 = vpop.f32.mrf.mxu3  ;;  %v4030_v19 = vpop.f32.mrf.mxu1 }
 0x5e0   :  { %v8763_v10 = vadd.f32 %v4206_v38, %v4118_v5  ;;  %v4654_v44 = vmax.f32 %v3942_v9, 0.0  ;;  %v4031_v16 = vadd.f32 %v4030_v19, %v8724_v12 }
 0x5e2   :  { %v8765_v0 = vpack.c.bf16 %v4654_v44, %v4650_v59 }
 0x5e4   :  { %9763 = vst [vmem:[#allocation73_spill] sm:$0xff] %v8765_v0  ;;  %v4119_v7 = vpop.f32.mrf.mxu2 }
 0x5e5   :  { %v4120_v2 = vadd.f32 %v4119_v7, %v4031_v16  ;;  %v3944_v8 = vpop.f32.mrf.mxu0 }
 0x5e6   :  { %v3945_v46 = vadd.f32 %v3944_v8, %v8602_v22 }
 0x5e7   :  { %v4208_v27 = vpop.f32.mrf.mxu3  ;;  %v4033_v11 = vpop.f32.mrf.mxu1 }
 0x5e8   :  { %v8769_v14 = vadd.f32 %v4208_v27, %v4120_v2  ;;  %3983 = vmatmul.bf16.gmra.mxu0 %v9764_v15  ;;  %v4034_v36 = vadd.f32 %v4033_v11, %v8724_v12  ;;  %v4658_v32 = vmax.f32 %v3945_v46, 0.0  ;;  %v9770_v46 = vld [vmem:[#allocation64_spill] sm:$0xff] }
 0x5e9   :  { %4161 = vmatmul.bf16.gmra.mxu2 %v9766_v50  ;;  %v9769_v50 = vld [vmem:[#allocation63_spill] sm:$0xff] }
 0x5ea   :  { %4072 = vmatmul.bf16.gmra.mxu1 %v9765_v20  ;;  %v9768_v20 = vld [vmem:[#allocation125_spill] sm:$0xff] }
 0x5ec   :  { %4250 = vmatmul.bf16.gmra.mxu3 %v9706_v55  ;;  %v4122_v5 = vpop.f32.mrf.mxu2 }
 0x5ed   :  { %v4123_v38 = vadd.f32 %v4122_v5, %v4034_v36  ;;  %v3946_v9 = vpop.f32.mrf.mxu0  ;;  %v7238_v5 = vld [vmem:[#allocation5 + $0x50c] sm:$0xf] }
 0x5ee   :  { %v3947_v19 = vadd.f32 %v3946_v9, %v8605_v26 }
 0x5ef   :  { %v4211_v33 = vpop.f32.mrf.mxu3  ;;  %v4035_v22 = vpop.f32.mrf.mxu1 }
 0x5f0   :  { %v8777_v40 = vadd.f32 %v4211_v33, %v4123_v38  ;;  %v4662_v59 = vmax.f32 %v3947_v19, 0.0  ;;  %v4036_v16 = vadd.f32 %v4035_v22, %v8724_v12  ;;  %v6593_v38 = vld [vmem:[#allocation5 + $0x518] sm:$0xf0]  ;;  %v7174_v33 = vld [vmem:[#allocation5 + $0x30c] sm:$0xf] }
 0x5f1   :  { %v6596_v9 = vor.u32 %v7238_v5, %v6593_v38  ;;  %v6337_v19 = vld [vmem:[#allocation5 + $0x318] sm:$0xf0]  ;;  %v7270_v22 = vld [vmem:[#allocation5 + $0x60c] sm:$0xf] }
 0x5f2   :  { %v8779_v44 = vpack.c.bf16 %v4662_v59, %v4658_v32  ;;  %v6340_v59 = vor.u32 %v7174_v33, %v6337_v19 }
 0x5f3   :  { %4461 = vmatpush.bf16.msra.mxu2 %v6596_v9 }
 0x5f4   :  { %9767 = vst [vmem:[#allocation77_spill] sm:$0xff] %v8779_v44  ;;  %v4124_v7 = vpop.f32.mrf.mxu2  ;;  %4283 = vmatpush.bf16.msra.mxu0 %v6340_v59  ;;  %v9771_v59 = vld [vmem:[#allocation129_spill] sm:$0xff] }
 0x5f5   :  { %v4125_v2 = vadd.f32 %v4124_v7, %v4036_v16  ;;  %v3949_v8 = vpop.f32.mrf.mxu0 }
 0x5f6   :  { %v3950_v55 = vadd.f32 %v3949_v8, %v8612_v37  ;;  %v6721_v37 = vld [vmem:[#allocation5 + $0x618] sm:$0xf0] }
 0x5f7   :  { %v4213_v27 = vpop.f32.mrf.mxu3  ;;  %v4038_v11 = vpop.f32.mrf.mxu1  ;;  %v6724_v16 = vor.u32 %v7270_v22, %v6721_v37 }
 0x5f8   :  { %v8783_v36 = vadd.f32 %v4213_v27, %v4125_v2  ;;  %3988 = vmatmul.bf16.gmra.mxu0 %v9768_v20  ;;  %v4039_v26 = vadd.f32 %v4038_v11, %v8724_v12  ;;  %v4666_v5 = vmax.f32 %v3950_v55, 0.0 }
 0x5f9   :  { %4166 = vmatmul.bf16.gmra.mxu2 %v9770_v46  ;;  %4550 = vmatpush.bf16.msra.mxu3 %v6724_v16  ;;  %v6465_v46 = vld [vmem:[#allocation5 + $0x418] sm:$0xf0]  ;;  %v9772_v16 = vld [vmem:[#allocation67_spill] sm:$0xff] }
 0x5fa   :  { %4077 = vmatmul.bf16.gmra.mxu1 %v9769_v50  ;;  %v7206_v50 = vld [vmem:[#allocation5 + $0x40c] sm:$0xf] }
 0x5fb   :  { %v6468_v44 = vor.u32 %v7206_v50, %v6465_v46 }
 0x5fc   :  { %4255 = vmatmul.bf16.gmra.mxu3 %v9709_v21  ;;  %v4127_v32 = vpop.f32.mrf.mxu2 }
 0x5fd   :  { %v4128_v7 = vadd.f32 %v4127_v32, %v4039_v26  ;;  %v3951_v27 = vpop.f32.mrf.mxu0  ;;  %4372 = vmatpush.bf16.msra.mxu1 %v6468_v44  ;;  %v9773_v44 = vld [vmem:[#allocation68_spill] sm:$0xff] }
 0x5fe   :  { %v3952_v8 = vadd.f32 %v3951_v27, %v8615_v39 }
 0x5ff   :  { %v4216_v2 = vpop.f32.mrf.mxu3  ;;  %v4040_v11 = vpop.f32.mrf.mxu1 }
 0x600   :  { %v8791_v21 = vadd.f32 %v4216_v2, %v4128_v7  ;;  %v4670_v38 = vmax.f32 %v3952_v8, 0.0  ;;  %v4041_v26 = vadd.f32 %v4040_v11, %v8724_v12 }
 0x602   :  { %v8793_v0 = vpack.c.bf16 %v4670_v38, %v4666_v5 }
 0x604   :  { %v4129_v33 = vpop.f32.mrf.mxu2 }
 0x605   :  { %v4130_v19 = vadd.f32 %v4129_v33, %v4041_v26  ;;  %v3954_v22 = vpop.f32.mrf.mxu0 }
 0x606   :  { %v3955_v39 = vadd.f32 %v3954_v22, %v8622_v63 }
 0x607   :  { %v4218_v9 = vpop.f32.mrf.mxu3  ;;  %v4043_v37 = vpop.f32.mrf.mxu1 }
 0x608   :  { %v8797_v32 = vadd.f32 %v4218_v9, %v4130_v19  ;;  %3993 = vmatmul.bf16.gmra.mxu0 %v9771_v59  ;;  %v4044_v55 = vadd.f32 %v4043_v37, %v8724_v12  ;;  %v4674_v46 = vmax.f32 %v3955_v39, 0.0  ;;  %v9776_v39 = vld [vmem:[#allocation72_spill] sm:$0xff] }
 0x609   :  { %4171 = vmatmul.bf16.gmra.mxu2 %v9773_v44  ;;  %v9775_v44 = vld [vmem:[#allocation71_spill] sm:$0xff] }
 0x60a   :  { %4082 = vmatmul.bf16.gmra.mxu1 %v9772_v16  ;;  %v9774_v16 = vld [vmem:[#allocation133_spill] sm:$0xff] }
 0x60c   :  { %4260 = vmatmul.bf16.gmra.mxu3 %v9712_v29  ;;  %v4132_v7 = vpop.f32.mrf.mxu2 }
 0x60d   :  { %v4133_v2 = vadd.f32 %v4132_v7, %v4044_v55  ;;  %v3956_v8 = vpop.f32.mrf.mxu0  ;;  %v7324_v7 = vld [vmem:[#allocation8 + $0xb8] sm:$0xff] }
 0x60e   :  { %v3957_v11 = vadd.f32 %v3956_v8, %v8625_v34  ;;  %5262 = vmatpush.bf16.msrb.mxu2 %v7324_v7 }
 0x60f   :  { %v4221_v27 = vpop.f32.mrf.mxu3  ;;  %v4045_v63 = vpop.f32.mrf.mxu1 }
 0x610   :  { %v8805_v50 = vadd.f32 %v4221_v27, %v4133_v2  ;;  %v4678_v5 = vmax.f32 %v3957_v11, 0.0  ;;  %v4046_v26 = vadd.f32 %v4045_v63, %v8724_v12  ;;  %v7308_v2 = vld [vmem:[#allocation8 + $0x38] sm:$0xff] }
 0x611   :  { %v7332_v27 = vld [vmem:[#allocation8 + $0xf8] sm:$0xff]  ;;  %5084 = vmatpush.bf16.msrb.mxu0 %v7308_v2 }
 0x612   :  { %v8807_v38 = vpack.c.bf16 %v4678_v5, %v4674_v46  ;;  %5351 = vmatpush.bf16.msrb.mxu3 %v7332_v27 }
 0x614   :  { %v4134_v33 = vpop.f32.mrf.mxu2 }
 0x615   :  { %v4135_v19 = vadd.f32 %v4134_v33, %v4046_v26  ;;  %v3959_v22 = vpop.f32.mrf.mxu0  ;;  %v7316_v33 = vld [vmem:[#allocation8 + $0x78] sm:$0xff] }
 0x616   :  { %v3960_v29 = vadd.f32 %v3959_v22, %v8632_v43  ;;  %5173 = vmatpush.bf16.msrb.mxu1 %v7316_v33 }
 0x617   :  { %v4223_v9 = vpop.f32.mrf.mxu3  ;;  %v4048_v37 = vpop.f32.mrf.mxu1 }
 0x618   :  { %v8811_v55 = vadd.f32 %v4223_v9, %v4135_v19  ;;  %3998 = vmatmul.bf16.gmra.mxu0 %v9774_v16  ;;  %v4049_v34 = vadd.f32 %v4048_v37, %v8724_v12  ;;  %v4682_v19 = vmax.f32 %v3960_v29, 0.0  ;;  %v9778_v29 = vld [vmem:[#allocation75_spill] sm:$0xff] }
 0x619   :  { %4176 = vmatmul.bf16.gmra.mxu2 %v9776_v39 }
 0x61a   :  { %4087 = vmatmul.bf16.gmra.mxu1 %v9775_v44 }
 0x61c   :  { %4265 = vmatmul.bf16.gmra.mxu3 %v9715_v30  ;;  %v4137_v8 = vpop.f32.mrf.mxu2 }
 0x61d   :  { %v4138_v43 = vadd.f32 %v4137_v8, %v4049_v34  ;;  %v3961_v63 = vpop.f32.mrf.mxu0 }
 0x61e   :  { %v3962_v46 = vadd.f32 %v3961_v63, %v8635_v48  ;;  %v9777_v48 = vld [vmem:[#allocation137_spill] sm:$0xff] }
 0x61f   :  { %v4226_v11 = vpop.f32.mrf.mxu3  ;;  %v4050_v5 = vpop.f32.mrf.mxu1 }
 0x620   :  { %v8819_v26 = vadd.f32 %v4226_v11, %v4138_v43  ;;  %v4686_v9 = vmax.f32 %v3962_v46, 0.0  ;;  %v4051_v22 = vadd.f32 %v4050_v5, %v8724_v12  ;;  %v9779_v43 = vld [vmem:[#allocation76_spill] sm:$0xff] }
 0x622   :  { %v8821_v30 = vpack.c.bf16 %v4686_v9, %v4682_v19 }
 0x624   :  { %v4139_v37 = vpop.f32.mrf.mxu2 }
 0x625   :  { %v4140_v44 = vadd.f32 %v4139_v37, %v4051_v22  ;;  %v3964_v34 = vpop.f32.mrf.mxu0 }
 0x626   :  { %v3965_v7 = vadd.f32 %v3964_v34, %v8642_v42 }
 0x627   :  { %v4228_v39 = vpop.f32.mrf.mxu3  ;;  %v4053_v2 = vpop.f32.mrf.mxu1 }
 0x628   :  { %v8825_v27 = vadd.f32 %v4228_v39, %v4140_v44  ;;  %4003 = vmatmul.bf16.gmra.mxu0 %v9777_v48  ;;  %v4054_v8 = vadd.f32 %v4053_v2, %v8724_v12  ;;  %v4690_v9 = vmax.f32 %v3965_v7, 0.0  ;;  %v9782_v7 = vld [vmem:[#allocation80_spill] sm:$0xff] }
 0x629   :  { %4181 = vmatmul.bf16.gmra.mxu2 %v9779_v43 }
 0x62a   :  { %4092 = vmatmul.bf16.gmra.mxu1 %v9778_v29 }
 0x62c   :  { %4270 = vmatmul.bf16.gmra.mxu3 %v9718_v45  ;;  %v4142_v11 = vpop.f32.mrf.mxu2 }
 0x62d   :  { %v4143_v63 = vadd.f32 %v4142_v11, %v4054_v8  ;;  %v3966_v5 = vpop.f32.mrf.mxu0  ;;  %v9780_v11 = vld [vmem:[#allocation18_spill] sm:$0xff] }
 0x62e   :  { %v3967_v33 = vadd.f32 %v3966_v5, %v8645_v24  ;;  %v7307_v5 = vld [vmem:[#allocation8 + $0x30] sm:$0xff] }
 0x62f   :  { %v4231_v46 = vpop.f32.mrf.mxu3  ;;  %v4055_v42 = vpop.f32.mrf.mxu1  ;;  %5085 = vmatpush.bf16.msrb.mxu0 %v7307_v5 }
 0x630   :  { %v8833_v19 = vadd.f32 %v4231_v46, %v4143_v63  ;;  %v4694_v22 = vmax.f32 %v3967_v33, 0.0  ;;  %v4056_v44 = vadd.f32 %v4055_v42, %v8724_v12  ;;  %v9781_v63 = vld [vmem:[#allocation79_spill] sm:$0xff]  ;;  %v7323_v46 = vld [vmem:[#allocation8 + $0xb0] sm:$0xff] }
 0x631   :  { %v7331_v33 = vld [vmem:[#allocation8 + $0xf0] sm:$0xff]  ;;  %5263 = vmatpush.bf16.msrb.mxu2 %v7323_v46 }
 0x632   :  { %v8835_v37 = vpack.c.bf16 %v4694_v22, %v4690_v9  ;;  %5352 = vmatpush.bf16.msrb.mxu3 %v7331_v33 }
 0x634   :  { %v4144_v39 = vpop.f32.mrf.mxu2 }
 0x635   :  { %v4145_v34 = vadd.f32 %v4144_v39, %v4056_v44  ;;  %v3969_v29 = vpop.f32.mrf.mxu0 }
 0x636   :  { %v3970_v45 = vadd.f32 %v3969_v29, %v8652_v58 }
 0x637   :  { %v4233_v2 = vpop.f32.mrf.mxu3  ;;  %v4058_v8 = vpop.f32.mrf.mxu1 }
 0x638   :  { %v8839_v43 = vadd.f32 %v4233_v2, %v4145_v34  ;;  %4284 = vmatmul.bf16.vlgmr.msra.gmra.mxu0 %v9780_v11  ;;  %v4059_v24 = vadd.f32 %v4058_v8, %v8724_v12  ;;  %v7315_v2 = vld [vmem:[#allocation8 + $0x70] sm:$0xff]  ;;  %v4698_v29 = vmax.f32 %v3970_v45, 0.0  ;;  %v9784_v45 = vld [vmem:[#allocation82_spill] sm:$0xff] }
 0x639   :  { %4462 = vmatmul.bf16.vlgmr.msra.gmra.mxu2 %v9782_v7  ;;  %5174 = vmatpush.bf16.msrb.mxu1 %v7315_v2 }
 0x63a   :  { %4373 = vmatmul.bf16.vlgmr.msra.gmra.mxu1 %v9781_v63 }
 0x63c   :  { %4551 = vmatmul.bf16.vlgmr.msra.gmra.mxu3 %v9721_v62  ;;  %v4147_v42 = vpop.f32.mrf.mxu2 }
 0x63d   :  { %v4148_v58 = vadd.f32 %v4147_v42, %v4059_v24  ;;  %v3971_v22 = vpop.f32.mrf.mxu0 }
 0x63e   :  { %v3972_v44 = vadd.f32 %v3971_v22, %v8655_v56  ;;  %v9783_v56 = vld [vmem:[#allocation22_spill] sm:$0xff] }
 0x63f   :  { %v4236_v9 = vpop.f32.mrf.mxu3  ;;  %v4060_v39 = vpop.f32.mrf.mxu1 }
 0x640   :  { %v8847_v34 = vadd.f32 %v4236_v9, %v4148_v58  ;;  %v4702_v8 = vmax.f32 %v3972_v44, 0.0  ;;  %v4061_v11 = vadd.f32 %v4060_v39, %v8724_v12  ;;  %v9785_v9 = vld [vmem:[#allocation83_spill] sm:$0xff] }
 0x642   :  { %v8849_v62 = vpack.c.bf16 %v4702_v8, %v4698_v29 }
 0x644   :  { %v4149_v63 = vpop.f32.mrf.mxu2 }
 0x645   :  { %v4150_v7 = vadd.f32 %v4149_v63, %v4061_v11  ;;  %v3974_v24 = vpop.f32.mrf.mxu0 }
 0x646   :  { %v3975_v5 = vadd.f32 %v3974_v24, %v8662_v57 }
 0x647   :  { %v4238_v46 = vpop.f32.mrf.mxu3  ;;  %v4063_v33 = vpop.f32.mrf.mxu1 }
 0x648   :  { %v8853_v42 = vadd.f32 %v4238_v46, %v4150_v7  ;;  %4289 = vmatmul.bf16.gmra.mxu0 %v9783_v56  ;;  %v4064_v58 = vadd.f32 %v4063_v33, %v8724_v12  ;;  %v4706_v11 = vmax.f32 %v3975_v5, 0.0  ;;  %v9788_v5 = vld [vmem:[#allocation86_spill] sm:$0xff] }
 0x649   :  { %4467 = vmatmul.bf16.gmra.mxu2 %v9785_v9 }
 0x64a   :  { %4378 = vmatmul.bf16.gmra.mxu1 %v9784_v45 }
 0x64c   :  { %4556 = vmatmul.bf16.gmra.mxu3 %v9724_v41  ;;  %v4152_v22 = vpop.f32.mrf.mxu2 }
 0x64d   :  { %v4153_v44 = vadd.f32 %v4152_v22, %v4064_v58  ;;  %v3976_v2 = vpop.f32.mrf.mxu0  ;;  %v9786_v22 = vld [vmem:[#allocation26_spill] sm:$0xff] }
 0x64e   :  { %v3977_v29 = vadd.f32 %v3976_v2, %v8665_v35  ;;  %v7306_v2 = vld [vmem:[#allocation8 + $0x28] sm:$0xff] }
 0x64f   :  { %v4241_v39 = vpop.f32.mrf.mxu3  ;;  %v4065_v57 = vpop.f32.mrf.mxu1  ;;  %5086 = vmatpush.bf16.msrb.mxu0 %v7306_v2 }
 0x650   :  { %v8861_v8 = vadd.f32 %v4241_v39, %v4153_v44  ;;  %v4710_v63 = vmax.f32 %v3977_v29, 0.0  ;;  %v4066_v46 = vadd.f32 %v4065_v57, %v8724_v12  ;;  %v9787_v44 = vld [vmem:[#allocation85_spill] sm:$0xff]  ;;  %v7322_v39 = vld [vmem:[#allocation8 + $0xa8] sm:$0xff] }
 0x651   :  { %v7330_v29 = vld [vmem:[#allocation8 + $0xe8] sm:$0xff]  ;;  %5264 = vmatpush.bf16.msrb.mxu2 %v7322_v39 }
 0x652   :  { %v8863_v7 = vpack.c.bf16 %v4710_v63, %v4706_v11  ;;  %5353 = vmatpush.bf16.msrb.mxu3 %v7330_v29 }
 0x654   :  { %v4154_v24 = vpop.f32.mrf.mxu2 }
 0x655   :  { %v4155_v33 = vadd.f32 %v4154_v24, %v4066_v46  ;;  %v3979_v45 = vpop.f32.mrf.mxu0 }
 0x656   :  { %v3980_v41 = vadd.f32 %v3979_v45, %v8672_v13 }
 0x657   :  { %v4243_v56 = vpop.f32.mrf.mxu3  ;;  %v4068_v58 = vpop.f32.mrf.mxu1 }
 0x658   :  { %v8867_v9 = vadd.f32 %v4243_v56, %v4155_v33  ;;  %4294 = vmatmul.bf16.gmra.mxu0 %v9786_v22  ;;  %v4069_v35 = vadd.f32 %v4068_v58, %v8724_v12  ;;  %v7314_v56 = vld [vmem:[#allocation8 + $0x68] sm:$0xff]  ;;  %v4714_v45 = vmax.f32 %v3980_v41, 0.0 }
 0x659   :  { %4472 = vmatmul.bf16.gmra.mxu2 %v9788_v5  ;;  %5175 = vmatpush.bf16.msrb.mxu1 %v7314_v56  ;;  %v9791_v41 = vld [vmem:[#allocation88_spill] sm:$0xff] }
 0x65a   :  { %4383 = vmatmul.bf16.gmra.mxu1 %v9787_v44 }
 0x65c   :  { %4561 = vmatmul.bf16.gmra.mxu3 %v9727_v23  ;;  %v4157_v57 = vpop.f32.mrf.mxu2 }
 0x65d   :  { %v4158_v13 = vadd.f32 %v4157_v57, %v4069_v35  ;;  %v3981_v63 = vpop.f32.mrf.mxu0 }
 0x65e   :  { %v3982_v46 = vadd.f32 %v3981_v63, %v8675_v17  ;;  %v9790_v17 = vld [vmem:[#allocation30_spill] sm:$0xff] }
 0x65f   :  { %v4246_v11 = vpop.f32.mrf.mxu3  ;;  %v4070_v24 = vpop.f32.mrf.mxu1 }
 0x660   :  { %v8875_v33 = vadd.f32 %v4246_v11, %v4158_v13  ;;  %v4718_v58 = vmax.f32 %v3982_v46, 0.0  ;;  %v4071_v22 = vadd.f32 %v4070_v24, %v8724_v12  ;;  %v9792_v11 = vld [vmem:[#allocation89_spill] sm:$0xff] }
 0x662   :  { %v8877_v23 = vpack.c.bf16 %v4718_v58, %v4714_v45 }
 0x664   :  { %9789 = vst [vmem:[#allocation81_spill] sm:$0xff] %v8877_v23  ;;  %v4159_v44 = vpop.f32.mrf.mxu2 }
 0x665   :  { %v4160_v5 = vadd.f32 %v4159_v44, %v4071_v22  ;;  %v3984_v35 = vpop.f32.mrf.mxu0 }
 0x666   :  { %v3985_v2 = vadd.f32 %v3984_v35, %v8682_v49 }
 0x667   :  { %v4248_v39 = vpop.f32.mrf.mxu3  ;;  %v4073_v29 = vpop.f32.mrf.mxu1 }
 0x668   :  { %v8881_v57 = vadd.f32 %v4248_v39, %v4160_v5  ;;  %4299 = vmatmul.bf16.gmra.mxu0 %v9790_v17  ;;  %v4074_v13 = vadd.f32 %v4073_v29, %v8724_v12  ;;  %v4722_v22 = vmax.f32 %v3985_v2, 0.0  ;;  %v9796_v2 = vld [vmem:[#allocation93_spill] sm:$0xff] }
 0x669   :  { %4477 = vmatmul.bf16.gmra.mxu2 %v9792_v11 }
 0x66a   :  { %4388 = vmatmul.bf16.gmra.mxu1 %v9791_v41 }
 0x66c   :  { %4566 = vmatmul.bf16.gmra.mxu3 %v9730_v54  ;;  %v4162_v63 = vpop.f32.mrf.mxu2 }
 0x66d   :  { %v4163_v46 = vadd.f32 %v4162_v63, %v4074_v13  ;;  %v3986_v56 = vpop.f32.mrf.mxu0  ;;  %v9794_v63 = vld [vmem:[#allocation34_spill] sm:$0xff] }
 0x66e   :  { %v3987_v45 = vadd.f32 %v3986_v56, %v8685_v60  ;;  %v7305_v56 = vld [vmem:[#allocation8 + $0x20] sm:$0xff] }
 0x66f   :  { %v4251_v24 = vpop.f32.mrf.mxu3  ;;  %v4075_v49 = vpop.f32.mrf.mxu1  ;;  %5087 = vmatpush.bf16.msrb.mxu0 %v7305_v56 }
 0x670   :  { %v8889_v58 = vadd.f32 %v4251_v24, %v4163_v46  ;;  %v4726_v44 = vmax.f32 %v3987_v45, 0.0  ;;  %v4076_v39 = vadd.f32 %v4075_v49, %v8724_v12  ;;  %v9795_v46 = vld [vmem:[#allocation92_spill] sm:$0xff]  ;;  %v7321_v24 = vld [vmem:[#allocation8 + $0xa0] sm:$0xff] }
 0x671   :  { %v7329_v45 = vld [vmem:[#allocation8 + $0xe0] sm:$0xff]  ;;  %5265 = vmatpush.bf16.msrb.mxu2 %v7321_v24 }
 0x672   :  { %v8891_v5 = vpack.c.bf16 %v4726_v44, %v4722_v22  ;;  %5354 = vmatpush.bf16.msrb.mxu3 %v7329_v45 }
 0x674   :  { %9793 = vst [vmem:[#allocation15_spill] sm:$0xff] %v8891_v5  ;;  %v4164_v35 = vpop.f32.mrf.mxu2 }
 0x675   :  { %v4165_v29 = vadd.f32 %v4164_v35, %v4076_v39  ;;  %v3989_v41 = vpop.f32.mrf.mxu0 }
 0x676   :  { %v3990_v54 = vadd.f32 %v3989_v41, %v8692_v1 }
 0x677   :  { %v4253_v17 = vpop.f32.mrf.mxu3  ;;  %v4078_v13 = vpop.f32.mrf.mxu1 }
 0x678   :  { %v8895_v11 = vadd.f32 %v4253_v17, %v4165_v29  ;;  %4304 = vmatmul.bf16.gmra.mxu0 %v9794_v63  ;;  %v4079_v60 = vadd.f32 %v4078_v13, %v8724_v12  ;;  %v7313_v17 = vld [vmem:[#allocation8 + $0x60] sm:$0xff]  ;;  %v4730_v41 = vmax.f32 %v3990_v54, 0.0  ;;  %v9799_v54 = vld [vmem:[#allocation96_spill] sm:$0xff] }
 0x679   :  { %4482 = vmatmul.bf16.gmra.mxu2 %v9796_v2  ;;  %5176 = vmatpush.bf16.msrb.mxu1 %v7313_v17 }
 0x67a   :  { %4393 = vmatmul.bf16.gmra.mxu1 %v9795_v46 }
 0x67c   :  { %4571 = vmatmul.bf16.gmra.mxu3 %v9733_v31  ;;  %v4167_v49 = vpop.f32.mrf.mxu2 }
 0x67d   :  { %v4168_v1 = vadd.f32 %v4167_v49, %v4079_v60  ;;  %v3991_v44 = vpop.f32.mrf.mxu0 }
 0x67e   :  { %v3992_v39 = vadd.f32 %v3991_v44, %v8695_v4  ;;  %v9798_v4 = vld [vmem:[#allocation38_spill] sm:$0xff] }
 0x67f   :  { %v4256_v22 = vpop.f32.mrf.mxu3  ;;  %v4080_v35 = vpop.f32.mrf.mxu1 }
 0x680   :  { %v8903_v29 = vadd.f32 %v4256_v22, %v4168_v1  ;;  %v4734_v13 = vmax.f32 %v3992_v39, 0.0  ;;  %v4081_v63 = vadd.f32 %v4080_v35, %v8724_v12  ;;  %v9800_v22 = vld [vmem:[#allocation97_spill] sm:$0xff] }
 0x682   :  { %v8905_v31 = vpack.c.bf16 %v4734_v13, %v4730_v41  ;;  %v9801_v41 = vld [vmem:[#allocation53_spill] sm:$0xff] }
 0x684   :  { %9797 = vst [vmem:[#allocation16_spill] sm:$0xff] %v8905_v31  ;;  %v4169_v46 = vpop.f32.mrf.mxu2  ;;  %v9803_v31 = vld [vmem:[#allocation42_spill] sm:$0xff] }
 0x685   :  { %v4170_v2 = vadd.f32 %v4169_v46, %v4081_v63  ;;  %v3994_v60 = vpop.f32.mrf.mxu0 }
 0x686   :  { %v3995_v56 = vadd.f32 %v3994_v60, %v8702_v51 }
 0x687   :  { %v4258_v24 = vpop.f32.mrf.mxu3  ;;  %v4083_v45 = vpop.f32.mrf.mxu1 }
 0x688   :  { %v8909_v49 = vadd.f32 %v4258_v24, %v4170_v2  ;;  %4309 = vmatmul.bf16.gmra.mxu0 %v9798_v4  ;;  %v4084_v1 = vadd.f32 %v4083_v45, %v8724_v12  ;;  %v4738_v46 = vmax.f32 %v3995_v56, 0.0  ;;  %v9805_v56 = vld [vmem:[#allocation101_spill] sm:$0xff] }
 0x689   :  { %4487 = vmatmul.bf16.gmra.mxu2 %v9800_v22 }
 0x68a   :  { %4398 = vmatmul.bf16.gmra.mxu1 %v9799_v54 }
 0x68c   :  { %4576 = vmatmul.bf16.gmra.mxu3 %v9736_v25  ;;  %v4172_v44 = vpop.f32.mrf.mxu2 }
 0x68d   :  { %v4173_v39 = vadd.f32 %v4172_v44, %v4084_v1  ;;  %v3996_v17 = vpop.f32.mrf.mxu0 }
 0x68e   :  { %v3997_v13 = vadd.f32 %v3996_v17, %v9801_v41  ;;  %v9806_v17 = vld [vmem:[#allocation102_spill] sm:$0xff] }
 0x68f   :  { %v4261_v35 = vpop.f32.mrf.mxu3  ;;  %v4085_v51 = vpop.f32.mrf.mxu1  ;;  %v7320_v41 = vld [vmem:[#allocation8 + $0x98] sm:$0xff] }
 0x690   :  { %v8917_v63 = vadd.f32 %v4261_v35, %v4173_v39  ;;  %v4742_v2 = vmax.f32 %v3997_v13, 0.0  ;;  %v4086_v60 = vadd.f32 %v4085_v51, %v8724_v12  ;;  %v9804_v35 = vld [vmem:[#allocation100_spill] sm:$0xff]  ;;  %v7304_v13 = vld [vmem:[#allocation8 + $0x18] sm:$0xff]  ;;  %5266 = vmatpush.bf16.msrb.mxu2 %v7320_v41 }
 0x691   :  { %v7328_v51 = vld [vmem:[#allocation8 + $0xd8] sm:$0xff]  ;;  %5088 = vmatpush.bf16.msrb.mxu0 %v7304_v13 }
 0x692   :  { %v8919_v24 = vpack.c.bf16 %v4742_v2, %v4738_v46  ;;  %5355 = vmatpush.bf16.msrb.mxu3 %v7328_v51 }
 0x694   :  { %9802 = vst [vmem:[#allocation84_spill] sm:$0xff] %v8919_v24  ;;  %v4174_v45 = vpop.f32.mrf.mxu2 }
 0x695   :  { %v4175_v4 = vadd.f32 %v4174_v45, %v4086_v60  ;;  %v3999_v22 = vpop.f32.mrf.mxu0 }
 0x696   :  { %v4000_v25 = vadd.f32 %v3999_v22, %v8712_v47 }
 0x697   :  { %v4263_v54 = vpop.f32.mrf.mxu3  ;;  %v4088_v1 = vpop.f32.mrf.mxu1 }
 0x698   :  { %v8923_v44 = vadd.f32 %v4263_v54, %v4175_v4  ;;  %4314 = vmatmul.bf16.gmra.mxu0 %v9803_v31  ;;  %v4089_v39 = vadd.f32 %v4088_v1, %v8724_v12  ;;  %v4746_v54 = vmax.f32 %v4000_v25, 0.0  ;;  %v7312_v1 = vld [vmem:[#allocation8 + $0x58] sm:$0xff] }
 0x699   :  { %4492 = vmatmul.bf16.gmra.mxu2 %v9805_v56  ;;  %5177 = vmatpush.bf16.msrb.mxu1 %v7312_v1  ;;  %v9813_v1 = vld [vmem:[#allocation61_spill] sm:$0xff] }
 0x69a   :  { %4403 = vmatmul.bf16.gmra.mxu1 %v9804_v35 }
 0x69c   :  { %4581 = vmatmul.bf16.gmra.mxu3 %v9806_v17  ;;  %v4177_v46 = vpop.f32.mrf.mxu2 }
 0x69d   :  { %v4178_v47 = vadd.f32 %v4177_v46, %v4089_v39  ;;  %v4001_v60 = vpop.f32.mrf.mxu0  ;;  %v9808_v46 = vld [vmem:[#allocation57_spill] sm:$0xff] }
 0x69e   :  { %v4002_v31 = vadd.f32 %v4001_v60, %v8715_v61  ;;  %v9809_v61 = vld [vmem:[#allocation46_spill] sm:$0xff] }
 0x69f   :  { %v4266_v2 = vpop.f32.mrf.mxu3  ;;  %v4090_v45 = vpop.f32.mrf.mxu1  ;;  %v9812_v60 = vld [vmem:[#allocation106_spill] sm:$0xff] }
 0x6a0   :  { %v8931_v4 = vadd.f32 %v4266_v2, %v4178_v47  ;;  %v4750_v22 = vmax.f32 %v4002_v31, 0.0  ;;  %v4091_v56 = vadd.f32 %v4090_v45, %v8724_v12  ;;  %v9810_v47 = vld [vmem:[#allocation104_spill] sm:$0xff]  ;;  %v9811_v2 = vld [vmem:[#allocation105_spill] sm:$0xff] }
 0x6a2   :  { %v8933_v35 = vpack.c.bf16 %v4750_v22, %v4746_v54 }
 0x6a4   :  { %9807 = vst [vmem:[#allocation19_spill] sm:$0xff] %v8933_v35  ;;  %v4179_v17 = vpop.f32.mrf.mxu2 }
 0x6a5   :  { %v4180_v41 = vadd.f32 %v4179_v17, %v4091_v56  ;;  %v4004_v39 = vpop.f32.mrf.mxu0 }
 0x6a6   :  { %v4005_v24 = vadd.f32 %v4004_v39, %v9808_v46 }
 0x6a7   :  { %v4268_v13 = vpop.f32.mrf.mxu3  ;;  %v4093_v51 = vpop.f32.mrf.mxu1 }
 0x6a8   :  { %v8937_v5 = vadd.f32 %v4268_v13, %v4180_v41  ;;  %4319 = vmatmul.bf16.gmra.mxu0 %v9809_v61  ;;  %v4094_v25 = vadd.f32 %v4093_v51, %v8724_v12  ;;  %v4754_v41 = vmax.f32 %v4005_v24, 0.0  ;;  %v9817_v24 = vld [vmem:[#allocation108_spill] sm:$0xff] }
 0x6a9   :  { %4497 = vmatmul.bf16.gmra.mxu2 %v9811_v2 }
 0x6aa   :  { %4408 = vmatmul.bf16.gmra.mxu1 %v9810_v47 }
 0x6ac   :  { %4586 = vmatmul.bf16.gmra.mxu3 %v9812_v60  ;;  %v4182_v31 = vpop.f32.mrf.mxu2 }
 0x6ad   :  { %v4183_v45 = vadd.f32 %v4182_v31, %v4094_v25  ;;  %v4006_v22 = vpop.f32.mrf.mxu0 }
 0x6ae   :  { %v4007_v56 = vadd.f32 %v4006_v22, %v9813_v1  ;;  %v9815_v22 = vld [vmem:[#allocation50_spill] sm:$0xff]  ;;  %v7319_v1 = vld [vmem:[#allocation8 + $0x90] sm:$0xff] }
 0x6af   :  { %v4271_v54 = vpop.f32.mrf.mxu3  ;;  %v4095_v17 = vpop.f32.mrf.mxu1  ;;  %5267 = vmatpush.bf16.msrb.mxu2 %v7319_v1 }
 0x6b0   :  { %v8945_v39 = vadd.f32 %v4271_v54, %v4183_v45  ;;  %v4758_v13 = vmax.f32 %v4007_v56, 0.0  ;;  %v4096_v51 = vadd.f32 %v4095_v17, %v8724_v12  ;;  %v9816_v45 = vld [vmem:[#allocation107_spill] sm:$0xff]  ;;  %v9818_v54 = vld [vmem:[#allocation109_spill] sm:$0xff] }
 0x6b1   :  { %v7303_v12 = vld [vmem:[#allocation8 + $0x10] sm:$0xff] }
 0x6b2   :  { %v8947_v46 = vpack.c.bf16 %v4758_v13, %v4754_v41  ;;  %v7327_v56 = vld [vmem:[#allocation8 + $0xd0] sm:$0xff]  ;;  %5089 = vmatpush.bf16.msrb.mxu0 %v7303_v12 }
 0x6b3   :  { %5356 = vmatpush.bf16.msrb.mxu3 %v7327_v56 }
 0x6b4   :  { %9814 = vst [vmem:[#allocation20_spill] sm:$0xff] %v8947_v46  ;;  %v4184_v61 = vpop.f32.mrf.mxu2  ;;  %v9820_v46 = vld [vmem:[#allocation111_spill] sm:$0xff] }
 0x6b5   :  { %v4185_v47 = vadd.f32 %v4184_v61, %v4096_v51  ;;  %v4285_v35 = vpop.f32.mrf.mxu0 }
 0x6b6   :  { %v4286_v60 = vadd.f32 %v4285_v35, %v8735_v6 }
 0x6b7   :  { %v4273_v2 = vpop.f32.mrf.mxu3  ;;  %v4374_v25 = vpop.f32.mrf.mxu1 }
 0x6b8   :  { %v8951_v31 = vadd.f32 %v4273_v2, %v4185_v47  ;;  %v4375_v23 = vadd.f32 %v4374_v25, %v4286_v60  ;;  %4324 = vmatmul.bf16.gmra.mxu0 %v9815_v22  ;;  %v7311_v2 = vld [vmem:[#allocation8 + $0x50] sm:$0xff] }
 0x6b9   :  { %4502 = vmatmul.bf16.gmra.mxu2 %v9817_v24  ;;  %5178 = vmatpush.bf16.msrb.mxu1 %v7311_v2 }
 0x6ba   :  { %4413 = vmatmul.bf16.gmra.mxu1 %v9816_v45 }
 0x6bc   :  { %4591 = vmatmul.bf16.gmra.mxu3 %v9818_v54  ;;  %v4463_v17 = vpop.f32.mrf.mxu2 }
 0x6bd   :  { %v4464_v41 = vadd.f32 %v4463_v17, %v4375_v23  ;;  %v4287_v35 = vpop.f32.mrf.mxu0  ;;  %v9819_v23 = vld [vmem:[#allocation54_spill] sm:$0xff] }
 0x6be   :  { %v4288_v13 = vadd.f32 %v4287_v35, %v8741_v52  ;;  %v9821_v52 = vld [vmem:[#allocation112_spill] sm:$0xff] }
 0x6bf   :  { %v4552_v6 = vpop.f32.mrf.mxu3  ;;  %v4376_v51 = vpop.f32.mrf.mxu1 }
 0x6c0   :  { %v4553_v61 = vadd.f32 %v4552_v6, %v4464_v41  ;;  %v4377_v47 = vadd.f32 %v4376_v51, %v4288_v13 }
 0x6c2   :  { %v4635_v17 = vmax.f32 %v4553_v61, 0.0 }
 0x6c4   :  { %v4465_v60 = vpop.f32.mrf.mxu2 }
 0x6c5   :  { %v4466_v25 = vadd.f32 %v4465_v60, %v4377_v47  ;;  %v4290_v45 = vpop.f32.mrf.mxu0 }
 0x6c6   :  { %v4291_v24 = vadd.f32 %v4290_v45, %v8749_v28 }
 0x6c7   :  { %v4554_v22 = vpop.f32.mrf.mxu3  ;;  %v4379_v54 = vpop.f32.mrf.mxu1 }
 0x6c8   :  { %v4555_v1 = vadd.f32 %v4554_v22, %v4466_v25  ;;  %v4380_v12 = vadd.f32 %v4379_v54, %v4291_v24  ;;  %4329 = vmatmul.bf16.gmra.mxu0 %v9819_v23 }
 0x6c9   :  { %4507 = vmatmul.bf16.gmra.mxu2 %v9821_v52  ;;  %v7302_v52 = vld [vmem:[#allocation8 + $0x8] sm:$0xff] }
 0x6ca   :  { %v4639_v56 = vmax.f32 %v4555_v1, 0.0  ;;  %4418 = vmatmul.bf16.gmra.mxu1 %v9820_v46  ;;  %v9822_v1 = vld [vmem:[#allocation58_spill] sm:$0xff]  ;;  %5090 = vmatpush.bf16.msrb.mxu0 %v7302_v52 }
 0x6cc   :  { %4596 = vmatmul.bf16.gmra.mxu3 %v9756_v18  ;;  %v8963_v41 = vpack.c.bf16 %v4639_v56, %v4635_v17  ;;  %v4468_v6 = vpop.f32.mrf.mxu2  ;;  %v9823_v17 = vld [vmem:[#allocation115_spill] sm:$0xff]  ;;  %v9824_v56 = vld [vmem:[#allocation116_spill] sm:$0xff] }
 0x6cd   :  { %v4469_v35 = vadd.f32 %v4468_v6, %v4380_v12  ;;  %v4292_v51 = vpop.f32.mrf.mxu0  ;;  %v7326_v6 = vld [vmem:[#allocation8 + $0xc8] sm:$0xff] }
 0x6ce   :  { %v4293_v28 = vadd.f32 %v4292_v51, %v8755_v53  ;;  %v7318_v53 = vld [vmem:[#allocation8 + $0x88] sm:$0xff]  ;;  %5357 = vmatpush.bf16.msrb.mxu3 %v7326_v6 }
 0x6cf   :  { %v4557_v13 = vpop.f32.mrf.mxu3  ;;  %v4381_v47 = vpop.f32.mrf.mxu1  ;;  %5268 = vmatpush.bf16.msrb.mxu2 %v7318_v53 }
 0x6d0   :  { %v4558_v2 = vadd.f32 %v4557_v13, %v4469_v35  ;;  %v4382_v60 = vadd.f32 %v4381_v47, %v4293_v28 }
 0x6d2   :  { %v4643_v23 = vmax.f32 %v4558_v2, 0.0 }
 0x6d4   :  { %v4470_v25 = vpop.f32.mrf.mxu2 }
 0x6d5   :  { %v4471_v61 = vadd.f32 %v4470_v25, %v4382_v60  ;;  %v4295_v45 = vpop.f32.mrf.mxu0 }
 0x6d6   :  { %v4296_v46 = vadd.f32 %v4295_v45, %v8763_v10 }
 0x6d7   :  { %v4559_v22 = vpop.f32.mrf.mxu3  ;;  %v4384_v24 = vpop.f32.mrf.mxu1 }
 0x6d8   :  { %v4560_v54 = vadd.f32 %v4559_v22, %v4471_v61  ;;  %v4385_v18 = vadd.f32 %v4384_v24, %v4296_v46  ;;  %4334 = vmatmul.bf16.gmra.mxu0 %v9822_v1  ;;  %v7310_v61 = vld [vmem:[#allocation8 + $0x48] sm:$0xff] }
 0x6d9   :  { %4512 = vmatmul.bf16.gmra.mxu2 %v9824_v56  ;;  %5179 = vmatpush.bf16.msrb.mxu1 %v7310_v61  ;;  %v9826_v56 = vld [vmem:[#allocation119_spill] sm:$0xff] }
 0x6da   :  { %v4647_v12 = vmax.f32 %v4560_v54, 0.0  ;;  %4423 = vmatmul.bf16.gmra.mxu1 %v9823_v17 }
 0x6dc   :  { %4601 = vmatmul.bf16.gmra.mxu3 %v9760_v3  ;;  %v8971_v35 = vpack.c.bf16 %v4647_v12, %v4643_v23  ;;  %v4473_v13 = vpop.f32.mrf.mxu2 }
 0x6dd   :  { %v4474_v10 = vadd.f32 %v4473_v13, %v4385_v18  ;;  %v4297_v28 = vpop.f32.mrf.mxu0  ;;  %v9825_v18 = vld [vmem:[#allocation62_spill] sm:$0xff] }
 0x6de   :  { %v4298_v47 = vadd.f32 %v4297_v28, %v8769_v14  ;;  %v9827_v14 = vld [vmem:[#allocation120_spill] sm:$0xff] }
 0x6df   :  { %v4562_v51 = vpop.f32.mrf.mxu3  ;;  %v4386_v2 = vpop.f32.mrf.mxu1 }
 0x6e0   :  { %v4563_v60 = vadd.f32 %v4562_v51, %v4474_v10  ;;  %v4387_v25 = vadd.f32 %v4386_v2, %v4298_v47 }
 0x6e2   :  { %v4651_v12 = vmax.f32 %v4563_v60, 0.0 }
 0x6e4   :  { %v4475_v3 = vpop.f32.mrf.mxu2 }
 0x6e5   :  { %v4476_v22 = vadd.f32 %v4475_v3, %v4387_v25  ;;  %v4300_v46 = vpop.f32.mrf.mxu0 }
 0x6e6   :  { %v4301_v24 = vadd.f32 %v4300_v46, %v8777_v40  ;;  %v9828_v46 = vld [vmem:[#allocation66_spill] sm:$0xff] }
 0x6e7   :  { %v4564_v45 = vpop.f32.mrf.mxu3  ;;  %v4389_v54 = vpop.f32.mrf.mxu1 }
 0x6e8   :  { %v4565_v1 = vadd.f32 %v4564_v45, %v4476_v22  ;;  %v4390_v23 = vadd.f32 %v4389_v54, %v4301_v24  ;;  %4339 = vmatmul.bf16.gmra.mxu0 %v9825_v18  ;;  %v7301_v18 = vld [vmem:[#allocation8] sm:$0xff] }
 0x6e9   :  { %4517 = vmatmul.bf16.gmra.mxu2 %v9827_v14  ;;  %5091 = vmatpush.bf16.msrb.mxu0 %v7301_v18 }
 0x6ea   :  { %v4655_v17 = vmax.f32 %v4565_v1, 0.0  ;;  %4428 = vmatmul.bf16.gmra.mxu1 %v9826_v56  ;;  %v9829_v1 = vld [vmem:[#allocation123_spill] sm:$0xff] }
 0x6ec   :  { %4606 = vmatmul.bf16.gmra.mxu3 %v9764_v15  ;;  %v8979_v53 = vpack.c.bf16 %v4655_v17, %v4651_v12  ;;  %v4478_v52 = vpop.f32.mrf.mxu2  ;;  %v7325_v12 = vld [vmem:[#allocation8 + $0xc0] sm:$0xff] }
 0x6ed   :  { %v4479_v6 = vadd.f32 %v4478_v52, %v4390_v23  ;;  %v4302_v10 = vpop.f32.mrf.mxu0  ;;  %v9830_v23 = vld [vmem:[#allocation124_spill] sm:$0xff]  ;;  %5358 = vmatpush.bf16.msrb.mxu3 %v7325_v12 }
 0x6ee   :  { %v4303_v40 = vadd.f32 %v4302_v10, %v8783_v36  ;;  %v7317_v36 = vld [vmem:[#allocation8 + $0x80] sm:$0xff] }
 0x6ef   :  { %v4567_v13 = vpop.f32.mrf.mxu3  ;;  %v4391_v51 = vpop.f32.mrf.mxu1  ;;  %5269 = vmatpush.bf16.msrb.mxu2 %v7317_v36 }
 0x6f0   :  { %v4568_v28 = vadd.f32 %v4567_v13, %v4479_v6  ;;  %v4392_v47 = vadd.f32 %v4391_v51, %v4303_v40  ;;  %v7309_v51 = vld [vmem:[#allocation8 + $0x40] sm:$0xff] }
 0x6f1   :  { %5180 = vmatpush.bf16.msrb.mxu1 %v7309_v51  ;;  %v9834_v51 = vld [vmem:[#allocation74_spill] sm:$0xff] }
 0x6f2   :  { %v4659_v24 = vmax.f32 %v4568_v28, 0.0 }
 0x6f4   :  { %v4480_v2 = vpop.f32.mrf.mxu2 }
 0x6f5   :  { %v4481_v60 = vadd.f32 %v4480_v2, %v4392_v47  ;;  %v4305_v61 = vpop.f32.mrf.mxu0 }
 0x6f6   :  { %v4306_v3 = vadd.f32 %v4305_v61, %v8791_v21 }
 0x6f7   :  { %v4569_v25 = vpop.f32.mrf.mxu3  ;;  %v4394_v22 = vpop.f32.mrf.mxu1 }
 0x6f8   :  { %v4570_v45 = vadd.f32 %v4569_v25, %v4481_v60  ;;  %v4395_v15 = vadd.f32 %v4394_v22, %v4306_v3  ;;  %4344 = vmatmul.bf16.gmra.mxu0 %v9828_v46  ;;  %v9831_v22 = vld [vmem:[#allocation70_spill] sm:$0xff]  ;;  %v9832_v46 = vld [vmem:[#allocation127_spill] sm:$0xff] }
 0x6f9   :  { %4522 = vmatmul.bf16.gmra.mxu2 %v9830_v23 }
 0x6fa   :  { %v4663_v54 = vmax.f32 %v4570_v45, 0.0  ;;  %4433 = vmatmul.bf16.gmra.mxu1 %v9829_v1 }
 0x6fc   :  { %4611 = vmatmul.bf16.gmra.mxu3 %v9768_v20  ;;  %v8987_v17 = vpack.c.bf16 %v4663_v54, %v4659_v24  ;;  %v4483_v56 = vpop.f32.mrf.mxu2 }
 0x6fd   :  { %v4484_v21 = vadd.f32 %v4483_v56, %v4395_v15  ;;  %v4307_v52 = vpop.f32.mrf.mxu0 }
 0x6fe   :  { %v4308_v6 = vadd.f32 %v4307_v52, %v8797_v32  ;;  %v9833_v32 = vld [vmem:[#allocation128_spill] sm:$0xff] }
 0x6ff   :  { %v4572_v14 = vpop.f32.mrf.mxu3  ;;  %v4396_v13 = vpop.f32.mrf.mxu1 }
 0x700   :  { %v4573_v10 = vadd.f32 %v4572_v14, %v4484_v21  ;;  %v4397_v40 = vadd.f32 %v4396_v13, %v4308_v6 }
 0x702   :  { %v4667_v45 = vmax.f32 %v4573_v10, 0.0 }
 0x704   :  { %v4485_v20 = vpop.f32.mrf.mxu2 }
 0x705   :  { %v4486_v28 = vadd.f32 %v4485_v20, %v4397_v40  ;;  %v4310_v2 = vpop.f32.mrf.mxu0 }
 0x706   :  { %v4311_v60 = vadd.f32 %v4310_v2, %v8805_v50  ;;  %v9836_v2 = vld [vmem:[#allocation132_spill] sm:$0xff] }
 0x707   :  { %v4574_v47 = vpop.f32.mrf.mxu3  ;;  %v4399_v25 = vpop.f32.mrf.mxu1 }
 0x708   :  { %v4575_v61 = vadd.f32 %v4574_v47, %v4486_v28  ;;  %v4400_v3 = vadd.f32 %v4399_v25, %v4311_v60  ;;  %4349 = vmatmul.bf16.gmra.mxu0 %v9831_v22  ;;  %v9835_v47 = vld [vmem:[#allocation131_spill] sm:$0xff] }
 0x709   :  { %4527 = vmatmul.bf16.gmra.mxu2 %v9833_v32 }
 0x70a   :  { %v4671_v15 = vmax.f32 %v4575_v61, 0.0  ;;  %4438 = vmatmul.bf16.gmra.mxu1 %v9832_v46 }
 0x70c   :  { %4616 = vmatmul.bf16.gmra.mxu3 %v9771_v59  ;;  %v8995_v24 = vpack.c.bf16 %v4671_v15, %v4667_v45  ;;  %v4488_v54 = vpop.f32.mrf.mxu2 }
 0x70d   :  { %v4489_v1 = vadd.f32 %v4488_v54, %v4400_v3  ;;  %v4312_v36 = vpop.f32.mrf.mxu0 }
 0x70e   :  { %v4313_v50 = vadd.f32 %v4312_v36, %v8811_v55 }
 0x70f   :  { %v4577_v23 = vpop.f32.mrf.mxu3  ;;  %v4401_v18 = vpop.f32.mrf.mxu1 }
 0x710   :  { %v4578_v12 = vadd.f32 %v4577_v23, %v4489_v1  ;;  %v4402_v56 = vadd.f32 %v4401_v18, %v4313_v50  ;;  %v9837_v18 = vld [vmem:[#allocation78_spill] sm:$0xff] }
 0x712   :  { %v4675_v20 = vmax.f32 %v4578_v12, 0.0 }
 0x714   :  { %v4490_v21 = vpop.f32.mrf.mxu2 }
 0x715   :  { %v4491_v14 = vadd.f32 %v4490_v21, %v4402_v56  ;;  %v4315_v6 = vpop.f32.mrf.mxu0  ;;  %v9838_v21 = vld [vmem:[#allocation135_spill] sm:$0xff] }
 0x716   :  { %v4316_v13 = vadd.f32 %v4315_v6, %v8819_v26 }
 0x717   :  { %v4579_v52 = vpop.f32.mrf.mxu3  ;;  %v4404_v10 = vpop.f32.mrf.mxu1 }
 0x718   :  { %v4580_v40 = vadd.f32 %v4579_v52, %v4491_v14  ;;  %v4405_v59 = vadd.f32 %v4404_v10, %v4316_v13  ;;  %4354 = vmatmul.bf16.gmra.mxu0 %v9834_v51  ;;  %v9839_v14 = vld [vmem:[#allocation136_spill] sm:$0xff] }
 0x719   :  { %4532 = vmatmul.bf16.gmra.mxu2 %v9836_v2 }
 0x71a   :  { %v4679_v28 = vmax.f32 %v4580_v40, 0.0  ;;  %4443 = vmatmul.bf16.gmra.mxu1 %v9835_v47 }
 0x71c   :  { %4621 = vmatmul.bf16.gmra.mxu3 %v9774_v16  ;;  %v9003_v55 = vpack.c.bf16 %v4679_v28, %v4675_v20  ;;  %v4493_v60 = vpop.f32.mrf.mxu2 }
 0x71d   :  { %v4494_v25 = vadd.f32 %v4493_v60, %v4405_v59  ;;  %v4317_v3 = vpop.f32.mrf.mxu0 }
 0x71e   :  { %v4318_v26 = vadd.f32 %v4317_v3, %v8825_v27  ;;  %v9840_v3 = vld [vmem:[#allocation114_spill] sm:$0xff] }
 0x71f   :  { %v4582_v61 = vpop.f32.mrf.mxu3  ;;  %v4406_v22 = vpop.f32.mrf.mxu1 }
 0x720   :  { %v4583_v45 = vadd.f32 %v4582_v61, %v4494_v25  ;;  %v4407_v15 = vadd.f32 %v4406_v22, %v4318_v26 }
 0x722   :  { %v4683_v12 = vmax.f32 %v4583_v45, 0.0  ;;  %v9841_v45 = vld [vmem:[#allocation110_spill] sm:$0xff] }
 0x724   :  { %v4495_v46 = vpop.f32.mrf.mxu2 }
 0x725   :  { %v4496_v32 = vadd.f32 %v4495_v46, %v4407_v15  ;;  %v4320_v1 = vpop.f32.mrf.mxu0  ;;  %v9842_v15 = vld [vmem:[#allocation65_spill] sm:$0xff] }
 0x726   :  { %v4321_v23 = vadd.f32 %v4320_v1, %v8833_v19 }
 0x727   :  { %v4584_v54 = vpop.f32.mrf.mxu3  ;;  %v4409_v36 = vpop.f32.mrf.mxu1 }
 0x728   :  { %v4585_v50 = vadd.f32 %v4584_v54, %v4496_v32  ;;  %v4410_v16 = vadd.f32 %v4409_v36, %v4321_v23  ;;  %4359 = vmatmul.bf16.gmra.mxu0 %v9837_v18 }
 0x729   :  { %4537 = vmatmul.bf16.gmra.mxu2 %v9839_v14 }
 0x72a   :  { %v4687_v56 = vmax.f32 %v4585_v50, 0.0  ;;  %4448 = vmatmul.bf16.gmra.mxu1 %v9838_v21 }
 0x72c   :  { %4626 = vmatmul.bf16.gmra.mxu3 %v9777_v48  ;;  %v9011_v27 = vpack.c.bf16 %v4687_v56, %v4683_v12  ;;  %v4498_v52 = vpop.f32.mrf.mxu2 }
 0x72d   :  { %v4499_v6 = vadd.f32 %v4498_v52, %v4410_v16  ;;  %v4322_v10 = vpop.f32.mrf.mxu0 }
 0x72e   :  { %v4323_v19 = vadd.f32 %v4322_v10, %v8839_v43 }
 0x72f   :  { %v4587_v13 = vpop.f32.mrf.mxu3  ;;  %v4411_v40 = vpop.f32.mrf.mxu1 }
 0x730   :  { %v4588_v59 = vadd.f32 %v4587_v13, %v4499_v6  ;;  %v4412_v51 = vadd.f32 %v4411_v40, %v4323_v19  ;;  %v9843_v6 = vld [vmem:[#allocation118_spill] sm:$0xff]  ;;  %v9845_v40 = vld [vmem:[#allocation69_spill] sm:$0xff] }
 0x731   :  { %v9844_v19 = vld [vmem:[#allocation146_spill] sm:$0xff] }
 0x732   :  { %v4691_v26 = vmax.f32 %v4588_v59, 0.0 }
 0x734   :  { %v4500_v20 = vpop.f32.mrf.mxu2 }
 0x735   :  { %v4501_v28 = vadd.f32 %v4500_v20, %v4412_v51  ;;  %v4325_v2 = vpop.f32.mrf.mxu0 }
 0x736   :  { %v4326_v60 = vadd.f32 %v4325_v2, %v8847_v34 }
 0x737   :  { %v4589_v47 = vpop.f32.mrf.mxu3  ;;  %v4414_v25 = vpop.f32.mrf.mxu1 }
 0x738   :  { %v4590_v61 = vadd.f32 %v4589_v47, %v4501_v28  ;;  %v4415_v48 = vadd.f32 %v4414_v25, %v4326_v60  ;;  %5092 = vmatmul.bf16.vlgmr.msrb.gmra.mxu0 %v9840_v3 }
 0x739   :  { %5270 = vmatmul.bf16.vlgmr.msrb.gmra.mxu2 %v9842_v15  ;;  %v9846_v15 = vld [vmem:[#allocation122_spill] sm:$0xff] }
 0x73a   :  { %v4695_v22 = vmax.f32 %v4590_v61, 0.0  ;;  %5181 = vmatmul.bf16.vlgmr.msrb.gmra.mxu1 %v9841_v45 }
 0x73c   :  { %5359 = vmatmul.bf16.vlgmr.msrb.gmra.mxu3 %v8963_v41  ;;  %v9019_v43 = vpack.c.bf16 %v4695_v22, %v4691_v26  ;;  %v4503_v46 = vpop.f32.mrf.mxu2 }
 0x73d   :  { %v4504_v32 = vadd.f32 %v4503_v46, %v4415_v48  ;;  %v4327_v1 = vpop.f32.mrf.mxu0 }
 0x73e   :  { %v4328_v34 = vadd.f32 %v4327_v1, %v8853_v42  ;;  %v9848_v1 = vld [vmem:[#allocation73_spill] sm:$0xff] }
 0x73f   :  { %v4592_v54 = vpop.f32.mrf.mxu3  ;;  %v4416_v23 = vpop.f32.mrf.mxu1 }
 0x740   :  { %v4593_v36 = vadd.f32 %v4592_v54, %v4504_v32  ;;  %v4417_v50 = vadd.f32 %v4416_v23, %v4328_v34  ;;  %v9847_v54 = vld [vmem:[#allocation147_spill] sm:$0xff] }
 0x742   :  { %v4699_v13 = vmax.f32 %v4593_v36, 0.0 }
 0x744   :  { %v4505_v16 = vpop.f32.mrf.mxu2 }
 0x745   :  { %v4506_v18 = vadd.f32 %v4505_v16, %v4417_v50  ;;  %v4330_v56 = vpop.f32.mrf.mxu0 }
 0x746   :  { %v4331_v21 = vadd.f32 %v4330_v56, %v8861_v8 }
 0x747   :  { %v4594_v12 = vpop.f32.mrf.mxu3  ;;  %v4419_v14 = vpop.f32.mrf.mxu1 }
 0x748   :  { %v4595_v52 = vadd.f32 %v4594_v12, %v4506_v18  ;;  %v4420_v41 = vadd.f32 %v4419_v14, %v4331_v21  ;;  %5097 = vmatmul.bf16.gmra.mxu0 %v9843_v6 }
 0x749   :  { %5275 = vmatmul.bf16.gmra.mxu2 %v9845_v40 }
 0x74a   :  { %v4703_v10 = vmax.f32 %v4595_v52, 0.0  ;;  %5186 = vmatmul.bf16.gmra.mxu1 %v9844_v19 }
 0x74c   :  { %5364 = vmatmul.bf16.gmra.mxu3 %v8971_v35  ;;  %v9027_v42 = vpack.c.bf16 %v4703_v10, %v4699_v13  ;;  %v4508_v59 = vpop.f32.mrf.mxu2  ;;  %v9849_v10 = vld [vmem:[#allocation126_spill] sm:$0xff] }
 0x74d   :  { %v4509_v51 = vadd.f32 %v4508_v59, %v4420_v41  ;;  %v4332_v28 = vpop.f32.mrf.mxu0  ;;  %v9850_v59 = vld [vmem:[#allocation148_spill] sm:$0xff] }
 0x74e   :  { %v4333_v8 = vadd.f32 %v4332_v28, %v8867_v9 }
 0x74f   :  { %v4597_v20 = vpop.f32.mrf.mxu3  ;;  %v4421_v47 = vpop.f32.mrf.mxu1 }
 0x750   :  { %v4598_v2 = vadd.f32 %v4597_v20, %v4509_v51  ;;  %v4422_v60 = vadd.f32 %v4421_v47, %v4333_v8  ;;  %v9851_v51 = vld [vmem:[#allocation77_spill] sm:$0xff] }
 0x752   :  { %v4707_v46 = vmax.f32 %v4598_v2, 0.0 }
 0x754   :  { %v4510_v25 = vpop.f32.mrf.mxu2 }
 0x755   :  { %v4511_v61 = vadd.f32 %v4510_v25, %v4422_v60  ;;  %v4335_v3 = vpop.f32.mrf.mxu0 }
 0x756   :  { %v4336_v26 = vadd.f32 %v4335_v3, %v8875_v33 }
 0x757   :  { %v4599_v48 = vpop.f32.mrf.mxu3  ;;  %v4424_v22 = vpop.f32.mrf.mxu1 }
 0x758   :  { %v4600_v45 = vadd.f32 %v4599_v48, %v4511_v61  ;;  %v4425_v35 = vadd.f32 %v4424_v22, %v4336_v26  ;;  %5102 = vmatmul.bf16.gmra.mxu0 %v9846_v15  ;;  %v9852_v15 = vld [vmem:[#allocation130_spill] sm:$0xff] }
 0x759   :  { %5280 = vmatmul.bf16.gmra.mxu2 %v9848_v1 }
 0x75a   :  { %v4711_v32 = vmax.f32 %v4600_v45, 0.0  ;;  %5191 = vmatmul.bf16.gmra.mxu1 %v9847_v54  ;;  %v9853_v54 = vld [vmem:[#allocation149_spill] sm:$0xff] }
 0x75c   :  { %5369 = vmatmul.bf16.gmra.mxu3 %v8979_v53  ;;  %v9035_v9 = vpack.c.bf16 %v4711_v32, %v4707_v46  ;;  %v4513_v34 = vpop.f32.mrf.mxu2 }
 0x75d   :  { %v4514_v23 = vadd.f32 %v4513_v34, %v4425_v35  ;;  %v4337_v50 = vpop.f32.mrf.mxu0 }
 0x75e   :  { %v4338_v33 = vadd.f32 %v4337_v50, %v8881_v57 }
 0x75f   :  { %v4602_v36 = vpop.f32.mrf.mxu3  ;;  %v4426_v16 = vpop.f32.mrf.mxu1 }
 0x760   :  { %v4603_v18 = vadd.f32 %v4602_v36, %v4514_v23  ;;  %v4427_v12 = vadd.f32 %v4426_v16, %v4338_v33 }
 0x762   :  { %v4715_v19 = vmax.f32 %v4603_v18, 0.0 }
 0x764   :  { %v4515_v56 = vpop.f32.mrf.mxu2 }
 0x765   :  { %v4516_v21 = vadd.f32 %v4515_v56, %v4427_v12  ;;  %v4340_v52 = vpop.f32.mrf.mxu0 }
 0x766   :  { %v4341_v41 = vadd.f32 %v4340_v52, %v8889_v58 }
 0x767   :  { %v4604_v14 = vpop.f32.mrf.mxu3  ;;  %v4429_v6 = vpop.f32.mrf.mxu1 }
 0x768   :  { %v4605_v13 = vadd.f32 %v4604_v14, %v4516_v21  ;;  %v4430_v53 = vadd.f32 %v4429_v6, %v4341_v41  ;;  %5107 = vmatmul.bf16.gmra.mxu0 %v9849_v10  ;;  %v9854_v41 = vld [vmem:[#allocation134_spill] sm:$0xff] }
 0x769   :  { %5285 = vmatmul.bf16.gmra.mxu2 %v9851_v51 }
 0x76a   :  { %v4719_v40 = vmax.f32 %v4605_v13, 0.0  ;;  %5196 = vmatmul.bf16.gmra.mxu1 %v9850_v59 }
 0x76c   :  { %5374 = vmatmul.bf16.gmra.mxu3 %v8987_v17  ;;  %v9043_v57 = vpack.c.bf16 %v4719_v40, %v4715_v19  ;;  %v4518_v20 = vpop.f32.mrf.mxu2 }
 0x76d   :  { %v4519_v28 = vadd.f32 %v4518_v20, %v4430_v53  ;;  %v4342_v47 = vpop.f32.mrf.mxu0  ;;  %v9855_v53 = vld [vmem:[#allocation150_spill] sm:$0xff] }
 0x76e   :  { %v4343_v58 = vadd.f32 %v4342_v47, %v8895_v11 }
 0x76f   :  { %v4607_v8 = vpop.f32.mrf.mxu3  ;;  %v4431_v2 = vpop.f32.mrf.mxu1 }
 0x770   :  { %v4608_v60 = vadd.f32 %v4607_v8, %v4519_v28  ;;  %v4432_v25 = vadd.f32 %v4431_v2, %v4343_v58 }
 0x772   :  { %v4723_v46 = vmax.f32 %v4608_v60, 0.0 }
 0x774   :  { %v4520_v61 = vpop.f32.mrf.mxu2 }
 0x775   :  { %v4521_v48 = vadd.f32 %v4520_v61, %v4432_v25  ;;  %v4345_v26 = vpop.f32.mrf.mxu0  ;;  %v9856_v61 = vld [vmem:[#allocation138_spill] sm:$0xff] }
 0x776   :  { %v4346_v22 = vadd.f32 %v4345_v26, %v8903_v29  ;;  %v9857_v26 = vld [vmem:[#allocation151_spill] sm:$0xff] }
 0x777   :  { %v4609_v3 = vpop.f32.mrf.mxu3  ;;  %v4434_v45 = vpop.f32.mrf.mxu1 }
 0x778   :  { %v4610_v35 = vadd.f32 %v4609_v3, %v4521_v48  ;;  %v4435_v17 = vadd.f32 %v4434_v45, %v4346_v22  ;;  %5112 = vmatmul.bf16.gmra.mxu0 %v9852_v15 }
 0x779   :  { %5290 = vmatmul.bf16.gmra.mxu2 %v8793_v0 }
 0x77a   :  { %v4727_v32 = vmax.f32 %v4610_v35, 0.0  ;;  %5201 = vmatmul.bf16.gmra.mxu1 %v9853_v54 }
 0x77c   :  { %5379 = vmatmul.bf16.gmra.mxu3 %v8995_v24  ;;  %v9051_v11 = vpack.c.bf16 %v4727_v32, %v4723_v46  ;;  %v4523_v1 = vpop.f32.mrf.mxu2 }
 0x77d   :  { %v4524_v34 = vadd.f32 %v4523_v1, %v4435_v17  ;;  %v4347_v36 = vpop.f32.mrf.mxu0 }
 0x77e   :  { %v4348_v29 = vadd.f32 %v4347_v36, %v8909_v49 }
 0x77f   :  { %v4612_v23 = vpop.f32.mrf.mxu3  ;;  %v4436_v50 = vpop.f32.mrf.mxu1 }
 0x780   :  { %v4613_v33 = vadd.f32 %v4612_v23, %v4524_v34  ;;  %v4437_v16 = vadd.f32 %v4436_v50, %v4348_v29  ;;  %v9858_v50 = vld [vmem:[#allocation139_spill] sm:$0xff] }
 0x782   :  { %v4731_v6 = vmax.f32 %v4613_v33, 0.0 }
 0x784   :  { %v4525_v18 = vpop.f32.mrf.mxu2 }
 0x785   :  { %v4526_v12 = vadd.f32 %v4525_v18, %v4437_v16  ;;  %v4350_v21 = vpop.f32.mrf.mxu0  ;;  %v9859_v18 = vld [vmem:[#allocation152_spill] sm:$0xff] }
 0x786   :  { %v4351_v14 = vadd.f32 %v4350_v21, %v8917_v63 }
 0x787   :  { %v4614_v56 = vpop.f32.mrf.mxu3  ;;  %v4439_v0 = vpop.f32.mrf.mxu1 }
 0x788   :  { %v4615_v52 = vadd.f32 %v4614_v56, %v4526_v12  ;;  %v4440_v24 = vadd.f32 %v4439_v0, %v4351_v14  ;;  %5117 = vmatmul.bf16.gmra.mxu0 %v9854_v41  ;;  %v9081_v41 = vld [vmem:[%s9156_s4] ss:$0 sm:$0xff]  ;;  %s7487_s4 = smov [#allocation10]  }
 0x789   :  { %5295 = vmatmul.bf16.gmra.mxu2 %v8807_v38  ;;  %s5476_s17 = sshll.u32 %s7487_s4, 4  ;;  %s5477_s17 = int_to_ptr.vmem [resolvable:$true] %s5476_s17 }
 0x78a   :  { %v4735_v13 = vmax.f32 %v4615_v52, 0.0  ;;  %5206 = vmatmul.bf16.gmra.mxu1 %v9855_v53 }
 0x78c   :  { %5384 = vmatmul.bf16.gmra.mxu3 %v9003_v55  ;;  %v9059_v49 = vpack.c.bf16 %v4735_v13, %v4731_v6  ;;  %v4528_v10 = vpop.f32.mrf.mxu2 }
 0x78d   :  { %v4529_v19 = vadd.f32 %v4528_v10, %v4440_v24  ;;  %v4352_v59 = vpop.f32.mrf.mxu0 }
 0x78e   :  { %v4353_v63 = vadd.f32 %v4352_v59, %v8923_v44 }
 0x78f   :  { %v4617_v40 = vpop.f32.mrf.mxu3  ;;  %v4441_v51 = vpop.f32.mrf.mxu1 }
 0x790   :  { %v4618_v20 = vadd.f32 %v4617_v40, %v4529_v19  ;;  %v4442_v28 = vadd.f32 %v4441_v51, %v4353_v63  ;;  %v9860_v40 = vld [vmem:[#allocation140_spill] sm:$0xff]  ;;  %v9861_v63 = vld [vmem:[#allocation17_spill] sm:$0xff] }
 0x792   :  { %v4739_v48 = vmax.f32 %v4618_v20, 0.0 }
 0x794   :  { %v4530_v8 = vpop.f32.mrf.mxu2 }
 0x795   :  { %v4531_v47 = vadd.f32 %v4530_v8, %v4442_v28  ;;  %v4355_v2 = vpop.f32.mrf.mxu0 }
 0x796   :  { %v4356_v60 = vadd.f32 %v4355_v2, %v8931_v4 }
 0x797   :  { %v4619_v58 = vpop.f32.mrf.mxu3  ;;  %v4444_v38 = vpop.f32.mrf.mxu1 }
 0x798   :  { %v4620_v25 = vadd.f32 %v4619_v58, %v4531_v47  ;;  %v4445_v55 = vadd.f32 %v4444_v38, %v4356_v60  ;;  %5122 = vmatmul.bf16.gmra.mxu0 %v9856_v61 }
 0x799   :  { %5300 = vmatmul.bf16.gmra.mxu2 %v8821_v30 }
 0x79a   :  { %v4743_v3 = vmax.f32 %v4620_v25, 0.0  ;;  %5211 = vmatmul.bf16.gmra.mxu1 %v9857_v26 }
 0x79c   :  { %5389 = vmatmul.bf16.gmra.mxu3 %v9011_v27  ;;  %v9067_v44 = vpack.c.bf16 %v4743_v3, %v4739_v48  ;;  %v4533_v22 = vpop.f32.mrf.mxu2 }
 0x79d   :  { %v4534_v45 = vadd.f32 %v4533_v22, %v4445_v55  ;;  %v4357_v17 = vpop.f32.mrf.mxu0  ;;  %v9862_v22 = vld [vmem:[#allocation141_spill] sm:$0xff] }
 0x79e   :  { %v4358_v4 = vadd.f32 %v4357_v17, %v8937_v5 }
 0x79f   :  { %v4622_v35 = vpop.f32.mrf.mxu3  ;;  %v4446_v15 = vpop.f32.mrf.mxu1 }
 0x7a0   :  { %v4623_v46 = vadd.f32 %v4622_v35, %v4534_v45  ;;  %v4447_v32 = vadd.f32 %v4446_v15, %v4358_v4  ;;  %v9863_v45 = vld [vmem:[#allocation21_spill] sm:$0xff] }
 0x7a2   :  { %v4747_v33 = vmax.f32 %v4623_v46, 0.0 }
 0x7a4   :  { %v4535_v54 = vpop.f32.mrf.mxu2 }
 0x7a5   :  { %v4536_v1 = vadd.f32 %v4535_v54, %v4447_v32  ;;  %v4360_v23 = vpop.f32.mrf.mxu0 }
 0x7a6   :  { %v4361_v36 = vadd.f32 %v4360_v23, %v8945_v39 }
 0x7a7   :  { %v4624_v34 = vpop.f32.mrf.mxu3  ;;  %v4449_v30 = vpop.f32.mrf.mxu1 }
 0x7a8   :  { %v4625_v29 = vadd.f32 %v4624_v34, %v4536_v1  ;;  %v4450_v27 = vadd.f32 %v4449_v30, %v4361_v36  ;;  %5127 = vmatmul.bf16.gmra.mxu0 %v9858_v50 }
 0x7a9   :  { %5305 = vmatmul.bf16.gmra.mxu2 %v8835_v37 }
 0x7aa   :  { %v4751_v16 = vmax.f32 %v4625_v29, 0.0  ;;  %5216 = vmatmul.bf16.gmra.mxu1 %v9859_v18 }
 0x7ac   :  { %5394 = vmatmul.bf16.gmra.mxu3 %v9019_v43  ;;  %v9075_v5 = vpack.c.bf16 %v4751_v16, %v4747_v33  ;;  %v4538_v12 = vpop.f32.mrf.mxu2  ;;  %v9865_v33 = vld [vmem:[#allocation25_spill] sm:$0xff] }
 0x7ad   :  { %v4539_v56 = vadd.f32 %v4538_v12, %v4450_v27  ;;  %v4362_v14 = vpop.f32.mrf.mxu0  ;;  %v9866_v16 = vld [vmem:[#allocation81_spill] sm:$0xff] }
 0x7ae   :  { %v4363_v39 = vadd.f32 %v4362_v14, %v8951_v31 }
 0x7af   :  { %v4627_v21 = vpop.f32.mrf.mxu3  ;;  %v4451_v0 = vpop.f32.mrf.mxu1 }
 0x7b0   :  { %v4628_v52 = vadd.f32 %v4627_v21, %v4539_v56  ;;  %v4452_v24 = vadd.f32 %v4451_v0, %v4363_v39 }
 0x7b2   :  { %v4755_v59 = vmax.f32 %v4628_v52, 0.0 }
 0x7b4   :  { %v4540_v6 = vpop.f32.mrf.mxu2 }
 0x7b5   :  { %v4541_v37 = vadd.f32 %v4540_v6, %v4452_v24  ;;  %v5093_v43 = vpop.f32.mrf.mxu0 }
 0x7b6   :  { %v5094_v19 = vadd.f32 %v9081_v41, %v5093_v43 }
 0x7b7   :  { %v4629_v13 = vpop.f32.mrf.mxu3  ;;  %v5182_v53 = vpop.f32.mrf.mxu1 }
 0x7b8   :  { %v4630_v10 = vadd.f32 %v4629_v13, %v4541_v37  ;;  %5132 = vmatmul.bf16.gmra.mxu0 %v9860_v40  ;;  %v5183_v51 = vadd.f32 %v5182_v53, %v5094_v19  ;;  %v9868_v40 = vld [vmem:[#allocation29_spill] sm:$0xff] }
 0x7b9   :  { %5310 = vmatmul.bf16.gmra.mxu2 %v8849_v62 }
 0x7ba   :  { %v4759_v31 = vmax.f32 %v4630_v10, 0.0  ;;  %5221 = vmatmul.bf16.gmra.mxu1 %v9861_v63 }
 0x7bc   :  { %5399 = vmatmul.bf16.gmra.mxu3 %v9027_v42  ;;  %v9088_v20 = vpack.c.bf16 %v4759_v31, %v4755_v59  ;;  %v5271_v28 = vpop.f32.mrf.mxu2  ;;  %v9869_v59 = vld [vmem:[#allocation15_spill] sm:$0xff] }
 0x7bd   :  { %v5272_v8 = vadd.f32 %v5271_v28, %v5183_v51  ;;  %v5095_v58 = vpop.f32.mrf.mxu0 }
 0x7be   :  { %v5096_v38 = vadd.f32 %v9081_v41, %v5095_v58 }
 0x7bf   :  { %v5360_v47 = vpop.f32.mrf.mxu3  ;;  %v5184_v2 = vpop.f32.mrf.mxu1 }
 0x7c0   :  { %v5361_v60 = vadd.f32 %v5360_v47, %v5272_v8  ;;  %v5185_v25 = vadd.f32 %v5184_v2, %v5096_v38 }
 0x7c2   :  { %5440 = vst [vmem:[#allocation10] sm:$0xff] %v5361_v60 }
 0x7c4   :  { %v5273_v55 = vpop.f32.mrf.mxu2 }
 0x7c5   :  { %v5274_v61 = vadd.f32 %v5273_v55, %v5185_v25  ;;  %v5098_v3 = vpop.f32.mrf.mxu0 }
 0x7c6   :  { %v5099_v42 = vadd.f32 %v9081_v41, %v5098_v3 }
 0x7c7   :  { %v5362_v48 = vpop.f32.mrf.mxu3  ;;  %v5187_v62 = vpop.f32.mrf.mxu1 }
 0x7c8   :  { %v5363_v26 = vadd.f32 %v5362_v48, %v5274_v61  ;;  %5137 = vmatmul.bf16.gmra.mxu0 %v9862_v22  ;;  %v5188_v35 = vadd.f32 %v5187_v62, %v5099_v42  ;;  %v9872_v42 = vld [vmem:[#allocation16_spill] sm:$0xff] }
 0x7c9   :  { %5315 = vmatmul.bf16.gmra.mxu2 %v8863_v7 }
 0x7ca   :  { %5441 = vst [vmem:[#allocation10 + $0x8] sm:$0xff] %v5363_v26  ;;  %5226 = vmatmul.bf16.gmra.mxu1 %v9863_v45  ;;  %v9871_v26 = vld [vmem:[#allocation33_spill] sm:$0xff] }
 0x7cc   :  { %5404 = vmatmul.bf16.gmra.mxu3 %v9035_v9  ;;  %v5276_v17 = vpop.f32.mrf.mxu2  ;;  %v9864_v9 = vld [vmem:[#allocation91_spill] sm:$0xff] }
 0x7cd   :  { %v5277_v4 = vadd.f32 %v5276_v17, %v5188_v35  ;;  %v5100_v46 = vpop.f32.mrf.mxu0 }
 0x7ce   :  { %v5101_v1 = vadd.f32 %v9081_v41, %v5100_v46 }
 0x7cf   :  { %v5365_v15 = vpop.f32.mrf.mxu3  ;;  %v5189_v32 = vpop.f32.mrf.mxu1 }
 0x7d0   :  { %v5366_v54 = vadd.f32 %v5365_v15, %v5277_v4  ;;  %v5190_v34 = vadd.f32 %v5189_v32, %v5101_v1 }
 0x7d2   :  { %5442 = vst [vmem:[#allocation10 + $0x10] sm:$0xff] %v5366_v54 }
 0x7d4   :  { %v5278_v23 = vpop.f32.mrf.mxu2 }
 0x7d5   :  { %v5279_v36 = vadd.f32 %v5278_v23, %v5190_v34  ;;  %v5103_v29 = vpop.f32.mrf.mxu0 }
 0x7d6   :  { %v5104_v7 = vadd.f32 %v9081_v41, %v5103_v29 }
 0x7d7   :  { %v5367_v30 = vpop.f32.mrf.mxu3  ;;  %v5192_v27 = vpop.f32.mrf.mxu1 }
 0x7d8   :  { %v5368_v50 = vadd.f32 %v5367_v30, %v5279_v36  ;;  %5142 = vmatmul.bf16.gmra.mxu0 %v9864_v9  ;;  %v5193_v18 = vadd.f32 %v5192_v27, %v5104_v7  ;;  %v9875_v7 = vld [vmem:[#allocation84_spill] sm:$0xff] }
 0x7d9   :  { %5320 = vmatmul.bf16.gmra.mxu2 %v9866_v16 }
 0x7da   :  { %5443 = vst [vmem:[#allocation10 + $0x18] sm:$0xff] %v5368_v50  ;;  %5231 = vmatmul.bf16.gmra.mxu1 %v9865_v33  ;;  %v9874_v50 = vld [vmem:[#allocation37_spill] sm:$0xff] }
 0x7dc   :  { %5409 = vmatmul.bf16.gmra.mxu3 %v9043_v57  ;;  %v5281_v12 = vpop.f32.mrf.mxu2  ;;  %v9867_v57 = vld [vmem:[#allocation95_spill] sm:$0xff] }
 0x7dd   :  { %v5282_v56 = vadd.f32 %v5281_v12, %v5193_v18  ;;  %v5105_v14 = vpop.f32.mrf.mxu0 }
 0x7de   :  { %v5106_v52 = vadd.f32 %v9081_v41, %v5105_v14 }
 0x7df   :  { %v5370_v21 = vpop.f32.mrf.mxu3  ;;  %v5194_v39 = vpop.f32.mrf.mxu1 }
 0x7e0   :  { %v5371_v0 = vadd.f32 %v5370_v21, %v5282_v56  ;;  %v5195_v24 = vadd.f32 %v5194_v39, %v5106_v52 }
 0x7e2   :  { %5444 = vst [vmem:[#allocation10 + $0x20] sm:$0xff] %v5371_v0 }
 0x7e4   :  { %v5283_v6 = vpop.f32.mrf.mxu2 }
 0x7e5   :  { %v5284_v37 = vadd.f32 %v5283_v6, %v5195_v24  ;;  %v5108_v43 = vpop.f32.mrf.mxu0 }
 0x7e6   :  { %v5109_v19 = vadd.f32 %v9081_v41, %v5108_v43 }
 0x7e7   :  { %v5372_v13 = vpop.f32.mrf.mxu3  ;;  %v5197_v53 = vpop.f32.mrf.mxu1 }
 0x7e8   :  { %v5373_v10 = vadd.f32 %v5372_v13, %v5284_v37  ;;  %5147 = vmatmul.bf16.gmra.mxu0 %v9867_v57  ;;  %v5198_v31 = vadd.f32 %v5197_v53, %v5109_v19  ;;  %v9877_v53 = vld [vmem:[#allocation153_spill] sm:$0xff] }
 0x7e9   :  { %5325 = vmatmul.bf16.gmra.mxu2 %v9869_v59 }
 0x7ea   :  { %5445 = vst [vmem:[#allocation10 + $0x28] sm:$0xff] %v5373_v10  ;;  %5236 = vmatmul.bf16.gmra.mxu1 %v9868_v40  ;;  %v9878_v10 = vld [vmem:[#allocation19_spill] sm:$0xff] }
 0x7ec   :  { %5414 = vmatmul.bf16.gmra.mxu3 %v9051_v11  ;;  %v5286_v63 = vpop.f32.mrf.mxu2  ;;  %v9870_v11 = vld [vmem:[#allocation99_spill] sm:$0xff] }
 0x7ed   :  { %v5287_v51 = vadd.f32 %v5286_v63, %v5198_v31  ;;  %v5110_v8 = vpop.f32.mrf.mxu0 }
 0x7ee   :  { %v5111_v2 = vadd.f32 %v9081_v41, %v5110_v8 }
 0x7ef   :  { %v5375_v28 = vpop.f32.mrf.mxu3  ;;  %v5199_v47 = vpop.f32.mrf.mxu1 }
 0x7f0   :  { %v5376_v58 = vadd.f32 %v5375_v28, %v5287_v51  ;;  %v5200_v60 = vadd.f32 %v5199_v47, %v5111_v2 }
 0x7f2   :  { %5446 = vst [vmem:[#allocation10 + $0x30] sm:$0xff] %v5376_v58 }
 0x7f4   :  { %v5288_v38 = vpop.f32.mrf.mxu2 }
 0x7f5   :  { %v5289_v25 = vadd.f32 %v5288_v38, %v5200_v60  ;;  %v5113_v61 = vpop.f32.mrf.mxu0 }
 0x7f6   :  { %v5114_v62 = vadd.f32 %v9081_v41, %v5113_v61  ;;  %v9880_v61 = vld [vmem:[#allocation45_spill] sm:$0xff] }
 0x7f7   :  { %v5377_v55 = vpop.f32.mrf.mxu3  ;;  %v5202_v48 = vpop.f32.mrf.mxu1 }
 0x7f8   :  { %v5378_v3 = vadd.f32 %v5377_v55, %v5289_v25  ;;  %5152 = vmatmul.bf16.gmra.mxu0 %v9870_v11  ;;  %v5203_v22 = vadd.f32 %v5202_v48, %v5114_v62  ;;  %v9881_v48 = vld [vmem:[#allocation20_spill] sm:$0xff] }
 0x7f9   :  { %5330 = vmatmul.bf16.gmra.mxu2 %v9872_v42 }
 0x7fa   :  { %5447 = vst [vmem:[#allocation10 + $0x38] sm:$0xff] %v5378_v3  ;;  %5241 = vmatmul.bf16.gmra.mxu1 %v9871_v26 }
 0x7fc   :  { %5419 = vmatmul.bf16.gmra.mxu3 %v9059_v49  ;;  %v5291_v45 = vpop.f32.mrf.mxu2  ;;  %v9873_v49 = vld [vmem:[#allocation142_spill] sm:$0xff] }
 0x7fd   :  { %v5292_v35 = vadd.f32 %v5291_v45, %v5203_v22  ;;  %v5115_v4 = vpop.f32.mrf.mxu0 }
 0x7fe   :  { %v5116_v32 = vadd.f32 %v9081_v41, %v5115_v4 }
 0x7ff   :  { %v5380_v17 = vpop.f32.mrf.mxu3  ;;  %v5204_v15 = vpop.f32.mrf.mxu1 }
 0x800   :  { %v5381_v46 = vadd.f32 %v5380_v17, %v5292_v35  ;;  %v5205_v54 = vadd.f32 %v5204_v15, %v5116_v32 }
 0x802   :  { %5448 = vst [vmem:[#allocation10 + $0x40] sm:$0xff] %v5381_v46 }
 0x804   :  { %v5293_v1 = vpop.f32.mrf.mxu2 }
 0x805   :  { %v5294_v34 = vadd.f32 %v5293_v1, %v5205_v54  ;;  %v5118_v36 = vpop.f32.mrf.mxu0 }
 0x806   :  { %v5119_v27 = vadd.f32 %v9081_v41, %v5118_v36 }
 0x807   :  { %v5382_v23 = vpop.f32.mrf.mxu3  ;;  %v5207_v30 = vpop.f32.mrf.mxu1 }
 0x808   :  { %v5383_v29 = vadd.f32 %v5382_v23, %v5294_v34  ;;  %5157 = vmatmul.bf16.gmra.mxu0 %v9873_v49  ;;  %v5208_v9 = vadd.f32 %v5207_v30, %v5119_v27 }
 0x809   :  { %5335 = vmatmul.bf16.gmra.mxu2 %v9875_v7 }
 0x80a   :  { %5449 = vst [vmem:[#allocation10 + $0x48] sm:$0xff] %v5383_v29  ;;  %5246 = vmatmul.bf16.gmra.mxu1 %v9874_v50 }
 0x80c   :  { %5424 = vmatmul.bf16.gmra.mxu3 %v9067_v44  ;;  %v5296_v33 = vpop.f32.mrf.mxu2  ;;  %v9876_v44 = vld [vmem:[#allocation143_spill] sm:$0xff] }
 0x80d   :  { %v5297_v16 = vadd.f32 %v5296_v33, %v5208_v9  ;;  %v5120_v12 = vpop.f32.mrf.mxu0 }
 0x80e   :  { %v5121_v14 = vadd.f32 %v9081_v41, %v5120_v12 }
 0x80f   :  { %v5385_v18 = vpop.f32.mrf.mxu3  ;;  %v5209_v56 = vpop.f32.mrf.mxu1 }
 0x810   :  { %v5386_v21 = vadd.f32 %v5385_v18, %v5297_v16  ;;  %v5210_v39 = vadd.f32 %v5209_v56, %v5121_v14 }
 0x812   :  { %5450 = vst [vmem:[#allocation10 + $0x50] sm:$0xff] %v5386_v21 }
 0x814   :  { %v5298_v0 = vpop.f32.mrf.mxu2 }
 0x815   :  { %v5299_v52 = vadd.f32 %v5298_v0, %v5210_v39  ;;  %v5123_v6 = vpop.f32.mrf.mxu0 }
 0x816   :  { %v5124_v43 = vadd.f32 %v9081_v41, %v5123_v6 }
 0x817   :  { %v5387_v24 = vpop.f32.mrf.mxu3  ;;  %v5212_v37 = vpop.f32.mrf.mxu1 }
 0x818   :  { %v5388_v13 = vadd.f32 %v5387_v24, %v5299_v52  ;;  %5162 = vmatmul.bf16.gmra.mxu0 %v9876_v44  ;;  %v5213_v19 = vadd.f32 %v5212_v37, %v5124_v43 }
 0x819   :  { %5340 = vmatmul.bf16.gmra.mxu2 %v9878_v10 }
 0x81a   :  { %5451 = vst [vmem:[#allocation10 + $0x58] sm:$0xff] %v5388_v13  ;;  %5251 = vmatmul.bf16.gmra.mxu1 %v9877_v53 }
 0x81c   :  { %5429 = vmatmul.bf16.gmra.mxu3 %v9075_v5  ;;  %v5301_v57 = vpop.f32.mrf.mxu2  ;;  %v9879_v5 = vld [vmem:[#allocation145_spill] sm:$0xff] }
 0x81d   :  { %v5302_v40 = vadd.f32 %v5301_v57, %v5213_v19  ;;  %v5125_v31 = vpop.f32.mrf.mxu0 }
 0x81e   :  { %v5126_v28 = vadd.f32 %v9081_v41, %v5125_v31 }
 0x81f   :  { %v5390_v59 = vpop.f32.mrf.mxu3  ;;  %v5214_v63 = vpop.f32.mrf.mxu1 }
 0x820   :  { %v5391_v51 = vadd.f32 %v5390_v59, %v5302_v40  ;;  %v5215_v8 = vadd.f32 %v5214_v63, %v5126_v28 }
 0x822   :  { %5452 = vst [vmem:[#allocation10 + $0x60] sm:$0xff] %v5391_v51 }
 0x824   :  { %v5303_v47 = vpop.f32.mrf.mxu2 }
 0x825   :  { %v5304_v58 = vadd.f32 %v5303_v47, %v5215_v8  ;;  %v5128_v60 = vpop.f32.mrf.mxu0 }
 0x826   :  { %v5129_v55 = vadd.f32 %v9081_v41, %v5128_v60 }
 0x827   :  { %v5392_v2 = vpop.f32.mrf.mxu3  ;;  %v5217_v38 = vpop.f32.mrf.mxu1 }
 0x828   :  { %v5393_v25 = vadd.f32 %v5392_v2, %v5304_v58  ;;  %5167 = vmatmul.bf16.gmra.mxu0 %v9879_v5  ;;  %v5218_v3 = vadd.f32 %v5217_v38, %v5129_v55 }
 0x829   :  { %5345 = vmatmul.bf16.gmra.mxu2 %v9881_v48 }
 0x82a   :  { %5453 = vst [vmem:[#allocation10 + $0x68] sm:$0xff] %v5393_v25  ;;  %5256 = vmatmul.bf16.gmra.mxu1 %v9880_v61 }
 0x82c   :  { %5434 = vmatmul.bf16.gmra.mxu3 %v9088_v20  ;;  %v5306_v62 = vpop.f32.mrf.mxu2 }
 0x82d   :  { %v5307_v11 = vadd.f32 %v5306_v62, %v5218_v3  ;;  %v5130_v42 = vpop.f32.mrf.mxu0 }
 0x82e   :  { %v5131_v35 = vadd.f32 %v9081_v41, %v5130_v42 }
 0x82f   :  { %v5395_v26 = vpop.f32.mrf.mxu3  ;;  %v5219_v22 = vpop.f32.mrf.mxu1 }
 0x830   :  { %v5396_v45 = vadd.f32 %v5395_v26, %v5307_v11  ;;  %v5220_v17 = vadd.f32 %v5219_v22, %v5131_v35 }
 0x832   :  { %5454 = vst [vmem:[#allocation10 + $0x70] sm:$0xff] %v5396_v45 }
 0x834   :  { %v5308_v4 = vpop.f32.mrf.mxu2 }
 0x835   :  { %v5309_v15 = vadd.f32 %v5308_v4, %v5220_v17  ;;  %v5133_v32 = vpop.f32.mrf.mxu0 }
 0x836   :  { %v5134_v34 = vadd.f32 %v9081_v41, %v5133_v32 }
 0x837   :  { %v5397_v46 = vpop.f32.mrf.mxu3  ;;  %v5222_v54 = vpop.f32.mrf.mxu1 }
 0x838   :  { %v5398_v1 = vadd.f32 %v5397_v46, %v5309_v15  ;;  %v5223_v20 = vadd.f32 %v5222_v54, %v5134_v34 }
 0x83a   :  { %5455 = vst [vmem:[#allocation10 + $0x78] sm:$0xff] %v5398_v1 }
 0x83c   :  { %v5311_v23 = vpop.f32.mrf.mxu2 }
 0x83d   :  { %v5312_v36 = vadd.f32 %v5311_v23, %v5223_v20  ;;  %v5135_v29 = vpop.f32.mrf.mxu0 }
 0x83e   :  { %v5136_v50 = vadd.f32 %v9081_v41, %v5135_v29 }
 0x83f   :  { %v5400_v30 = vpop.f32.mrf.mxu3  ;;  %v5224_v27 = vpop.f32.mrf.mxu1 }
 0x840   :  { %v5401_v49 = vadd.f32 %v5400_v30, %v5312_v36  ;;  %v5225_v7 = vadd.f32 %v5224_v27, %v5136_v50 }
 0x842   :  { %5456 = vst [vmem:[#allocation10 + $0x80] sm:$0xff] %v5401_v49 }
 0x844   :  { %v5313_v9 = vpop.f32.mrf.mxu2 }
 0x845   :  { %v5314_v33 = vadd.f32 %v5313_v9, %v5225_v7  ;;  %v5138_v18 = vpop.f32.mrf.mxu0 }
 0x846   :  { %v5139_v21 = vadd.f32 %v9081_v41, %v5138_v18 }
 0x847   :  { %v5402_v16 = vpop.f32.mrf.mxu3  ;;  %v5227_v12 = vpop.f32.mrf.mxu1 }
 0x848   :  { %v5403_v56 = vadd.f32 %v5402_v16, %v5314_v33  ;;  %v5228_v14 = vadd.f32 %v5227_v12, %v5139_v21 }
 0x84a   :  { %5457 = vst [vmem:[#allocation10 + $0x88] sm:$0xff] %v5403_v56 }
 0x84c   :  { %v5316_v39 = vpop.f32.mrf.mxu2 }
 0x84d   :  { %v5317_v0 = vadd.f32 %v5316_v39, %v5228_v14  ;;  %v5140_v24 = vpop.f32.mrf.mxu0 }
 0x84e   :  { %v5141_v13 = vadd.f32 %v9081_v41, %v5140_v24 }
 0x84f   :  { %v5405_v52 = vpop.f32.mrf.mxu3  ;;  %v5229_v6 = vpop.f32.mrf.mxu1 }
 0x850   :  { %v5406_v37 = vadd.f32 %v5405_v52, %v5317_v0  ;;  %v5230_v43 = vadd.f32 %v5229_v6, %v5141_v13 }
 0x852   :  { %5458 = vst [vmem:[#allocation10 + $0x90] sm:$0xff] %v5406_v37 }
 0x854   :  { %v5318_v44 = vpop.f32.mrf.mxu2 }
 0x855   :  { %v5319_v53 = vadd.f32 %v5318_v44, %v5230_v43  ;;  %v5143_v19 = vpop.f32.mrf.mxu0 }
 0x856   :  { %v5144_v59 = vadd.f32 %v9081_v41, %v5143_v19 }
 0x857   :  { %v5407_v10 = vpop.f32.mrf.mxu3  ;;  %v5232_v57 = vpop.f32.mrf.mxu1 }
 0x858   :  { %v5408_v40 = vadd.f32 %v5407_v10, %v5319_v53  ;;  %v5233_v31 = vadd.f32 %v5232_v57, %v5144_v59 }
 0x85a   :  { %5459 = vst [vmem:[#allocation10 + $0x98] sm:$0xff] %v5408_v40 }
 0x85c   :  { %v5321_v63 = vpop.f32.mrf.mxu2 }
 0x85d   :  { %v5322_v51 = vadd.f32 %v5321_v63, %v5233_v31  ;;  %v5145_v8 = vpop.f32.mrf.mxu0 }
 0x85e   :  { %v5146_v2 = vadd.f32 %v9081_v41, %v5145_v8 }
 0x85f   :  { %v5410_v28 = vpop.f32.mrf.mxu3  ;;  %v5234_v47 = vpop.f32.mrf.mxu1 }
 0x860   :  { %v5411_v58 = vadd.f32 %v5410_v28, %v5322_v51  ;;  %v5235_v60 = vadd.f32 %v5234_v47, %v5146_v2 }
 0x862   :  { %5460 = vst [vmem:[#allocation10 + $0xa0] sm:$0xff] %v5411_v58 }
 0x864   :  { %v5323_v38 = vpop.f32.mrf.mxu2 }
 0x865   :  { %v5324_v25 = vadd.f32 %v5323_v38, %v5235_v60  ;;  %v5148_v5 = vpop.f32.mrf.mxu0 }
 0x866   :  { %v5149_v3 = vadd.f32 %v9081_v41, %v5148_v5 }
 0x867   :  { %v5412_v55 = vpop.f32.mrf.mxu3  ;;  %v5237_v61 = vpop.f32.mrf.mxu1 }
 0x868   :  { %v5413_v48 = vadd.f32 %v5412_v55, %v5324_v25  ;;  %v5238_v62 = vadd.f32 %v5237_v61, %v5149_v3 }
 0x86a   :  { %5461 = vst [vmem:[#allocation10 + $0xa8] sm:$0xff] %v5413_v48 }
 0x86c   :  { %v5326_v11 = vpop.f32.mrf.mxu2 }
 0x86d   :  { %v5327_v26 = vadd.f32 %v5326_v11, %v5238_v62  ;;  %v5150_v22 = vpop.f32.mrf.mxu0 }
 0x86e   :  { %v5151_v17 = vadd.f32 %v9081_v41, %v5150_v22 }
 0x86f   :  { %v5415_v42 = vpop.f32.mrf.mxu3  ;;  %v5239_v45 = vpop.f32.mrf.mxu1 }
 0x870   :  { %v5416_v35 = vadd.f32 %v5415_v42, %v5327_v26  ;;  %v5240_v4 = vadd.f32 %v5239_v45, %v5151_v17 }
 0x872   :  { %5462 = vst [vmem:[#allocation10 + $0xb0] sm:$0xff] %v5416_v35 }
 0x874   :  { %v5328_v15 = vpop.f32.mrf.mxu2 }
 0x875   :  { %v5329_v46 = vadd.f32 %v5328_v15, %v5240_v4  ;;  %v5153_v54 = vpop.f32.mrf.mxu0 }
 0x876   :  { %v5154_v20 = vadd.f32 %v9081_v41, %v5153_v54 }
 0x877   :  { %v5417_v32 = vpop.f32.mrf.mxu3  ;;  %v5242_v1 = vpop.f32.mrf.mxu1 }
 0x878   :  { %v5418_v34 = vadd.f32 %v5417_v32, %v5329_v46  ;;  %v5243_v23 = vadd.f32 %v5242_v1, %v5154_v20 }
 0x87a   :  { %5463 = vst [vmem:[#allocation10 + $0xb8] sm:$0xff] %v5418_v34 }
 0x87c   :  { %v5331_v36 = vpop.f32.mrf.mxu2 }
 0x87d   :  { %v5332_v30 = vadd.f32 %v5331_v36, %v5243_v23  ;;  %v5155_v27 = vpop.f32.mrf.mxu0 }
 0x87e   :  { %v5156_v7 = vadd.f32 %v9081_v41, %v5155_v27 }
 0x87f   :  { %v5420_v29 = vpop.f32.mrf.mxu3  ;;  %v5244_v49 = vpop.f32.mrf.mxu1 }
 0x880   :  { %v5421_v50 = vadd.f32 %v5420_v29, %v5332_v30  ;;  %v5245_v9 = vadd.f32 %v5244_v49, %v5156_v7 }
 0x882   :  { %5464 = vst [vmem:[#allocation10 + $0xc0] sm:$0xff] %v5421_v50 }
 0x884   :  { %v5333_v33 = vpop.f32.mrf.mxu2 }
 0x885   :  { %v5334_v16 = vadd.f32 %v5333_v33, %v5245_v9  ;;  %v5158_v12 = vpop.f32.mrf.mxu0 }
 0x886   :  { %v5159_v14 = vadd.f32 %v9081_v41, %v5158_v12 }
 0x887   :  { %v5422_v18 = vpop.f32.mrf.mxu3  ;;  %v5247_v56 = vpop.f32.mrf.mxu1 }
 0x888   :  { %v5423_v21 = vadd.f32 %v5422_v18, %v5334_v16  ;;  %v5248_v39 = vadd.f32 %v5247_v56, %v5159_v14 }
 0x88a   :  { %5465 = vst [vmem:[#allocation10 + $0xc8] sm:$0xff] %v5423_v21 }
 0x88c   :  { %v5336_v0 = vpop.f32.mrf.mxu2 }
 0x88d   :  { %v5337_v52 = vadd.f32 %v5336_v0, %v5248_v39  ;;  %v5160_v6 = vpop.f32.mrf.mxu0 }
 0x88e   :  { %v5161_v43 = vadd.f32 %v9081_v41, %v5160_v6 }
 0x88f   :  { %v5425_v24 = vpop.f32.mrf.mxu3  ;;  %v5249_v37 = vpop.f32.mrf.mxu1 }
 0x890   :  { %v5426_v13 = vadd.f32 %v5425_v24, %v5337_v52  ;;  %v5250_v44 = vadd.f32 %v5249_v37, %v5161_v43 }
 0x892   :  { %5466 = vst [vmem:[#allocation10 + $0xd0] sm:$0xff] %v5426_v13 }
 0x894   :  { %v5338_v53 = vpop.f32.mrf.mxu2 }
 0x895   :  { %v5339_v10 = vadd.f32 %v5338_v53, %v5250_v44  ;;  %v5163_v57 = vpop.f32.mrf.mxu0 }
 0x896   :  { %v5164_v31 = vadd.f32 %v9081_v41, %v5163_v57 }
 0x897   :  { %v5427_v19 = vpop.f32.mrf.mxu3  ;;  %v5252_v40 = vpop.f32.mrf.mxu1 }
 0x898   :  { %v5428_v59 = vadd.f32 %v5427_v19, %v5339_v10  ;;  %v5253_v63 = vadd.f32 %v5252_v40, %v5164_v31 }
 0x89a   :  { %5467 = vst [vmem:[#allocation10 + $0xd8] sm:$0xff] %v5428_v59 }
 0x89c   :  { %v5341_v51 = vpop.f32.mrf.mxu2 }
 0x89d   :  { %v5342_v28 = vadd.f32 %v5341_v51, %v5253_v63  ;;  %v5165_v47 = vpop.f32.mrf.mxu0 }
 0x89e   :  { %v5166_v60 = vadd.f32 %v9081_v41, %v5165_v47 }
 0x89f   :  { %v5430_v8 = vpop.f32.mrf.mxu3  ;;  %v5254_v58 = vpop.f32.mrf.mxu1 }
 0x8a0   :  { %v5431_v2 = vadd.f32 %v5430_v8, %v5342_v28  ;;  %v5255_v38 = vadd.f32 %v5254_v58, %v5166_v60 }
 0x8a2   :  { %5468 = vst [vmem:[#allocation10 + $0xe0] sm:$0xff] %v5431_v2 }
 0x8a4   :  { %v5343_v25 = vpop.f32.mrf.mxu2 }
 0x8a5   :  { %v5344_v55 = vadd.f32 %v5343_v25, %v5255_v38  ;;  %v5168_v61 = vpop.f32.mrf.mxu0 }
 0x8a6   :  { %v5169_v3 = vadd.f32 %v9081_v41, %v5168_v61 }
 0x8a7   :  { %v5432_v5 = vpop.f32.mrf.mxu3  ;;  %v5257_v62 = vpop.f32.mrf.mxu1 }
 0x8a8   :  { %v5433_v48 = vadd.f32 %v5432_v5, %v5344_v55  ;;  %v5258_v11 = vadd.f32 %v5257_v62, %v5169_v3 }
 0x8aa   :  { %5469 = vst [vmem:[#allocation10 + $0xe8] sm:$0xff] %v5433_v48 }
 0x8ac   :  { %v5346_v26 = vpop.f32.mrf.mxu2 }
 0x8ad   :  { %v5347_v42 = vadd.f32 %v5346_v26, %v5258_v11  ;;  %v5170_v45 = vpop.f32.mrf.mxu0 }
 0x8ae   :  { %v5171_v17 = vadd.f32 %v9081_v41, %v5170_v45 }
 0x8af   :  { %v5435_v22 = vpop.f32.mrf.mxu3  ;;  %v5259_v4 = vpop.f32.mrf.mxu1 }
 0x8b0   :  { %v5436_v35 = vadd.f32 %v5435_v22, %v5347_v42  ;;  %v5260_v15 = vadd.f32 %v5259_v4, %v5171_v17 }
 0x8b2   :  { %5470 = vst [vmem:[#allocation10 + $0xf0] sm:$0xff] %v5436_v35 }
 0x8b4   :  { %v5348_v46 = vpop.f32.mrf.mxu2 }
 0x8b5   :  { %v5349_v32 = vadd.f32 %v5348_v46, %v5260_v15 }
 0x8b7   :  { %v5437_v54 = vpop.f32.mrf.mxu3 }
 0x8b8   :  { %v5438_v1 = vadd.f32 %v5437_v54, %v5349_v32 }
 0x8ba   :  { %5471 = vst [vmem:[#allocation10 + $0xf8] sm:$0xff] %v5438_v1 }
 0x8bb   :  { %5484 = dma.vmem_to_hbm [thread:$0]  %s5477_s17, 4096, %s5479_s20, [#allocation4], %s7488_s21, %s7488_s21, %s7489_s22  }
 0x8bc   :  { %7475 = dma.done.wait [#allocation4], 4096  }
 0x8bd   :  { %7476 = vsyncadd [#allocation4], 4294963200 }
 0x8be   :  { %5489 = vsyncpa [#allocation3], 1 }
 0x8bf   :  { %5490 = vsyncpa [#allocation6], 1 }
 0x8c0   :  { %5491 = vsyncpa [#allocation9], 1 }
 0x8c1   :  { %5492 = vsyncpa [#allocation4], 1 }

</bundles_post_ra>
